<compile_context>
chip_gen: v5e
topology: v5e:2x2
jax: 0.10.0
libtpu: 0.0.40
codegen_flags: <defaults>
</compile_context>

<pallas_src>
import jax
import jax.numpy as jnp
import numpy as np
from jax.experimental import pallas as pl
from jax.experimental.pallas import tpu as pltpu

BN_EPS = 1e-5


def _round_up(x, m):
    return (x + m - 1) // m * m


def _vmem_limit_bytes():
    # v5e/v6e: 128 MiB VMEM per TensorCore, v7x: 64 MiB.  Use 75% of whatever
    # is physically present, capped at 96 MiB (review guidance).  Fall back to
    # the smallest generation (64 MiB -> 48 MiB limit) if the query fails.
    try:
        cap = int(pltpu.get_tpu_info().vmem_capacity_bytes)
    except Exception:
        cap = 64 * 1024 * 1024
    return int(min(96 * 1024 * 1024, cap * 3 // 4))


# ---------------------------------------------------------------------------
# Fused kernel: 3x3 conv (9 shifted matmuls over flattened rows) + ReLU
#               + masked per-strip BN partial statistics (sum, centered M2).
# ---------------------------------------------------------------------------
def _make_conv_kernel(tm, hb, wp, cin, cpad):
    def kernel(xm_ref, xh_ref, w_ref, mask_ref, o_ref, ssum_ref, sm2_ref,
               xcat_ref):
        # xm_ref  : (tm, cin)  bf16  strip of flattened padded input rows
        # xh_ref  : (hb, cin)  bf16  halo rows immediately after the strip
        # w_ref   : (9, cin, cpad) bf16 conv weights (resident across grid)
        # mask_ref: (tm, 1)    f32   1.0 on valid extended rows, else 0.0
        # o_ref   : (tm, cpad) bf16  conv+ReLU output (pre-BN)
        # ssum_ref/sm2_ref: (1, cpad) f32 per-strip masked sum / centered M2
        # xcat_ref: (tm+hb, cin) f32 scratch holding [strip ; halo]

        # Assemble the contiguous window once; f32 scratch keeps the nine
        # sublane-shifted tap slices below as plain f32 relayouts.
        xcat_ref[:tm, :] = xm_ref[...].astype(jnp.float32)
        xcat_ref[tm:, :] = xh_ref[...].astype(jnp.float32)

        acc = jnp.zeros((tm, cpad), jnp.float32)
        for kh in range(3):
            for kw in range(3):
                t = kh * wp + kw                       # flattened tap offset
                xt = xcat_ref[t:t + tm, :].astype(jnp.bfloat16)
                acc = acc + jnp.dot(xt, w_ref[kh * 3 + kw],
                                    preferred_element_type=jnp.float32)
        acc = jnp.maximum(acc, 0.0)                    # ReLU before BatchNorm

        # bf16 store halves the dominant intermediate's HBM write/read.
        o_ref[...] = acc.astype(jnp.bfloat16)

        # Masked, centered per-strip statistics (f32, taken pre-cast).
        mv = mask_ref[...]                             # (tm, 1) in {0., 1.}
        cnt = jnp.sum(mv)
        den = jnp.maximum(cnt, 1.0)
        s = jnp.sum(acc * mv, axis=0, keepdims=True)   # (1, cpad)
        mean_t = s / den
        d = (acc - mean_t) * mv
        ssum_ref[...] = s
        sm2_ref[...] = jnp.sum(d * d, axis=0, keepdims=True)

    return kernel


# ---------------------------------------------------------------------------
# One conv_block: Conv2d(3x3, pad=1, bias=False) -> ReLU -> BatchNorm2d(train)
# ---------------------------------------------------------------------------
def conv_block_apply(x_nhwc, w_hwio, gamma, beta, *, tm_hint=1024):
    n, h, w, cin = x_nhwc.shape
    kh_sz, kw_sz, _, cout = w_hwio.shape
    assert (kh_sz, kw_sz) == (3, 3)

    wp = w + 2                        # padded row width
    m_ext = h * wp                    # "extended" output rows per image
    cpad = _round_up(cout, 128)       # lane-dense output channels
    hb = _round_up(2 * wp + 2, 8)     # halo rows a strip needs past itself

    vmem_limit = _vmem_limit_bytes()

    # Strip size over extended rows: a multiple of hb (so the halo stream tiles
    # with a plain Blocked BlockSpec), shrunk if the double-buffered blocks
    # would not comfortably fit in VMEM.
    tm = max(hb, (tm_hint // hb) * hb)
    tm = min(tm, _round_up(m_ext, hb))

    def _footprint(t):
        return (2 * t * cin * 2 + 2 * hb * cin * 2 + 2 * 9 * cin * cpad * 2
                + 2 * t * cpad * 2 + (t + hb) * cin * 4 + t * cpad * 4
                + 8 * cpad * 4)

    while tm > hb and _footprint(tm) > vmem_limit // 2:
        tm -= hb

    n_strips = (m_ext + tm - 1) // tm
    q = tm // hb                      # halo block index stride
    r_in = n_strips * tm + hb         # flattened padded input rows we expose

    # ---- wrapper layout glue (fused by XLA under jit) -----------------------
    xp = jnp.pad(x_nhwc.astype(jnp.bfloat16), ((0, 0), (1, 1), (1, 1), (0, 0)))
    xf = xp.reshape(n, (h + 2) * wp, cin)
    xf = jnp.pad(xf, ((0, 0), (0, r_in - (h + 2) * wp), (0, 0)))

    wmat = jnp.pad(w_hwio.reshape(9, cin, cout).astype(jnp.bfloat16),
                   ((0, 0), (0, 0), (0, cpad - cout)))

    # Static validity mask over extended rows: the x-part (col in the padded
    # row) must be < W and the row index must be < m_ext.
    jj = np.arange(n_strips * tm)
    valid_np = (jj < m_ext) & ((jj % wp) < w)
    maskf = jnp.asarray(valid_np, jnp.float32).reshape(n_strips * tm, 1)
    counts_np = valid_np.reshape(n_strips, tm).sum(axis=1)   # per-strip counts

    kernel = _make_conv_kernel(tm, hb, wp, cin, cpad)
    cparams = pltpu.CompilerParams(
        dimension_semantics=("parallel", "parallel"),
        vmem_limit_bytes=vmem_limit,
    )

    conv_ext, psum, pm2 = pl.pallas_call(
        kernel,
        out_shape=(
            jax.ShapeDtypeStruct((n, n_strips * tm, cpad), jnp.bfloat16),
            jax.ShapeDtypeStruct((n, n_strips, 1, cpad), jnp.float32),
            jax.ShapeDtypeStruct((n, n_strips, 1, cpad), jnp.float32),
        ),
        grid=(n, n_strips),
        in_specs=[
            pl.BlockSpec((None, tm, cin), lambda b, r: (b, r, 0)),            # strip
            pl.BlockSpec((None, hb, cin), lambda b, r: (b, (r + 1) * q, 0)),  # halo
            pl.BlockSpec((9, cin, cpad), lambda b, r: (0, 0, 0)),             # weights
            pl.BlockSpec((tm, 1), lambda b, r: (r, 0)),                       # mask
        ],
        out_specs=(
            pl.BlockSpec((None, tm, cpad), lambda b, r: (b, r, 0)),
            pl.BlockSpec((None, None, 1, cpad), lambda b, r: (b, r, 0, 0)),
            pl.BlockSpec((None, None, 1, cpad), lambda b, r: (b, r, 0, 0)),
        ),
        scratch_shapes=[pltpu.VMEM((tm + hb, cin), jnp.float32)],
        compiler_params=cparams,
    )(xf, xf, wmat, maskf)

    # ---- combine per-strip stats (Chan's parallel variance) -> scale/shift --
    m_total = float(n * h * w)
    cnt = jnp.asarray(counts_np, jnp.float32).reshape(1, n_strips, 1)
    ps = psum.reshape(n, n_strips, cpad)
    pm = pm2.reshape(n, n_strips, cpad)
    mean_i = ps / jnp.maximum(cnt, 1.0)
    mean = jnp.sum(ps, axis=(0, 1)) / m_total
    m2 = jnp.sum(pm, axis=(0, 1)) + jnp.sum(cnt * (mean_i - mean) ** 2,
                                            axis=(0, 1))
    var = jnp.maximum(m2 / m_total, 0.0)               # biased var (train fwd)

    inv_std = jax.lax.rsqrt(var[:cout] + BN_EPS)
    scale = gamma.astype(jnp.float32) * inv_std
    shift = beta.astype(jnp.float32) - mean[:cout] * scale

    # BN affine in plain jnp: XLA fuses it with the next block's pad/bf16-cast
    # (or the final slice/transpose) under jit — no standalone elementwise pass
    # re-reading the big intermediate.
    y = conv_ext[:, :m_ext, :].reshape(n, h, wp, cpad)[:, :, :w, :cout]
    return y.astype(jnp.float32) * scale + shift


def separated_block_apply(x_nchw, params):
    """Forward of separated_block. Input/output are NCHW like PyTorch."""
    x = jnp.transpose(x_nchw, (0, 2, 3, 1))            # NCHW -> NHWC
    x = conv_block_apply(x, params["w1"], params["g1"], params["b1"])
    x = conv_block_apply(x, params["w2"], params["g2"], params["b2"])
    return jnp.transpose(x, (0, 3, 1, 2))               # NHWC -> NCHW


# ---------------------------------------------------------------------------
# Pure-JAX reference (lax.conv) for correctness checking.  It mirrors the
# kernel's quantization points: conv inputs fed to the MXU in bf16 (f32
# accumulation), BN statistics from the f32 activation, and the pre-BN ReLU
# activation stored in bf16 before the affine is applied.
# ---------------------------------------------------------------------------
def _ref_block(x, w, g, b):
    y = jax.lax.conv_general_dilated(
        x.astype(jnp.bfloat16), w.astype(jnp.bfloat16),
        window_strides=(1, 1), padding=((1, 1), (1, 1)),
        dimension_numbers=("NHWC", "HWIO", "NHWC"),
        preferred_element_type=jnp.float32)
    y = jnp.maximum(y, 0.0)
    mean = jnp.mean(y, axis=(0, 1, 2))
    var = jnp.mean((y - mean) ** 2, axis=(0, 1, 2))
    inv_std = jax.lax.rsqrt(var + BN_EPS)
    scale = g.astype(jnp.float32) * inv_std
    shift = b.astype(jnp.float32) - mean * scale
    yq = y.astype(jnp.bfloat16).astype(jnp.float32)     # bf16 intermediate
    return yq * scale + shift


def separated_block_ref(x_nchw, params):
    x = jnp.transpose(x_nchw, (0, 2, 3, 1))
    x = _ref_block(x, params["w1"], params["g1"], params["b1"])
    x = _ref_block(x, params["w2"], params["g2"], params["b2"])
    return jnp.transpose(x, (0, 3, 1, 2))


# ---------------------------------------------------------------------------
def init_params(key, in_ch, out_ch):
    k1, k2 = jax.random.split(key)
    # Conv weights in HWIO layout (kh, kw, cin, cout); deterministic init.
    w1 = jax.random.normal(k1, (3, 3, in_ch, out_ch), jnp.float32) * 0.1
    w2 = jax.random.normal(k2, (3, 3, out_ch, out_ch), jnp.float32) * 0.1
    # BatchNorm2d default init: gamma = 1, beta = 0.
    g1 = jnp.ones((out_ch,), jnp.float32)
    b1 = jnp.zeros((out_ch,), jnp.float32)
    g2 = jnp.ones((out_ch,), jnp.float32)
    b2 = jnp.zeros((out_ch,), jnp.float32)
    return {"w1": w1, "g1": g1, "b1": b1, "w2": w2, "g2": g2, "b2": b2}


if __name__ == "__main__":
    key = jax.random.PRNGKey(0)
    kx, kp = jax.random.split(key)

    N, Cin, H, W = 2, 4, 16, 16
    Cout = 8
    x = jax.random.normal(kx, (N, Cin, H, W), jnp.float32)   # NCHW like PyTorch
    params = init_params(kp, Cin, Cout)

    fwd = jax.jit(separated_block_apply)
    out = jax.block_until_ready(fwd(x, params))
    assert out.shape == (N, Cout, H, W), out.shape

    ref = jax.block_until_ready(separated_block_ref(x, params))
    # Tolerance covers residual f32 accumulation-order differences; the bf16
    # quantization points are mirrored between kernel and reference.
    np.testing.assert_allclose(np.asarray(out), np.asarray(ref),
                               rtol=1e-2, atol=1e-2)

    print("KERNEL_OK")
</pallas_src>

<mosaic_0001>
module attributes {stable_mosaic.version = 11 : i64} {
  func.func @kernel(%arg0: i32, %arg1: i32, %arg2: memref<1x320x4xbf16, #tpu.memory_space<vmem>>, %arg3: memref<1x40x4xbf16, #tpu.memory_space<vmem>>, %arg4: memref<9x4x128xbf16, #tpu.memory_space<vmem>>, %arg5: memref<320x1xf32, #tpu.memory_space<vmem>>, %arg6: memref<1x320x128xbf16, #tpu.memory_space<vmem>>, %arg7: memref<1x1x1x128xf32, #tpu.memory_space<vmem>>, %arg8: memref<1x1x1x128xf32, #tpu.memory_space<vmem>>, %arg9: memref<360x4xf32, #tpu.memory_space<vmem>>) attributes {dimension_semantics = [#tpu.dimension_semantics<parallel>, #tpu.dimension_semantics<parallel>], iteration_bounds = array<i64: 2, 1>, scalar_prefetch = 0 : i64, scratch_operands = 1 : i64, tpu.core_type = #tpu.core_type<tc>, window_params = [{transform_indices = @transform_0, window_bounds = array<i64: 1, 320, 4>}, {transform_indices = @transform_1, window_bounds = array<i64: 1, 40, 4>}, {pipeline_mode = #tpu.pipeline_mode<synchronous>, transform_indices = @transform_2, window_bounds = array<i64: 9, 4, 128>}, {transform_indices = @transform_3, window_bounds = array<i64: 320, 1>}, {transform_indices = @transform_4, window_bounds = array<i64: 1, 320, 128>}, {transform_indices = @transform_5, window_bounds = array<i64: 1, 1, 1, 128>}, {transform_indices = @transform_6, window_bounds = array<i64: 1, 1, 1, 128>}]} {
    %c0 = arith.constant 0 : index
    %c0_0 = arith.constant 0 : index
    %c0_1 = arith.constant 0 : index
    %0 = vector.load %arg2[%c0, %c0_0, %c0_1] : memref<1x320x4xbf16, #tpu.memory_space<vmem>>, vector<1x320x4xbf16>
    %1 = vector.shape_cast %0 : vector<1x320x4xbf16> to vector<320x4xbf16>
    %2 = arith.extf %1 : vector<320x4xbf16> to vector<320x4xf32>
    %c0_2 = arith.constant 0 : index
    %c0_3 = arith.constant 0 : index
    %3 = vector.load %arg9[%c0_2, %c0_3] : memref<360x4xf32, #tpu.memory_space<vmem>>, vector<320x4xf32>
    tpu.vector_store %arg9[%c0_2, %c0_3], %2 {strides = array<i32>} : memref<360x4xf32, #tpu.memory_space<vmem>>, vector<320x4xf32>,
    %c0_4 = arith.constant 0 : index
    %c0_5 = arith.constant 0 : index
    %c0_6 = arith.constant 0 : index
    %4 = vector.load %arg3[%c0_4, %c0_5, %c0_6] : memref<1x40x4xbf16, #tpu.memory_space<vmem>>, vector<1x40x4xbf16>
    %5 = vector.shape_cast %4 : vector<1x40x4xbf16> to vector<40x4xbf16>
    %6 = arith.extf %5 : vector<40x4xbf16> to vector<40x4xf32>
    %c320 = arith.constant 320 : index
    %c0_7 = arith.constant 0 : index
    %7 = vector.load %arg9[%c320, %c0_7] : memref<360x4xf32, #tpu.memory_space<vmem>>, vector<40x4xf32>
    tpu.vector_store %arg9[%c320, %c0_7], %6 {strides = array<i32>} : memref<360x4xf32, #tpu.memory_space<vmem>>, vector<40x4xf32>,
    %cst = arith.constant 0.000000e+00 : f32
    %8 = vector.broadcast %cst : f32 to vector<320x128xf32>
    %c0_8 = arith.constant 0 : index
    %c0_9 = arith.constant 0 : index
    %9 = vector.load %arg9[%c0_8, %c0_9] : memref<360x4xf32, #tpu.memory_space<vmem>>, vector<320x4xf32>
    %10 = arith.truncf %9 : vector<320x4xf32> to vector<320x4xbf16>
    %c0_10 = arith.constant 0 : index
    %c0_11 = arith.constant 0 : index
    %c0_12 = arith.constant 0 : index
    %11 = vector.load %arg4[%c0_10, %c0_11, %c0_12] : memref<9x4x128xbf16, #tpu.memory_space<vmem>>, vector<1x4x128xbf16>
    %12 = vector.shape_cast %11 : vector<1x4x128xbf16> to vector<4x128xbf16>
    %cst_13 = arith.constant dense<0.000000e+00> : vector<320x128xf32>
    %13 = tpu.matmul %10, %12, %cst_13 {dimension_numbers = #tpu.dot_dimension_numbers<[1], [0], [0], [1], [0, 0, 1, 1], [], []>} : vector<320x4xbf16>, vector<4x128xbf16>, vector<320x128xf32> -> vector<320x128xf32>
    %14 = arith.addf %8, %13 : vector<320x128xf32>
    %c1 = arith.constant 1 : index
    %c0_14 = arith.constant 0 : index
    %15 = vector.load %arg9[%c1, %c0_14] : memref<360x4xf32, #tpu.memory_space<vmem>>, vector<320x4xf32>
    %16 = arith.truncf %15 : vector<320x4xf32> to vector<320x4xbf16>
    %c1_15 = arith.constant 1 : index
    %c0_16 = arith.constant 0 : index
    %c0_17 = arith.constant 0 : index
    %17 = vector.load %arg4[%c1_15, %c0_16, %c0_17] : memref<9x4x128xbf16, #tpu.memory_space<vmem>>, vector<1x4x128xbf16>
    %18 = vector.shape_cast %17 : vector<1x4x128xbf16> to vector<4x128xbf16>
    %cst_18 = arith.constant dense<0.000000e+00> : vector<320x128xf32>
    %19 = tpu.matmul %16, %18, %cst_18 {dimension_numbers = #tpu.dot_dimension_numbers<[1], [0], [0], [1], [0, 0, 1, 1], [], []>} : vector<320x4xbf16>, vector<4x128xbf16>, vector<320x128xf32> -> vector<320x128xf32>
    %20 = arith.addf %14, %19 : vector<320x128xf32>
    %c2 = arith.constant 2 : index
    %c0_19 = arith.constant 0 : index
    %21 = vector.load %arg9[%c2, %c0_19] : memref<360x4xf32, #tpu.memory_space<vmem>>, vector<320x4xf32>
    %22 = arith.truncf %21 : vector<320x4xf32> to vector<320x4xbf16>
    %c2_20 = arith.constant 2 : index
    %c0_21 = arith.constant 0 : index
    %c0_22 = arith.constant 0 : index
    %23 = vector.load %arg4[%c2_20, %c0_21, %c0_22] : memref<9x4x128xbf16, #tpu.memory_space<vmem>>, vector<1x4x128xbf16>
    %24 = vector.shape_cast %23 : vector<1x4x128xbf16> to vector<4x128xbf16>
    %cst_23 = arith.constant dense<0.000000e+00> : vector<320x128xf32>
    %25 = tpu.matmul %22, %24, %cst_23 {dimension_numbers = #tpu.dot_dimension_numbers<[1], [0], [0], [1], [0, 0, 1, 1], [], []>} : vector<320x4xbf16>, vector<4x128xbf16>, vector<320x128xf32> -> vector<320x128xf32>
    %26 = arith.addf %20, %25 : vector<320x128xf32>
    %c18 = arith.constant 18 : index
    %c0_24 = arith.constant 0 : index
    %27 = vector.load %arg9[%c18, %c0_24] : memref<360x4xf32, #tpu.memory_space<vmem>>, vector<320x4xf32>
    %28 = arith.truncf %27 : vector<320x4xf32> to vector<320x4xbf16>
    %c3 = arith.constant 3 : index
    %c0_25 = arith.constant 0 : index
    %c0_26 = arith.constant 0 : index
    %29 = vector.load %arg4[%c3, %c0_25, %c0_26] : memref<9x4x128xbf16, #tpu.memory_space<vmem>>, vector<1x4x128xbf16>
    %30 = vector.shape_cast %29 : vector<1x4x128xbf16> to vector<4x128xbf16>
    %cst_27 = arith.constant dense<0.000000e+00> : vector<320x128xf32>
    %31 = tpu.matmul %28, %30, %cst_27 {dimension_numbers = #tpu.dot_dimension_numbers<[1], [0], [0], [1], [0, 0, 1, 1], [], []>} : vector<320x4xbf16>, vector<4x128xbf16>, vector<320x128xf32> -> vector<320x128xf32>
    %32 = arith.addf %26, %31 : vector<320x128xf32>
    %c19 = arith.constant 19 : index
    %c0_28 = arith.constant 0 : index
    %33 = vector.load %arg9[%c19, %c0_28] : memref<360x4xf32, #tpu.memory_space<vmem>>, vector<320x4xf32>
    %34 = arith.truncf %33 : vector<320x4xf32> to vector<320x4xbf16>
    %c4 = arith.constant 4 : index
    %c0_29 = arith.constant 0 : index
    %c0_30 = arith.constant 0 : index
    %35 = vector.load %arg4[%c4, %c0_29, %c0_30] : memref<9x4x128xbf16, #tpu.memory_space<vmem>>, vector<1x4x128xbf16>
    %36 = vector.shape_cast %35 : vector<1x4x128xbf16> to vector<4x128xbf16>
    %cst_31 = arith.constant dense<0.000000e+00> : vector<320x128xf32>
    %37 = tpu.matmul %34, %36, %cst_31 {dimension_numbers = #tpu.dot_dimension_numbers<[1], [0], [0], [1], [0, 0, 1, 1], [], []>} : vector<320x4xbf16>, vector<4x128xbf16>, vector<320x128xf32> -> vector<320x128xf32>
    %38 = arith.addf %32, %37 : vector<320x128xf32>
    %c20 = arith.constant 20 : index
    %c0_32 = arith.constant 0 : index
    %39 = vector.load %arg9[%c20, %c0_32] : memref<360x4xf32, #tpu.memory_space<vmem>>, vector<320x4xf32>
    %40 = arith.truncf %39 : vector<320x4xf32> to vector<320x4xbf16>
    %c5 = arith.constant 5 : index
    %c0_33 = arith.constant 0 : index
    %c0_34 = arith.constant 0 : index
    %41 = vector.load %arg4[%c5, %c0_33, %c0_34] : memref<9x4x128xbf16, #tpu.memory_space<vmem>>, vector<1x4x128xbf16>
    %42 = vector.shape_cast %41 : vector<1x4x128xbf16> to vector<4x128xbf16>
    %cst_35 = arith.constant dense<0.000000e+00> : vector<320x128xf32>
    %43 = tpu.matmul %40, %42, %cst_35 {dimension_numbers = #tpu.dot_dimension_numbers<[1], [0], [0], [1], [0, 0, 1, 1], [], []>} : vector<320x4xbf16>, vector<4x128xbf16>, vector<320x128xf32> -> vector<320x128xf32>
    %44 = arith.addf %38, %43 : vector<320x128xf32>
    %c36 = arith.constant 36 : index
    %c0_36 = arith.constant 0 : index
    %45 = vector.load %arg9[%c36, %c0_36] : memref<360x4xf32, #tpu.memory_space<vmem>>, vector<320x4xf32>
    %46 = arith.truncf %45 : vector<320x4xf32> to vector<320x4xbf16>
    %c6 = arith.constant 6 : index
    %c0_37 = arith.constant 0 : index
    %c0_38 = arith.constant 0 : index
    %47 = vector.load %arg4[%c6, %c0_37, %c0_38] : memref<9x4x128xbf16, #tpu.memory_space<vmem>>, vector<1x4x128xbf16>
    %48 = vector.shape_cast %47 : vector<1x4x128xbf16> to vector<4x128xbf16>
    %cst_39 = arith.constant dense<0.000000e+00> : vector<320x128xf32>
    %49 = tpu.matmul %46, %48, %cst_39 {dimension_numbers = #tpu.dot_dimension_numbers<[1], [0], [0], [1], [0, 0, 1, 1], [], []>} : vector<320x4xbf16>, vector<4x128xbf16>, vector<320x128xf32> -> vector<320x128xf32>
    %50 = arith.addf %44, %49 : vector<320x128xf32>
    %c37 = arith.constant 37 : index
    %c0_40 = arith.constant 0 : index
    %51 = vector.load %arg9[%c37, %c0_40] : memref<360x4xf32, #tpu.memory_space<vmem>>, vector<320x4xf32>
    %52 = arith.truncf %51 : vector<320x4xf32> to vector<320x4xbf16>
    %c7 = arith.constant 7 : index
    %c0_41 = arith.constant 0 : index
    %c0_42 = arith.constant 0 : index
    %53 = vector.load %arg4[%c7, %c0_41, %c0_42] : memref<9x4x128xbf16, #tpu.memory_space<vmem>>, vector<1x4x128xbf16>
    %54 = vector.shape_cast %53 : vector<1x4x128xbf16> to vector<4x128xbf16>
    %cst_43 = arith.constant dense<0.000000e+00> : vector<320x128xf32>
    %55 = tpu.matmul %52, %54, %cst_43 {dimension_numbers = #tpu.dot_dimension_numbers<[1], [0], [0], [1], [0, 0, 1, 1], [], []>} : vector<320x4xbf16>, vector<4x128xbf16>, vector<320x128xf32> -> vector<320x128xf32>
    %56 = arith.addf %50, %55 : vector<320x128xf32>
    %c38 = arith.constant 38 : index
    %c0_44 = arith.constant 0 : index
    %57 = vector.load %arg9[%c38, %c0_44] : memref<360x4xf32, #tpu.memory_space<vmem>>, vector<320x4xf32>
    %58 = arith.truncf %57 : vector<320x4xf32> to vector<320x4xbf16>
    %c8 = arith.constant 8 : index
    %c0_45 = arith.constant 0 : index
    %c0_46 = arith.constant 0 : index
    %59 = vector.load %arg4[%c8, %c0_45, %c0_46] : memref<9x4x128xbf16, #tpu.memory_space<vmem>>, vector<1x4x128xbf16>
    %60 = vector.shape_cast %59 : vector<1x4x128xbf16> to vector<4x128xbf16>
    %cst_47 = arith.constant dense<0.000000e+00> : vector<320x128xf32>
    %61 = tpu.matmul %58, %60, %cst_47 {dimension_numbers = #tpu.dot_dimension_numbers<[1], [0], [0], [1], [0, 0, 1, 1], [], []>} : vector<320x4xbf16>, vector<4x128xbf16>, vector<320x128xf32> -> vector<320x128xf32>
    %62 = arith.addf %56, %61 : vector<320x128xf32>
    %cst_48 = arith.constant 0.000000e+00 : f32
    %63 = vector.broadcast %cst_48 : f32 to vector<320x128xf32>
    %64 = arith.maximumf %62, %63 : vector<320x128xf32>
    %65 = arith.truncf %64 : vector<320x128xf32> to vector<320x128xbf16>
    %c0_49 = arith.constant 0 : index
    %c0_50 = arith.constant 0 : index
    %c0_51 = arith.constant 0 : index
    %66 = vector.load %arg6[%c0_49, %c0_50, %c0_51] : memref<1x320x128xbf16, #tpu.memory_space<vmem>>, vector<1x320x128xbf16>
    %67 = vector.shape_cast %66 : vector<1x320x128xbf16> to vector<320x128xbf16>
    %68 = vector.shape_cast %65 : vector<320x128xbf16> to vector<1x320x128xbf16>
    tpu.vector_store %arg6[%c0_49, %c0_50, %c0_51], %68 {strides = array<i32>} : memref<1x320x128xbf16, #tpu.memory_space<vmem>>, vector<1x320x128xbf16>,
    %c0_52 = arith.constant 0 : index
    %c0_53 = arith.constant 0 : index
    %69 = vector.load %arg5[%c0_52, %c0_53] : memref<320x1xf32, #tpu.memory_space<vmem>>, vector<320x1xf32>
    %70 = vector.shape_cast %69 : vector<320x1xf32> to vector<1x320x1xf32>
    %cst_54 = arith.constant dense<0.000000e+00> : vector<1xf32>
    %71 = vector.multi_reduction <add>, %70, %cst_54 [1, 2] : vector<1x320x1xf32> to vector<1xf32>
    %72 = vector.shape_cast %71 : vector<1xf32> to vector<1x1x1xf32>
    %73 = vector.extract %72[0, 0, 0] : f32 from vector<1x1x1xf32>
    %cst_55 = arith.constant 1.000000e+00 : f32
    %74 = arith.maximumf %73, %cst_55 : f32
    %75 = vector.broadcast %69 : vector<320x1xf32> to vector<320x128xf32>
    %76 = arith.mulf %64, %75 : vector<320x128xf32>
    %cst_56 = arith.constant dense<0.000000e+00> : vector<128xf32>
    %77 = vector.multi_reduction <add>, %76, %cst_56 [0] : vector<320x128xf32> to vector<128xf32>
    %78 = vector.shape_cast %77 : vector<128xf32> to vector<1x128xf32>
    %79 = vector.broadcast %74 : f32 to vector<1x128xf32>
    %80 = arith.divf %78, %79 : vector<1x128xf32>
    %81 = vector.broadcast %80 : vector<1x128xf32> to vector<320x128xf32>
    %82 = arith.subf %64, %81 : vector<320x128xf32>
    %83 = vector.broadcast %69 : vector<320x1xf32> to vector<320x128xf32>
    %84 = arith.mulf %82, %83 : vector<320x128xf32>
    %c0_57 = arith.constant 0 : index
    %c0_58 = arith.constant 0 : index
    %c0_59 = arith.constant 0 : index
    %c0_60 = arith.constant 0 : index
    %85 = vector.load %arg7[%c0_57, %c0_58, %c0_59, %c0_60] : memref<1x1x1x128xf32, #tpu.memory_space<vmem>>, vector<1x1x1x128xf32>
    %86 = vector.shape_cast %85 : vector<1x1x1x128xf32> to vector<1x128xf32>
    %87 = vector.shape_cast %78 : vector<1x128xf32> to vector<1x1x1x128xf32>
    tpu.vector_store %arg7[%c0_57, %c0_58, %c0_59, %c0_60], %87 {strides = array<i32>} : memref<1x1x1x128xf32, #tpu.memory_space<vmem>>, vector<1x1x1x128xf32>,
    %88 = arith.mulf %84, %84 : vector<320x128xf32>
    %cst_61 = arith.constant dense<0.000000e+00> : vector<128xf32>
    %89 = vector.multi_reduction <add>, %88, %cst_61 [0] : vector<320x128xf32> to vector<128xf32>
    %90 = vector.shape_cast %89 : vector<128xf32> to vector<1x128xf32>
    %c0_62 = arith.constant 0 : index
    %c0_63 = arith.constant 0 : index
    %c0_64 = arith.constant 0 : index
    %c0_65 = arith.constant 0 : index
    %91 = vector.load %arg8[%c0_62, %c0_63, %c0_64, %c0_65] : memref<1x1x1x128xf32, #tpu.memory_space<vmem>>, vector<1x1x1x128xf32>
    %92 = vector.shape_cast %91 : vector<1x1x1x128xf32> to vector<1x128xf32>
    %93 = vector.shape_cast %90 : vector<1x128xf32> to vector<1x1x1x128xf32>
    tpu.vector_store %arg8[%c0_62, %c0_63, %c0_64, %c0_65], %93 {strides = array<i32>} : memref<1x1x1x128xf32, #tpu.memory_space<vmem>>, vector<1x1x1x128xf32>,
    return
  }
  func.func @transform_0(%arg0: i32, %arg1: i32) -> (i32, i32, i32) {
    %c0_i32 = arith.constant 0 : i32
    %c0_i32_0 = arith.constant 0 : i32
    return %arg0, %arg1, %c0_i32 : i32, i32, i32
  }
  func.func @transform_1(%arg0: i32, %arg1: i32) -> (i32, i32, i32) {
    %c1_i32 = arith.constant 1 : i32
    %0 = arith.addi %arg1, %c1_i32 : i32
    %c8_i32 = arith.constant 8 : i32
    %1 = arith.muli %0, %c8_i32 : i32
    %c0_i32 = arith.constant 0 : i32
    %c0_i32_0 = arith.constant 0 : i32
    return %arg0, %1, %c0_i32 : i32, i32, i32
  }
  func.func @transform_2(%arg0: i32, %arg1: i32) -> (i32, i32, i32) {
    %c0_i32 = arith.constant 0 : i32
    %c0_i32_0 = arith.constant 0 : i32
    %c0_i32_1 = arith.constant 0 : i32
    %c0_i32_2 = arith.constant 0 : i32
    return %c0_i32, %c0_i32_0, %c0_i32_1 : i32, i32, i32
  }
  func.func @transform_3(%arg0: i32, %arg1: i32) -> (i32, i32) {
    %c0_i32 = arith.constant 0 : i32
    %c0_i32_0 = arith.constant 0 : i32
    return %arg1, %c0_i32 : i32, i32
  }
  func.func @transform_4(%arg0: i32, %arg1: i32) -> (i32, i32, i32) {
    %c0_i32 = arith.constant 0 : i32
    %c0_i32_0 = arith.constant 0 : i32
    return %arg0, %arg1, %c0_i32 : i32, i32, i32
  }
  func.func @transform_5(%arg0: i32, %arg1: i32) -> (i32, i32, i32, i32) {
    %c0_i32 = arith.constant 0 : i32
    %c0_i32_0 = arith.constant 0 : i32
    %c0_i32_1 = arith.constant 0 : i32
    return %arg0, %arg1, %c0_i32, %c0_i32_0 : i32, i32, i32, i32
  }
  func.func @transform_6(%arg0: i32, %arg1: i32) -> (i32, i32, i32, i32) {
    %c0_i32 = arith.constant 0 : i32
    %c0_i32_0 = arith.constant 0 : i32
    %c0_i32_1 = arith.constant 0 : i32
    return %arg0, %arg1, %c0_i32, %c0_i32_0 : i32, i32, i32, i32
  }
}

module attributes {stable_mosaic.version = 11 : i64} {
  func.func @kernel(%arg0: i32, %arg1: i32, %arg2: memref<1x320x8xbf16, #tpu.memory_space<vmem>>, %arg3: memref<1x40x8xbf16, #tpu.memory_space<vmem>>, %arg4: memref<9x8x128xbf16, #tpu.memory_space<vmem>>, %arg5: memref<320x1xf32, #tpu.memory_space<vmem>>, %arg6: memref<1x320x128xbf16, #tpu.memory_space<vmem>>, %arg7: memref<1x1x1x128xf32, #tpu.memory_space<vmem>>, %arg8: memref<1x1x1x128xf32, #tpu.memory_space<vmem>>, %arg9: memref<360x8xf32, #tpu.memory_space<vmem>>) attributes {dimension_semantics = [#tpu.dimension_semantics<parallel>, #tpu.dimension_semantics<parallel>], iteration_bounds = array<i64: 2, 1>, scalar_prefetch = 0 : i64, scratch_operands = 1 : i64, tpu.core_type = #tpu.core_type<tc>, window_params = [{transform_indices = @transform_0, window_bounds = array<i64: 1, 320, 8>}, {transform_indices = @transform_1, window_bounds = array<i64: 1, 40, 8>}, {pipeline_mode = #tpu.pipeline_mode<synchronous>, transform_indices = @transform_2, window_bounds = array<i64: 9, 8, 128>}, {transform_indices = @transform_3, window_bounds = array<i64: 320, 1>}, {transform_indices = @transform_4, window_bounds = array<i64: 1, 320, 128>}, {transform_indices = @transform_5, window_bounds = array<i64: 1, 1, 1, 128>}, {transform_indices = @transform_6, window_bounds = array<i64: 1, 1, 1, 128>}]} {
    %c0 = arith.constant 0 : index
    %c0_0 = arith.constant 0 : index
    %c0_1 = arith.constant 0 : index
    %0 = vector.load %arg2[%c0, %c0_0, %c0_1] : memref<1x320x8xbf16, #tpu.memory_space<vmem>>, vector<1x320x8xbf16>
    %1 = vector.shape_cast %0 : vector<1x320x8xbf16> to vector<320x8xbf16>
    %2 = arith.extf %1 : vector<320x8xbf16> to vector<320x8xf32>
    %c0_2 = arith.constant 0 : index
    %c0_3 = arith.constant 0 : index
    %3 = vector.load %arg9[%c0_2, %c0_3] : memref<360x8xf32, #tpu.memory_space<vmem>>, vector<320x8xf32>
    tpu.vector_store %arg9[%c0_2, %c0_3], %2 {strides = array<i32>} : memref<360x8xf32, #tpu.memory_space<vmem>>, vector<320x8xf32>,
    %c0_4 = arith.constant 0 : index
    %c0_5 = arith.constant 0 : index
    %c0_6 = arith.constant 0 : index
    %4 = vector.load %arg3[%c0_4, %c0_5, %c0_6] : memref<1x40x8xbf16, #tpu.memory_space<vmem>>, vector<1x40x8xbf16>
    %5 = vector.shape_cast %4 : vector<1x40x8xbf16> to vector<40x8xbf16>
    %6 = arith.extf %5 : vector<40x8xbf16> to vector<40x8xf32>
    %c320 = arith.constant 320 : index
    %c0_7 = arith.constant 0 : index
    %7 = vector.load %arg9[%c320, %c0_7] : memref<360x8xf32, #tpu.memory_space<vmem>>, vector<40x8xf32>
    tpu.vector_store %arg9[%c320, %c0_7], %6 {strides = array<i32>} : memref<360x8xf32, #tpu.memory_space<vmem>>, vector<40x8xf32>,
    %cst = arith.constant 0.000000e+00 : f32
    %8 = vector.broadcast %cst : f32 to vector<320x128xf32>
    %c0_8 = arith.constant 0 : index
    %c0_9 = arith.constant 0 : index
    %9 = vector.load %arg9[%c0_8, %c0_9] : memref<360x8xf32, #tpu.memory_space<vmem>>, vector<320x8xf32>
    %10 = arith.truncf %9 : vector<320x8xf32> to vector<320x8xbf16>
    %c0_10 = arith.constant 0 : index
    %c0_11 = arith.constant 0 : index
    %c0_12 = arith.constant 0 : index
    %11 = vector.load %arg4[%c0_10, %c0_11, %c0_12] : memref<9x8x128xbf16, #tpu.memory_space<vmem>>, vector<1x8x128xbf16>
    %12 = vector.shape_cast %11 : vector<1x8x128xbf16> to vector<8x128xbf16>
    %cst_13 = arith.constant dense<0.000000e+00> : vector<320x128xf32>
    %13 = tpu.matmul %10, %12, %cst_13 {dimension_numbers = #tpu.dot_dimension_numbers<[1], [0], [0], [1], [0, 0, 1, 1], [], []>} : vector<320x8xbf16>, vector<8x128xbf16>, vector<320x128xf32> -> vector<320x128xf32>
    %14 = arith.addf %8, %13 : vector<320x128xf32>
    %c1 = arith.constant 1 : index
    %c0_14 = arith.constant 0 : index
    %15 = vector.load %arg9[%c1, %c0_14] : memref<360x8xf32, #tpu.memory_space<vmem>>, vector<320x8xf32>
    %16 = arith.truncf %15 : vector<320x8xf32> to vector<320x8xbf16>
    %c1_15 = arith.constant 1 : index
    %c0_16 = arith.constant 0 : index
    %c0_17 = arith.constant 0 : index
    %17 = vector.load %arg4[%c1_15, %c0_16, %c0_17] : memref<9x8x128xbf16, #tpu.memory_space<vmem>>, vector<1x8x128xbf16>
    %18 = vector.shape_cast %17 : vector<1x8x128xbf16> to vector<8x128xbf16>
    %cst_18 = arith.constant dense<0.000000e+00> : vector<320x128xf32>
    %19 = tpu.matmul %16, %18, %cst_18 {dimension_numbers = #tpu.dot_dimension_numbers<[1], [0], [0], [1], [0, 0, 1, 1], [], []>} : vector<320x8xbf16>, vector<8x128xbf16>, vector<320x128xf32> -> vector<320x128xf32>
    %20 = arith.addf %14, %19 : vector<320x128xf32>
    %c2 = arith.constant 2 : index
    %c0_19 = arith.constant 0 : index
    %21 = vector.load %arg9[%c2, %c0_19] : memref<360x8xf32, #tpu.memory_space<vmem>>, vector<320x8xf32>
    %22 = arith.truncf %21 : vector<320x8xf32> to vector<320x8xbf16>
    %c2_20 = arith.constant 2 : index
    %c0_21 = arith.constant 0 : index
    %c0_22 = arith.constant 0 : index
    %23 = vector.load %arg4[%c2_20, %c0_21, %c0_22] : memref<9x8x128xbf16, #tpu.memory_space<vmem>>, vector<1x8x128xbf16>
    %24 = vector.shape_cast %23 : vector<1x8x128xbf16> to vector<8x128xbf16>
    %cst_23 = arith.constant dense<0.000000e+00> : vector<320x128xf32>
    %25 = tpu.matmul %22, %24, %cst_23 {dimension_numbers = #tpu.dot_dimension_numbers<[1], [0], [0], [1], [0, 0, 1, 1], [], []>} : vector<320x8xbf16>, vector<8x128xbf16>, vector<320x128xf32> -> vector<320x128xf32>
    %26 = arith.addf %20, %25 : vector<320x128xf32>
    %c18 = arith.constant 18 : index
    %c0_24 = arith.constant 0 : index
    %27 = vector.load %arg9[%c18, %c0_24] : memref<360x8xf32, #tpu.memory_space<vmem>>, vector<320x8xf32>
    %28 = arith.truncf %27 : vector<320x8xf32> to vector<320x8xbf16>
    %c3 = arith.constant 3 : index
    %c0_25 = arith.constant 0 : index
    %c0_26 = arith.constant 0 : index
    %29 = vector.load %arg4[%c3, %c0_25, %c0_26] : memref<9x8x128xbf16, #tpu.memory_space<vmem>>, vector<1x8x128xbf16>
    %30 = vector.shape_cast %29 : vector<1x8x128xbf16> to vector<8x128xbf16>
    %cst_27 = arith.constant dense<0.000000e+00> : vector<320x128xf32>
    %31 = tpu.matmul %28, %30, %cst_27 {dimension_numbers = #tpu.dot_dimension_numbers<[1], [0], [0], [1], [0, 0, 1, 1], [], []>} : vector<320x8xbf16>, vector<8x128xbf16>, vector<320x128xf32> -> vector<320x128xf32>
    %32 = arith.addf %26, %31 : vector<320x128xf32>
    %c19 = arith.constant 19 : index
    %c0_28 = arith.constant 0 : index
    %33 = vector.load %arg9[%c19, %c0_28] : memref<360x8xf32, #tpu.memory_space<vmem>>, vector<320x8xf32>
    %34 = arith.truncf %33 : vector<320x8xf32> to vector<320x8xbf16>
    %c4 = arith.constant 4 : index
    %c0_29 = arith.constant 0 : index
    %c0_30 = arith.constant 0 : index
    %35 = vector.load %arg4[%c4, %c0_29, %c0_30] : memref<9x8x128xbf16, #tpu.memory_space<vmem>>, vector<1x8x128xbf16>
    %36 = vector.shape_cast %35 : vector<1x8x128xbf16> to vector<8x128xbf16>
    %cst_31 = arith.constant dense<0.000000e+00> : vector<320x128xf32>
    %37 = tpu.matmul %34, %36, %cst_31 {dimension_numbers = #tpu.dot_dimension_numbers<[1], [0], [0], [1], [0, 0, 1, 1], [], []>} : vector<320x8xbf16>, vector<8x128xbf16>, vector<320x128xf32> -> vector<320x128xf32>
    %38 = arith.addf %32, %37 : vector<320x128xf32>
    %c20 = arith.constant 20 : index
    %c0_32 = arith.constant 0 : index
    %39 = vector.load %arg9[%c20, %c0_32] : memref<360x8xf32, #tpu.memory_space<vmem>>, vector<320x8xf32>
    %40 = arith.truncf %39 : vector<320x8xf32> to vector<320x8xbf16>
    %c5 = arith.constant 5 : index
    %c0_33 = arith.constant 0 : index
    %c0_34 = arith.constant 0 : index
    %41 = vector.load %arg4[%c5, %c0_33, %c0_34] : memref<9x8x128xbf16, #tpu.memory_space<vmem>>, vector<1x8x128xbf16>
    %42 = vector.shape_cast %41 : vector<1x8x128xbf16> to vector<8x128xbf16>
    %cst_35 = arith.constant dense<0.000000e+00> : vector<320x128xf32>
    %43 = tpu.matmul %40, %42, %cst_35 {dimension_numbers = #tpu.dot_dimension_numbers<[1], [0], [0], [1], [0, 0, 1, 1], [], []>} : vector<320x8xbf16>, vector<8x128xbf16>, vector<320x128xf32> -> vector<320x128xf32>
    %44 = arith.addf %38, %43 : vector<320x128xf32>
    %c36 = arith.constant 36 : index
    %c0_36 = arith.constant 0 : index
    %45 = vector.load %arg9[%c36, %c0_36] : memref<360x8xf32, #tpu.memory_space<vmem>>, vector<320x8xf32>
    %46 = arith.truncf %45 : vector<320x8xf32> to vector<320x8xbf16>
    %c6 = arith.constant 6 : index
    %c0_37 = arith.constant 0 : index
    %c0_38 = arith.constant 0 : index
    %47 = vector.load %arg4[%c6, %c0_37, %c0_38] : memref<9x8x128xbf16, #tpu.memory_space<vmem>>, vector<1x8x128xbf16>
    %48 = vector.shape_cast %47 : vector<1x8x128xbf16> to vector<8x128xbf16>
    %cst_39 = arith.constant dense<0.000000e+00> : vector<320x128xf32>
    %49 = tpu.matmul %46, %48, %cst_39 {dimension_numbers = #tpu.dot_dimension_numbers<[1], [0], [0], [1], [0, 0, 1, 1], [], []>} : vector<320x8xbf16>, vector<8x128xbf16>, vector<320x128xf32> -> vector<320x128xf32>
    %50 = arith.addf %44, %49 : vector<320x128xf32>
    %c37 = arith.constant 37 : index
    %c0_40 = arith.constant 0 : index
    %51 = vector.load %arg9[%c37, %c0_40] : memref<360x8xf32, #tpu.memory_space<vmem>>, vector<320x8xf32>
    %52 = arith.truncf %51 : vector<320x8xf32> to vector<320x8xbf16>
    %c7 = arith.constant 7 : index
    %c0_41 = arith.constant 0 : index
    %c0_42 = arith.constant 0 : index
    %53 = vector.load %arg4[%c7, %c0_41, %c0_42] : memref<9x8x128xbf16, #tpu.memory_space<vmem>>, vector<1x8x128xbf16>
    %54 = vector.shape_cast %53 : vector<1x8x128xbf16> to vector<8x128xbf16>
    %cst_43 = arith.constant dense<0.000000e+00> : vector<320x128xf32>
    %55 = tpu.matmul %52, %54, %cst_43 {dimension_numbers = #tpu.dot_dimension_numbers<[1], [0], [0], [1], [0, 0, 1, 1], [], []>} : vector<320x8xbf16>, vector<8x128xbf16>, vector<320x128xf32> -> vector<320x128xf32>
    %56 = arith.addf %50, %55 : vector<320x128xf32>
    %c38 = arith.constant 38 : index
    %c0_44 = arith.constant 0 : index
    %57 = vector.load %arg9[%c38, %c0_44] : memref<360x8xf32, #tpu.memory_space<vmem>>, vector<320x8xf32>
    %58 = arith.truncf %57 : vector<320x8xf32> to vector<320x8xbf16>
    %c8 = arith.constant 8 : index
    %c0_45 = arith.constant 0 : index
    %c0_46 = arith.constant 0 : index
    %59 = vector.load %arg4[%c8, %c0_45, %c0_46] : memref<9x8x128xbf16, #tpu.memory_space<vmem>>, vector<1x8x128xbf16>
    %60 = vector.shape_cast %59 : vector<1x8x128xbf16> to vector<8x128xbf16>
    %cst_47 = arith.constant dense<0.000000e+00> : vector<320x128xf32>
    %61 = tpu.matmul %58, %60, %cst_47 {dimension_numbers = #tpu.dot_dimension_numbers<[1], [0], [0], [1], [0, 0, 1, 1], [], []>} : vector<320x8xbf16>, vector<8x128xbf16>, vector<320x128xf32> -> vector<320x128xf32>
    %62 = arith.addf %56, %61 : vector<320x128xf32>
    %cst_48 = arith.constant 0.000000e+00 : f32
    %63 = vector.broadcast %cst_48 : f32 to vector<320x128xf32>
    %64 = arith.maximumf %62, %63 : vector<320x128xf32>
    %65 = arith.truncf %64 : vector<320x128xf32> to vector<320x128xbf16>
    %c0_49 = arith.constant 0 : index
    %c0_50 = arith.constant 0 : index
    %c0_51 = arith.constant 0 : index
    %66 = vector.load %arg6[%c0_49, %c0_50, %c0_51] : memref<1x320x128xbf16, #tpu.memory_space<vmem>>, vector<1x320x128xbf16>
    %67 = vector.shape_cast %66 : vector<1x320x128xbf16> to vector<320x128xbf16>
    %68 = vector.shape_cast %65 : vector<320x128xbf16> to vector<1x320x128xbf16>
    tpu.vector_store %arg6[%c0_49, %c0_50, %c0_51], %68 {strides = array<i32>} : memref<1x320x128xbf16, #tpu.memory_space<vmem>>, vector<1x320x128xbf16>,
    %c0_52 = arith.constant 0 : index
    %c0_53 = arith.constant 0 : index
    %69 = vector.load %arg5[%c0_52, %c0_53] : memref<320x1xf32, #tpu.memory_space<vmem>>, vector<320x1xf32>
    %70 = vector.shape_cast %69 : vector<320x1xf32> to vector<1x320x1xf32>
    %cst_54 = arith.constant dense<0.000000e+00> : vector<1xf32>
    %71 = vector.multi_reduction <add>, %70, %cst_54 [1, 2] : vector<1x320x1xf32> to vector<1xf32>
    %72 = vector.shape_cast %71 : vector<1xf32> to vector<1x1x1xf32>
    %73 = vector.extract %72[0, 0, 0] : f32 from vector<1x1x1xf32>
    %cst_55 = arith.constant 1.000000e+00 : f32
    %74 = arith.maximumf %73, %cst_55 : f32
    %75 = vector.broadcast %69 : vector<320x1xf32> to vector<320x128xf32>
    %76 = arith.mulf %64, %75 : vector<320x128xf32>
    %cst_56 = arith.constant dense<0.000000e+00> : vector<128xf32>
    %77 = vector.multi_reduction <add>, %76, %cst_56 [0] : vector<320x128xf32> to vector<128xf32>
    %78 = vector.shape_cast %77 : vector<128xf32> to vector<1x128xf32>
    %79 = vector.broadcast %74 : f32 to vector<1x128xf32>
    %80 = arith.divf %78, %79 : vector<1x128xf32>
    %81 = vector.broadcast %80 : vector<1x128xf32> to vector<320x128xf32>
    %82 = arith.subf %64, %81 : vector<320x128xf32>
    %83 = vector.broadcast %69 : vector<320x1xf32> to vector<320x128xf32>
    %84 = arith.mulf %82, %83 : vector<320x128xf32>
    %c0_57 = arith.constant 0 : index
    %c0_58 = arith.constant 0 : index
    %c0_59 = arith.constant 0 : index
    %c0_60 = arith.constant 0 : index
    %85 = vector.load %arg7[%c0_57, %c0_58, %c0_59, %c0_60] : memref<1x1x1x128xf32, #tpu.memory_space<vmem>>, vector<1x1x1x128xf32>
    %86 = vector.shape_cast %85 : vector<1x1x1x128xf32> to vector<1x128xf32>
    %87 = vector.shape_cast %78 : vector<1x128xf32> to vector<1x1x1x128xf32>
    tpu.vector_store %arg7[%c0_57, %c0_58, %c0_59, %c0_60], %87 {strides = array<i32>} : memref<1x1x1x128xf32, #tpu.memory_space<vmem>>, vector<1x1x1x128xf32>,
    %88 = arith.mulf %84, %84 : vector<320x128xf32>
    %cst_61 = arith.constant dense<0.000000e+00> : vector<128xf32>
    %89 = vector.multi_reduction <add>, %88, %cst_61 [0] : vector<320x128xf32> to vector<128xf32>
    %90 = vector.shape_cast %89 : vector<128xf32> to vector<1x128xf32>
    %c0_62 = arith.constant 0 : index
    %c0_63 = arith.constant 0 : index
    %c0_64 = arith.constant 0 : index
    %c0_65 = arith.constant 0 : index
    %91 = vector.load %arg8[%c0_62, %c0_63, %c0_64, %c0_65] : memref<1x1x1x128xf32, #tpu.memory_space<vmem>>, vector<1x1x1x128xf32>
    %92 = vector.shape_cast %91 : vector<1x1x1x128xf32> to vector<1x128xf32>
    %93 = vector.shape_cast %90 : vector<1x128xf32> to vector<1x1x1x128xf32>
    tpu.vector_store %arg8[%c0_62, %c0_63, %c0_64, %c0_65], %93 {strides = array<i32>} : memref<1x1x1x128xf32, #tpu.memory_space<vmem>>, vector<1x1x1x128xf32>,
    return
  }
  func.func @transform_0(%arg0: i32, %arg1: i32) -> (i32, i32, i32) {
    %c0_i32 = arith.constant 0 : i32
    %c0_i32_0 = arith.constant 0 : i32
    return %arg0, %arg1, %c0_i32 : i32, i32, i32
  }
  func.func @transform_1(%arg0: i32, %arg1: i32) -> (i32, i32, i32) {
    %c1_i32 = arith.constant 1 : i32
    %0 = arith.addi %arg1, %c1_i32 : i32
    %c8_i32 = arith.constant 8 : i32
    %1 = arith.muli %0, %c8_i32 : i32
    %c0_i32 = arith.constant 0 : i32
    %c0_i32_0 = arith.constant 0 : i32
    return %arg0, %1, %c0_i32 : i32, i32, i32
  }
  func.func @transform_2(%arg0: i32, %arg1: i32) -> (i32, i32, i32) {
    %c0_i32 = arith.constant 0 : i32
    %c0_i32_0 = arith.constant 0 : i32
    %c0_i32_1 = arith.constant 0 : i32
    %c0_i32_2 = arith.constant 0 : i32
    return %c0_i32, %c0_i32_0, %c0_i32_1 : i32, i32, i32
  }
  func.func @transform_3(%arg0: i32, %arg1: i32) -> (i32, i32) {
    %c0_i32 = arith.constant 0 : i32
    %c0_i32_0 = arith.constant 0 : i32
    return %arg1, %c0_i32 : i32, i32
  }
  func.func @transform_4(%arg0: i32, %arg1: i32) -> (i32, i32, i32) {
    %c0_i32 = arith.constant 0 : i32
    %c0_i32_0 = arith.constant 0 : i32
    return %arg0, %arg1, %c0_i32 : i32, i32, i32
  }
  func.func @transform_5(%arg0: i32, %arg1: i32) -> (i32, i32, i32, i32) {
    %c0_i32 = arith.constant 0 : i32
    %c0_i32_0 = arith.constant 0 : i32
    %c0_i32_1 = arith.constant 0 : i32
    return %arg0, %arg1, %c0_i32, %c0_i32_0 : i32, i32, i32, i32
  }
  func.func @transform_6(%arg0: i32, %arg1: i32) -> (i32, i32, i32, i32) {
    %c0_i32 = arith.constant 0 : i32
    %c0_i32_0 = arith.constant 0 : i32
    %c0_i32_1 = arith.constant 0 : i32
    return %arg0, %arg1, %c0_i32, %c0_i32_0 : i32, i32, i32, i32
  }
}

</mosaic_0001>

<bundles_post_ra>
// kernel: separated_block_apply.2
= control target key start
LH: loop header
LB: loop body
LE: loop exit
PB: predicated region body
PF: predicated region fallthrough
CT: control target
= control target key end

     0   :  { %s4377_s21 = smov 0   ;;  %s4379_s22 = smov 0   ;;  %s5646_s0 = inlined_call_operand.vmem [shape: bf16[2,360,4], index: 0, kind: input, shape index: {}, may-alias: {0,1}]   ;;  %s5647_s1 = inlined_call_operand.vmem [shape: bf16[2,360,4], index: 1, kind: input, shape index: {}, may-alias: {0,1}]   ;;  %s5648_s2 = inlined_call_operand.vmem [shape: bf16[9,4,128], index: 2, kind: input, shape index: {}]   ;;  %s5649_s3 = inlined_call_operand.vmem [shape: f32[320,1], index: 3, kind: input, shape index: {}]   ;;  %s5650_s4 = inlined_call_operand.vmem [shape: bf16[2,320,128], index: 4, kind: output, shape index: {0}]   ;;  %s5651_s5 = inlined_call_operand.vmem [shape: f32[2,1,1,128], index: 5, kind: output, shape index: {1}]   ;;  %s5652_s6 = inlined_call_operand.vmem [shape: f32[2,1,1,128], index: 6, kind: output, shape index: {2}]  }
   0x1   :  { %s4381_s23 = smov 0  }
   0x2 LB: > { %s29_s24 = sadd.s32 1, %s4334_s22  ;;  %p3852_p0 = scmp.ge.s32.totalorder %s4338_s23, 1  ;;  %s4338_s23 = sphi %s4381_s23, %s17_s23   ;;  %s4334_s22 = sphi %s4379_s22, %s5787_s22   ;;  %s4330_s21 = sphi %s4377_s21, %s5786_s21  }
   0x3   : > { %p31_p1 = scmp.ge.s32.totalorder %s29_s24, 2  ;;  %p286_p2 = scmp.lt.s32.totalorder %s4338_s23, 3 }
   0x5   : > { %s5789_s24 = smov (%p31_p1, %s29_s24), 0  ;;  %p287_p3 = pnand %p3852_p0, %p286_p2 }
   0x7   : > { %290 = sbr.rel (%p287_p3) target bundleno = 1005 (0x3ed), region = 36 }
   0xc   : > { %v3856_v0 = vld [vmem:[%s5648_s2 + $0x2] sm:$0x3]  ;;  %vm736_vm0 = vcmask 1041408   ;;  %p361_p4 = scmp.lt.s32.totalorder %s4330_s21, 1  ;;  %v3897_v2 = vld [vmem:[%s5648_s2 + $0x4] sm:$0x3] }
   0xd   : > { %v738_v1 = vsel %vm736_vm0, %v3856_v0, 0  ;;  %v3918_v3 = vld [vmem:[%s5648_s2 + $0x6] sm:$0x3]  ;;  %v1144_v4 = vsel %vm736_vm0, %v3897_v2, 0  ;;  %v613_v6 = vld [vmem:[%s5648_s2] sm:$0x3] }
   0xe   : > { %4275 = vmatpush.bf16.msra.mxu1 %v738_v1  ;;  %4276 = vmatpush.bf16.msra.mxu2 %v738_v1  ;;  %s5791_s21 = smov (!%p361_p4, %s4330_s21), 1  ;;  %v1418_v5 = vsel %vm736_vm0, %v3918_v3, 0  ;;  %v910_v7 = vsel %vm736_vm0, %v613_v6, 0  ;;  %v3939_v8 = vld [vmem:[%s5648_s2 + $0x8] sm:$0x3]  ;;  %vm497_vm1 = vcmask 31744  }
   0xf   : > { %4277 = vmatpush.bf16.msra.mxu3 %v738_v1  ;;  %747 = vmatpush.bf16.msra.mxu0 %v738_v1  ;;  %s4278_s11 = smul.u32 180, %s5791_s21  ;;  %v1692_v9 = vsel %vm736_vm0, %v3939_v8, 0  ;;  %vm3099_vm2 = vcmask 7168   ;;  %s409_s20 = scalar_lea.vmem %s5651_s5, %s5791_s21 }
  0x10   : > { %s415_s27 = scalar_lea.vmem %s5652_s6, %s5791_s21 }
  0x11   : > { %s4423_s14 = scalar_lea.vmem %s5646_s0, %s4278_s11  ;;  %s4047_s15 = sadd.s32 160, %s4278_s11 }
  0x12   : > { %1153 = vmatpush.bf16.msrb.mxu2 %v1144_v4  ;;  %919 = vmatpush.bf16.msrb.mxu1 %v910_v7  ;;  %v4240_v10 = vld [vmem:[%s4423_s14 + $0x28] sm:$0xff]   ;;  %v4241_v11 = vld [vmem:[%s4423_s14 + $0x30] sm:$0xff]   ;;  %v4246_v16 = vld [vmem:[%s4423_s14 + $0x58] sm:$0xff]   ;;  %s4493_s18 = scalar_lea.vmem %s5647_s1, %s4047_s15  ;;  %s4280_s11 = smul.u32 160, %s5791_s21 }
  0x13   : > { %1427 = vmatpush.bf16.msrb.mxu3 %v1418_v5  ;;  %1701 = vmatpush.bf16.msrb.mxu0 %v1692_v9  ;;  %v4245_v12 = vld [vmem:[%s4423_s14 + $0x50] sm:$0xff]   ;;  %v4070_v13 = vunpack.c.l.bf16 %v4240_v10  ;;  %v4071_v14 = vunpack.c.h.bf16 %v4240_v10  ;;  %v4074_v15 = vunpack.c.l.bf16 %v4241_v11  ;;  %v4250_v18 = vld [vmem:[%s4423_s14 + $0x78] sm:$0xff]   ;;  %v4094_v20 = vunpack.c.l.bf16 %v4246_v16  ;;  %v4251_v21 = vld [vmem:[%s4423_s14 + $0x80] sm:$0xff]   ;;  %s4341_s15 = smov 1.0  }
  0x14   : > { %v4090_v17 = vunpack.c.l.bf16 %v4245_v12  ;;  %v4091_v19 = vunpack.c.h.bf16 %v4245_v12  ;;  %v4110_v22 = vunpack.c.l.bf16 %v4250_v18  ;;  %v4049_v23 = vld [vmem:[%s4423_s14] sm:$0xff]   ;;  %v4111_v24 = vunpack.c.h.bf16 %v4250_v18  ;;  %v4236_v26 = vld [vmem:[%s4423_s14 + $0x8] sm:$0xff]   ;;  %v4242_v29 = vld [vmem:[%s4423_s14 + $0x38] sm:$0xff]  }
  0x15   : > { %508 = vst.msk [vmem:[#allocation2 + $0x50] sm:$0xff] %vm497_vm1, %v4070_v13  ;;  %v4114_v25 = vunpack.c.l.bf16 %v4251_v21  ;;  %v4050_v27 = vunpack.c.l.bf16 %v4049_v23  ;;  %v4051_v28 = vunpack.c.h.bf16 %v4049_v23  ;;  %v4054_v30 = vunpack.c.l.bf16 %v4236_v26  ;;  %v4247_v33 = vld [vmem:[%s4423_s14 + $0x60] sm:$0xff]   ;;  %v4252_v38 = vld [vmem:[%s4423_s14 + $0x88] sm:$0xff]   ;;  %v4237_v43 = vld [vmem:[%s4423_s14 + $0x10] sm:$0xff]  }
  0x16   : > { %509 = vst.msk [vmem:[#allocation2 + $0x58] sm:$0xff] %vm497_vm1, %v4071_v14  ;;  %v4075_v32 = vunpack.c.h.bf16 %v4241_v11  ;;  %v4078_v35 = vunpack.c.l.bf16 %v4242_v29  ;;  %v4095_v37 = vunpack.c.h.bf16 %v4246_v16  ;;  %v4098_v40 = vunpack.c.l.bf16 %v4247_v33  ;;  %v4243_v48 = vld [vmem:[%s4423_s14 + $0x40] sm:$0xff]   ;;  %v4248_v53 = vld [vmem:[%s4423_s14 + $0x68] sm:$0xff]   ;;  %v4253_v58 = vld [vmem:[%s4423_s14 + $0x90] sm:$0xff]  }
  0x17   : > { %510 = vst.msk [vmem:[#allocation2 + $0x60] sm:$0xff] %vm497_vm1, %v4074_v15  ;;  %v4115_v42 = vunpack.c.h.bf16 %v4251_v21  ;;  %v4118_v45 = vunpack.c.l.bf16 %v4252_v38  ;;  %v4055_v47 = vunpack.c.h.bf16 %v4236_v26  ;;  %v4058_v50 = vunpack.c.l.bf16 %v4237_v43  ;;  %v4238_v62 = vld [vmem:[%s4423_s14 + $0x18] sm:$0xff]   ;;  %v4244_v3 = vld [vmem:[%s4423_s14 + $0x48] sm:$0xff]   ;;  %v4249_v9 = vld [vmem:[%s4423_s14 + $0x70] sm:$0xff]  }
  0x18   : > { %518 = vst.msk [vmem:[#allocation2 + $0xa0] sm:$0xff] %vm497_vm1, %v4090_v17  ;;  %v4079_v52 = vunpack.c.h.bf16 %v4242_v29  ;;  %v4082_v55 = vunpack.c.l.bf16 %v4243_v48  ;;  %v4099_v57 = vunpack.c.h.bf16 %v4247_v33  ;;  %v4102_v60 = vunpack.c.l.bf16 %v4248_v53  ;;  %v4254_v12 = vld [vmem:[%s4423_s14 + $0x98] sm:$0xff]   ;;  %v4239_v18 = vld [vmem:[%s4423_s14 + $0x20] sm:$0xff]   ;;  %s5123_s14 = scalar_lea.vmem %s5650_s4, %s4280_s11 }
  0x19   : > { %519 = vst.msk [vmem:[#allocation2 + $0xa8] sm:$0xff] %vm497_vm1, %v4091_v19  ;;  %v4119_v61 = vunpack.c.h.bf16 %v4252_v38  ;;  %v4122_v1 = vunpack.c.l.bf16 %v4253_v58  ;;  %v4059_v2 = vunpack.c.h.bf16 %v4237_v43  ;;  %v4062_v4 = vunpack.c.l.bf16 %v4238_v62  ;;  %v4129_v29 = vld [vmem:[%s4493_s18] sm:$0xff]  }
  0x1a   : > { %520 = vst.msk [vmem:[#allocation2 + $0xb0] sm:$0xff] %vm497_vm1, %v4094_v20  ;;  %v4083_v8 = vunpack.c.h.bf16 %v4243_v48  ;;  %v4086_v10 = vunpack.c.l.bf16 %v4244_v3  ;;  %v4103_v11 = vunpack.c.h.bf16 %v4248_v53  ;;  %v4106_v16 = vunpack.c.l.bf16 %v4249_v9 }
  0x1b   : > { %528 = vst.msk [vmem:[#allocation2 + $0xf0] sm:$0xff] %vm497_vm1, %v4110_v22  ;;  %v4123_v17 = vunpack.c.h.bf16 %v4253_v58  ;;  %v4126_v19 = vunpack.c.l.bf16 %v4254_v12  ;;  %v4063_v23 = vunpack.c.h.bf16 %v4238_v62  ;;  %v4131_v43 = vunpack.c.h.bf16 %v4129_v29  ;;  %v3960_v62 = vld [vmem:[%s5648_s2 + $0xa] sm:$0x3] }
  0x1c   : > { %529 = vst.msk [vmem:[#allocation2 + $0xf8] sm:$0xff] %vm497_vm1, %v4111_v24  ;;  %v4066_v24 = vunpack.c.l.bf16 %v4239_v18 }
  0x1d   : > { %v624_v31 = vld [vmem:[#allocation2 + $0x51] sm:$0xff]  ;;  %530 = vst.msk [vmem:[#allocation2 + $0x100] sm:$0xff] %vm497_vm1, %v4114_v25 }
  0x1e   : > { %v625_v34 = vld [vmem:[#allocation2 + $0x59] sm:$0xff]  ;;  %498 = vst.msk [vmem:[#allocation2] sm:$0xff] %vm497_vm1, %v4050_v27 }
  0x1f   : > { %v659_v36 = vpack.c.bf16 %v625_v34, %v624_v31  ;;  %499 = vst.msk [vmem:[#allocation2 + $0x8] sm:$0xff] %vm497_vm1, %v4051_v28  ;;  %v4087_v28 = vunpack.c.h.bf16 %v4244_v3  ;;  %v4127_v31 = vunpack.c.h.bf16 %v4254_v12 }
  0x20   : > { %v634_v39 = vld [vmem:[#allocation2 + $0xa1] sm:$0xff]  ;;  %500 = vst.msk [vmem:[#allocation2 + $0x10] sm:$0xff] %vm497_vm1, %v4054_v30  ;;  %v4107_v30 = vunpack.c.h.bf16 %v4249_v9 }
  0x21   : > { %3862 = vmatmul.msk.bf16.vlgmr.msra.gmra.mxu1 %vm497_vm1, %v659_v36  ;;  %v635_v41 = vld [vmem:[#allocation2 + $0xa9] sm:$0xff]  ;;  %511 = vst.msk [vmem:[#allocation2 + $0x68] sm:$0xff] %vm497_vm1, %v4075_v32  ;;  %v4130_v32 = vunpack.c.l.bf16 %v4129_v29  ;;  %v4067_v36 = vunpack.c.h.bf16 %v4239_v18 }
  0x22   : > { %v664_v44 = vpack.c.bf16 %v635_v41, %v634_v39  ;;  %512 = vst.msk [vmem:[#allocation2 + $0x70] sm:$0xff] %vm497_vm1, %v4078_v35 }
  0x23   : > { %v644_v46 = vld [vmem:[#allocation2 + $0xf1] sm:$0xff]  ;;  %521 = vst.msk [vmem:[#allocation2 + $0xb8] sm:$0xff] %vm497_vm1, %v4095_v37 }
  0x24   : > { %3867 = vmatmul.msk.bf16.vlgmr.msra.gmra.mxu2 %vm497_vm1, %v664_v44  ;;  %v645_v49 = vld [vmem:[#allocation2 + $0xf9] sm:$0xff]  ;;  %522 = vst.msk [vmem:[#allocation2 + $0xc0] sm:$0xff] %vm497_vm1, %v4098_v40 }
  0x25   : > { %v669_v51 = vpack.c.bf16 %v645_v49, %v644_v46  ;;  %531 = vst.msk [vmem:[#allocation2 + $0x108] sm:$0xff] %vm497_vm1, %v4115_v42 }
  0x26   : > { %v614_v54 = vld [vmem:[#allocation2 + $0x1] sm:$0xff]  ;;  %532 = vst.msk [vmem:[#allocation2 + $0x110] sm:$0xff] %vm497_vm1, %v4118_v45 }
  0x27   : > { %3872 = vmatmul.msk.bf16.vlgmr.msra.gmra.mxu3 %vm497_vm1, %v669_v51  ;;  %v615_v56 = vld [vmem:[#allocation2 + $0x9] sm:$0xff]  ;;  %501 = vst.msk [vmem:[#allocation2 + $0x18] sm:$0xff] %vm497_vm1, %v4055_v47 }
  0x28   : > { %v654_v59 = vpack.c.bf16 %v615_v56, %v614_v54  ;;  %502 = vst.msk [vmem:[#allocation2 + $0x20] sm:$0xff] %vm497_vm1, %v4058_v50  ;;  %v626_v63 = vld [vmem:[#allocation2 + $0x61] sm:$0xff] }
  0x29   : > { %513 = vst.msk [vmem:[#allocation2 + $0x78] sm:$0xff] %vm497_vm1, %v4079_v52  ;;  %v627_v0 = vld [vmem:[#allocation2 + $0x69] sm:$0xff] }
  0x2a   : > { %3857 = vmatmul.msk.bf16.vlgmr.msra.gmra.mxu0 %vm497_vm1, %v654_v59  ;;  %514 = vst.msk [vmem:[#allocation2 + $0x80] sm:$0xff] %vm497_vm1, %v4082_v55  ;;  %v660_v5 = vpack.c.bf16 %v627_v0, %v626_v63  ;;  %v636_v6 = vld [vmem:[#allocation2 + $0xb1] sm:$0xff] }
  0x2b   : > { %523 = vst.msk [vmem:[#allocation2 + $0xc8] sm:$0xff] %vm497_vm1, %v4099_v57  ;;  %v637_v7 = vld [vmem:[#allocation2 + $0xb9] sm:$0xff]  ;;  %v3981_v57 = vld [vmem:[%s5648_s2 + $0xc] sm:$0x3]  ;;  %v4023_v63 = vld [vmem:[%s5648_s2 + $0x10] sm:$0x3] }
  0x2c   : > { %524 = vst.msk [vmem:[#allocation2 + $0xd0] sm:$0xff] %vm497_vm1, %v4102_v60  ;;  %v665_v13 = vpack.c.bf16 %v637_v7, %v636_v6  ;;  %v646_v14 = vld [vmem:[#allocation2 + $0x101] sm:$0xff]  ;;  %v2240_v58 = vsel %vm736_vm0, %v3981_v57, 0 }
  0x2d   : > { %533 = vst.msk [vmem:[#allocation2 + $0x118] sm:$0xff] %vm497_vm1, %v4119_v61  ;;  %v647_v15 = vld [vmem:[#allocation2 + $0x109] sm:$0xff]  ;;  %2249 = vmatpush.bf16.msra.mxu2 %v2240_v58 }
  0x2e   : > { %534 = vst.msk [vmem:[#allocation2 + $0x120] sm:$0xff] %vm497_vm1, %v4122_v1  ;;  %v670_v20 = vpack.c.bf16 %v647_v15, %v646_v14  ;;  %v616_v21 = vld [vmem:[#allocation2 + $0x11] sm:$0xff]  ;;  %v4002_v61 = vld [vmem:[%s5648_s2 + $0xe] sm:$0x3]  ;;  %v1966_v1 = vsel %vm736_vm0, %v3960_v62, 0 }
  0x2f   : > { %503 = vst.msk [vmem:[#allocation2 + $0x28] sm:$0xff] %vm497_vm1, %v4059_v2  ;;  %v617_v22 = vld [vmem:[#allocation2 + $0x19] sm:$0xff]  ;;  %v2514_v0 = vsel %vm736_vm0, %v4002_v61, 0  ;;  %v2788_v2 = vsel %vm736_vm0, %v4023_v63, 0  ;;  %1975 = vmatpush.bf16.msra.mxu1 %v1966_v1  ;;  %v554_v14 = vld [vmem:[#allocation2 + $0x8] sm:$0xff] }
  0x30   : > { %504 = vst.msk [vmem:[#allocation2 + $0x30] sm:$0xff] %vm497_vm1, %v4062_v4  ;;  %v655_v25 = vpack.c.bf16 %v617_v22, %v616_v21  ;;  %v628_v26 = vld [vmem:[#allocation2 + $0x71] sm:$0xff]  ;;  %2523 = vmatpush.bf16.msra.mxu3 %v2514_v0  ;;  %2797 = vmatpush.bf16.msra.mxu0 %v2788_v2  ;;  %v1304_v0 = vld [vmem:[#allocation2 + $0x5a] sm:$0xff] }
  0x31   : > { %3863 = vmatmul.msk.bf16.gmra.mxu1 %vm497_vm1, %v660_v5  ;;  %515 = vst.msk [vmem:[#allocation2 + $0x88] sm:$0xff] %vm497_vm1, %v4083_v8  ;;  %v629_v27 = vld [vmem:[#allocation2 + $0x79] sm:$0xff] }
  0x32   : > { %516 = vst.msk [vmem:[#allocation2 + $0x90] sm:$0xff] %vm497_vm1, %v4086_v10  ;;  %v661_v33 = vpack.c.bf16 %v629_v27, %v628_v26  ;;  %v638_v34 = vld [vmem:[#allocation2 + $0xc1] sm:$0xff]  ;;  %v1569_v22 = vld [vmem:[#allocation2 + $0x13] sm:$0xff] }
  0x33   : > { %525 = vst.msk [vmem:[#allocation2 + $0xd8] sm:$0xff] %vm497_vm1, %v4103_v11  ;;  %v639_v35 = vld [vmem:[#allocation2 + $0xc9] sm:$0xff]  ;;  %v556_v26 = vld [vmem:[#allocation2 + $0x18] sm:$0xff] }
  0x34   : > { %3868 = vmatmul.msk.bf16.gmra.mxu2 %vm497_vm1, %v665_v13  ;;  %526 = vst.msk [vmem:[#allocation2 + $0xe0] sm:$0xff] %vm497_vm1, %v4106_v16  ;;  %v666_v37 = vpack.c.bf16 %v639_v35, %v638_v34  ;;  %v648_v38 = vld [vmem:[#allocation2 + $0x111] sm:$0xff]  ;;  %v553_v13 = vld [vmem:[#allocation2] sm:$0xff] }
  0x35   : > { %535 = vst.msk [vmem:[#allocation2 + $0x128] sm:$0xff] %vm497_vm1, %v4123_v17  ;;  %v649_v39 = vld [vmem:[#allocation2 + $0x119] sm:$0xff]  ;;  %v593_v15 = vpack.c.bf16 %v554_v14, %v553_v13  ;;  %v1021_v16 = vld [vmem:[#allocation2 + $0x2] sm:$0xff]  ;;  %v1022_v17 = vld [vmem:[#allocation2 + $0xa] sm:$0xff] }
  0x36   : > { %536 = vst.msk [vmem:[#allocation2 + $0x130] sm:$0xff] %vm497_vm1, %v4126_v19  ;;  %v671_v40 = vpack.c.bf16 %v649_v39, %v648_v38  ;;  %v618_v41 = vld [vmem:[#allocation2 + $0x21] sm:$0xff]  ;;  %v1061_v18 = vpack.c.bf16 %v1022_v17, %v1021_v16  ;;  %v1295_v19 = vld [vmem:[#allocation2 + $0x12] sm:$0xff]  ;;  %v1306_v17 = vld [vmem:[#allocation2 + $0x6a] sm:$0xff] }
  0x37   : > { %3873 = vmatmul.msk.bf16.gmra.mxu3 %vm497_vm1, %v670_v20  ;;  %505 = vst.msk [vmem:[#allocation2 + $0x38] sm:$0xff] %vm497_vm1, %v4063_v23  ;;  %v619_v42 = vld [vmem:[#allocation2 + $0x29] sm:$0xff]  ;;  %v1296_v20 = vld [vmem:[#allocation2 + $0x1a] sm:$0xff]  ;;  %v1303_v63 = vld [vmem:[#allocation2 + $0x52] sm:$0xff] }
  0x38   : > { %506 = vst.msk [vmem:[#allocation2 + $0x40] sm:$0xff] %vm497_vm1, %v4066_v24  ;;  %v656_v44 = vpack.c.bf16 %v619_v42, %v618_v41  ;;  %v630_v45 = vld [vmem:[#allocation2 + $0x81] sm:$0xff]  ;;  %v1335_v21 = vpack.c.bf16 %v1296_v20, %v1295_v19  ;;  %v1298_v29 = vld [vmem:[#allocation2 + $0x2a] sm:$0xff]  ;;  %v1339_v2 = vpack.c.bf16 %v1304_v0, %v1303_v63 }
  0x39   : > { %517 = vst.msk [vmem:[#allocation2 + $0x98] sm:$0xff] %vm497_vm1, %v4087_v28  ;;  %v631_v46 = vld [vmem:[#allocation2 + $0x89] sm:$0xff]  ;;  %v1570_v23 = vld [vmem:[#allocation2 + $0x1b] sm:$0xff] }
  0x3a   : > { %3858 = vmatmul.msk.bf16.gmra.mxu0 %vm497_vm1, %v655_v25  ;;  %527 = vst.msk [vmem:[#allocation2 + $0xe8] sm:$0xff] %vm497_vm1, %v4107_v30  ;;  %v662_v47 = vpack.c.bf16 %v631_v46, %v630_v45  ;;  %v640_v48 = vld [vmem:[#allocation2 + $0xd1] sm:$0xff]  ;;  %v1609_v24 = vpack.c.bf16 %v1570_v23, %v1569_v22  ;;  %v1297_v28 = vld [vmem:[#allocation2 + $0x22] sm:$0xff] }
  0x3b   : > { %537 = vst.msk [vmem:[#allocation2 + $0x138] sm:$0xff] %vm497_vm1, %v4127_v31  ;;  %v641_v49 = vld [vmem:[#allocation2 + $0xd9] sm:$0xff]  ;;  %v555_v25 = vld [vmem:[#allocation2 + $0x10] sm:$0xff]  ;;  %v1336_v30 = vpack.c.bf16 %v1298_v29, %v1297_v28  ;;  %v1571_v31 = vld [vmem:[#allocation2 + $0x23] sm:$0xff] }
  0x3c   : > { %548 = vst.msk [vmem:[#allocation2 + $0x140] sm:$0xff] %vm497_vm1, %v4130_v32  ;;  %v667_v50 = vpack.c.bf16 %v641_v49, %v640_v48  ;;  %v650_v51 = vld [vmem:[#allocation2 + $0x121] sm:$0xff]  ;;  %v594_v27 = vpack.c.bf16 %v556_v26, %v555_v25  ;;  %v1572_v32 = vld [vmem:[#allocation2 + $0x2b] sm:$0xff] }
  0x3d   : > { %507 = vst.msk [vmem:[#allocation2 + $0x48] sm:$0xff] %vm497_vm1, %v4067_v36  ;;  %v651_v52 = vld [vmem:[#allocation2 + $0x129] sm:$0xff]  ;;  %v557_v34 = vld [vmem:[#allocation2 + $0x20] sm:$0xff] }
  0x3e   : > { %549 = vst.msk [vmem:[#allocation2 + $0x148] sm:$0xff] %vm497_vm1, %v4131_v43  ;;  %v672_v53 = vpack.c.bf16 %v651_v52, %v650_v51  ;;  %v620_v54 = vld [vmem:[#allocation2 + $0x31] sm:$0xff]  ;;  %v558_v35 = vld [vmem:[#allocation2 + $0x28] sm:$0xff] }
  0x3f   : > { %v621_v55 = vld [vmem:[#allocation2 + $0x39] sm:$0xff]  ;;  %v595_v36 = vpack.c.bf16 %v558_v35, %v557_v34  ;;  %v559_v43 = vld [vmem:[#allocation2 + $0x30] sm:$0xff]  ;;  %v1305_v16 = vld [vmem:[#allocation2 + $0x62] sm:$0xff] }
  0x40   : > { %v657_v56 = vpack.c.bf16 %v621_v55, %v620_v54  ;;  %v632_v59 = vld [vmem:[#allocation2 + $0x91] sm:$0xff]  ;;  %v633_v60 = vld [vmem:[#allocation2 + $0x99] sm:$0xff]  ;;  %v1340_v19 = vpack.c.bf16 %v1306_v17, %v1305_v16  ;;  %v1579_v20 = vld [vmem:[#allocation2 + $0x63] sm:$0xff] }
  0x41   : > { %3864 = vmatmul.msk.bf16.gmra.mxu1 %vm497_vm1, %v661_v33  ;;  %v663_v3 = vpack.c.bf16 %v633_v60, %v632_v59  ;;  %v642_v4 = vld [vmem:[#allocation2 + $0xe1] sm:$0xff]  ;;  %v643_v5 = vld [vmem:[#allocation2 + $0xe9] sm:$0xff]  ;;  %v1610_v33 = vpack.c.bf16 %v1572_v32, %v1571_v31 }
  0x42   : > { %v668_v6 = vpack.c.bf16 %v643_v5, %v642_v4  ;;  %v652_v7 = vld [vmem:[#allocation2 + $0x131] sm:$0xff]  ;;  %v1300_v38 = vld [vmem:[#allocation2 + $0x3a] sm:$0xff]  ;;  %v566_v28 = vld [vmem:[#allocation2 + $0x68] sm:$0xff] }
  0x43   : > { %v653_v8 = vld [vmem:[#allocation2 + $0x139] sm:$0xff]  ;;  %v1584_v63 = vld [vmem:[#allocation2 + $0x8b] sm:$0xff] }
  0x44   : > { %3869 = vmatmul.msk.bf16.gmra.mxu2 %vm497_vm1, %v666_v37  ;;  %v673_v9 = vpack.c.bf16 %v653_v8, %v652_v7  ;;  %v622_v10 = vld [vmem:[#allocation2 + $0x41] sm:$0xff]  ;;  %v623_v11 = vld [vmem:[#allocation2 + $0x49] sm:$0xff]  ;;  %v1299_v37 = vld [vmem:[#allocation2 + $0x32] sm:$0xff] }
  0x45   : > { %v658_v12 = vpack.c.bf16 %v623_v11, %v622_v10  ;;  %v1337_v39 = vpack.c.bf16 %v1300_v38, %v1299_v37  ;;  %v1574_v41 = vld [vmem:[#allocation2 + $0x3b] sm:$0xff]  ;;  %v1302_v48 = vld [vmem:[#allocation2 + $0x4a] sm:$0xff]  ;;  %v1581_v37 = vld [vmem:[#allocation2 + $0x73] sm:$0xff] }
  0x46   : > { %v1576_v51 = vld [vmem:[#allocation2 + $0x4b] sm:$0xff]  ;;  %v561_v57 = vld [vmem:[#allocation2 + $0x40] sm:$0xff]  ;;  %v564_v11 = vld [vmem:[#allocation2 + $0x58] sm:$0xff] }
  0x47   : > { %3874 = vmatmul.msk.bf16.gmra.mxu3 %vm497_vm1, %v671_v40  ;;  %v1573_v40 = vld [vmem:[#allocation2 + $0x33] sm:$0xff]  ;;  %v562_v58 = vld [vmem:[#allocation2 + $0x48] sm:$0xff]  ;;  %v1578_v4 = vld [vmem:[#allocation2 + $0x5b] sm:$0xff] }
  0x48   : > { %v1611_v42 = vpack.c.bf16 %v1574_v41, %v1573_v40  ;;  %v597_v59 = vpack.c.bf16 %v562_v58, %v561_v57  ;;  %v563_v10 = vld [vmem:[#allocation2 + $0x50] sm:$0xff]  ;;  %v1308_v34 = vld [vmem:[#allocation2 + $0x7a] sm:$0xff] }
  0x49   : > { %v1582_v38 = vld [vmem:[#allocation2 + $0x7b] sm:$0xff] }
  0x4a   : > { %3859 = vmatmul.msk.bf16.gmra.mxu0 %vm497_vm1, %v656_v44  ;;  %v560_v44 = vld [vmem:[#allocation2 + $0x38] sm:$0xff] }
  0x4b   : > { %v596_v45 = vpack.c.bf16 %v560_v44, %v559_v43  ;;  %v567_v44 = vld [vmem:[#allocation2 + $0x70] sm:$0xff] }
  0x51   : > { %3865 = vmatmul.msk.bf16.gmra.mxu1 %vm497_vm1, %v662_v47  ;;  %v1301_v47 = vld [vmem:[#allocation2 + $0x42] sm:$0xff] }
  0x52   : > { %v1338_v49 = vpack.c.bf16 %v1302_v48, %v1301_v47 }
  0x54   : > { %3870 = vmatmul.msk.bf16.gmra.mxu2 %vm497_vm1, %v667_v50  ;;  %v1575_v50 = vld [vmem:[#allocation2 + $0x43] sm:$0xff] }
  0x55   : > { %v1612_v52 = vpack.c.bf16 %v1576_v51, %v1575_v50  ;;  %v1309_v51 = vld [vmem:[#allocation2 + $0x82] sm:$0xff] }
  0x57   : > { %3875 = vmatmul.msk.bf16.gmra.mxu3 %vm497_vm1, %v672_v53 }
  0x5a   : > { %3860 = vmatmul.msk.bf16.gmra.mxu0 %vm497_vm1, %v657_v56 }
  0x61   : > { %3866 = vmatmul.msk.bf16.gmra.mxu1 %vm497_vm1, %v663_v3  ;;  %v1577_v3 = vld [vmem:[#allocation2 + $0x53] sm:$0xff] }
  0x62   : > { %v1613_v5 = vpack.c.bf16 %v1578_v4, %v1577_v3 }
  0x64   : > { %3871 = vmatmul.msk.bf16.gmra.mxu2 %vm497_vm1, %v668_v6 }
  0x67   : > { %3876 = vmatmul.msk.bf16.gmra.mxu3 %vm497_vm1, %v673_v9 }
  0x6a   : > { %3861 = vmatmul.msk.bf16.gmra.mxu0 %vm497_vm1, %v658_v12  ;;  %v598_v12 = vpack.c.bf16 %v564_v11, %v563_v10  ;;  %v569_v10 = vld [vmem:[#allocation2 + $0x80] sm:$0xff]  ;;  %v570_v11 = vld [vmem:[#allocation2 + $0x88] sm:$0xff] }
  0x71   : > { %3877 = vmatmul.msk.bf16.vlgmr.msrb.gmra.mxu1 %vm497_vm1, %v593_v15 }
  0x74   : > { %3898 = vmatmul.msk.bf16.vlgmr.msrb.gmra.mxu2 %vm497_vm1, %v1061_v18 }
  0x77   : > { %3919 = vmatmul.msk.bf16.vlgmr.msrb.gmra.mxu3 %vm497_vm1, %v1335_v21 }
  0x7a   : > { %3940 = vmatmul.msk.bf16.vlgmr.msrb.gmra.mxu0 %vm497_vm1, %v1609_v24 }
  0x81   : > { %3878 = vmatmul.msk.bf16.gmra.mxu1 %vm497_vm1, %v594_v27  ;;  %v565_v27 = vld [vmem:[#allocation2 + $0x60] sm:$0xff] }
  0x82   : > { %v599_v29 = vpack.c.bf16 %v566_v28, %v565_v27 }
  0x84   : > { %3899 = vmatmul.msk.bf16.gmra.mxu2 %vm497_vm1, %v1335_v21  ;;  %v1580_v21 = vld [vmem:[#allocation2 + $0x6b] sm:$0xff] }
  0x85   : > { %v1614_v22 = vpack.c.bf16 %v1580_v21, %v1579_v20  ;;  %v1311_v21 = vld [vmem:[#allocation2 + $0x92] sm:$0xff] }
  0x87   : > { %3920 = vmatmul.msk.bf16.gmra.mxu3 %vm497_vm1, %v1336_v30 }
  0x8a   : > { %3941 = vmatmul.msk.bf16.gmra.mxu0 %vm497_vm1, %v1610_v33  ;;  %v1307_v33 = vld [vmem:[#allocation2 + $0x72] sm:$0xff] }
  0x91   : > { %3879 = vmatmul.msk.bf16.gmra.mxu1 %vm497_vm1, %v595_v36  ;;  %v1341_v36 = vpack.c.bf16 %v1308_v34, %v1307_v33  ;;  %v1586_v33 = vld [vmem:[#allocation2 + $0x9b] sm:$0xff] }
  0x94   : > { %3900 = vmatmul.msk.bf16.gmra.mxu2 %vm497_vm1, %v1336_v30 }
  0x97   : > { %3921 = vmatmul.msk.bf16.gmra.mxu3 %vm497_vm1, %v1337_v39 }
  0x9a   : > { %3942 = vmatmul.msk.bf16.gmra.mxu0 %vm497_vm1, %v1611_v42 }
  0x9e   : > { %v4543_v46 = vpop.f32.mrf.mxu1 }
  0xa1   : > { %3880 = vmatmul.msk.bf16.gmra.mxu1 %vm497_vm1, %v596_v45  ;;  %v568_v45 = vld [vmem:[#allocation2 + $0x78] sm:$0xff] }
  0xa2   : > { %v600_v47 = vpack.c.bf16 %v568_v45, %v567_v44  ;;  %v571_v45 = vld [vmem:[#allocation2 + $0x90] sm:$0xff] }
  0xa4   : > { %3901 = vmatmul.msk.bf16.gmra.mxu2 %vm497_vm1, %v1337_v39  ;;  %v1615_v39 = vpack.c.bf16 %v1582_v38, %v1581_v37 }
  0xa6   : > { %v4547_v53 = vpop.f32.mrf.mxu1 }
  0xa7   : > { %v4549_v54 = vpop.f32.mrf.mxu0  ;;  %3922 = vmatmul.msk.bf16.gmra.mxu3 %vm497_vm1, %v1338_v49  ;;  %v4552_v55 = vpop.f32.mrf.mxu2 }
  0xaa   : > { %3943 = vmatmul.msk.bf16.gmra.mxu0 %vm497_vm1, %v1612_v52  ;;  %v4555_v56 = vpop.f32.mrf.mxu3  ;;  %v1310_v52 = vld [vmem:[#allocation2 + $0x8a] sm:$0xff] }
  0xab   : > { %v1342_v58 = vpack.c.bf16 %v1310_v52, %v1309_v51 }
  0xae   : > { %v4557_v60 = vpop.f32.mrf.mxu1 }
  0xaf   : > { %v4559_v61 = vpop.f32.mrf.mxu0  ;;  %v4561_v62 = vpop.f32.mrf.mxu2 }
  0xb1   : > { %3881 = vmatmul.msk.bf16.gmra.mxu1 %vm497_vm1, %v597_v59  ;;  %v1583_v59 = vld [vmem:[#allocation2 + $0x83] sm:$0xff] }
  0xb2   : > { %v4564_v1 = vpop.f32.mrf.mxu3  ;;  %v1616_v0 = vpack.c.bf16 %v1584_v63, %v1583_v59 }
  0xb4   : > { %3902 = vmatmul.msk.bf16.gmra.mxu2 %vm497_vm1, %v1338_v49 }
  0xb6   : > { %v4567_v6 = vpop.f32.mrf.mxu1 }
  0xb7   : > { %v4569_v7 = vpop.f32.mrf.mxu0  ;;  %3923 = vmatmul.msk.bf16.gmra.mxu3 %vm497_vm1, %v1339_v2  ;;  %v4572_v8 = vpop.f32.mrf.mxu2 }
  0xba   : > { %3944 = vmatmul.msk.bf16.gmra.mxu0 %vm497_vm1, %v1613_v5  ;;  %v4575_v9 = vpop.f32.mrf.mxu3 }
  0xbe   : > { %v4577_v13 = vpop.f32.mrf.mxu1 }
  0xbf   : > { %v4579_v14 = vpop.f32.mrf.mxu0  ;;  %v4581_v15 = vpop.f32.mrf.mxu2 }
  0xc1   : > { %3882 = vmatmul.msk.bf16.gmra.mxu1 %vm497_vm1, %v598_v12  ;;  %v601_v12 = vpack.c.bf16 %v570_v11, %v569_v10 }
  0xc2   : > { %v4584_v18 = vpop.f32.mrf.mxu3 }
  0xc4   : > { %3903 = vmatmul.msk.bf16.gmra.mxu2 %vm497_vm1, %v1339_v2 }
  0xc6   : > { %v4587_v23 = vpop.f32.mrf.mxu1 }
  0xc7   : > { %v4589_v24 = vpop.f32.mrf.mxu0  ;;  %3924 = vmatmul.msk.bf16.gmra.mxu3 %vm497_vm1, %v1340_v19  ;;  %v4592_v25 = vpop.f32.mrf.mxu2 }
  0xca   : > { %3945 = vmatmul.msk.bf16.gmra.mxu0 %vm497_vm1, %v1614_v22  ;;  %v4595_v26 = vpop.f32.mrf.mxu3  ;;  %v1312_v22 = vld [vmem:[#allocation2 + $0x9a] sm:$0xff] }
  0xcb   : > { %v1343_v28 = vpack.c.bf16 %v1312_v22, %v1311_v21  ;;  %v1587_v22 = vld [vmem:[#allocation2 + $0xa3] sm:$0xff] }
  0xce   : > { %v4597_v30 = vpop.f32.mrf.mxu1 }
  0xcf   : > { %v4599_v31 = vpop.f32.mrf.mxu0  ;;  %v4601_v32 = vpop.f32.mrf.mxu2 }
  0xd1   : > { %3883 = vmatmul.msk.bf16.gmra.mxu1 %vm497_vm1, %v599_v29  ;;  %v1585_v29 = vld [vmem:[#allocation2 + $0x93] sm:$0xff] }
  0xd2   : > { %v4604_v35 = vpop.f32.mrf.mxu3  ;;  %v1617_v34 = vpack.c.bf16 %v1586_v33, %v1585_v29  ;;  %v1588_v29 = vld [vmem:[#allocation2 + $0xab] sm:$0xff] }
  0xd4   : > { %3904 = vmatmul.msk.bf16.gmra.mxu2 %vm497_vm1, %v1340_v19 }
  0xd6   : > { %v4607_v40 = vpop.f32.mrf.mxu1 }
  0xd7   : > { %v4609_v41 = vpop.f32.mrf.mxu0  ;;  %3925 = vmatmul.msk.bf16.gmra.mxu3 %vm497_vm1, %v1341_v36  ;;  %v4612_v42 = vpop.f32.mrf.mxu2 }
  0xda   : > { %3946 = vmatmul.msk.bf16.gmra.mxu0 %vm497_vm1, %v1615_v39  ;;  %v4615_v43 = vpop.f32.mrf.mxu3 }
  0xde   : > { %v4617_v48 = vpop.f32.mrf.mxu1 }
  0xdf   : > { %v4619_v49 = vpop.f32.mrf.mxu0  ;;  %v4621_v50 = vpop.f32.mrf.mxu2 }
  0xe1   : > { %3884 = vmatmul.msk.bf16.gmra.mxu1 %vm497_vm1, %v600_v47  ;;  %v572_v47 = vld [vmem:[#allocation2 + $0x98] sm:$0xff] }
  0xe2   : > { %v4624_v57 = vpop.f32.mrf.mxu3  ;;  %v602_v52 = vpack.c.bf16 %v572_v47, %v571_v45  ;;  %v574_v45 = vld [vmem:[#allocation2 + $0xa8] sm:$0xff] }
  0xe4   : > { %3905 = vmatmul.msk.bf16.gmra.mxu2 %vm497_vm1, %v1341_v36 }
  0xe6   : > { %v4627_v2 = vpop.f32.mrf.mxu1 }
  0xe7   : > { %v4629_v3 = vpop.f32.mrf.mxu0  ;;  %3926 = vmatmul.msk.bf16.gmra.mxu3 %vm497_vm1, %v1342_v58  ;;  %v4632_v4 = vpop.f32.mrf.mxu2 }
  0xea   : > { %3947 = vmatmul.msk.bf16.gmra.mxu0 %vm497_vm1, %v1616_v0  ;;  %v4635_v5 = vpop.f32.mrf.mxu3 }
  0xee   : > { %v921_v16 = vpop.f32.mrf.mxu1 }
  0xef   : > { %v4637_v17 = vpop.f32.mrf.mxu0  ;;  %v4639_v19 = vpop.f32.mrf.mxu2  ;;  %v922_v20 = vadd.f32 %v921_v16, %v4549_v54  ;;  %v1314_v16 = vld [vmem:[#allocation2 + $0xaa] sm:$0xff] }
  0xf1   : > { %3885 = vmatmul.msk.bf16.gmra.mxu1 %vm497_vm1, %v601_v12  ;;  %v1313_v12 = vld [vmem:[#allocation2 + $0xa2] sm:$0xff] }
  0xf2   : > { %v4643_v27 = vpop.f32.mrf.mxu3  ;;  %v1344_v21 = vpack.c.bf16 %v1314_v16, %v1313_v12  ;;  %v1315_v12 = vld [vmem:[#allocation2 + $0xb2] sm:$0xff]  ;;  %v1316_v16 = vld [vmem:[#allocation2 + $0xba] sm:$0xff] }
  0xf4   : > { %3906 = vmatmul.msk.bf16.gmra.mxu2 %vm497_vm1, %v1342_v58 }
  0xf6   : > { %v923_v36 = vpop.f32.mrf.mxu1 }
  0xf7   : > { %v1703_v37 = vpop.f32.mrf.mxu0  ;;  %3927 = vmatmul.msk.bf16.gmra.mxu3 %vm497_vm1, %v1343_v28  ;;  %v1155_v38 = vpop.f32.mrf.mxu2  ;;  %v924_v39 = vadd.f32 %v923_v36, %v4559_v61 }
  0xf8   : > { %v1255_v54 = vadd.f32 %v1155_v38, %v922_v20 }
  0xfa   : > { %3948 = vmatmul.msk.bf16.gmra.mxu0 %vm497_vm1, %v1617_v34  ;;  %v1429_v44 = vpop.f32.mrf.mxu3  ;;  %v1618_v34 = vpack.c.bf16 %v1588_v29, %v1587_v22  ;;  %v1590_v22 = vld [vmem:[#allocation2 + $0xbb] sm:$0xff] }
  0xfb   : > { %v1529_v51 = vadd.f32 %v1429_v44, %v1255_v54  ;;  %v573_v44 = vld [vmem:[#allocation2 + $0xa0] sm:$0xff] }
  0xfd   : > { %v4649_v59 = vadd.f32 %v1703_v37, %v1529_v51  ;;  %v603_v51 = vpack.c.bf16 %v574_v45, %v573_v44  ;;  %v576_v44 = vld [vmem:[#allocation2 + $0xb8] sm:$0xff] }
  0xfe   : > { %v926_v63 = vpop.f32.mrf.mxu1 }
  0xff   : > { %v1705_v58 = vpop.f32.mrf.mxu0  ;;  %v1157_v0 = vpop.f32.mrf.mxu2  ;;  %v927_v10 = vadd.f32 %v926_v63, %v4569_v7 }
 0x100   : > { %v1256_v11 = vadd.f32 %v1157_v0, %v924_v39 }
 0x101   : > { %3886 = vmatmul.msk.bf16.gmra.mxu1 %vm497_vm1, %v602_v52 }
 0x102   : > { %v1431_v61 = vpop.f32.mrf.mxu3 }
 0x103   : > { %v1530_v20 = vadd.f32 %v1431_v61, %v1256_v11  ;;  %v1345_v61 = vpack.c.bf16 %v1316_v16, %v1315_v12  ;;  %v1317_v12 = vld [vmem:[#allocation2 + $0xc2] sm:$0xff]  ;;  %v1318_v16 = vld [vmem:[#allocation2 + $0xca] sm:$0xff] }
 0x104   : > { %3907 = vmatmul.msk.bf16.gmra.mxu2 %vm497_vm1, %v1343_v28 }
 0x105   : > { %v4654_v33 = vadd.f32 %v1705_v58, %v1530_v20  ;;  %v1589_v20 = vld [vmem:[#allocation2 + $0xb3] sm:$0xff] }
 0x106   : > { %v928_v36 = vpop.f32.mrf.mxu1 }
 0x107   : > { %v1708_v37 = vpop.f32.mrf.mxu0  ;;  %3928 = vmatmul.msk.bf16.gmra.mxu3 %vm497_vm1, %v1344_v21  ;;  %v1160_v7 = vpop.f32.mrf.mxu2  ;;  %v929_v38 = vadd.f32 %v928_v36, %v4579_v14 }
 0x108   : > { %v1257_v39 = vadd.f32 %v1160_v7, %v927_v10 }
 0x10a   : > { %3949 = vmatmul.msk.bf16.gmra.mxu0 %vm497_vm1, %v1618_v34  ;;  %v1434_v54 = vpop.f32.mrf.mxu3  ;;  %v1619_v34 = vpack.c.bf16 %v1590_v22, %v1589_v20  ;;  %v1592_v20 = vld [vmem:[#allocation2 + $0xcb] sm:$0xff] }
 0x10b   : > { %v1531_v47 = vadd.f32 %v1434_v54, %v1257_v39  ;;  %v575_v54 = vld [vmem:[#allocation2 + $0xb0] sm:$0xff] }
 0x10d   : > { %v4659_v52 = vadd.f32 %v1708_v37, %v1531_v47  ;;  %v604_v47 = vpack.c.bf16 %v576_v44, %v575_v54  ;;  %v578_v54 = vld [vmem:[#allocation2 + $0xc8] sm:$0xff] }
 0x10e   : > { %v931_v28 = vpop.f32.mrf.mxu1 }
 0x10f   : > { %v1710_v63 = vpop.f32.mrf.mxu0  ;;  %v1162_v58 = vpop.f32.mrf.mxu2  ;;  %v932_v0 = vadd.f32 %v931_v28, %v4589_v24 }
 0x110   : > { %v1258_v11 = vadd.f32 %v1162_v58, %v929_v38 }
 0x111   : > { %3887 = vmatmul.msk.bf16.gmra.mxu1 %vm497_vm1, %v603_v51 }
 0x112   : > { %v1436_v14 = vpop.f32.mrf.mxu3 }
 0x113   : > { %v1532_v10 = vadd.f32 %v1436_v14, %v1258_v11  ;;  %v1346_v14 = vpack.c.bf16 %v1318_v16, %v1317_v12  ;;  %v1319_v12 = vld [vmem:[#allocation2 + $0xd2] sm:$0xff]  ;;  %v1320_v16 = vld [vmem:[#allocation2 + $0xda] sm:$0xff] }
 0x114   : > { %3908 = vmatmul.msk.bf16.gmra.mxu2 %vm497_vm1, %v1344_v21 }
 0x115   : > { %v4664_v29 = vadd.f32 %v1710_v63, %v1532_v10  ;;  %v1591_v10 = vld [vmem:[#allocation2 + $0xc3] sm:$0xff] }
 0x116   : > { %v933_v36 = vpop.f32.mrf.mxu1 }
 0x117   : > { %v1713_v37 = vpop.f32.mrf.mxu0  ;;  %3929 = vmatmul.msk.bf16.gmra.mxu3 %vm497_vm1, %v1345_v61  ;;  %v1165_v24 = vpop.f32.mrf.mxu2  ;;  %v934_v7 = vadd.f32 %v933_v36, %v4599_v31 }
 0x118   : > { %v1259_v38 = vadd.f32 %v1165_v24, %v932_v0 }
 0x11a   : > { %3950 = vmatmul.msk.bf16.gmra.mxu0 %vm497_vm1, %v1619_v34  ;;  %v1439_v39 = vpop.f32.mrf.mxu3  ;;  %v1620_v34 = vpack.c.bf16 %v1592_v20, %v1591_v10  ;;  %v1594_v10 = vld [vmem:[#allocation2 + $0xdb] sm:$0xff] }
 0x11b   : > { %v1533_v45 = vadd.f32 %v1439_v39, %v1259_v38  ;;  %v577_v39 = vld [vmem:[#allocation2 + $0xc0] sm:$0xff] }
 0x11d   : > { %v4669_v51 = vadd.f32 %v1713_v37, %v1533_v45  ;;  %v605_v45 = vpack.c.bf16 %v578_v54, %v577_v39  ;;  %v580_v39 = vld [vmem:[#allocation2 + $0xd8] sm:$0xff] }
 0x11e   : > { %v936_v21 = vpop.f32.mrf.mxu1 }
 0x11f   : > { %v1715_v28 = vpop.f32.mrf.mxu0  ;;  %v1167_v63 = vpop.f32.mrf.mxu2  ;;  %v937_v58 = vadd.f32 %v936_v21, %v4609_v41 }
 0x120   : > { %v1260_v11 = vadd.f32 %v1167_v63, %v934_v7 }
 0x121   : > { %3888 = vmatmul.msk.bf16.gmra.mxu1 %vm497_vm1, %v604_v47 }
 0x122   : > { %v1441_v31 = vpop.f32.mrf.mxu3 }
 0x123   : > { %v1534_v0 = vadd.f32 %v1441_v31, %v1260_v11  ;;  %v1347_v31 = vpack.c.bf16 %v1320_v16, %v1319_v12  ;;  %v1322_v12 = vld [vmem:[#allocation2 + $0xea] sm:$0xff] }
 0x124   : > { %3909 = vmatmul.msk.bf16.gmra.mxu2 %vm497_vm1, %v1345_v61 }
 0x125   : > { %v4674_v22 = vadd.f32 %v1715_v28, %v1534_v0  ;;  %v1593_v0 = vld [vmem:[#allocation2 + $0xd3] sm:$0xff] }
 0x126   : > { %v938_v36 = vpop.f32.mrf.mxu1 }
 0x127   : > { %v1718_v37 = vpop.f32.mrf.mxu0  ;;  %3930 = vmatmul.msk.bf16.gmra.mxu3 %vm497_vm1, %v1346_v14  ;;  %v1170_v41 = vpop.f32.mrf.mxu2  ;;  %v939_v24 = vadd.f32 %v938_v36, %v4619_v49 }
 0x128   : > { %v1261_v7 = vadd.f32 %v1170_v41, %v937_v58 }
 0x12a   : > { %3951 = vmatmul.msk.bf16.gmra.mxu0 %vm497_vm1, %v1620_v34  ;;  %v1444_v38 = vpop.f32.mrf.mxu3  ;;  %v1621_v34 = vpack.c.bf16 %v1594_v10, %v1593_v0 }
 0x12b   : > { %v1535_v44 = vadd.f32 %v1444_v38, %v1261_v7  ;;  %v579_v38 = vld [vmem:[#allocation2 + $0xd0] sm:$0xff] }
 0x12d   : > { %v4679_v47 = vadd.f32 %v1718_v37, %v1535_v44  ;;  %v606_v44 = vpack.c.bf16 %v580_v39, %v579_v38  ;;  %v582_v38 = vld [vmem:[#allocation2 + $0xe8] sm:$0xff] }
 0x12e   : > { %v941_v61 = vpop.f32.mrf.mxu1 }
 0x12f   : > { %v1720_v21 = vpop.f32.mrf.mxu0  ;;  %v1172_v28 = vpop.f32.mrf.mxu2  ;;  %v942_v63 = vadd.f32 %v941_v61, %v4629_v3 }
 0x130   : > { %v1262_v11 = vadd.f32 %v1172_v28, %v939_v24 }
 0x131   : > { %3889 = vmatmul.msk.bf16.gmra.mxu1 %vm497_vm1, %v605_v45 }
 0x132   : > { %v1446_v49 = vpop.f32.mrf.mxu3 }
 0x133   : > { %v1536_v58 = vadd.f32 %v1446_v49, %v1262_v11  ;;  %v1321_v11 = vld [vmem:[#allocation2 + $0xe2] sm:$0xff] }
 0x134   : > { %3910 = vmatmul.msk.bf16.gmra.mxu2 %vm497_vm1, %v1346_v14  ;;  %v1595_v49 = vld [vmem:[#allocation2 + $0xe3] sm:$0xff] }
 0x135   : > { %v4684_v20 = vadd.f32 %v1720_v21, %v1536_v58  ;;  %v1596_v58 = vld [vmem:[#allocation2 + $0xeb] sm:$0xff] }
 0x136   : > { %v943_v36 = vpop.f32.mrf.mxu1 }
 0x137   : > { %v1723_v37 = vpop.f32.mrf.mxu0  ;;  %3931 = vmatmul.msk.bf16.gmra.mxu3 %vm497_vm1, %v1347_v31  ;;  %v1175_v3 = vpop.f32.mrf.mxu2  ;;  %v944_v41 = vadd.f32 %v943_v36, %v4637_v17 }
 0x138   : > { %v1263_v24 = vadd.f32 %v1175_v3, %v942_v63  ;;  %v1348_v63 = vpack.c.bf16 %v1322_v12, %v1321_v11  ;;  %v1324_v11 = vld [vmem:[#allocation2 + $0xfa] sm:$0xff] }
 0x13a   : > { %3952 = vmatmul.msk.bf16.gmra.mxu0 %vm497_vm1, %v1621_v34  ;;  %v1449_v7 = vpop.f32.mrf.mxu3  ;;  %v1622_v34 = vpack.c.bf16 %v1596_v58, %v1595_v49  ;;  %v1597_v49 = vld [vmem:[#allocation2 + $0xf3] sm:$0xff]  ;;  %v1598_v58 = vld [vmem:[#allocation2 + $0xfb] sm:$0xff] }
 0x13b   : > { %v1537_v54 = vadd.f32 %v1449_v7, %v1263_v24  ;;  %v581_v7 = vld [vmem:[#allocation2 + $0xe0] sm:$0xff] }
 0x13d   : > { %v4689_v45 = vadd.f32 %v1723_v37, %v1537_v54  ;;  %v607_v54 = vpack.c.bf16 %v582_v38, %v581_v7  ;;  %v583_v7 = vld [vmem:[#allocation2 + $0xf0] sm:$0xff]  ;;  %v584_v38 = vld [vmem:[#allocation2 + $0xf8] sm:$0xff] }
 0x13e   : > { %v946_v14 = vpop.f32.mrf.mxu1 }
 0x13f   : > { %v1725_v61 = vpop.f32.mrf.mxu0  ;;  %v1177_v21 = vpop.f32.mrf.mxu2  ;;  %v947_v10 = vadd.f32 %v946_v14, %v4543_v46 }
 0x140   : > { %v1264_v28 = vadd.f32 %v1177_v21, %v944_v41 }
 0x141   : > { %3890 = vmatmul.msk.bf16.gmra.mxu1 %vm497_vm1, %v606_v44 }
 0x142   : > { %v1451_v16 = vpop.f32.mrf.mxu3 }
 0x143   : > { %v1538_v17 = vadd.f32 %v1451_v16, %v1264_v28  ;;  %v1323_v28 = vld [vmem:[#allocation2 + $0xf2] sm:$0xff] }
 0x144   : > { %3911 = vmatmul.msk.bf16.gmra.mxu2 %vm497_vm1, %v1347_v31 }
 0x145   : > { %v4693_v0 = vadd.f32 %v1725_v61, %v1538_v17  ;;  %v1349_v17 = vpack.c.bf16 %v1324_v11, %v1323_v28  ;;  %v1326_v28 = vld [vmem:[#allocation2 + $0x10a] sm:$0xff] }
 0x146   : > { %v948_v36 = vpop.f32.mrf.mxu1 }
 0x147   : > { %v1728_v37 = vpop.f32.mrf.mxu0  ;;  %3932 = vmatmul.msk.bf16.gmra.mxu3 %vm497_vm1, %v1348_v63  ;;  %v1180_v3 = vpop.f32.mrf.mxu2  ;;  %v949_v31 = vadd.f32 %v948_v36, %v4547_v53  ;;  %v1623_v53 = vpack.c.bf16 %v1598_v58, %v1597_v49  ;;  %v1599_v49 = vld [vmem:[#allocation2 + $0x103] sm:$0xff]  ;;  %v1600_v58 = vld [vmem:[#allocation2 + $0x10b] sm:$0xff] }
 0x148   : > { %v1265_v41 = vadd.f32 %v1180_v3, %v947_v10 }
 0x14a   : > { %3953 = vmatmul.msk.bf16.gmra.mxu0 %vm497_vm1, %v1622_v34  ;;  %v1454_v24 = vpop.f32.mrf.mxu3 }
 0x14b   : > { %v1539_v39 = vadd.f32 %v1454_v24, %v1265_v41 }
 0x14d   : > { %v4698_v44 = vadd.f32 %v1728_v37, %v1539_v39 }
 0x14e   : > { %v951_v61 = vpop.f32.mrf.mxu1 }
 0x14f   : > { %v1730_v46 = vpop.f32.mrf.mxu0  ;;  %v1182_v14 = vpop.f32.mrf.mxu2  ;;  %v952_v34 = vadd.f32 %v951_v61, %v4557_v60 }
 0x150   : > { %v1266_v21 = vadd.f32 %v1182_v14, %v949_v31 }
 0x151   : > { %3891 = vmatmul.msk.bf16.gmra.mxu1 %vm497_vm1, %v607_v54  ;;  %v608_v54 = vpack.c.bf16 %v584_v38, %v583_v7  ;;  %v585_v7 = vld [vmem:[#allocation2 + $0x100] sm:$0xff]  ;;  %v586_v38 = vld [vmem:[#allocation2 + $0x108] sm:$0xff] }
 0x152   : > { %v1456_v12 = vpop.f32.mrf.mxu3 }
 0x153   : > { %v1540_v16 = vadd.f32 %v1456_v12, %v1266_v21  ;;  %v1325_v21 = vld [vmem:[#allocation2 + $0x102] sm:$0xff] }
 0x154   : > { %3912 = vmatmul.msk.bf16.gmra.mxu2 %vm497_vm1, %v1348_v63 }
 0x155   : > { %v4703_v10 = vadd.f32 %v1730_v46, %v1540_v16  ;;  %v1350_v16 = vpack.c.bf16 %v1326_v28, %v1325_v21  ;;  %v1328_v21 = vld [vmem:[#allocation2 + $0x11a] sm:$0xff] }
 0x156   : > { %v953_v36 = vpop.f32.mrf.mxu1 }
 0x157   : > { %v1733_v37 = vpop.f32.mrf.mxu0  ;;  %3933 = vmatmul.msk.bf16.gmra.mxu3 %vm497_vm1, %v1349_v17  ;;  %v1185_v3 = vpop.f32.mrf.mxu2  ;;  %v954_v63 = vadd.f32 %v953_v36, %v4567_v6  ;;  %v1624_v6 = vpack.c.bf16 %v1600_v58, %v1599_v49  ;;  %v1601_v49 = vld [vmem:[#allocation2 + $0x113] sm:$0xff]  ;;  %v1602_v58 = vld [vmem:[#allocation2 + $0x11b] sm:$0xff] }
 0x158   : > { %v1267_v41 = vadd.f32 %v1185_v3, %v952_v34 }
 0x15a   : > { %3954 = vmatmul.msk.bf16.gmra.mxu0 %vm497_vm1, %v1623_v53  ;;  %v1459_v24 = vpop.f32.mrf.mxu3 }
 0x15b   : > { %v1541_v39 = vadd.f32 %v1459_v24, %v1267_v41 }
 0x15d   : > { %v4708_v31 = vadd.f32 %v1733_v37, %v1541_v39 }
 0x15e   : > { %v956_v46 = vpop.f32.mrf.mxu1 }
 0x15f   : > { %v1735_v60 = vpop.f32.mrf.mxu0  ;;  %v1187_v61 = vpop.f32.mrf.mxu2  ;;  %v957_v53 = vadd.f32 %v956_v46, %v4577_v13 }
 0x160   : > { %v1268_v14 = vadd.f32 %v1187_v61, %v954_v63 }
 0x161   : > { %3892 = vmatmul.msk.bf16.gmra.mxu1 %vm497_vm1, %v608_v54  ;;  %v609_v54 = vpack.c.bf16 %v586_v38, %v585_v7  ;;  %v587_v7 = vld [vmem:[#allocation2 + $0x110] sm:$0xff]  ;;  %v588_v38 = vld [vmem:[#allocation2 + $0x118] sm:$0xff] }
 0x162   : > { %v1461_v11 = vpop.f32.mrf.mxu3 }
 0x163   : > { %v1542_v12 = vadd.f32 %v1461_v11, %v1268_v14  ;;  %v1327_v14 = vld [vmem:[#allocation2 + $0x112] sm:$0xff] }
 0x164   : > { %3913 = vmatmul.msk.bf16.gmra.mxu2 %vm497_vm1, %v1349_v17 }
 0x165   : > { %v4713_v34 = vadd.f32 %v1735_v60, %v1542_v12  ;;  %v1351_v12 = vpack.c.bf16 %v1328_v21, %v1327_v14  ;;  %v1329_v21 = vld [vmem:[#allocation2 + $0x122] sm:$0xff] }
 0x166   : > { %v958_v36 = vpop.f32.mrf.mxu1 }
 0x167   : > { %v1738_v37 = vpop.f32.mrf.mxu0  ;;  %3934 = vmatmul.msk.bf16.gmra.mxu3 %vm497_vm1, %v1350_v16  ;;  %v1190_v3 = vpop.f32.mrf.mxu2  ;;  %v959_v17 = vadd.f32 %v958_v36, %v4587_v23 }
 0x168   : > { %v1269_v41 = vadd.f32 %v1190_v3, %v957_v53 }
 0x16a   : > { %3955 = vmatmul.msk.bf16.gmra.mxu0 %vm497_vm1, %v1624_v6  ;;  %v1464_v24 = vpop.f32.mrf.mxu3  ;;  %v1625_v6 = vpack.c.bf16 %v1602_v58, %v1601_v49 }
 0x16b   : > { %v1543_v39 = vadd.f32 %v1464_v24, %v1269_v41 }
 0x16d   : > { %v4718_v63 = vadd.f32 %v1738_v37, %v1543_v39 }
 0x16e   : > { %v961_v60 = vpop.f32.mrf.mxu1 }
 0x16f   : > { %v1740_v13 = vpop.f32.mrf.mxu0  ;;  %v1192_v46 = vpop.f32.mrf.mxu2  ;;  %v962_v23 = vadd.f32 %v961_v60, %v4597_v30 }
 0x170   : > { %v1270_v61 = vadd.f32 %v1192_v46, %v959_v17 }
 0x171   : > { %3893 = vmatmul.msk.bf16.gmra.mxu1 %vm497_vm1, %v609_v54  ;;  %v4255_v54 = vld [vmem:[%s4493_s18 + $0x8] sm:$0xff]  }
 0x172   : > { %v1466_v28 = vpop.f32.mrf.mxu3  ;;  %v4134_v17 = vunpack.c.l.bf16 %v4255_v54  ;;  %v590_v54 = vld [vmem:[#allocation2 + $0x128] sm:$0xff] }
 0x173   : > { %v1544_v11 = vadd.f32 %v1466_v28, %v1270_v61  ;;  %v1330_v28 = vld [vmem:[#allocation2 + $0x12a] sm:$0xff] }
 0x174   : > { %3914 = vmatmul.msk.bf16.gmra.mxu2 %vm497_vm1, %v1350_v16  ;;  %v610_v16 = vpack.c.bf16 %v588_v38, %v587_v7  ;;  %550 = vst.msk [vmem:[#allocation2 + $0x150] sm:$0xff] %vm497_vm1, %v4134_v17  ;;  %v1352_v58 = vpack.c.bf16 %v1330_v28, %v1329_v21  ;;  %v1332_v21 = vld [vmem:[#allocation2 + $0x13a] sm:$0xff] }
 0x175   : > { %v4723_v53 = vadd.f32 %v1740_v13, %v1544_v11 }
 0x176   : > { %v963_v36 = vpop.f32.mrf.mxu1 }
 0x177   : > { %v1743_v37 = vpop.f32.mrf.mxu0  ;;  %3935 = vmatmul.msk.bf16.gmra.mxu3 %vm497_vm1, %v1351_v12  ;;  %v1195_v3 = vpop.f32.mrf.mxu2  ;;  %v964_v30 = vadd.f32 %v963_v36, %v4607_v40 }
 0x178   : > { %v1271_v41 = vadd.f32 %v1195_v3, %v962_v23  ;;  %v1603_v23 = vld [vmem:[#allocation2 + $0x123] sm:$0xff] }
 0x17a   : > { %3956 = vmatmul.msk.bf16.gmra.mxu0 %vm497_vm1, %v1625_v6  ;;  %v1469_v24 = vpop.f32.mrf.mxu3  ;;  %v1604_v6 = vld [vmem:[#allocation2 + $0x12b] sm:$0xff] }
 0x17b   : > { %v1545_v39 = vadd.f32 %v1469_v24, %v1271_v41  ;;  %v1626_v36 = vpack.c.bf16 %v1604_v6, %v1603_v23  ;;  %v1605_v23 = vld [vmem:[#allocation2 + $0x133] sm:$0xff]  ;;  %v1606_v6 = vld [vmem:[#allocation2 + $0x13b] sm:$0xff] }
 0x17d   : > { %v4729_v13 = vadd.f32 %v1743_v37, %v1545_v39  ;;  %v589_v39 = vld [vmem:[#allocation2 + $0x120] sm:$0xff] }
 0x17e   : > { %v966_v60 = vpop.f32.mrf.mxu1 }
 0x17f   : > { %v1745_v46 = vpop.f32.mrf.mxu0  ;;  %v1197_v61 = vpop.f32.mrf.mxu2  ;;  %v967_v40 = vadd.f32 %v966_v60, %v4617_v48 }
 0x180   : > { %v1272_v14 = vadd.f32 %v1197_v61, %v964_v30 }
 0x181   : > { %3894 = vmatmul.msk.bf16.gmra.mxu1 %vm497_vm1, %v610_v16  ;;  %v611_v16 = vpack.c.bf16 %v590_v54, %v589_v39  ;;  %v591_v39 = vld [vmem:[#allocation2 + $0x130] sm:$0xff]  ;;  %v592_v54 = vld [vmem:[#allocation2 + $0x138] sm:$0xff] }
 0x182   : > { %v1471_v11 = vpop.f32.mrf.mxu3 }
 0x183   : > { %v1546_v49 = vadd.f32 %v1471_v11, %v1272_v14  ;;  %v1331_v14 = vld [vmem:[#allocation2 + $0x132] sm:$0xff] }
 0x184   : > { %3915 = vmatmul.msk.bf16.gmra.mxu2 %vm497_vm1, %v1351_v12 }
 0x185   : > { %v4735_v37 = vadd.f32 %v1745_v46, %v1546_v49  ;;  %v1353_v49 = vpack.c.bf16 %v1332_v21, %v1331_v14  ;;  %v1334_v14 = vld [vmem:[#allocation2 + $0x14a] sm:$0xff] }
 0x186   : > { %v968_v3 = vpop.f32.mrf.mxu1 }
 0x187   : > { %v1748_v41 = vpop.f32.mrf.mxu0  ;;  %3936 = vmatmul.msk.bf16.gmra.mxu3 %vm497_vm1, %v1352_v58  ;;  %v1200_v24 = vpop.f32.mrf.mxu2  ;;  %v969_v12 = vadd.f32 %v968_v3, %v4627_v2  ;;  %v1627_v2 = vpack.c.bf16 %v1606_v6, %v1605_v23  ;;  %v1607_v23 = vld [vmem:[#allocation2 + $0x143] sm:$0xff]  ;;  %v1608_v6 = vld [vmem:[#allocation2 + $0x14b] sm:$0xff] }
 0x188   : > { %v1273_v7 = vadd.f32 %v1200_v24, %v967_v40 }
 0x18a   : > { %3957 = vmatmul.msk.bf16.gmra.mxu0 %vm497_vm1, %v1626_v36  ;;  %v1474_v38 = vpop.f32.mrf.mxu3 }
 0x18b   : > { %v1547_v17 = vadd.f32 %v1474_v38, %v1273_v7 }
 0x18d   : > { %v4740_v30 = vadd.f32 %v1748_v41, %v1547_v17 }
 0x18e   : > { %v971_v46 = vpop.f32.mrf.mxu1 }
 0x18f   : > { %v1750_v48 = vpop.f32.mrf.mxu0  ;;  %v1202_v60 = vpop.f32.mrf.mxu2  ;;  %v972_v36 = vadd.f32 %v971_v46, %v4552_v55 }
 0x190   : > { %v1274_v61 = vadd.f32 %v1202_v60, %v969_v12 }
 0x191   : > { %3895 = vmatmul.msk.bf16.gmra.mxu1 %vm497_vm1, %v611_v16  ;;  %v612_v16 = vpack.c.bf16 %v592_v54, %v591_v39  ;;  %v1843_v39 = vld [vmem:[#allocation2 + $0x14] sm:$0xff]  ;;  %v1844_v54 = vld [vmem:[#allocation2 + $0x1c] sm:$0xff] }
 0x192   : > { %v1476_v28 = vpop.f32.mrf.mxu3 }
 0x193   : > { %v1548_v11 = vadd.f32 %v1476_v28, %v1274_v61  ;;  %v1333_v61 = vld [vmem:[#allocation2 + $0x142] sm:$0xff] }
 0x194   : > { %3916 = vmatmul.msk.bf16.gmra.mxu2 %vm497_vm1, %v1352_v58 }
 0x195   : > { %v4745_v40 = vadd.f32 %v1750_v48, %v1548_v11  ;;  %v1354_v11 = vpack.c.bf16 %v1334_v14, %v1333_v61  ;;  %v4766_v61 = vld [vmem:[%s5649_s3] sm:$0xff] }
 0x196   : > { %v973_v3 = vpop.f32.mrf.mxu1 }
 0x197   : > { %v1753_v41 = vpop.f32.mrf.mxu0  ;;  %3937 = vmatmul.msk.bf16.gmra.mxu3 %vm497_vm1, %v1353_v49  ;;  %v1205_v24 = vpop.f32.mrf.mxu2  ;;  %v974_v58 = vadd.f32 %v973_v3, %v4561_v62  ;;  %v1628_v62 = vpack.c.bf16 %v1608_v6, %v1607_v23  ;;  %v4340_v23 = vmov 0  }
 0x198   : > { %v1275_v7 = vadd.f32 %v1205_v24, %v972_v36  ;;  %4310 = vset.pattern.permute.xlu0 %v4340_v23  ;;  %4311 = vset.pattern.permute.xlu1 %v4340_v23 }
 0x199   : > { %3191 = vperm.xlu0 %4310, %v4766_v61   ;;  %4312 = vset.pattern.permute.xlu2 %v4340_v23 }
 0x19a   : > { %3958 = vmatmul.msk.bf16.gmra.mxu0 %vm497_vm1, %v1627_v2  ;;  %v1479_v38 = vpop.f32.mrf.mxu3 }
 0x19b   : > { %v1549_v17 = vadd.f32 %v1479_v38, %v1275_v7 }
 0x19d   : > { %v4750_v12 = vadd.f32 %v1753_v41, %v1549_v17 }
 0x19e   : > { %v976_v48 = vpop.f32.mrf.mxu1 }
 0x19f   : > { %v1755_v55 = vpop.f32.mrf.mxu0  ;;  %v1207_v46 = vpop.f32.mrf.mxu2  ;;  %v977_v2 = vadd.f32 %v976_v48, %v4572_v8 }
 0x1a0   : > { %v1276_v60 = vadd.f32 %v1207_v46, %v974_v58  ;;  %v2117_v58 = vld [vmem:[#allocation2 + $0x24] sm:$0xff] }
 0x1a1   : > { %3896 = vmatmul.msk.bf16.gmra.mxu1 %vm497_vm1, %v612_v16  ;;  %v1883_v16 = vpack.c.bf16 %v1844_v54, %v1843_v39 }
 0x1a2   : > { %v1481_v21 = vpop.f32.mrf.mxu3 }
 0x1a3   : > { %v1550_v28 = vadd.f32 %v1481_v21, %v1276_v60 }
 0x1a4   : > { %3917 = vmatmul.msk.bf16.gmra.mxu2 %vm497_vm1, %v1353_v49  ;;  %v2118_v49 = vld [vmem:[#allocation2 + $0x2c] sm:$0xff] }
 0x1a5   : > { %v4755_v36 = vadd.f32 %v1755_v55, %v1550_v28  ;;  %v2157_v21 = vpack.c.bf16 %v2118_v49, %v2117_v58  ;;  %v2391_v28 = vld [vmem:[#allocation2 + $0x25] sm:$0xff] }
 0x1a6   : > { %v978_v3 = vpop.f32.mrf.mxu1 }
 0x1a7   : > { %v1758_v41 = vpop.f32.mrf.mxu0  ;;  %3938 = vmatmul.msk.bf16.gmra.mxu3 %vm497_vm1, %v1354_v11  ;;  %v1210_v24 = vpop.f32.mrf.mxu2  ;;  %v979_v8 = vadd.f32 %v978_v3, %v4581_v15  ;;  %v2392_v11 = vld [vmem:[#allocation2 + $0x2d] sm:$0xff] }
 0x1a8   : > { %v1277_v7 = vadd.f32 %v1210_v24, %v977_v2  ;;  %v2431_v2 = vpack.c.bf16 %v2392_v11, %v2391_v28  ;;  %v2666_v3 = vld [vmem:[#allocation2 + $0x2e] sm:$0xff] }
 0x1a9   : > { %v3061_v11 = vld [vmem:[%s5649_s3 + $0x10] sm:$0xff] }
 0x1aa   : > { %3959 = vmatmul.msk.bf16.gmra.mxu0 %vm497_vm1, %v1628_v62  ;;  %v1484_v38 = vpop.f32.mrf.mxu3  ;;  %v2665_v62 = vld [vmem:[#allocation2 + $0x26] sm:$0xff] }
 0x1ab   : > { %v1551_v17 = vadd.f32 %v1484_v38, %v1277_v7  ;;  %v2705_v7 = vpack.c.bf16 %v2666_v3, %v2665_v62 }
 0x1ad   : > { %v4760_v55 = vadd.f32 %v1758_v41, %v1551_v17  ;;  %v3060_v17 = vld [vmem:[%s5649_s3 + $0x8] sm:$0xff] }
 0x1ae   : > { %v981_v48 = vpop.f32.mrf.mxu1  ;;  %3196 = vperm.xlu1 %4311, %v3060_v17  }
 0x1af   : > { %v1760_v46 = vpop.f32.mrf.mxu0  ;;  %v1212_v60 = vpop.f32.mrf.mxu2  ;;  %v982_v24 = vadd.f32 %v981_v48, %v4592_v25 }
 0x1b0   : > { %v1278_v14 = vadd.f32 %v1212_v60, %v979_v8  ;;  %v2119_v8 = vld [vmem:[#allocation2 + $0x34] sm:$0xff] }
 0x1b1   : > { %3961 = vmatmul.msk.bf16.vlgmr.msra.gmra.mxu1 %vm497_vm1, %v1883_v16 }
 0x1b2   : > { %v1486_v15 = vpop.f32.mrf.mxu3 }
 0x1b3   : > { %v1552_v6 = vadd.f32 %v1486_v15, %v1278_v14 }
 0x1b4   : > { %3982 = vmatmul.msk.bf16.vlgmr.msra.gmra.mxu2 %vm497_vm1, %v2157_v21 }
 0x1b5   : > { %v4771_v41 = vadd.f32 %v1760_v46, %v1552_v6  ;;  %v2120_v46 = vld [vmem:[#allocation2 + $0x3c] sm:$0xff] }
 0x1b6   : > { %v983_v38 = vpop.f32.mrf.mxu1  ;;  %v2158_v15 = vpack.c.bf16 %v2120_v46, %v2119_v8  ;;  %v2393_v6 = vld [vmem:[#allocation2 + $0x35] sm:$0xff]  ;;  %3201 = vperm.xlu1 %4311, %v3061_v11  }
 0x1b7   : > { %v1763_v39 = vpop.f32.mrf.mxu0  ;;  %4003 = vmatmul.msk.bf16.vlgmr.msra.gmra.mxu3 %vm497_vm1, %v2431_v2  ;;  %v1215_v54 = vpop.f32.mrf.mxu2  ;;  %v984_v25 = vadd.f32 %v983_v38, %v4601_v32  ;;  %v2394_v2 = vld [vmem:[#allocation2 + $0x3d] sm:$0xff] }
 0x1b8   : > { %v1279_v16 = vadd.f32 %v1215_v54, %v982_v24  ;;  %v2432_v24 = vpack.c.bf16 %v2394_v2, %v2393_v6 }
 0x1ba   : > { %4024 = vmatmul.msk.bf16.vlgmr.msra.gmra.mxu0 %vm497_vm1, %v2705_v7  ;;  %v1489_v58 = vpop.f32.mrf.mxu3  ;;  %v2667_v7 = vld [vmem:[#allocation2 + $0x36] sm:$0xff] }
 0x1bb   : > { %v1553_v49 = vadd.f32 %v1489_v58, %v1279_v16 }
 0x1bd   : > { %v4779_v60 = vadd.f32 %v1763_v39, %v1553_v49  ;;  %v2668_v39 = vld [vmem:[#allocation2 + $0x3e] sm:$0xff] }
 0x1be   : > { %v986_v48 = vpop.f32.mrf.mxu1  ;;  %v2706_v54 = vpack.c.bf16 %v2668_v39, %v2667_v7  ;;  %v2396_v7 = vld [vmem:[#allocation2 + $0x4d] sm:$0xff] }
 0x1bf   : > { %v1765_v14 = vpop.f32.mrf.mxu0  ;;  %v1217_v28 = vpop.f32.mrf.mxu2  ;;  %v987_v38 = vadd.f32 %v986_v48, %v4612_v42 }
 0x1c0   : > { %v1280_v23 = vadd.f32 %v1217_v28, %v984_v25  ;;  %v2121_v25 = vld [vmem:[#allocation2 + $0x44] sm:$0xff]  ;;  %v2122_v28 = vld [vmem:[#allocation2 + $0x4c] sm:$0xff] }
 0x1c1   : > { %3962 = vmatmul.msk.bf16.gmra.mxu1 %vm497_vm1, %v2157_v21 }
 0x1c2   : > { %v1491_v62 = vpop.f32.mrf.mxu3 }
 0x1c3   : > { %v1554_v3 = vadd.f32 %v1491_v62, %v1280_v23  ;;  %v2159_v62 = vpack.c.bf16 %v2122_v28, %v2121_v25 }
 0x1c4   : > { %3983 = vmatmul.msk.bf16.gmra.mxu2 %vm497_vm1, %v2158_v15 }
 0x1c5   : > { %v4787_v32 = vadd.f32 %v1765_v14, %v1554_v3  ;;  %v2395_v3 = vld [vmem:[#allocation2 + $0x45] sm:$0xff] }
 0x1c6   : > { %v988_v16 = vpop.f32.mrf.mxu1 }
 0x1c7   : > { %v1768_v58 = vpop.f32.mrf.mxu0  ;;  %4004 = vmatmul.msk.bf16.gmra.mxu3 %vm497_vm1, %v2432_v24  ;;  %v1220_v49 = vpop.f32.mrf.mxu2  ;;  %v989_v14 = vadd.f32 %v988_v16, %v4621_v50  ;;  %v3101_v50 = vsel %vm3099_vm2, %v3060_v17, 0.0 }
 0x1c8   : > { %v1281_v8 = vadd.f32 %v1220_v49, %v987_v38  ;;  %v2433_v38 = vpack.c.bf16 %v2396_v7, %v2395_v3  ;;  %v2670_v49 = vld [vmem:[#allocation2 + $0x4e] sm:$0xff]  ;;  %v2124_v3 = vld [vmem:[#allocation2 + $0x5c] sm:$0xff] }
 0x1c9   : > { %v3062_v7 = vld [vmem:[%s5649_s3 + $0x18] sm:$0xff] }
 0x1ca   : > { %4025 = vmatmul.msk.bf16.gmra.mxu0 %vm497_vm1, %v2706_v54  ;;  %v1494_v21 = vpop.f32.mrf.mxu3  ;;  %v2669_v54 = vld [vmem:[#allocation2 + $0x46] sm:$0xff]  ;;  %3206 = vperm.xlu2 %4312, %v3062_v7  }
 0x1cb   : > { %v1555_v46 = vadd.f32 %v1494_v21, %v1281_v8  ;;  %v2707_v21 = vpack.c.bf16 %v2670_v49, %v2669_v54 }
 0x1cd   : > { %v4792_v23 = vadd.f32 %v1768_v58, %v1555_v46  ;;  %v3100_v58 = vsel %vm3099_vm2, %v4766_v61, 0.0 }
 0x1ce   : > { %v991_v6 = vpop.f32.mrf.mxu1 }
 0x1cf   : > { %v1770_v2 = vpop.f32.mrf.mxu0  ;;  %v1222_v42 = vpop.f32.mrf.mxu2  ;;  %v992_v8 = vadd.f32 %v991_v6, %v4632_v4  ;;  %v4812_v6 = vld [vmem:[%s5649_s3 + $0x68] sm:$0xff] }
 0x1d0   : > { %v1282_v48 = vadd.f32 %v1222_v42, %v989_v14  ;;  %v3064_v14 = vld [vmem:[%s5649_s3 + $0x28] sm:$0xff]  ;;  %v3103_v42 = vsel %vm3099_vm2, %v3061_v11, 0.0  ;;  %3256 = vperm.xlu0 %4310, %v4812_v6  }
 0x1d1   : > { %3963 = vmatmul.msk.bf16.gmra.mxu1 %vm497_vm1, %v2158_v15  ;;  %v3102_v15 = vadd.f32 %v3101_v50, %v3100_v58  ;;  %3216 = vperm.xlu1 %4311, %v3064_v14   ;;  %v3063_v50 = vld [vmem:[%s5649_s3 + $0x20] sm:$0xff] }
 0x1d2   : > { %v1496_v24 = vpop.f32.mrf.mxu3  ;;  %3211 = vperm.xlu2 %4312, %v3063_v50  }
 0x1d3   : > { %v1556_v39 = vadd.f32 %v1496_v24, %v1282_v48  ;;  %v3104_v4 = vadd.f32 %v3103_v42, %v3102_v15  ;;  %v2123_v48 = vld [vmem:[#allocation2 + $0x54] sm:$0xff] }
 0x1d4   : > { %3984 = vmatmul.msk.bf16.gmra.mxu2 %vm497_vm1, %v2159_v62  ;;  %v2397_v15 = vld [vmem:[#allocation2 + $0x55] sm:$0xff] }
 0x1d5   : > { %v4800_v16 = vadd.f32 %v1770_v2, %v1556_v39  ;;  %v2671_v42 = vld [vmem:[#allocation2 + $0x56] sm:$0xff] }
 0x1d6   : > { %v993_v46 = vpop.f32.mrf.mxu1 }
 0x1d7   : > { %v1773_v25 = vpop.f32.mrf.mxu0  ;;  %4005 = vmatmul.msk.bf16.gmra.mxu3 %vm497_vm1, %v2433_v38  ;;  %v1225_v28 = vpop.f32.mrf.mxu2  ;;  %v994_v24 = vadd.f32 %v993_v46, %v4639_v19  ;;  %v3105_v38 = vsel %vm3099_vm2, %v3062_v7, 0.0  ;;  %v3107_v19 = vsel %vm3099_vm2, %v3063_v50, 0.0  ;;  %v4833_v7 = vld [vmem:[%s5649_s3 + $0x80] sm:$0xff]  ;;  %v3068_v50 = vld [vmem:[%s5649_s3 + $0x48] sm:$0xff] }
 0x1d8   : > { %v1283_v61 = vadd.f32 %v1225_v28, %v992_v8  ;;  %v3106_v58 = vadd.f32 %v3105_v38, %v3104_v4  ;;  %v2398_v28 = vld [vmem:[#allocation2 + $0x5d] sm:$0xff]  ;;  %3271 = vperm.xlu0 %4310, %v4833_v7  }
 0x1d9   : > { %v2672_v4 = vld [vmem:[#allocation2 + $0x5e] sm:$0xff] }
 0x1da   : > { %4026 = vmatmul.msk.bf16.gmra.mxu0 %vm497_vm1, %v2707_v21  ;;  %v1499_v17 = vpop.f32.mrf.mxu3  ;;  %v4825_v21 = vpack.c.bf16 %v2124_v3, %v2123_v48  ;;  %v3108_v46 = vadd.f32 %v3107_v19, %v3106_v58  ;;  %v3065_v48 = vld [vmem:[%s5649_s3 + $0x30] sm:$0xff] }
 0x1db   : > { %v1557_v2 = vadd.f32 %v1499_v17, %v1283_v61  ;;  %3221 = vperm.xlu2 %4312, %v3065_v48  }
 0x1dd   : > { %v4818_v11 = vadd.f32 %v1773_v25, %v1557_v2  ;;  %v3109_v25 = vsel %vm3099_vm2, %v3064_v14, 0.0  ;;  %v2434_v2 = vpack.c.bf16 %v2398_v28, %v2397_v15 }
 0x1de   : > { %v996_v39 = vpop.f32.mrf.mxu1  ;;  %v3110_v14 = vadd.f32 %v3109_v25, %v3108_v46 }
 0x1df   : > { %5690 = vst [vmem:[#allocation3_spill] sm:$0xff] %v4818_v11  ;;  %v1775_v54 = vpop.f32.mrf.mxu0  ;;  %v1227_v49 = vpop.f32.mrf.mxu2  ;;  %v997_v38 = vadd.f32 %v996_v39, %v4555_v56 }
 0x1e0   : > { %v1284_v8 = vadd.f32 %v1227_v49, %v994_v24  ;;  %v2708_v49 = vpack.c.bf16 %v2672_v4, %v2671_v42  ;;  %v4867_v4 = vld [vmem:[%s5649_s3 + $0x50] sm:$0xff] }
 0x1e1   : > { %3964 = vmatmul.msk.bf16.gmra.mxu1 %vm497_vm1, %v2159_v62  ;;  %v3111_v62 = vsel %vm3099_vm2, %v3065_v48, 0.0 }
 0x1e2   : > { %v1501_v61 = vpop.f32.mrf.mxu3  ;;  %v3112_v3 = vadd.f32 %v3111_v62, %v3110_v14  ;;  %v3119_v14 = vsel %vm3099_vm2, %v4867_v4, 0.0 }
 0x1e3   : > { %v1558_v17 = vadd.f32 %v1501_v61, %v1284_v8  ;;  %v3066_v8 = vld [vmem:[%s5649_s3 + $0x38] sm:$0xff]  ;;  %v3117_v61 = vsel %vm3099_vm2, %v3068_v50, 0.0 }
 0x1e4   : > { %3985 = vmatmul.msk.bf16.gmra.mxu2 %vm497_vm1, %v4825_v21  ;;  %v3113_v25 = vsel %vm3099_vm2, %v3066_v8, 0.0  ;;  %3226 = vperm.xlu1 %4311, %v3066_v8  }
 0x1e5   : > { %v4842_v24 = vadd.f32 %v1775_v54, %v1558_v17  ;;  %v3067_v54 = vld [vmem:[%s5649_s3 + $0x40] sm:$0xff]  ;;  %v3114_v39 = vadd.f32 %v3113_v25, %v3112_v3 }
 0x1e6   : > { %v998_v58 = vpop.f32.mrf.mxu1  ;;  %v3115_v56 = vsel %vm3099_vm2, %v3067_v54, 0.0  ;;  %v2125_v3 = vld [vmem:[#allocation2 + $0x64] sm:$0xff]  ;;  %3231 = vperm.xlu2 %4312, %v3067_v54  }
 0x1e7   : > { %5691 = vst [vmem:[#allocation4_spill] sm:$0xff] %v4842_v24  ;;  %v1778_v15 = vpop.f32.mrf.mxu0  ;;  %4006 = vmatmul.msk.bf16.gmra.mxu3 %vm497_vm1, %v2434_v2  ;;  %v1230_v28 = vpop.f32.mrf.mxu2  ;;  %v3116_v42 = vadd.f32 %v3115_v56, %v3114_v39  ;;  %v4862_v2 = vld [vmem:[%s5649_s3 + $0x98] sm:$0xff]  ;;  %v3076_v54 = vld [vmem:[%s5649_s3 + $0x88] sm:$0xff] }
 0x1e8   : > { %v1285_v19 = vadd.f32 %v1230_v28, %v997_v38  ;;  %3286 = vperm.xlu0 %4310, %v4862_v2   ;;  %v2126_v38 = vld [vmem:[#allocation2 + $0x6c] sm:$0xff]  ;;  %v999_v28 = vadd.f32 %v998_v58, %v4564_v1  ;;  %v3125_v58 = vsel %vm3099_vm2, %v4812_v6, 0.0 }
 0x1e9   : > { %v3118_v62 = vadd.f32 %v3117_v61, %v3116_v42  ;;  %v4882_v61 = vld [vmem:[%s5649_s3 + $0x60] sm:$0xff]  ;;  %v4884_v24 = vpack.c.bf16 %v2126_v38, %v2125_v3  ;;  %v3081_v3 = vld [vmem:[%s5649_s3 + $0xb0] sm:$0xff] }
 0x1ea   : > { %4027 = vmatmul.msk.bf16.gmra.mxu0 %vm497_vm1, %v2708_v49  ;;  %v1504_v46 = vpop.f32.mrf.mxu3  ;;  %v3070_v49 = vld [vmem:[%s5649_s3 + $0x58] sm:$0xff]  ;;  %v3123_v1 = vsel %vm3099_vm2, %v4882_v61, 0.0  ;;  %v3073_v38 = vld [vmem:[%s5649_s3 + $0x70] sm:$0xff] }
 0x1eb   : > { %v1559_v17 = vadd.f32 %v1504_v46, %v1285_v19  ;;  %v3121_v19 = vsel %vm3099_vm2, %v3070_v49, 0.0  ;;  %v3120_v56 = vadd.f32 %v3119_v14, %v3118_v62  ;;  %v2673_v14 = vld [vmem:[#allocation2 + $0x66] sm:$0xff]  ;;  %v3127_v6 = vsel %vm3099_vm2, %v3073_v38, 0.0 }
 0x1ec   : > { %3236 = vperm.xlu1 %4311, %v3068_v50  }
 0x1ed   : > { %v4875_v8 = vadd.f32 %v1778_v15, %v1559_v17  ;;  %v2399_v15 = vld [vmem:[#allocation2 + $0x65] sm:$0xff]  ;;  %v2400_v17 = vld [vmem:[#allocation2 + $0x6d] sm:$0xff]  ;;  %v3122_v48 = vadd.f32 %v3121_v19, %v3120_v56 }
 0x1ee   : > { %v1001_v25 = vpop.f32.mrf.mxu1  ;;  %v2435_v11 = vpack.c.bf16 %v2400_v17, %v2399_v15  ;;  %v4907_v15 = vld [vmem:[%s5649_s3 + $0x78] sm:$0xff]  ;;  %3241 = vperm.xlu2 %4312, %v4867_v4  }
 0x1ef   : > { %5692 = vst [vmem:[#allocation5_spill] sm:$0xff] %v4875_v8  ;;  %v1780_v39 = vpop.f32.mrf.mxu0  ;;  %v1232_v46 = vpop.f32.mrf.mxu2  ;;  %v3124_v62 = vadd.f32 %v3123_v1, %v3122_v48  ;;  %v1002_v56 = vadd.f32 %v1001_v25, %v4575_v9  ;;  %v3129_v9 = vsel %vm3099_vm2, %v4907_v15, 0.0 }
 0x1f0   : > { %v1286_v42 = vadd.f32 %v1232_v46, %v999_v28  ;;  %v2674_v28 = vld [vmem:[#allocation2 + $0x6e] sm:$0xff]  ;;  %3301 = vperm.xlu0 %4310, %v3081_v3  }
 0x1f1   : > { %3965 = vmatmul.msk.bf16.gmra.mxu1 %vm497_vm1, %v4825_v21  ;;  %v3126_v21 = vadd.f32 %v3125_v58, %v3124_v62  ;;  %v2709_v46 = vpack.c.bf16 %v2674_v28, %v2673_v14  ;;  %v3131_v58 = vsel %vm3099_vm2, %v4833_v7, 0.0  ;;  %v3084_v7 = vld [vmem:[%s5649_s3 + $0xc8] sm:$0xff] }
 0x1f2   : > { %v1506_v50 = vpop.f32.mrf.mxu3 }
 0x1f3   : > { %v1560_v8 = vadd.f32 %v1506_v50, %v1286_v42  ;;  %v3128_v17 = vadd.f32 %v3127_v6, %v3126_v21  ;;  %v3133_v50 = vsel %vm3099_vm2, %v3076_v54, 0.0  ;;  %v2127_v6 = vld [vmem:[#allocation2 + $0x74] sm:$0xff]  ;;  %v2128_v21 = vld [vmem:[#allocation2 + $0x7c] sm:$0xff] }
 0x1f4   : > { %3986 = vmatmul.msk.bf16.gmra.mxu2 %vm497_vm1, %v4884_v24  ;;  %3246 = vperm.xlu1 %4311, %v3070_v49   ;;  %v4925_v49 = vld [vmem:[%s5649_s3 + $0x90] sm:$0xff] }
 0x1f5   : > { %v4901_v19 = vadd.f32 %v1780_v39, %v1560_v8  ;;  %v3130_v25 = vadd.f32 %v3129_v9, %v3128_v17  ;;  %v3135_v62 = vsel %vm3099_vm2, %v4925_v49, 0.0 }
 0x1f6   : > { %v1003_v42 = vpop.f32.mrf.mxu1  ;;  %3251 = vperm.xlu2 %4312, %v4882_v61   ;;  %v3149_v61 = vsel %vm3099_vm2, %v3084_v7, 0.0 }
 0x1f7   : > { %5693 = vst [vmem:[#allocation6_spill] sm:$0xff] %v4901_v19  ;;  %v1783_v1 = vpop.f32.mrf.mxu0  ;;  %4007 = vmatmul.msk.bf16.gmra.mxu3 %vm497_vm1, %v2435_v11  ;;  %v1235_v48 = vpop.f32.mrf.mxu2  ;;  %v3132_v11 = vadd.f32 %v3131_v58, %v3130_v25  ;;  %v1004_v17 = vadd.f32 %v1003_v42, %v4584_v18  ;;  %v3079_v25 = vld [vmem:[%s5649_s3 + $0xa0] sm:$0xff]  ;;  %v4944_v18 = vld [vmem:[%s5649_s3 + $0xa8] sm:$0xff] }
 0x1f8   : > { %v1287_v8 = vadd.f32 %v1235_v48, %v1002_v56  ;;  %3316 = vperm.xlu0 %4310, %v3084_v7   ;;  %v3137_v56 = vsel %vm3099_vm2, %v4862_v2, 0.0  ;;  %v2402_v19 = vld [vmem:[#allocation2 + $0x7d] sm:$0xff]  ;;  %v3139_v2 = vsel %vm3099_vm2, %v3079_v25, 0.0 }
 0x1f9   : > { %v3134_v28 = vadd.f32 %v3133_v50, %v3132_v11  ;;  %v2162_v50 = vpack.c.bf16 %v2128_v21, %v2127_v6  ;;  %v2401_v11 = vld [vmem:[#allocation2 + $0x75] sm:$0xff]  ;;  %v2676_v6 = vld [vmem:[#allocation2 + $0x7e] sm:$0xff]  ;;  %v3143_v21 = vsel %vm3099_vm2, %v3081_v3, 0.0 }
 0x1fa   : > { %4028 = vmatmul.msk.bf16.gmra.mxu0 %vm497_vm1, %v2709_v46  ;;  %v1509_v39 = vpop.f32.mrf.mxu3  ;;  %v4981_v7 = vld [vmem:[%s5649_s3 + $0xd8] sm:$0xff] }
 0x1fb   : > { %v1561_v14 = vadd.f32 %v1509_v39, %v1287_v8  ;;  %v3136_v58 = vadd.f32 %v3135_v62, %v3134_v28  ;;  %v2436_v62 = vpack.c.bf16 %v2402_v19, %v2401_v11  ;;  %v2675_v28 = vld [vmem:[#allocation2 + $0x76] sm:$0xff] }
 0x1fc   : > { %3261 = vperm.xlu1 %4311, %v3073_v38   ;;  %v3141_v38 = vsel %vm3099_vm2, %v4944_v18, 0.0 }
 0x1fd   : > { %v4931_v46 = vadd.f32 %v1783_v1, %v1561_v14  ;;  %v3138_v1 = vadd.f32 %v3137_v56, %v3136_v58  ;;  %v2710_v58 = vpack.c.bf16 %v2676_v6, %v2675_v28  ;;  %v2130_v28 = vld [vmem:[#allocation2 + $0x8c] sm:$0xff] }
 0x1fe   : > { %v1006_v48 = vpop.f32.mrf.mxu1  ;;  %3266 = vperm.xlu2 %4312, %v4907_v15   ;;  %v5000_v15 = vld [vmem:[%s5649_s3 + $0xe8] sm:$0xff] }
 0x1ff   : > { %5694 = vst [vmem:[#allocation7_spill] sm:$0xff] %v4931_v46  ;;  %v1785_v9 = vpop.f32.mrf.mxu0  ;;  %v1237_v8 = vpop.f32.mrf.mxu2  ;;  %v3140_v42 = vadd.f32 %v3139_v2, %v3138_v1  ;;  %v4956_v46 = vld [vmem:[%s5649_s3 + $0xb8] sm:$0xff] }
 0x200   : > { %v1288_v39 = vadd.f32 %v1237_v8, %v1004_v17  ;;  %v1007_v17 = vadd.f32 %v1006_v48, %v4595_v26  ;;  %v3145_v26 = vsel %vm3099_vm2, %v4956_v46, 0.0 }
 0x201   : > { %3966 = vmatmul.msk.bf16.gmra.mxu1 %vm497_vm1, %v4884_v24  ;;  %v3142_v56 = vadd.f32 %v3141_v38, %v3140_v42  ;;  %v4974_v42 = vld [vmem:[%s5649_s3 + $0xd0] sm:$0xff] }
 0x202   : > { %v1511_v4 = vpop.f32.mrf.mxu3 }
 0x203   : > { %v1562_v14 = vadd.f32 %v1511_v4, %v1288_v39  ;;  %v3144_v19 = vadd.f32 %v3143_v21, %v3142_v56 }
 0x204   : > { %3987 = vmatmul.msk.bf16.gmra.mxu2 %vm497_vm1, %v2162_v50  ;;  %3276 = vperm.xlu1 %4311, %v3076_v54   ;;  %v3151_v54 = vsel %vm3099_vm2, %v4974_v42, 0.0 }
 0x205   : > { %v4950_v24 = vadd.f32 %v1785_v9, %v1562_v14  ;;  %v4963_v9 = vld [vmem:[%s5649_s3 + $0xc0] sm:$0xff]  ;;  %v3146_v2 = vadd.f32 %v3145_v26, %v3144_v19 }
 0x206   : > { %v1008_v8 = vpop.f32.mrf.mxu1  ;;  %v3147_v11 = vsel %vm3099_vm2, %v4963_v9, 0.0  ;;  %v4992_v26 = vld [vmem:[%s5649_s3 + $0xe0] sm:$0xff]  ;;  %3281 = vperm.xlu2 %4312, %v4925_v49   ;;  %v5035_v49 = vld [vmem:[%s5649_s3 + $0x108] sm:$0xff] }
 0x207   : > { %v1788_v39 = vpop.f32.mrf.mxu0  ;;  %4008 = vmatmul.msk.bf16.gmra.mxu3 %vm497_vm1, %v2436_v62  ;;  %v1240_v3 = vpop.f32.mrf.mxu2  ;;  %v3148_v4 = vadd.f32 %v3147_v11, %v3146_v2  ;;  %v2129_v62 = vld [vmem:[#allocation2 + $0x84] sm:$0xff]  ;;  %v1009_v21 = vadd.f32 %v1008_v8, %v4604_v35  ;;  %v2404_v2 = vld [vmem:[#allocation2 + $0x8d] sm:$0xff]  ;;  %v3155_v8 = vsel %vm3099_vm2, %v4992_v26, 0.0 }
 0x208   : > { %v1289_v48 = vadd.f32 %v1240_v3, %v1007_v17  ;;  %v2403_v11 = vld [vmem:[#allocation2 + $0x85] sm:$0xff] }
 0x209   : > { %v3150_v14 = vadd.f32 %v3149_v61, %v3148_v4 }
 0x20a   : > { %4029 = vmatmul.msk.bf16.gmra.mxu0 %vm497_vm1, %v2710_v58  ;;  %v1514_v1 = vpop.f32.mrf.mxu3  ;;  %v3153_v58 = vsel %vm3099_vm2, %v4981_v7, 0.0 }
 0x20b   : > { %v1563_v38 = vadd.f32 %v1514_v1, %v1289_v48  ;;  %v3152_v17 = vadd.f32 %v3151_v54, %v3150_v14  ;;  %v2677_v14 = vld [vmem:[#allocation2 + $0x86] sm:$0xff]  ;;  %v2678_v54 = vld [vmem:[#allocation2 + $0x8e] sm:$0xff] }
 0x20c   : > { %3291 = vperm.xlu1 %4311, %v3079_v25   ;;  %v3157_v25 = vsel %vm3099_vm2, %v5000_v15, 0.0 }
 0x20d   : > { %v4983_v6 = vadd.f32 %v1788_v39, %v1563_v38  ;;  %v2163_v39 = vpack.c.bf16 %v2130_v28, %v2129_v62  ;;  %v3154_v35 = vadd.f32 %v3153_v58, %v3152_v17  ;;  %v2437_v38 = vpack.c.bf16 %v2404_v2, %v2403_v11  ;;  %v5007_v62 = vld [vmem:[%s5649_s3 + $0xf0] sm:$0xff] }
 0x20e   : > { %v1011_v56 = vpop.f32.mrf.mxu1  ;;  %v3159_v28 = vsel %vm3099_vm2, %v5007_v62, 0.0  ;;  %v2711_v58 = vpack.c.bf16 %v2678_v54, %v2677_v14  ;;  %3296 = vperm.xlu2 %4312, %v4944_v18   ;;  %v5070_v18 = vld [vmem:[%s5649_s3 + $0x128] sm:$0xff] }
 0x20f   : > { %5695 = vst [vmem:[#allocation8_spill] sm:$0xff] %v4983_v6  ;;  %v1790_v19 = vpop.f32.mrf.mxu0  ;;  %v1242_v3 = vpop.f32.mrf.mxu2  ;;  %v3156_v1 = vadd.f32 %v3155_v8, %v3154_v35  ;;  %v1012_v17 = vadd.f32 %v1011_v56, %v4615_v43 }
 0x210   : > { %v1290_v48 = vadd.f32 %v1242_v3, %v1009_v21 }
 0x211   : > { %3967 = vmatmul.msk.bf16.gmra.mxu1 %vm497_vm1, %v2162_v50  ;;  %v3158_v50 = vadd.f32 %v3157_v25, %v3156_v1 }
 0x212   : > { %v1516_v61 = vpop.f32.mrf.mxu3 }
 0x213   : > { %v1564_v4 = vadd.f32 %v1516_v61, %v1290_v48  ;;  %v5018_v48 = vld [vmem:[%s5649_s3 + $0xf8] sm:$0xff]  ;;  %v3160_v11 = vadd.f32 %v3159_v28, %v3158_v50 }
 0x214   : > { %3988 = vmatmul.msk.bf16.gmra.mxu2 %vm497_vm1, %v2163_v39  ;;  %v3161_v43 = vsel %vm3099_vm2, %v5018_v48, 0.0  ;;  %3306 = vperm.xlu1 %4311, %v4956_v46   ;;  %v5043_v46 = vld [vmem:[%s5649_s3 + $0x110] sm:$0xff]  ;;  %v2132_v28 = vld [vmem:[#allocation2 + $0x9c] sm:$0xff] }
 0x215   : > { %v5012_v21 = vadd.f32 %v1790_v19, %v1564_v4  ;;  %v5025_v19 = vld [vmem:[%s5649_s3 + $0x100] sm:$0xff]  ;;  %v3162_v8 = vadd.f32 %v3161_v43, %v3160_v11  ;;  %v3165_v4 = vsel %vm3099_vm2, %v5035_v49, 0.0  ;;  %v3167_v54 = vsel %vm3099_vm2, %v5043_v46, 0.0  ;;  %v2131_v50 = vld [vmem:[#allocation2 + $0x94] sm:$0xff] }
 0x216   : > { %v1013_v3 = vpop.f32.mrf.mxu1  ;;  %v3163_v61 = vsel %vm3099_vm2, %v5025_v19, 0.0  ;;  %3311 = vperm.xlu2 %4312, %v4963_v9  }
 0x217   : > { %5696 = vst [vmem:[#allocation9_spill] sm:$0xff] %v5012_v21  ;;  %v1793_v2 = vpop.f32.mrf.mxu0  ;;  %4009 = vmatmul.msk.bf16.gmra.mxu3 %vm497_vm1, %v2437_v38  ;;  %v1245_v35 = vpop.f32.mrf.mxu2  ;;  %v3164_v25 = vadd.f32 %v3163_v61, %v3162_v8  ;;  %v1014_v11 = vadd.f32 %v1013_v3, %v4624_v57  ;;  %v2406_v57 = vld [vmem:[#allocation2 + $0x9d] sm:$0xff] }
 0x218   : > { %v1291_v56 = vadd.f32 %v1245_v35, %v1012_v17  ;;  %v5050_v17 = vld [vmem:[%s5649_s3 + $0x118] sm:$0xff] }
 0x219   : > { %v3166_v14 = vadd.f32 %v3165_v4, %v3164_v25  ;;  %v2164_v25 = vpack.c.bf16 %v2132_v28, %v2131_v50  ;;  %v2405_v4 = vld [vmem:[#allocation2 + $0x95] sm:$0xff] }
 0x21a   : > { %4030 = vmatmul.msk.bf16.gmra.mxu0 %vm497_vm1, %v2711_v58  ;;  %v1519_v1 = vpop.f32.mrf.mxu3  ;;  %v2438_v50 = vpack.c.bf16 %v2406_v57, %v2405_v4  ;;  %v2679_v28 = vld [vmem:[#allocation2 + $0x96] sm:$0xff] }
 0x21b   : > { %v1565_v38 = vadd.f32 %v1519_v1, %v1291_v56  ;;  %v3168_v43 = vadd.f32 %v3167_v54, %v3166_v14  ;;  %v3169_v56 = vsel %vm3099_vm2, %v5050_v17, 0.0  ;;  %v5061_v1 = vld [vmem:[%s5649_s3 + $0x120] sm:$0xff] }
 0x21c   : > { %3321 = vperm.xlu1 %4311, %v4974_v42   ;;  %v3173_v42 = vsel %vm3099_vm2, %v5070_v18, 0.0 }
 0x21d   : > { %v5052_v58 = vadd.f32 %v1793_v2, %v1565_v38  ;;  %v3170_v3 = vadd.f32 %v3169_v56, %v3168_v43  ;;  %v3171_v38 = vsel %vm3099_vm2, %v5061_v1, 0.0  ;;  %v3097_v43 = vld [vmem:[%s5649_s3 + $0x130] sm:$0xff] }
 0x21e   : > { %v1016_v35 = vpop.f32.mrf.mxu1  ;;  %v3175_v56 = vsel %vm3099_vm2, %v3097_v43, 0.0  ;;  %3326 = vperm.xlu2 %4312, %v4981_v7  }
 0x21f   : > { %5697 = vst [vmem:[#allocation10_spill] sm:$0xff] %v5052_v58  ;;  %v1795_v8 = vpop.f32.mrf.mxu0  ;;  %v1247_v61 = vpop.f32.mrf.mxu2  ;;  %v3172_v54 = vadd.f32 %v3171_v38, %v3170_v3  ;;  %v1017_v3 = vadd.f32 %v1016_v35, %v4635_v5 }
 0x220   : > { %v1292_v2 = vadd.f32 %v1247_v61, %v1014_v11  ;;  %v2680_v61 = vld [vmem:[#allocation2 + $0x9e] sm:$0xff] }
 0x221   : > { %3968 = vmatmul.msk.bf16.gmra.mxu1 %vm497_vm1, %v2163_v39  ;;  %v3174_v39 = vadd.f32 %v3173_v42, %v3172_v54  ;;  %v2712_v38 = vpack.c.bf16 %v2680_v61, %v2679_v28  ;;  %v2134_v28 = vld [vmem:[#allocation2 + $0xac] sm:$0xff] }
 0x222   : > { %v1521_v14 = vpop.f32.mrf.mxu3 }
 0x223   : > { %v1566_v11 = vadd.f32 %v1521_v14, %v1292_v2  ;;  %v5085_v2 = vld [vmem:[%s5649_s3 + $0x138] sm:$0xff]  ;;  %v3176_v4 = vadd.f32 %v3175_v56, %v3174_v39 }
 0x224   : > { %3989 = vmatmul.msk.bf16.gmra.mxu2 %vm497_vm1, %v2164_v25  ;;  %3336 = vperm.xlu1 %4311, %v5000_v15  }
 0x225   : > { %v5079_v58 = vadd.f32 %v1795_v8, %v1566_v11  ;;  %v3177_v8 = vsel %vm3099_vm2, %v5085_v2, 0.0  ;;  %v2133_v11 = vld [vmem:[#allocation2 + $0xa4] sm:$0xff] }
 0x226   : > { %v1018_v21 = vpop.f32.mrf.mxu1  ;;  %v3178_v35 = vadd.f32 %v3177_v8, %v3176_v4  ;;  %v2407_v4 = vld [vmem:[#allocation2 + $0xa5] sm:$0xff]  ;;  %3341 = vperm.xlu2 %4312, %v5007_v62  }
 0x227   : > { %5698 = vst [vmem:[#allocation11_spill] sm:$0xff] %v5079_v58  ;;  %v1798_v57 = vpop.f32.mrf.mxu0  ;;  %4010 = vmatmul.msk.bf16.gmra.mxu3 %vm497_vm1, %v2438_v50  ;;  %v1250_v14 = vpop.f32.mrf.mxu2  ;;  %v1019_v9 = vadd.f32 %v1018_v21, %v4643_v27 }
 0x228   : > { %v1293_v5 = vadd.f32 %v1250_v14, %v1017_v3  ;;  %3179 = vadd.xlane.f32.xlu0 %v3178_v35  ;;  %v2165_v3 = vpack.c.bf16 %v2134_v28, %v2133_v11  ;;  %v2682_v35 = vld [vmem:[#allocation2 + $0xae] sm:$0xff] }
 0x229   : > { %v2135_v28 = vld [vmem:[#allocation2 + $0xb4] sm:$0xff] }
 0x22a   : > { %4031 = vmatmul.msk.bf16.gmra.mxu0 %vm497_vm1, %v2712_v38  ;;  %v1524_v54 = vpop.f32.mrf.mxu3  ;;  %v2408_v38 = vld [vmem:[#allocation2 + $0xad] sm:$0xff] }
 0x22b   : > { %v1567_v42 = vadd.f32 %v1524_v54, %v1293_v5  ;;  %v2439_v5 = vpack.c.bf16 %v2408_v38, %v2407_v4  ;;  %v2410_v38 = vld [vmem:[#allocation2 + $0xbd] sm:$0xff] }
 0x22c   : > { %3351 = vperm.xlu1 %4311, %v5025_v19  }
 0x22d   : > { %v5093_v61 = vadd.f32 %v1798_v57, %v1567_v42  ;;  %v2681_v57 = vld [vmem:[#allocation2 + $0xa6] sm:$0xff] }
 0x22e   : > { %v1977_v50 = vpop.f32.mrf.mxu1  ;;  %v2713_v7 = vpack.c.bf16 %v2682_v35, %v2681_v57  ;;  %3356 = vperm.xlu2 %4312, %v5035_v49   ;;  %v2683_v57 = vld [vmem:[#allocation2 + $0xb6] sm:$0xff]  ;;  %v2684_v35 = vld [vmem:[#allocation2 + $0xbe] sm:$0xff] }
 0x22f   : > { %5699 = vst [vmem:[#allocation12_spill] sm:$0xff] %v5093_v61  ;;  %v1800_v39 = vpop.f32.mrf.mxu0  ;;  %v1252_v56 = vpop.f32.mrf.mxu2  ;;  %v2714_v49 = vpack.c.bf16 %v2684_v35, %v2683_v57 }
 0x230   : > { %v1294_v15 = vadd.f32 %v1252_v56, %v1019_v9  ;;  %v2136_v9 = vld [vmem:[#allocation2 + $0xbc] sm:$0xff] }
 0x231   : > { %3969 = vmatmul.msk.bf16.gmra.mxu1 %vm497_vm1, %v2164_v25  ;;  %v2077_v25 = vadd.f32 %v1977_v50, %v4649_v59  ;;  %v2166_v59 = vpack.c.bf16 %v2136_v9, %v2135_v28  ;;  %v2409_v50 = vld [vmem:[#allocation2 + $0xb5] sm:$0xff] }
 0x232   : > { %v1526_v14 = vpop.f32.mrf.mxu3 }
 0x233   : > { %v1568_v8 = vadd.f32 %v1526_v14, %v1294_v15 }
 0x234   : > { %3990 = vmatmul.msk.bf16.gmra.mxu2 %vm497_vm1, %v2165_v3  ;;  %3366 = vperm.xlu1 %4311, %v5050_v17  }
 0x235   : > { %v5100_v27 = vadd.f32 %v1800_v39, %v1568_v8 }
 0x236   : > { %v1979_v21 = vpop.f32.mrf.mxu1  ;;  %3371 = vperm.xlu2 %4312, %v5061_v1  }
 0x237   : > { %5700 = vst [vmem:[#allocation13_spill] sm:$0xff] %v5100_v27  ;;  %v2799_v19 = vpop.f32.mrf.mxu0  ;;  %4011 = vmatmul.msk.bf16.gmra.mxu3 %vm497_vm1, %v2439_v5  ;;  %v2251_v54 = vpop.f32.mrf.mxu2  ;;  %v2078_v39 = vadd.f32 %v1979_v21, %v4654_v33  ;;  %v2440_v33 = vpack.c.bf16 %v2410_v38, %v2409_v50 }
 0x238   : > { %v2351_v11 = vadd.f32 %v2251_v54, %v2077_v25 }
 0x23a   : > { %4032 = vmatmul.msk.bf16.gmra.mxu0 %vm497_vm1, %v2713_v7  ;;  %v2525_v42 = vpop.f32.mrf.mxu3 }
 0x23b   : > { %v2625_v62 = vadd.f32 %v2525_v42, %v2351_v11  ;;  %v2137_v42 = vld [vmem:[#allocation2 + $0xc4] sm:$0xff]  ;;  %v2138_v11 = vld [vmem:[#allocation2 + $0xcc] sm:$0xff] }
 0x23c   : > { %3331 = vperm.xlu0 %4310, %v4992_v26   ;;  %3381 = vperm.xlu1 %4311, %v3097_v43  }
 0x23d   : > { %v2899_v8 = vadd.f32 %v2799_v19, %v2625_v62 }
 0x23e   : > { %v1982_v56 = vpop.f32.mrf.mxu1  ;;  %3386 = vperm.xlu2 %4312, %v5085_v2  }
 0x23f   : > { %v2801_v15 = vpop.f32.mrf.mxu0  ;;  %v2253_v4 = vpop.f32.mrf.mxu2  ;;  %v5115_v43 = vmax.f32 %v2899_v8, 0.0 }
 0x240   : > { %v2352_v17 = vadd.f32 %v2253_v4, %v2078_v39 }
 0x241   : > { %3970 = vmatmul.msk.bf16.gmra.mxu1 %vm497_vm1, %v2165_v3  ;;  %5701 = vst [vmem:[#allocation14_spill] sm:$0xff] %v5115_v43 }
 0x242   : > { %v2527_v14 = vpop.f32.mrf.mxu3 }
 0x243   : > { %v2626_v5 = vadd.f32 %v2527_v14, %v2352_v17  ;;  %v2167_v17 = vpack.c.bf16 %v2138_v11, %v2137_v42 }
 0x244   : > { %3991 = vmatmul.msk.bf16.gmra.mxu2 %vm497_vm1, %v2166_v59  ;;  %3346 = vperm.xlu0 %4310, %v5018_v48   ;;  %v2079_v48 = vadd.f32 %v1982_v56, %v4659_v52  ;;  %v2411_v52 = vld [vmem:[#allocation2 + $0xc5] sm:$0xff]  ;;  %v2412_v56 = vld [vmem:[#allocation2 + $0xcd] sm:$0xff] }
 0x245   : > { %v2900_v26 = vadd.f32 %v2801_v15, %v2626_v5  ;;  %v2441_v8 = vpack.c.bf16 %v2412_v56, %v2411_v52  ;;  %v2685_v5 = vld [vmem:[#allocation2 + $0xc6] sm:$0xff]  ;;  %v2687_v56 = vld [vmem:[#allocation2 + $0xd6] sm:$0xff] }
 0x246   : > { %v1984_v7 = vpop.f32.mrf.mxu1 }
 0x247   : > { %v5117_v21 = vmax.f32 %v2900_v26, 0.0  ;;  %v2804_v3 = vpop.f32.mrf.mxu0  ;;  %4012 = vmatmul.msk.bf16.gmra.mxu3 %vm497_vm1, %v2440_v33  ;;  %v2256_v19 = vpop.f32.mrf.mxu2  ;;  %v2080_v28 = vadd.f32 %v1984_v7, %v4664_v29  ;;  %v2686_v29 = vld [vmem:[#allocation2 + $0xce] sm:$0xff] }
 0x248   : > { %v2353_v25 = vadd.f32 %v2256_v19, %v2079_v48  ;;  %v2715_v2 = vpack.c.bf16 %v2686_v29, %v2685_v5 }
 0x249   : > { %5702 = vst [vmem:[#allocation15_spill] sm:$0xff] %v5117_v21  ;;  %v4139_v54 = vpack.c.bf16 %v5117_v21, %v5115_v43 }
 0x24a   : > { %4033 = vmatmul.msk.bf16.gmra.mxu0 %vm497_vm1, %v2714_v49  ;;  %v2530_v1 = vpop.f32.mrf.mxu3 }
 0x24b   : > { %4140 = vst [vmem:[%s5123_s14] sm:$0xff] %v4139_v54   ;;  %v2627_v39 = vadd.f32 %v2530_v1, %v2353_v25  ;;  %v2139_v54 = vld [vmem:[#allocation2 + $0xd4] sm:$0xff] }
 0x24c   : > { %3361 = vperm.xlu0 %4310, %v5043_v46  }
 0x24d   : > { %v2901_v38 = vadd.f32 %v2804_v3, %v2627_v39 }
 0x24e   : > { %v1987_v9 = vpop.f32.mrf.mxu1 }
 0x24f   : > { %v2806_v62 = vpop.f32.mrf.mxu0  ;;  %v2258_v15 = vpop.f32.mrf.mxu2  ;;  %v5136_v57 = vmax.f32 %v2901_v38, 0.0  ;;  %v2081_v7 = vadd.f32 %v1987_v9, %v4669_v51 }
 0x250   : > { %v2354_v4 = vadd.f32 %v2258_v15, %v2080_v28  ;;  %v2414_v15 = vld [vmem:[#allocation2 + $0xdd] sm:$0xff] }
 0x251   : > { %3971 = vmatmul.msk.bf16.gmra.mxu1 %vm497_vm1, %v2166_v59 }
 0x252   : > { %v2532_v50 = vpop.f32.mrf.mxu3 }
 0x253   : > { %v2628_v14 = vadd.f32 %v2532_v50, %v2354_v4  ;;  %v2688_v50 = vld [vmem:[#allocation2 + $0xde] sm:$0xff] }
 0x254   : > { %3992 = vmatmul.msk.bf16.gmra.mxu2 %vm497_vm1, %v2167_v17  ;;  %3376 = vperm.xlu0 %4310, %v5070_v18   ;;  %v2140_v18 = vld [vmem:[#allocation2 + $0xdc] sm:$0xff]  ;;  %v2716_v38 = vpack.c.bf16 %v2688_v50, %v2687_v56 }
 0x255   : > { %v2902_v46 = vadd.f32 %v2806_v62, %v2628_v14  ;;  %v2168_v39 = vpack.c.bf16 %v2140_v18, %v2139_v54  ;;  %v2413_v62 = vld [vmem:[#allocation2 + $0xd5] sm:$0xff] }
 0x256   : > { %v1989_v33 = vpop.f32.mrf.mxu1  ;;  %v2442_v52 = vpack.c.bf16 %v2414_v15, %v2413_v62  ;;  %v2689_v15 = vld [vmem:[#allocation2 + $0xe6] sm:$0xff] }
 0x257   : > { %v5138_v35 = vmax.f32 %v2902_v46, 0.0  ;;  %v2809_v26 = vpop.f32.mrf.mxu0  ;;  %4013 = vmatmul.msk.bf16.gmra.mxu3 %vm497_vm1, %v2441_v8  ;;  %v2261_v59 = vpop.f32.mrf.mxu2  ;;  %v2082_v48 = vadd.f32 %v1989_v33, %v4674_v22 }
 0x258   : > { %v2355_v19 = vadd.f32 %v2261_v59, %v2081_v7  ;;  %v2141_v59 = vld [vmem:[#allocation2 + $0xe4] sm:$0xff] }
 0x259   : > { %v4144_v49 = vpack.c.bf16 %v5138_v35, %v5136_v57 }
 0x25a   : > { %4034 = vmatmul.msk.bf16.gmra.mxu0 %vm497_vm1, %v2715_v2  ;;  %v2535_v3 = vpop.f32.mrf.mxu3 }
 0x25b   : > { %4256 = vst [vmem:[%s5123_s14 + $0x8] sm:$0xff] %v4144_v49   ;;  %v2629_v25 = vadd.f32 %v2535_v3, %v2355_v19  ;;  %v2142_v49 = vld [vmem:[#allocation2 + $0xec] sm:$0xff] }
 0x25d   : > { %v2903_v9 = vadd.f32 %v2809_v26, %v2629_v25  ;;  %v2169_v25 = vpack.c.bf16 %v2142_v49, %v2141_v59 }
 0x25e   : > { %v1992_v1 = vpop.f32.mrf.mxu1 }
 0x25f   : > { %v2811_v42 = vpop.f32.mrf.mxu0  ;;  %v2263_v11 = vpop.f32.mrf.mxu2  ;;  %v5149_v8 = vmax.f32 %v2903_v9, 0.0  ;;  %v2083_v2 = vadd.f32 %v1992_v1, %v4679_v47 }
 0x260   : > { %v2356_v28 = vadd.f32 %v2263_v11, %v2082_v48  ;;  %v2416_v11 = vld [vmem:[#allocation2 + $0xed] sm:$0xff] }
 0x261   : > { %3972 = vmatmul.msk.bf16.gmra.mxu1 %vm497_vm1, %v2167_v17 }
 0x262   : > { %v2537_v51 = vpop.f32.mrf.mxu3 }
 0x263   : > { %v2630_v4 = vadd.f32 %v2537_v51, %v2356_v28  ;;  %v2690_v51 = vld [vmem:[#allocation2 + $0xee] sm:$0xff] }
 0x264   : > { %3993 = vmatmul.msk.bf16.gmra.mxu2 %vm497_vm1, %v2168_v39  ;;  %v2717_v9 = vpack.c.bf16 %v2690_v51, %v2689_v15 }
 0x265   : > { %v2904_v22 = vadd.f32 %v2811_v42, %v2630_v4  ;;  %v2415_v42 = vld [vmem:[#allocation2 + $0xe5] sm:$0xff] }
 0x266   : > { %v1994_v14 = vpop.f32.mrf.mxu1  ;;  %v2443_v62 = vpack.c.bf16 %v2416_v11, %v2415_v42  ;;  %v2691_v11 = vld [vmem:[#allocation2 + $0xf6] sm:$0xff] }
 0x267   : > { %v5151_v5 = vmax.f32 %v2904_v22, 0.0  ;;  %v2814_v29 = vpop.f32.mrf.mxu0  ;;  %4014 = vmatmul.msk.bf16.gmra.mxu3 %vm497_vm1, %v2442_v52  ;;  %v2266_v17 = vpop.f32.mrf.mxu2  ;;  %v2084_v7 = vadd.f32 %v1994_v14, %v4684_v20 }
 0x268   : > { %v2357_v26 = vadd.f32 %v2266_v17, %v2083_v2  ;;  %v2143_v17 = vld [vmem:[#allocation2 + $0xf4] sm:$0xff] }
 0x269   : > { %v4149_v46 = vpack.c.bf16 %v5151_v5, %v5149_v8 }
 0x26a   : > { %4035 = vmatmul.msk.bf16.gmra.mxu0 %vm497_vm1, %v2716_v38  ;;  %v2540_v33 = vpop.f32.mrf.mxu3 }
 0x26b   : > { %4257 = vst [vmem:[%s5123_s14 + $0x10] sm:$0xff] %v4149_v46   ;;  %v2631_v19 = vadd.f32 %v2540_v33, %v2357_v26  ;;  %v2144_v46 = vld [vmem:[#allocation2 + $0xfc] sm:$0xff] }
 0x26d   : > { %v2905_v1 = vadd.f32 %v2814_v29, %v2631_v19  ;;  %v2170_v19 = vpack.c.bf16 %v2144_v46, %v2143_v17 }
 0x26e   : > { %v1997_v3 = vpop.f32.mrf.mxu1 }
 0x26f   : > { %v2816_v54 = vpop.f32.mrf.mxu0  ;;  %v2268_v18 = vpop.f32.mrf.mxu2  ;;  %v5162_v52 = vmax.f32 %v2905_v1, 0.0  ;;  %v2085_v38 = vadd.f32 %v1997_v3, %v4689_v45 }
 0x270   : > { %v2358_v48 = vadd.f32 %v2268_v18, %v2084_v7  ;;  %v2418_v18 = vld [vmem:[#allocation2 + $0xfd] sm:$0xff] }
 0x271   : > { %3973 = vmatmul.msk.bf16.gmra.mxu1 %vm497_vm1, %v2168_v39 }
 0x272   : > { %v2542_v47 = vpop.f32.mrf.mxu3 }
 0x273   : > { %v2632_v28 = vadd.f32 %v2542_v47, %v2358_v48  ;;  %v2692_v47 = vld [vmem:[#allocation2 + $0xfe] sm:$0xff] }
 0x274   : > { %3994 = vmatmul.msk.bf16.gmra.mxu2 %vm497_vm1, %v2169_v25  ;;  %v2718_v1 = vpack.c.bf16 %v2692_v47, %v2691_v11 }
 0x275   : > { %v2906_v20 = vadd.f32 %v2816_v54, %v2632_v28  ;;  %v2417_v54 = vld [vmem:[#allocation2 + $0xf5] sm:$0xff] }
 0x276   : > { %v1999_v4 = vpop.f32.mrf.mxu1  ;;  %v2444_v42 = vpack.c.bf16 %v2418_v18, %v2417_v54  ;;  %v2693_v18 = vld [vmem:[#allocation2 + $0x106] sm:$0xff] }
 0x277   : > { %v5164_v56 = vmax.f32 %v2906_v20, 0.0  ;;  %v2819_v50 = vpop.f32.mrf.mxu0  ;;  %4015 = vmatmul.msk.bf16.gmra.mxu3 %vm497_vm1, %v2443_v62  ;;  %v2271_v39 = vpop.f32.mrf.mxu2  ;;  %v2086_v2 = vadd.f32 %v1999_v4, %v4693_v0 }
 0x278   : > { %v2359_v29 = vadd.f32 %v2271_v39, %v2085_v38  ;;  %v2145_v39 = vld [vmem:[#allocation2 + $0x104] sm:$0xff] }
 0x279   : > { %v4154_v22 = vpack.c.bf16 %v5164_v56, %v5162_v52 }
 0x27a   : > { %4036 = vmatmul.msk.bf16.gmra.mxu0 %vm497_vm1, %v2717_v9  ;;  %v2545_v14 = vpop.f32.mrf.mxu3 }
 0x27b   : > { %4258 = vst [vmem:[%s5123_s14 + $0x18] sm:$0xff] %v4154_v22   ;;  %v2633_v26 = vadd.f32 %v2545_v14, %v2359_v29  ;;  %v2146_v22 = vld [vmem:[#allocation2 + $0x10c] sm:$0xff] }
 0x27d   : > { %v2907_v3 = vadd.f32 %v2819_v50, %v2633_v26  ;;  %v2171_v26 = vpack.c.bf16 %v2146_v22, %v2145_v39 }
 0x27e   : > { %v2002_v33 = vpop.f32.mrf.mxu1 }
 0x27f   : > { %v2821_v59 = vpop.f32.mrf.mxu0  ;;  %v2273_v49 = vpop.f32.mrf.mxu2  ;;  %v5175_v62 = vmax.f32 %v2907_v3, 0.0  ;;  %v2087_v9 = vadd.f32 %v2002_v33, %v4698_v44 }
 0x280   : > { %v2360_v7 = vadd.f32 %v2273_v49, %v2086_v2  ;;  %v2420_v49 = vld [vmem:[#allocation2 + $0x10d] sm:$0xff] }
 0x281   : > { %3974 = vmatmul.msk.bf16.gmra.mxu1 %vm497_vm1, %v2169_v25 }
 0x282   : > { %v2547_v45 = vpop.f32.mrf.mxu3 }
 0x283   : > { %v2634_v48 = vadd.f32 %v2547_v45, %v2360_v7  ;;  %v2694_v45 = vld [vmem:[#allocation2 + $0x10e] sm:$0xff] }
 0x284   : > { %3995 = vmatmul.msk.bf16.gmra.mxu2 %vm497_vm1, %v2170_v19  ;;  %v2719_v3 = vpack.c.bf16 %v2694_v45, %v2693_v18 }
 0x285   : > { %v2908_v0 = vadd.f32 %v2821_v59, %v2634_v48  ;;  %v2419_v59 = vld [vmem:[#allocation2 + $0x105] sm:$0xff] }
 0x286   : > { %v2004_v28 = vpop.f32.mrf.mxu1  ;;  %v2445_v54 = vpack.c.bf16 %v2420_v49, %v2419_v59  ;;  %v2695_v49 = vld [vmem:[#allocation2 + $0x116] sm:$0xff] }
 0x287   : > { %v5177_v15 = vmax.f32 %v2908_v0, 0.0  ;;  %v2824_v51 = vpop.f32.mrf.mxu0  ;;  %4016 = vmatmul.msk.bf16.gmra.mxu3 %vm497_vm1, %v2444_v42  ;;  %v2276_v25 = vpop.f32.mrf.mxu2  ;;  %v2088_v38 = vadd.f32 %v2004_v28, %v4703_v10 }
 0x288   : > { %v2361_v50 = vadd.f32 %v2276_v25, %v2087_v9  ;;  %v2147_v25 = vld [vmem:[#allocation2 + $0x114] sm:$0xff] }
 0x289   : > { %5703 = vst [vmem:[#allocation16_spill] sm:$0xff] %v5177_v15  ;;  %v4159_v20 = vpack.c.bf16 %v5177_v15, %v5175_v62 }
 0x28a   : > { %4037 = vmatmul.msk.bf16.gmra.mxu0 %vm497_vm1, %v2718_v1  ;;  %v2550_v4 = vpop.f32.mrf.mxu3 }
 0x28b   : > { %4259 = vst [vmem:[%s5123_s14 + $0x20] sm:$0xff] %v4159_v20   ;;  %v2635_v29 = vadd.f32 %v2550_v4, %v2361_v50  ;;  %v2148_v20 = vld [vmem:[#allocation2 + $0x11c] sm:$0xff] }
 0x28d   : > { %v2909_v33 = vadd.f32 %v2824_v51, %v2635_v29  ;;  %v2172_v29 = vpack.c.bf16 %v2148_v20, %v2147_v25 }
 0x28e   : > { %v2007_v14 = vpop.f32.mrf.mxu1 }
 0x28f   : > { %v2826_v17 = vpop.f32.mrf.mxu0  ;;  %v2278_v46 = vpop.f32.mrf.mxu2  ;;  %v5188_v42 = vmax.f32 %v2909_v33, 0.0  ;;  %v2089_v1 = vadd.f32 %v2007_v14, %v4708_v31 }
 0x290   : > { %v2362_v2 = vadd.f32 %v2278_v46, %v2088_v38  ;;  %v2422_v46 = vld [vmem:[#allocation2 + $0x11d] sm:$0xff] }
 0x291   : > { %3975 = vmatmul.msk.bf16.gmra.mxu1 %vm497_vm1, %v2170_v19 }
 0x292   : > { %v2552_v44 = vpop.f32.mrf.mxu3 }
 0x293   : > { %v2636_v7 = vadd.f32 %v2552_v44, %v2362_v2  ;;  %v2696_v44 = vld [vmem:[#allocation2 + $0x11e] sm:$0xff] }
 0x294   : > { %3996 = vmatmul.msk.bf16.gmra.mxu2 %vm497_vm1, %v2171_v26  ;;  %v2720_v33 = vpack.c.bf16 %v2696_v44, %v2695_v49 }
 0x295   : > { %v2910_v10 = vadd.f32 %v2826_v17, %v2636_v7  ;;  %v2421_v17 = vld [vmem:[#allocation2 + $0x115] sm:$0xff] }
 0x296   : > { %v2009_v48 = vpop.f32.mrf.mxu1  ;;  %v2446_v59 = vpack.c.bf16 %v2422_v46, %v2421_v17  ;;  %v2697_v46 = vld [vmem:[#allocation2 + $0x126] sm:$0xff] }
 0x297   : > { %v5190_v11 = vmax.f32 %v2910_v10, 0.0  ;;  %v2829_v47 = vpop.f32.mrf.mxu0  ;;  %4017 = vmatmul.msk.bf16.gmra.mxu3 %vm497_vm1, %v2445_v54  ;;  %v2281_v19 = vpop.f32.mrf.mxu2  ;;  %v2090_v9 = vadd.f32 %v2009_v48, %v4713_v34 }
 0x298   : > { %v2363_v51 = vadd.f32 %v2281_v19, %v2089_v1  ;;  %v2149_v19 = vld [vmem:[#allocation2 + $0x124] sm:$0xff] }
 0x299   : > { %v4164_v0 = vpack.c.bf16 %v5190_v11, %v5188_v42 }
 0x29a   : > { %4038 = vmatmul.msk.bf16.gmra.mxu0 %vm497_vm1, %v2719_v3  ;;  %v2555_v28 = vpop.f32.mrf.mxu3 }
 0x29b   : > { %4260 = vst [vmem:[%s5123_s14 + $0x28] sm:$0xff] %v4164_v0   ;;  %v2637_v50 = vadd.f32 %v2555_v28, %v2363_v51  ;;  %v2150_v0 = vld [vmem:[#allocation2 + $0x12c] sm:$0xff] }
 0x29d   : > { %v2911_v14 = vadd.f32 %v2829_v47, %v2637_v50  ;;  %v2173_v50 = vpack.c.bf16 %v2150_v0, %v2149_v19  ;;  %v2152_v19 = vld [vmem:[#allocation2 + $0x13c] sm:$0xff] }
 0x29e   : > { %v2012_v4 = vpop.f32.mrf.mxu1 }
 0x29f   : > { %v2831_v39 = vpop.f32.mrf.mxu0  ;;  %v2283_v22 = vpop.f32.mrf.mxu2  ;;  %v5201_v54 = vmax.f32 %v2911_v14, 0.0  ;;  %v2091_v3 = vadd.f32 %v2012_v4, %v4718_v63 }
 0x2a0   : > { %v2364_v38 = vadd.f32 %v2283_v22, %v2090_v9  ;;  %v2424_v22 = vld [vmem:[#allocation2 + $0x12d] sm:$0xff] }
 0x2a1   : > { %3976 = vmatmul.msk.bf16.gmra.mxu1 %vm497_vm1, %v2171_v26 }
 0x2a2   : > { %v2557_v31 = vpop.f32.mrf.mxu3 }
 0x2a3   : > { %v2638_v2 = vadd.f32 %v2557_v31, %v2364_v38  ;;  %v2698_v31 = vld [vmem:[#allocation2 + $0x12e] sm:$0xff] }
 0x2a4   : > { %3997 = vmatmul.msk.bf16.gmra.mxu2 %vm497_vm1, %v2172_v29  ;;  %v2721_v14 = vpack.c.bf16 %v2698_v31, %v2697_v46  ;;  %v5231_v31 = vpop.permute.xlu0 %3191 }
 0x2a5   : > { %v2912_v34 = vadd.f32 %v2831_v39, %v2638_v2  ;;  %v2423_v39 = vld [vmem:[#allocation2 + $0x125] sm:$0xff]  ;;  %5704 = vst [vmem:[#allocation17_spill] sm:$0xff] %v5231_v31 }
 0x2a6   : > { %v2014_v7 = vpop.f32.mrf.mxu1  ;;  %v2447_v17 = vpack.c.bf16 %v2424_v22, %v2423_v39  ;;  %v2426_v39 = vld [vmem:[#allocation2 + $0x13d] sm:$0xff] }
 0x2a7   : > { %v5203_v18 = vmax.f32 %v2912_v34, 0.0  ;;  %v2834_v45 = vpop.f32.mrf.mxu0  ;;  %4018 = vmatmul.msk.bf16.gmra.mxu3 %vm497_vm1, %v2446_v59  ;;  %v2286_v26 = vpop.f32.mrf.mxu2  ;;  %v2092_v1 = vadd.f32 %v2014_v7, %v4723_v53 }
 0x2a8   : > { %v2365_v47 = vadd.f32 %v2286_v26, %v2091_v3  ;;  %v542_v26 = vld [vmem:[%s4493_s18 + $0x10] sm:$0xf] }
 0x2a9   : > { %v4169_v10 = vpack.c.bf16 %v5203_v18, %v5201_v54 }
 0x2aa   : > { %4039 = vmatmul.msk.bf16.gmra.mxu0 %vm497_vm1, %v2720_v33  ;;  %v2560_v48 = vpop.f32.mrf.mxu3 }
 0x2ab   : > { %4261 = vst [vmem:[%s5123_s14 + $0x30] sm:$0xff] %v4169_v10   ;;  %v2639_v51 = vadd.f32 %v2560_v48, %v2365_v47  ;;  %v4315_v10 = vld [vmem:[%s4493_s18 + $0x8] sm:$0xff]   ;;  %v547_v48 = vunpack.c.l.bf16 %v542_v26  ;;  %v2151_v47 = vld [vmem:[#allocation2 + $0x134] sm:$0xff] }
 0x2ac   : > { %v4135_v3 = vunpack.c.h.bf16 %v4315_v10  ;;  %v2153_v26 = vld [vmem:[#allocation2 + $0x144] sm:$0xff]  ;;  %v2154_v10 = vld [vmem:[#allocation2 + $0x14c] sm:$0xff] }
 0x2ad   : > { %v2913_v4 = vadd.f32 %v2834_v45, %v2639_v51  ;;  %552 = vst.msk [vmem:[#allocation2 + $0x160] sm:$0xff] %vm497_vm1, %v547_v48 }
 0x2ae   : > { %v2017_v28 = vpop.f32.mrf.mxu1  ;;  %551 = vst.msk [vmem:[#allocation2 + $0x158] sm:$0xff] %vm497_vm1, %v4135_v3  ;;  %v5243_v3 = vpop.permute.xlu0 %3256 }
 0x2af   : > { %v2836_v25 = vpop.f32.mrf.mxu0  ;;  %v2288_v20 = vpop.f32.mrf.mxu2  ;;  %v5214_v59 = vmax.f32 %v2913_v4, 0.0  ;;  %v2093_v33 = vadd.f32 %v2017_v28, %v4729_v13  ;;  %v2174_v28 = vpack.c.bf16 %v2152_v19, %v2151_v47 }
 0x2b0   : > { %v2366_v9 = vadd.f32 %v2288_v20, %v2092_v1 }
 0x2b1   : > { %3977 = vmatmul.msk.bf16.gmra.mxu1 %vm497_vm1, %v2172_v29 }
 0x2b2   : > { %v2562_v63 = vpop.f32.mrf.mxu3 }
 0x2b3   : > { %v2640_v38 = vadd.f32 %v2562_v63, %v2366_v9  ;;  %v2425_v9 = vld [vmem:[#allocation2 + $0x135] sm:$0xff] }
 0x2b4   : > { %3998 = vmatmul.msk.bf16.gmra.mxu2 %vm497_vm1, %v2173_v50 }
 0x2b5   : > { %v2914_v53 = vadd.f32 %v2836_v25, %v2640_v38  ;;  %v2448_v38 = vpack.c.bf16 %v2426_v39, %v2425_v9  ;;  %v2428_v9 = vld [vmem:[#allocation2 + $0x14d] sm:$0xff] }
 0x2b6   : > { %v2019_v2 = vpop.f32.mrf.mxu1 }
 0x2b7   : > { %v5216_v49 = vmax.f32 %v2914_v53, 0.0  ;;  %v2839_v44 = vpop.f32.mrf.mxu0  ;;  %4019 = vmatmul.msk.bf16.gmra.mxu3 %vm497_vm1, %v2447_v17  ;;  %v2291_v29 = vpop.f32.mrf.mxu2  ;;  %v2094_v0 = vadd.f32 %v2019_v2, %v4735_v37  ;;  %v2699_v17 = vld [vmem:[#allocation2 + $0x136] sm:$0xff]  ;;  %v2700_v37 = vld [vmem:[#allocation2 + $0x13e] sm:$0xff] }
 0x2b8   : > { %v2367_v45 = vadd.f32 %v2291_v29, %v2093_v33  ;;  %v2722_v53 = vpack.c.bf16 %v2700_v37, %v2699_v17 }
 0x2b9   : > { %v4174_v34 = vpack.c.bf16 %v5216_v49, %v5214_v59 }
 0x2ba   : > { %4040 = vmatmul.msk.bf16.gmra.mxu0 %vm497_vm1, %v2721_v14  ;;  %v2565_v7 = vpop.f32.mrf.mxu3 }
 0x2bb   : > { %4262 = vst [vmem:[%s5123_s14 + $0x38] sm:$0xff] %v4174_v34   ;;  %v2641_v51 = vadd.f32 %v2565_v7, %v2367_v45 }
 0x2bd   : > { %v2915_v63 = vadd.f32 %v2839_v44, %v2641_v51 }
 0x2be   : > { %v2022_v1 = vpop.f32.mrf.mxu1 }
 0x2bf   : > { %v2841_v25 = vpop.f32.mrf.mxu0  ;;  %v2293_v20 = vpop.f32.mrf.mxu2  ;;  %v5233_v2 = vmax.f32 %v2915_v63, 0.0  ;;  %v2095_v33 = vadd.f32 %v2022_v1, %v4740_v30  ;;  %v2701_v63 = vld [vmem:[#allocation2 + $0x146] sm:$0xff] }
 0x2c0   : > { %v2368_v13 = vadd.f32 %v2293_v20, %v2094_v0  ;;  %v2175_v20 = vpack.c.bf16 %v2154_v10, %v2153_v26 }
 0x2c1   : > { %3978 = vmatmul.msk.bf16.gmra.mxu1 %vm497_vm1, %v2173_v50 }
 0x2c2   : > { %v2567_v22 = vpop.f32.mrf.mxu3 }
 0x2c3   : > { %v2642_v4 = vadd.f32 %v2567_v22, %v2368_v13  ;;  %v2427_v13 = vld [vmem:[#allocation2 + $0x145] sm:$0xff] }
 0x2c4   : > { %3999 = vmatmul.msk.bf16.gmra.mxu2 %vm497_vm1, %v2174_v28  ;;  %v2449_v22 = vpack.c.bf16 %v2428_v9, %v2427_v13  ;;  %v2429_v13 = vld [vmem:[#allocation2 + $0x155] sm:$0xff]  ;;  %v2430_v9 = vld [vmem:[#allocation2 + $0x15d] sm:$0xff] }
 0x2c5   : > { %v2916_v46 = vadd.f32 %v2841_v25, %v2642_v4  ;;  %v2702_v4 = vld [vmem:[#allocation2 + $0x14e] sm:$0xff] }
 0x2c6   : > { %v2024_v14 = vpop.f32.mrf.mxu1 }
 0x2c7   : > { %v5235_v29 = vmax.f32 %v2916_v46, 0.0  ;;  %v2844_v34 = vpop.f32.mrf.mxu0  ;;  %4020 = vmatmul.msk.bf16.gmra.mxu3 %vm497_vm1, %v2448_v38  ;;  %v2296_v50 = vpop.f32.mrf.mxu2  ;;  %v2096_v48 = vadd.f32 %v2024_v14, %v4745_v40  ;;  %v2723_v38 = vpack.c.bf16 %v2702_v4, %v2701_v63  ;;  %v2704_v63 = vld [vmem:[#allocation2 + $0x15e] sm:$0xff] }
 0x2c8   : > { %v2369_v45 = vadd.f32 %v2296_v50, %v2095_v33  ;;  %v5253_v14 = vpop.permute.xlu0 %3271 }
 0x2c9   : > { %v4179_v44 = vpack.c.bf16 %v5235_v29, %v5233_v2  ;;  %5705 = vst [vmem:[#allocation18_spill] sm:$0xff] %v5253_v14 }
 0x2ca   : > { %4041 = vmatmul.msk.bf16.gmra.mxu0 %vm497_vm1, %v2722_v53  ;;  %v2570_v7 = vpop.f32.mrf.mxu3 }
 0x2cb   : > { %4263 = vst [vmem:[%s5123_s14 + $0x40] sm:$0xff] %v4179_v44   ;;  %v2643_v19 = vadd.f32 %v2570_v7, %v2369_v45  ;;  %v2155_v7 = vld [vmem:[#allocation2 + $0x154] sm:$0xff]  ;;  %v2156_v45 = vld [vmem:[#allocation2 + $0x15c] sm:$0xff] }
 0x2cd   : > { %v2917_v1 = vadd.f32 %v2844_v34, %v2643_v19 }
 0x2ce   : > { %v2027_v47 = vpop.f32.mrf.mxu1 }
 0x2cf   : > { %v2846_v0 = vpop.f32.mrf.mxu0  ;;  %v2298_v51 = vpop.f32.mrf.mxu2  ;;  %v5248_v37 = vmax.f32 %v2917_v1, 0.0  ;;  %v2097_v50 = vadd.f32 %v2027_v47, %v4750_v12 }
 0x2d0   : > { %v2370_v25 = vadd.f32 %v2298_v51, %v2096_v48  ;;  %v5262_v12 = vpop.permute.xlu0 %3286 }
 0x2d1   : > { %3979 = vmatmul.msk.bf16.gmra.mxu1 %vm497_vm1, %v2174_v28 }
 0x2d2   : > { %v2572_v30 = vpop.f32.mrf.mxu3 }
 0x2d3   : > { %v2644_v39 = vadd.f32 %v2572_v30, %v2370_v25  ;;  %v2176_v25 = vpack.c.bf16 %v2156_v45, %v2155_v7 }
 0x2d4   : > { %4000 = vmatmul.msk.bf16.gmra.mxu2 %vm497_vm1, %v2175_v20 }
 0x2d5   : > { %v2918_v40 = vadd.f32 %v2846_v0, %v2644_v39  ;;  %v2450_v39 = vpack.c.bf16 %v2430_v9, %v2429_v13 }
 0x2d6   : > { %v2029_v17 = vpop.f32.mrf.mxu1 }
 0x2d7   : > { %v5250_v46 = vmax.f32 %v2918_v40, 0.0  ;;  %v2849_v53 = vpop.f32.mrf.mxu0  ;;  %4021 = vmatmul.msk.bf16.gmra.mxu3 %vm497_vm1, %v2449_v22  ;;  %v2301_v28 = vpop.f32.mrf.mxu2  ;;  %v2098_v26 = vadd.f32 %v2029_v17, %v4755_v36  ;;  %v2703_v22 = vld [vmem:[#allocation2 + $0x156] sm:$0xff] }
 0x2d8   : > { %v2371_v33 = vadd.f32 %v2301_v28, %v2097_v50  ;;  %v2724_v4 = vpack.c.bf16 %v2704_v63, %v2703_v22  ;;  %v5279_v45 = vpop.permute.xlu0 %3301 }
 0x2d9   : > { %v4184_v34 = vpack.c.bf16 %v5250_v46, %v5248_v37  ;;  %5707 = vst [vmem:[#allocation20_spill] sm:$0xff] %v5279_v45 }
 0x2da   : > { %4042 = vmatmul.msk.bf16.gmra.mxu0 %vm497_vm1, %v2723_v38  ;;  %v2575_v44 = vpop.f32.mrf.mxu3 }
 0x2db   : > { %4264 = vst [vmem:[%s5123_s14 + $0x48] sm:$0xff] %v4184_v34   ;;  %v2645_v48 = vadd.f32 %v2575_v44, %v2371_v33  ;;  %v5270_v34 = vpop.permute.xlu1 %3196  ;;  %v5275_v44 = vpop.permute.xlu2 %3206 }
 0x2dc   : > { %5706 = vst [vmem:[#allocation19_spill] sm:$0xff] %v5270_v34 }
 0x2dd   : > { %v2919_v30 = vadd.f32 %v2849_v53, %v2645_v48 }
 0x2de   : > { %v2032_v10 = vpop.f32.mrf.mxu1 }
 0x2df   : > { %v2851_v19 = vpop.f32.mrf.mxu0  ;;  %v2303_v0 = vpop.f32.mrf.mxu2  ;;  %v5265_v38 = vmax.f32 %v2919_v30, 0.0  ;;  %v2099_v50 = vadd.f32 %v2032_v10, %v4760_v55 }
 0x2e0   : > { %v2372_v51 = vadd.f32 %v2303_v0, %v2098_v26 }
 0x2e1   : > { %3980 = vmatmul.msk.bf16.gmra.mxu1 %vm497_vm1, %v2175_v20 }
 0x2e2   : > { %v2577_v47 = vpop.f32.mrf.mxu3 }
 0x2e3   : > { %v2646_v1 = vadd.f32 %v2577_v47, %v2372_v51  ;;  %v5282_v13 = vpop.permute.xlu1 %3201  ;;  %v5284_v47 = vpop.permute.xlu2 %3211 }
 0x2e4   : > { %4001 = vmatmul.msk.bf16.gmra.mxu2 %vm497_vm1, %v2176_v25  ;;  %5708 = vst [vmem:[#allocation21_spill] sm:$0xff] %v5282_v13 }
 0x2e5   : > { %v2920_v36 = vadd.f32 %v2851_v19, %v2646_v1  ;;  %v5286_v1 = vpop.permute.xlu0 %3316 }
 0x2e6   : > { %v2034_v40 = vpop.f32.mrf.mxu1  ;;  %5709 = vst [vmem:[#allocation22_spill] sm:$0xff] %v5286_v1 }
 0x2e7   : > { %v5267_v17 = vmax.f32 %v2920_v36, 0.0  ;;  %v2854_v28 = vpop.f32.mrf.mxu0  ;;  %4022 = vmatmul.msk.bf16.gmra.mxu3 %vm497_vm1, %v2450_v39  ;;  %v2306_v20 = vpop.f32.mrf.mxu2  ;;  %v2100_v26 = vadd.f32 %v2034_v40, %v4771_v41 }
 0x2e8   : > { %v2373_v7 = vadd.f32 %v2306_v20, %v2099_v50 }
 0x2e9   : > { %v4189_v53 = vpack.c.bf16 %v5267_v17, %v5265_v38 }
 0x2ea   : > { %4043 = vmatmul.msk.bf16.gmra.mxu0 %vm497_vm1, %v2724_v4  ;;  %v2580_v33 = vpop.f32.mrf.mxu3 }
 0x2eb   : > { %4265 = vst [vmem:[%s5123_s14 + $0x50] sm:$0xff] %v4189_v53   ;;  %v2647_v19 = vadd.f32 %v2580_v33, %v2373_v7  ;;  %v5295_v20 = vpop.permute.xlu1 %3216  ;;  %v5298_v50 = vpop.permute.xlu2 %3221 }
 0x2ec   : > { %5710 = vst [vmem:[#allocation23_spill] sm:$0xff] %v5298_v50 }
 0x2ed   : > { %v2921_v10 = vadd.f32 %v2854_v28, %v2647_v19 }
 0x2ee   : > { %v2037_v48 = vpop.f32.mrf.mxu1 }
 0x2ef   : > { %v2856_v0 = vpop.f32.mrf.mxu0  ;;  %v2308_v51 = vpop.f32.mrf.mxu2  ;;  %v5288_v22 = vmax.f32 %v2921_v10, 0.0  ;;  %v2101_v40 = vadd.f32 %v2037_v48, %v4779_v60 }
 0x2f0   : > { %v2374_v25 = vadd.f32 %v2308_v51, %v2100_v26 }
 0x2f2   : > { %v2582_v55 = vpop.f32.mrf.mxu3 }
 0x2f3   : > { %v2648_v9 = vadd.f32 %v2582_v55, %v2374_v25  ;;  %v3180_v25 = vpop.xlane.xlu0 %3179  ;;  %v5301_v55 = vpop.permute.xlu1 %3226 }
 0x2f4   : > { %5711 = vst [vmem:[#allocation24_spill] sm:$0xff] %v5301_v55  ;;  %v3181_v10 = vrot.slane %v3180_v25, 4 }
 0x2f5   : > { %v2922_v30 = vadd.f32 %v2856_v0, %v2648_v9 }
 0x2f6   : > { %v2039_v39 = vpop.f32.mrf.mxu1 }
 0x2f7   : > { %v5290_v41 = vmax.f32 %v2922_v30, 0.0  ;;  %v2859_v63 = vpop.f32.mrf.mxu0  ;;  %v2311_v36 = vpop.f32.mrf.mxu2  ;;  %v2102_v33 = vadd.f32 %v2039_v39, %v4787_v32 }
 0x2f8   : > { %v2375_v53 = vadd.f32 %v2311_v36, %v2101_v40  ;;  %v5303_v30 = vpop.permute.xlu2 %3231 }
 0x2f9   : > { %v4194_v4 = vpack.c.bf16 %v5290_v41, %v5288_v22  ;;  %5712 = vst [vmem:[#allocation25_spill] sm:$0xff] %v5303_v30 }
 0x2fa   : > { %v2585_v28 = vpop.f32.mrf.mxu3 }
 0x2fb   : > { %4266 = vst [vmem:[%s5123_s14 + $0x58] sm:$0xff] %v4194_v4   ;;  %v2649_v26 = vadd.f32 %v2585_v28, %v2375_v53  ;;  %v3182_v4 = vadd.f32 %v3181_v10, %v3180_v25 }
 0x2fd   : > { %v2923_v60 = vadd.f32 %v2859_v63, %v2649_v26  ;;  %v3183_v63 = vrot.slane %v3182_v4, 2 }
 0x2fe   : > { %v2042_v7 = vpop.f32.mrf.mxu1 }
 0x2ff   : > { %v2861_v19 = vpop.f32.mrf.mxu0  ;;  %v2313_v0 = vpop.f32.mrf.mxu2  ;;  %v5305_v27 = vmax.f32 %v2923_v60, 0.0 }
 0x300   : > { %v2376_v51 = vadd.f32 %v2313_v0, %v2102_v33  ;;  %v2103_v33 = vadd.f32 %v2042_v7, %v4792_v23  ;;  %v5312_v0 = vpop.permute.xlu1 %3236 }
 0x301   : > { %5713 = vst [vmem:[#allocation26_spill] sm:$0xff] %v5305_v27 }
 0x302   : > { %v2587_v9 = vpop.f32.mrf.mxu3  ;;  %5715 = vst [vmem:[#allocation28_spill] sm:$0xff] %v5312_v0 }
 0x303   : > { %v2650_v48 = vadd.f32 %v2587_v9, %v2376_v51  ;;  %v3184_v9 = vadd.f32 %v3183_v63, %v3182_v4 }
 0x305   : > { %v2924_v36 = vadd.f32 %v2861_v19, %v2650_v48  ;;  %v5315_v19 = vpop.permute.xlu2 %3241  ;;  %v3185_v58 = vrot.slane %v3184_v9, 1 }
 0x306   : > { %v2044_v40 = vpop.f32.mrf.mxu1  ;;  %5716 = vst [vmem:[#allocation29_spill] sm:$0xff] %v5315_v19 }
 0x307   : > { %v5307_v32 = vmax.f32 %v2924_v36, 0.0  ;;  %v2864_v39 = vpop.f32.mrf.mxu0  ;;  %v2316_v28 = vpop.f32.mrf.mxu2  ;;  %v2104_v25 = vadd.f32 %v2044_v40, %v4800_v16  ;;  %v3186_v7 = vadd.f32 %v3185_v58, %v3184_v9 }
 0x308   : > { %v2377_v51 = vadd.f32 %v2316_v28, %v2103_v33  ;;  %v5318_v6 = vpop.permute.xlu1 %3246 }
 0x309   : > { %5714 = vst [vmem:[#allocation27_spill] sm:$0xff] %v5307_v32  ;;  %v4199_v53 = vpack.c.bf16 %v5307_v32, %v5305_v27 }
 0x30a   : > { %v2590_v26 = vpop.f32.mrf.mxu3  ;;  %4281 = vpush %v3186_v7 }
 0x30b   : > { %4267 = vst [vmem:[%s5123_s14 + $0x60] sm:$0xff] %v4199_v53   ;;  %v2651_v60 = vadd.f32 %v2590_v26, %v2377_v51  ;;  %v3390_v26 = vmul.f32 %v5270_v34, %v5117_v21 }
 0x30d   : > { %v2925_v1 = vadd.f32 %v2864_v39, %v2651_v60  ;;  %v5320_v53 = vpop.permute.xlu2 %3251  ;;  %v5717_v39 = vld [vmem:[#allocation3_spill] sm:$0xff] }
 0x30e   : > { %v2047_v10 = vpop.f32.mrf.mxu1 }
 0x30f   : > { %v2866_v48 = vpop.f32.mrf.mxu0  ;;  %v2318_v36 = vpop.f32.mrf.mxu2  ;;  %v5322_v16 = vmax.f32 %v2925_v1, 0.0  ;;  %v3391_v1 = vmul.f32 %v5282_v13, %v5136_v57 }
 0x310   : > { %v2378_v61 = vadd.f32 %v2318_v36, %v2104_v25  ;;  %v5331_v51 = vpop.permute.xlu1 %3261  ;;  %v3392_v36 = vmul.f32 %v5275_v44, %v5138_v35 }
 0x312   : > { %v2592_v23 = vpop.f32.mrf.mxu3 }
 0x313   : > { %v2652_v32 = vadd.f32 %v2592_v23, %v2378_v61  ;;  %v2105_v61 = vadd.f32 %v2047_v10, %v5717_v39  ;;  %v5719_v23 = vld [vmem:[#allocation4_spill] sm:$0xff]  ;;  %v3393_v39 = vmul.f32 %v5284_v47, %v5149_v8 }
 0x315   : > { %v2926_v28 = vadd.f32 %v2866_v48, %v2652_v32  ;;  %v3389_v32 = vmul.f32 %v5231_v31, %v5115_v43  ;;  %v5338_v60 = vpop.permute.xlu2 %3266 }
 0x316   : > { %v2049_v33 = vpop.f32.mrf.mxu1  ;;  %5718 = vst [vmem:[#allocation3_spill] sm:$0xff] %v5338_v60 }
 0x317   : > { %v5324_v4 = vmax.f32 %v2926_v28, 0.0  ;;  %v2869_v40 = vpop.f32.mrf.mxu0  ;;  %v2321_v63 = vpop.f32.mrf.mxu2  ;;  %v3429_v48 = vadd.f32 %v3390_v26, %v3389_v32  ;;  %v2106_v7 = vadd.f32 %v2049_v33, %v5719_v23  ;;  %v3395_v33 = vmul.f32 %v5298_v50, %v5162_v52 }
 0x318   : > { %v2379_v9 = vadd.f32 %v2321_v63, %v2105_v61  ;;  %v3394_v63 = vmul.f32 %v5295_v20, %v5151_v5 }
 0x319   : > { %v4204_v58 = vpack.c.bf16 %v5324_v4, %v5322_v16  ;;  %v3430_v28 = vadd.f32 %v3429_v48, %v3391_v1 }
 0x31a   : > { %v2595_v25 = vpop.f32.mrf.mxu3 }
 0x31b   : > { %4268 = vst [vmem:[%s5123_s14 + $0x68] sm:$0xff] %v4204_v58   ;;  %v2653_v34 = vadd.f32 %v2595_v25, %v2379_v9  ;;  %v3431_v13 = vadd.f32 %v3430_v28, %v3392_v36  ;;  %v5347_v58 = vpop.permute.xlu1 %3276  ;;  %v3396_v25 = vmul.f32 %v5301_v55, %v5164_v56 }
 0x31c   : > { %5720 = vst [vmem:[#allocation4_spill] sm:$0xff] %v5347_v58 }
 0x31d   : > { %v3432_v61 = vadd.f32 %v3431_v13, %v3393_v39  ;;  %v2927_v32 = vadd.f32 %v2869_v40, %v2653_v34  ;;  %v5351_v48 = vpop.permute.xlu2 %3281  ;;  %v3398_v40 = vmul.f32 %v5312_v0, %v5177_v15  ;;  %v5724_v0 = vld [vmem:[#allocation6_spill] sm:$0xff] }
 0x31e   : > { %v2052_v10 = vpop.f32.mrf.mxu1  ;;  %5721 = vst [vmem:[#allocation30_spill] sm:$0xff] %v5351_v48 }
 0x31f   : > { %v2871_v31 = vpop.f32.mrf.mxu0  ;;  %v2323_v21 = vpop.f32.mrf.mxu2  ;;  %v3433_v23 = vadd.f32 %v3432_v61, %v3394_v63  ;;  %v5357_v28 = vmax.f32 %v2927_v32, 0.0  ;;  %v3399_v32 = vmul.f32 %v5315_v19, %v5188_v42 }
 0x320   : > { %v2380_v43 = vadd.f32 %v2323_v21, %v2106_v7  ;;  %v3397_v7 = vmul.f32 %v5303_v30, %v5175_v62 }
 0x321   : > { %v3434_v36 = vadd.f32 %v3433_v23, %v3395_v33 }
 0x322   : > { %v2597_v26 = vpop.f32.mrf.mxu3 }
 0x323   : > { %v2654_v1 = vadd.f32 %v2597_v26, %v2380_v43  ;;  %v3435_v43 = vadd.f32 %v3434_v36, %v3396_v25  ;;  %v5366_v61 = vpop.permute.xlu1 %3291  ;;  %v3400_v25 = vmul.f32 %v5318_v6, %v5190_v11 }
 0x325   : > { %v2928_v21 = vadd.f32 %v2871_v31, %v2654_v1  ;;  %v5722_v31 = vld [vmem:[#allocation5_spill] sm:$0xff]  ;;  %v3436_v1 = vadd.f32 %v3435_v43, %v3397_v7  ;;  %v5373_v36 = vpop.permute.xlu2 %3296 }
 0x326   : > { %v2054_v9 = vpop.f32.mrf.mxu1  ;;  %v2107_v26 = vadd.f32 %v2052_v10, %v5722_v31  ;;  %5723 = vst [vmem:[#allocation5_spill] sm:$0xff] %v5373_v36  ;;  %v3401_v10 = vmul.f32 %v5320_v53, %v5201_v54 }
 0x327   : > { %v5359_v13 = vmax.f32 %v2928_v21, 0.0  ;;  %v2874_v39 = vpop.f32.mrf.mxu0  ;;  %v2326_v34 = vpop.f32.mrf.mxu2  ;;  %v3437_v21 = vadd.f32 %v3436_v1, %v3398_v40  ;;  %v2108_v30 = vadd.f32 %v2054_v9, %v5724_v0 }
 0x328   : > { %v2381_v23 = vadd.f32 %v2326_v34, %v2107_v26  ;;  %v3402_v34 = vmul.f32 %v5243_v3, %v5203_v18  ;;  %v3403_v26 = vmul.f32 %v5331_v51, %v5214_v59 }
 0x329   : > { %v4209_v63 = vpack.c.bf16 %v5359_v13, %v5357_v28  ;;  %v3438_v15 = vadd.f32 %v3437_v21, %v3399_v32  ;;  %v3405_v21 = vmul.f32 %v5253_v14, %v5233_v2 }
 0x32a   : > { %v2600_v33 = vpop.f32.mrf.mxu3 }
 0x32b   : > { %4269 = vst [vmem:[%s5123_s14 + $0x70] sm:$0xff] %v4209_v63   ;;  %v2655_v31 = vadd.f32 %v2600_v33, %v2381_v23  ;;  %v3439_v19 = vadd.f32 %v3438_v15, %v3400_v25  ;;  %v5382_v9 = vpop.permute.xlu1 %3306  ;;  %v3404_v33 = vmul.f32 %v5338_v60, %v5216_v49 }
 0x32c   : > { %5725 = vst [vmem:[#allocation6_spill] sm:$0xff] %v5382_v9 }
 0x32d   : > { %v3440_v63 = vadd.f32 %v3439_v19, %v3401_v10  ;;  %v2929_v1 = vadd.f32 %v2874_v39, %v2655_v31 }
 0x32e   : > { %v2057_v55 = vpop.f32.mrf.mxu1 }
 0x32f   : > { %v2876_v7 = vpop.f32.mrf.mxu0  ;;  %v2328_v43 = vpop.f32.mrf.mxu2  ;;  %v3441_v32 = vadd.f32 %v3440_v63, %v3402_v34  ;;  %v5388_v25 = vmax.f32 %v2929_v1, 0.0  ;;  %v5728_v34 = vld [vmem:[#allocation7_spill] sm:$0xff]  ;;  %v3407_v1 = vmul.f32 %v5351_v48, %v5248_v37 }
 0x330   : > { %v2382_v50 = vadd.f32 %v2328_v43, %v2108_v30  ;;  %v3406_v43 = vmul.f32 %v5347_v58, %v5235_v29 }
 0x331   : > { %v3442_v15 = vadd.f32 %v3441_v32, %v3403_v26 }
 0x332   : > { %v2602_v40 = vpop.f32.mrf.mxu3 }
 0x333   : > { %v2656_v0 = vadd.f32 %v2602_v40, %v2382_v50  ;;  %v5392_v50 = vpop.permute.xlu2 %3311  ;;  %v3443_v31 = vadd.f32 %v3442_v15, %v3404_v33  ;;  %v2109_v40 = vadd.f32 %v2057_v55, %v5728_v34  ;;  %v5404_v33 = vpop.permute.xlu1 %3321  ;;  %v3409_v55 = vmul.f32 %v5366_v61, %v5265_v38 }
 0x334   : > { %5727 = vst [vmem:[#allocation32_spill] sm:$0xff] %v5392_v50 }
 0x335   : > { %v2930_v23 = vadd.f32 %v2876_v7, %v2656_v0  ;;  %v3444_v26 = vadd.f32 %v3443_v31, %v3405_v21 }
 0x336   : > { %v2059_v30 = vpop.f32.mrf.mxu1 }
 0x337   : > { %v5390_v19 = vmax.f32 %v2930_v23, 0.0  ;;  %v2879_v10 = vpop.f32.mrf.mxu0  ;;  %v2331_v39 = vpop.f32.mrf.mxu2  ;;  %v3445_v32 = vadd.f32 %v3444_v26, %v3406_v43  ;;  %v3408_v23 = vmul.f32 %v5262_v12, %v5250_v46  ;;  %v2110_v15 = vadd.f32 %v2059_v30, %v4950_v24 }
 0x338   : > { %v2383_v0 = vadd.f32 %v2331_v39, %v2109_v40  ;;  %v3410_v39 = vmul.f32 %v5373_v36, %v5267_v17  ;;  %v3411_v24 = vmul.f32 %v5279_v45, %v5288_v22 }
 0x339   : > { %5726 = vst [vmem:[#allocation31_spill] sm:$0xff] %v5390_v19  ;;  %v4214_v7 = vpack.c.bf16 %v5390_v19, %v5388_v25  ;;  %v3446_v14 = vadd.f32 %v3445_v32, %v3407_v1  ;;  %v5417_v32 = vpop.permute.xlu0 %3331 }
 0x33a   : > { %v2605_v63 = vpop.f32.mrf.mxu3  ;;  %5730 = vst [vmem:[#allocation33_spill] sm:$0xff] %v5417_v32 }
 0x33b   : > { %4270 = vst [vmem:[%s5123_s14 + $0x78] sm:$0xff] %v4214_v7   ;;  %v2657_v34 = vadd.f32 %v2605_v63, %v2383_v0  ;;  %v3447_v48 = vadd.f32 %v3446_v14, %v3408_v23  ;;  %v5411_v43 = vpop.permute.xlu2 %3326  ;;  %v3412_v63 = vmul.f32 %v5382_v9, %v5290_v41  ;;  %s4282_s18 = spop %4281 }
 0x33c   : > { %5729 = vst [vmem:[#allocation7_spill] sm:$0xff] %v5411_v43  ;;  %s3188_s16 = smax.f32 %s4341_s15, %s4282_s18 }
 0x33d   : > { %v3448_v40 = vadd.f32 %v3447_v48, %v3409_v55  ;;  %v2931_v30 = vadd.f32 %v2879_v10, %v2657_v34 }
 0x33e   : > { %v2062_v58 = vpop.f32.mrf.mxu1 }
 0x33f   : > { %v2881_v21 = vpop.f32.mrf.mxu0  ;;  %v2333_v31 = vpop.f32.mrf.mxu2  ;;  %v3449_v1 = vadd.f32 %v3448_v40, %v3410_v39  ;;  %v5734_v39 = vld [vmem:[#allocation27_spill] sm:$0xff] }
 0x340   : > { %v2384_v60 = vadd.f32 %v2333_v31, %v2110_v15  ;;  %v3413_v15 = vmul.f32 %v5392_v50, %v5305_v27  ;;  %v5421_v31 = vmax.f32 %v2931_v30, 0.0  ;;  %v3415_v30 = vmul.f32 %v5404_v33, %v5322_v16 }
 0x341   : > { %v3450_v23 = vadd.f32 %v3449_v1, %v3411_v24  ;;  %v5442_v36 = vpop.permute.xlu0 %3346 }
 0x342   : > { %v2607_v7 = vpop.f32.mrf.mxu3  ;;  %5731 = vst [vmem:[#allocation34_spill] sm:$0xff] %v5421_v31 }
 0x343   : > { %v2658_v26 = vadd.f32 %v2607_v7, %v2384_v60  ;;  %v5425_v60 = vpop.permute.xlu1 %3336  ;;  %v3451_v34 = vadd.f32 %v3450_v23, %v3412_v63  ;;  %v5735_v7 = vld [vmem:[#allocation22_spill] sm:$0xff]  ;;  %v5435_v50 = vpop.permute.xlu2 %3341  ;;  %v3416_v63 = vmul.f32 %v5411_v43, %v5324_v4  ;;  %v5738_v23 = vld [vmem:[#allocation9_spill] sm:$0xff] }
 0x344   : > { %5733 = vst [vmem:[#allocation36_spill] sm:$0xff] %v5425_v60 }
 0x345   : > { %v2932_v0 = vadd.f32 %v2881_v21, %v2658_v26  ;;  %v3414_v21 = vmul.f32 %v5735_v7, %v5734_v39  ;;  %v5736_v26 = vld [vmem:[#allocation8_spill] sm:$0xff]  ;;  %v3452_v9 = vadd.f32 %v3451_v34, %v3413_v15  ;;  %5739 = vst [vmem:[#allocation9_spill] sm:$0xff] %v5442_v36 }
 0x346   : > { %v2064_v14 = vpop.f32.mrf.mxu1  ;;  %v2111_v24 = vadd.f32 %v2062_v58, %v5736_v26  ;;  %5737 = vst [vmem:[#allocation8_spill] sm:$0xff] %v5435_v50  ;;  %v3417_v58 = vmul.f32 %v5417_v32, %v5357_v28 }
 0x347   : > { %v5423_v48 = vmax.f32 %v2932_v0, 0.0  ;;  %v2884_v55 = vpop.f32.mrf.mxu0  ;;  %v2336_v10 = vpop.f32.mrf.mxu2  ;;  %v3453_v45 = vadd.f32 %v3452_v9, %v3414_v21  ;;  %v2112_v7 = vadd.f32 %v2064_v14, %v5738_v23  ;;  %v3418_v9 = vmul.f32 %v5425_v60, %v5359_v13 }
 0x348   : > { %v2385_v0 = vadd.f32 %v2336_v10, %v2111_v24 }
 0x349   : > { %5732 = vst [vmem:[#allocation35_spill] sm:$0xff] %v5423_v48  ;;  %v4219_v40 = vpack.c.bf16 %v5423_v48, %v5421_v31  ;;  %v3454_v27 = vadd.f32 %v3453_v45, %v3415_v30  ;;  %v3419_v45 = vmul.f32 %v5435_v50, %v5388_v25 }
 0x34a   : > { %v2610_v1 = vpop.f32.mrf.mxu3 }
 0x34b   : > { %4271 = vst [vmem:[%s5123_s14 + $0x80] sm:$0xff] %v4219_v40   ;;  %v2659_v26 = vadd.f32 %v2610_v1, %v2385_v0  ;;  %v3455_v10 = vadd.f32 %v3454_v27, %v3416_v63  ;;  %v5446_v21 = vpop.permute.xlu1 %3351  ;;  %v3420_v1 = vmul.f32 %v5442_v36, %v5390_v19  ;;  %v5452_v32 = vpop.permute.xlu2 %3356  ;;  %v5742_v27 = vld [vmem:[#allocation10_spill] sm:$0xff] }
 0x34c   : > { %5740 = vst [vmem:[#allocation37_spill] sm:$0xff] %v5446_v21 }
 0x34d   : > { %v3456_v43 = vadd.f32 %v3455_v10, %v3417_v58  ;;  %v2933_v14 = vadd.f32 %v2884_v55, %v2659_v26  ;;  %5741 = vst [vmem:[#allocation38_spill] sm:$0xff] %v5452_v32  ;;  %v3421_v58 = vmul.f32 %v5446_v21, %v5421_v31 }
 0x34e   : > { %v2067_v39 = vpop.f32.mrf.mxu1 }
 0x34f   : > { %v2886_v15 = vpop.f32.mrf.mxu0  ;;  %v2338_v34 = vpop.f32.mrf.mxu2  ;;  %v3457_v23 = vadd.f32 %v3456_v43, %v3418_v9  ;;  %v5457_v10 = vmax.f32 %v2933_v14, 0.0 }
 0x350   : > { %v2386_v40 = vadd.f32 %v2338_v34, %v2112_v7  ;;  %v2113_v7 = vadd.f32 %v2067_v39, %v5742_v27  ;;  %v5465_v9 = vpop.permute.xlu0 %3361 }
 0x351   : > { %v3458_v34 = vadd.f32 %v3457_v23, %v3419_v45  ;;  %5743 = vst [vmem:[#allocation10_spill] sm:$0xff] %v5457_v10  ;;  %v3423_v14 = vmul.f32 %v5465_v9, %v5457_v10 }
 0x352   : > { %v2612_v24 = vpop.f32.mrf.mxu3  ;;  %5744 = vst [vmem:[#allocation39_spill] sm:$0xff] %v5465_v9 }
 0x353   : > { %v2660_v30 = vadd.f32 %v2612_v24, %v2386_v40  ;;  %v3459_v40 = vadd.f32 %v3458_v34, %v3420_v1  ;;  %v5470_v23 = vpop.permute.xlu1 %3366  ;;  %v5477_v36 = vpop.permute.xlu2 %3371 }
 0x354   : > { %5745 = vst [vmem:[#allocation40_spill] sm:$0xff] %v5470_v23 }
 0x355   : > { %v2934_v0 = vadd.f32 %v2886_v15, %v2660_v30  ;;  %v3422_v15 = vmul.f32 %v5452_v32, %v5423_v48  ;;  %v3460_v45 = vadd.f32 %v3459_v40, %v3421_v58 }
 0x356   : > { %v2069_v63 = vpop.f32.mrf.mxu1 }
 0x357   : > { %v5459_v50 = vmax.f32 %v2934_v0, 0.0  ;;  %v2889_v55 = vpop.f32.mrf.mxu0  ;;  %v2341_v43 = vpop.f32.mrf.mxu2  ;;  %v3461_v0 = vadd.f32 %v3460_v45, %v3422_v15 }
 0x358   : > { %v2387_v26 = vadd.f32 %v2341_v43, %v2113_v7  ;;  %v5746_v7 = vld [vmem:[#allocation11_spill] sm:$0xff] }
 0x359   : > { %v4224_v39 = vpack.c.bf16 %v5459_v50, %v5457_v10  ;;  %v3424_v1 = vmul.f32 %v5470_v23, %v5459_v50  ;;  %v2114_v34 = vadd.f32 %v2069_v63, %v5746_v7  ;;  %v3462_v43 = vadd.f32 %v3461_v0, %v3423_v14  ;;  %5747 = vst [vmem:[#allocation11_spill] sm:$0xff] %v5477_v36 }
 0x35a   : > { %v2615_v24 = vpop.f32.mrf.mxu3 }
 0x35b   : > { %4272 = vst [vmem:[%s5123_s14 + $0x88] sm:$0xff] %v4224_v39   ;;  %v2661_v30 = vadd.f32 %v2615_v24, %v2387_v26  ;;  %v3463_v9 = vadd.f32 %v3462_v43, %v3424_v1 }
 0x35d   : > { %v2935_v27 = vadd.f32 %v2889_v55, %v2661_v30  ;;  %v5748_v30 = vld [vmem:[#allocation12_spill] sm:$0xff] }
 0x35e   : > { %v2072_v15 = vpop.f32.mrf.mxu1 }
 0x35f   : > { %v5475_v32 = vmax.f32 %v2935_v27, 0.0  ;;  %v2343_v21 = vpop.f32.mrf.mxu2  ;;  %v2891_v58 = vpop.f32.mrf.mxu0  ;;  %v2115_v63 = vadd.f32 %v2072_v15, %v5748_v30  ;;  %v5749_v15 = vld [vmem:[#allocation13_spill] sm:$0xff] }
 0x360   : > { %v2388_v40 = vadd.f32 %v2343_v21, %v2114_v34  ;;  %v5484_v27 = vpop.permute.xlu0 %3376 }
 0x361   : > { %v3425_v26 = vmul.f32 %v5477_v36, %v5475_v32 }
 0x362   : > { %v2617_v39 = vpop.f32.mrf.mxu3 }
 0x363   : > { %v3464_v24 = vadd.f32 %v3463_v9, %v3425_v26  ;;  %v2662_v45 = vadd.f32 %v2617_v39, %v2388_v40 }
 0x365   : > { %v2936_v55 = vadd.f32 %v2891_v58, %v2662_v45  ;;  %v3474_v45 = vstv %s3188_s16 }
 0x366   : > { %v2074_v40 = vpop.f32.mrf.mxu1  ;;  %4313 = vrcp.f32 %v3474_v45  ;;  %vm3480_vm3 = vweird.f32 %v3474_v45 }
 0x367   : > { %v5482_v14 = vmax.f32 %v2936_v55, 0.0  ;;  %v2346_v0 = vpop.f32.mrf.mxu2  ;;  %v2894_v34 = vpop.f32.mrf.mxu0  ;;  %v2116_v39 = vadd.f32 %v2074_v40, %v5749_v15 }
 0x368   : > { %v2389_v7 = vadd.f32 %v2346_v0, %v2115_v63  ;;  %v3382_v63 = vpop.permute.xlu1 %3381 }
 0x369   : > { %v4229_v21 = vpack.c.bf16 %v5482_v14, %v5475_v32  ;;  %v3426_v1 = vmul.f32 %v5484_v27, %v5482_v14 }
 0x36a   : > { %v2620_v43 = vpop.f32.mrf.mxu3 }
 0x36b   : > { %4273 = vst [vmem:[%s5123_s14 + $0x90] sm:$0xff] %v4229_v21   ;;  %v3465_v9 = vadd.f32 %v3464_v24, %v3426_v1  ;;  %v2663_v58 = vadd.f32 %v2620_v43, %v2389_v7  ;;  %v3387_v43 = vpop.permute.xlu2 %3386 }
 0x36c   : > { %v4314_v1 = vpop.eup %4313 }
 0x36d   : > { %v2937_v26 = vadd.f32 %v2894_v34, %v2663_v58  ;;  %v3476_v40 = vmul.f32 %v4314_v1, %v3474_v45  ;;  %vm3481_vm4 = vweird.f32 %v4314_v1 }
 0x36e   : > { %vm3482_vm5 = vmor %vm3480_vm3, %vm3481_vm4 }
 0x36f   : > { %v2977_v55 = vmax.f32 %v2937_v26, 0.0  ;;  %v2348_v30 = vpop.f32.mrf.mxu2  ;;  %v2896_v21 = vpop.f32.mrf.mxu0  ;;  %v3477_v31 = vsub.f32 1.0, %v3476_v40  ;;  %v5750_v40 = vld [vmem:[#allocation14_spill] sm:$0xff] }
 0x370   : > { %v2390_v0 = vadd.f32 %v2348_v30, %v2116_v39 }
 0x371   : > { %v3427_v36 = vmul.f32 %v3382_v63, %v2977_v55  ;;  %v3478_v30 = vmul.f32 %v4314_v1, %v3477_v31 }
 0x372   : > { %v2622_v23 = vpop.f32.mrf.mxu3 }
 0x373   : > { %v3466_v10 = vadd.f32 %v3465_v9, %v3427_v36  ;;  %v2664_v48 = vadd.f32 %v2622_v23, %v2390_v0  ;;  %v3486_v23 = vand.u32 2147483648, %v3474_v45  ;;  %v3484_v9 = vand.u32 2147483647, %v3474_v45 }
 0x375   : > { %v2938_v24 = vadd.f32 %v2896_v21, %v2664_v48  ;;  %v3479_v48 = vadd.f32 %v4314_v1, %v3478_v30  ;;  %vm3485_vm6 = vcmp.eq.f32.partialorder %v3484_v9, 8.507059e+37 }
 0x377   : > { %v2978_v7 = vmax.f32 %v2938_v24, 0.0  ;;  %v3483_v21 = vsel %vm3482_vm5, %v4314_v1, %v3479_v48  ;;  %v5753_v48 = vld [vmem:[#allocation19_spill] sm:$0xff] }
 0x379   : > { %v4234_v34 = vpack.c.bf16 %v2978_v7, %v2977_v55  ;;  %v3428_v58 = vmul.f32 %v3387_v43, %v2978_v7 }
 0x37b   : > { %4274 = vst [vmem:[%s5123_s14 + $0x98] sm:$0xff] %v4234_v34   ;;  %v3467_v26 = vadd.f32 %v3466_v10, %v3428_v58  ;;  %v3487_v10 = vor.u32 1.1754944e-38, %v3486_v23  ;;  %v5752_v23 = vld [vmem:[#allocation17_spill] sm:$0xff] }
 0x37d   : > { %v3468_v15 = vrot.slane %v3467_v26, 4  ;;  %v3488_v24 = vsel %vm3485_vm6, %v3487_v10, %v3483_v21  ;;  %v5754_v10 = vld [vmem:[#allocation21_spill] sm:$0xff] }
 0x37f   : > { %v3469_v60 = vadd.f32 %v3468_v15, %v3467_v26  ;;  %v5751_v26 = vld [vmem:[#allocation15_spill] sm:$0xff] }
 0x381   : > { %v3470_v39 = vrot.slane %v3469_v60, 2 }
 0x383   : > { %v3471_v19 = vadd.f32 %v3470_v39, %v3469_v60 }
 0x385   : > { %v3472_v36 = vrot.slane %v3471_v19, 1 }
 0x387   : > { %v3473_v0 = vadd.f32 %v3472_v36, %v3471_v19 }
 0x389   : > { %3570 = vst [vmem:[%s409_s20] sm:$0x1] %v3473_v0  ;;  %v5497_v34 = vmul.f32 %v3488_v24, %v3473_v0 }
 0x38b   : > { %v3525_v31 = vsub.f32 %v5459_v50, %v5497_v34  ;;  %v3526_v60 = vsub.f32 %v5475_v32, %v5497_v34  ;;  %v3527_v58 = vsub.f32 %v5482_v14, %v5497_v34  ;;  %v3528_v45 = vsub.f32 %v2977_v55, %v5497_v34 }
 0x38c   : > { %v3529_v19 = vsub.f32 %v2978_v7, %v5497_v34  ;;  %v3490_v1 = vsub.f32 %v5750_v40, %v5497_v34  ;;  %v3491_v15 = vsub.f32 %v5751_v26, %v5497_v34  ;;  %v3492_v14 = vsub.f32 %v5136_v57, %v5497_v34 }
 0x38d   : > { %v5512_v39 = vmul.f32 %v3527_v58, %v5484_v27  ;;  %v5514_v30 = vmul.f32 %v3528_v45, %v3382_v63  ;;  %v3493_v9 = vsub.f32 %v5138_v35, %v5497_v34  ;;  %v3494_v0 = vsub.f32 %v5149_v8, %v5497_v34 }
 0x38e   : > { %v5516_v36 = vmul.f32 %v3529_v19, %v3387_v43  ;;  %v3530_v55 = vmul.f32 %v3490_v1, %v5752_v23  ;;  %v3531_v7 = vmul.f32 %v3491_v15, %v5753_v48  ;;  %v3532_v27 = vmul.f32 %v3492_v14, %v5754_v10 }
 0x38f   : > { %v3495_v43 = vsub.f32 %v5151_v5, %v5497_v34  ;;  %v3533_v24 = vmul.f32 %v3493_v9, %v5275_v44  ;;  %v3496_v57 = vsub.f32 %v5162_v52, %v5497_v34  ;;  %v3534_v58 = vmul.f32 %v3494_v0, %v5284_v47  ;;  %v5755_v5 = vld [vmem:[#allocation23_spill] sm:$0xff]  ;;  %v5756_v52 = vld [vmem:[#allocation16_spill] sm:$0xff] }
 0x390   : > { %v3571_v21 = vmul.f32 %v3530_v55, %v3530_v55  ;;  %v3572_v63 = vmul.f32 %v3531_v7, %v3531_v7  ;;  %v3573_v45 = vmul.f32 %v3532_v27, %v3532_v27  ;;  %v3497_v35 = vsub.f32 %v5164_v56, %v5497_v34  ;;  %v5757_v47 = vld [vmem:[#allocation24_spill] sm:$0xff] }
 0x391   : > { %v3535_v8 = vmul.f32 %v3495_v43, %v5295_v20  ;;  %v3574_v40 = vmul.f32 %v3533_v24, %v3533_v24  ;;  %v3498_v26 = vsub.f32 %v5175_v62, %v5497_v34  ;;  %v3536_v15 = vmul.f32 %v3496_v57, %v5755_v5  ;;  %v5758_v20 = vld [vmem:[#allocation25_spill] sm:$0xff]  ;;  %v5759_v27 = vld [vmem:[#allocation28_spill] sm:$0xff] }
 0x392   : > { %v3611_v19 = vadd.f32 %v3572_v63, %v3571_v21  ;;  %v3575_v44 = vmul.f32 %v3534_v58, %v3534_v58  ;;  %v3499_v23 = vsub.f32 %v5756_v52, %v5497_v34  ;;  %v3537_v55 = vmul.f32 %v3497_v35, %v5757_v47  ;;  %v5760_v57 = vld [vmem:[#allocation29_spill] sm:$0xff] }
 0x393   : > { %v3576_v48 = vmul.f32 %v3535_v8, %v3535_v8  ;;  %v3500_v56 = vsub.f32 %v5188_v42, %v5497_v34  ;;  %v3538_v9 = vmul.f32 %v3498_v26, %v5758_v20  ;;  %v3577_v0 = vmul.f32 %v3536_v15, %v3536_v15 }
 0x394   : > { %v3612_v1 = vadd.f32 %v3611_v19, %v3573_v45  ;;  %v3501_v62 = vsub.f32 %v5190_v11, %v5497_v34  ;;  %v3539_v21 = vmul.f32 %v3499_v23, %v5759_v27  ;;  %v3578_v63 = vmul.f32 %v3537_v55, %v3537_v55 }
 0x395   : > { %v3502_v24 = vsub.f32 %v5201_v54, %v5497_v34  ;;  %v3540_v58 = vmul.f32 %v3500_v56, %v5760_v57  ;;  %v3579_v45 = vmul.f32 %v3538_v9, %v3538_v9  ;;  %v3503_v42 = vsub.f32 %v5203_v18, %v5497_v34 }
 0x396   : > { %v3613_v14 = vadd.f32 %v3612_v1, %v3574_v40  ;;  %v3541_v35 = vmul.f32 %v3501_v62, %v5318_v6  ;;  %v3580_v8 = vmul.f32 %v3539_v21, %v3539_v21  ;;  %v3504_v11 = vsub.f32 %v5214_v59, %v5497_v34  ;;  %v5764_v62 = vld [vmem:[#allocation30_spill] sm:$0xff] }
 0x397   : > { %v3542_v1 = vmul.f32 %v3502_v24, %v5320_v53  ;;  %v3581_v26 = vmul.f32 %v3540_v58, %v3540_v58  ;;  %v3505_v54 = vsub.f32 %v5216_v49, %v5497_v34  ;;  %v3543_v15 = vmul.f32 %v3503_v42, %v5243_v3  ;;  %v5761_v53 = vld [vmem:[#allocation3_spill] sm:$0xff]  ;;  %v5762_v3 = vld [vmem:[#allocation18_spill] sm:$0xff]  ;;  %v5765_v42 = vld [vmem:[#allocation5_spill] sm:$0xff] }
 0x398   : > { %v3614_v7 = vadd.f32 %v3613_v14, %v3575_v44  ;;  %v3582_v44 = vmul.f32 %v3541_v35, %v3541_v35  ;;  %v3506_v18 = vsub.f32 %v5233_v2, %v5497_v34  ;;  %v3544_v6 = vmul.f32 %v3504_v11, %v5331_v51  ;;  %v5763_v51 = vld [vmem:[#allocation4_spill] sm:$0xff] }
 0x399   : > { %v3583_v52 = vmul.f32 %v3542_v1, %v3542_v1  ;;  %v3507_v59 = vsub.f32 %v5235_v29, %v5497_v34  ;;  %v3545_v47 = vmul.f32 %v3505_v54, %v5761_v53  ;;  %v3584_v55 = vmul.f32 %v3543_v15, %v3543_v15  ;;  %v5771_v53 = vld [vmem:[#allocation22_spill] sm:$0xff] }
 0x39a   : > { %v3615_v10 = vadd.f32 %v3614_v7, %v3576_v48  ;;  %v3508_v49 = vsub.f32 %v5248_v37, %v5497_v34  ;;  %v3546_v7 = vmul.f32 %v3506_v18, %v5762_v3  ;;  %v3585_v56 = vmul.f32 %v3544_v6, %v3544_v6  ;;  %v5770_v18 = vld [vmem:[#allocation32_spill] sm:$0xff] }
 0x39b   : > { %v3509_v2 = vsub.f32 %v5250_v46, %v5497_v34  ;;  %v3547_v9 = vmul.f32 %v3507_v59, %v5763_v51  ;;  %v3510_v29 = vsub.f32 %v5265_v38, %v5497_v34  ;;  %v3511_v37 = vsub.f32 %v5267_v17, %v5497_v34  ;;  %v5766_v17 = vld [vmem:[#allocation26_spill] sm:$0xff] }
 0x39c   : > { %v3616_v43 = vadd.f32 %v3615_v10, %v3577_v0  ;;  %v3586_v0 = vmul.f32 %v3545_v47, %v3545_v47  ;;  %v3548_v27 = vmul.f32 %v3508_v49, %v5764_v62  ;;  %v3587_v21 = vmul.f32 %v3546_v7, %v3546_v7 }
 0x39d   : > { %v3588_v24 = vmul.f32 %v3547_v9, %v3547_v9  ;;  %v3512_v46 = vsub.f32 %v5288_v22, %v5497_v34  ;;  %v3550_v58 = vmul.f32 %v3510_v29, %v5366_v61  ;;  %v3513_v38 = vsub.f32 %v5290_v41, %v5497_v34  ;;  %v5768_v22 = vld [vmem:[#allocation27_spill] sm:$0xff]  ;;  %v5769_v61 = vld [vmem:[#allocation6_spill] sm:$0xff] }
 0x39e   : > { %v3617_v19 = vadd.f32 %v3616_v43, %v3578_v63  ;;  %v3549_v43 = vmul.f32 %v3509_v2, %v5262_v12  ;;  %v3551_v35 = vmul.f32 %v3511_v37, %v5765_v42  ;;  %v3514_v11 = vsub.f32 %v5766_v17, %v5497_v34  ;;  %v5767_v12 = vld [vmem:[#allocation20_spill] sm:$0xff]  ;;  %v5781_v17 = vld [vmem:[#allocation37_spill] sm:$0xff] }
 0x39f   : > { %v3552_v1 = vmul.f32 %v3512_v46, %v5767_v12  ;;  %v3515_v54 = vsub.f32 %v5768_v22, %v5497_v34  ;;  %v3553_v15 = vmul.f32 %v3513_v38, %v5769_v61  ;;  %v3516_v41 = vsub.f32 %v5322_v16, %v5497_v34  ;;  %v5783_v61 = vld [vmem:[#allocation39_spill] sm:$0xff] }
 0x3a0   : > { %v3618_v40 = vadd.f32 %v3617_v19, %v3579_v45  ;;  %v3589_v45 = vmul.f32 %v3548_v27, %v3548_v27  ;;  %v3554_v6 = vmul.f32 %v3514_v11, %v5770_v18  ;;  %v3517_v59 = vsub.f32 %v5324_v4, %v5497_v34 }
 0x3a1   : > { %v3555_v47 = vmul.f32 %v3515_v54, %v5771_v53  ;;  %v3518_v49 = vsub.f32 %v5357_v28, %v5497_v34  ;;  %v3556_v3 = vmul.f32 %v3516_v41, %v5404_v33  ;;  %v3519_v16 = vsub.f32 %v5359_v13, %v5497_v34  ;;  %v5774_v28 = vld [vmem:[#allocation31_spill] sm:$0xff]  ;;  %v5775_v33 = vld [vmem:[#allocation36_spill] sm:$0xff]  ;;  %v5776_v13 = vld [vmem:[#allocation34_spill] sm:$0xff] }
 0x3a2   : > { %v3619_v5 = vadd.f32 %v3618_v40, %v3580_v8  ;;  %v3590_v8 = vmul.f32 %v3549_v43, %v3549_v43  ;;  %v3595_v7 = vmul.f32 %v3554_v6, %v3554_v6  ;;  %v3520_v4 = vsub.f32 %v5388_v25, %v5497_v34  ;;  %v5778_v25 = vld [vmem:[#allocation35_spill] sm:$0xff]  ;;  %v5784_v41 = vld [vmem:[#allocation40_spill] sm:$0xff] }
 0x3a3   : > { %v3596_v51 = vmul.f32 %v3555_v47, %v3555_v47  ;;  %v3597_v29 = vmul.f32 %v3556_v3, %v3556_v3  ;;  %v3521_v27 = vsub.f32 %v5774_v28, %v5497_v34  ;;  %v3522_v43 = vsub.f32 %v5776_v13, %v5497_v34 }
 0x3a4   : > { %v3620_v14 = vadd.f32 %v3619_v5, %v3581_v26  ;;  %v3591_v26 = vmul.f32 %v3550_v58, %v3550_v58  ;;  %v3565_v18 = vmul.f32 %v3525_v31, %v5784_v41  ;;  %v3609_v50 = vmul.f32 %v5514_v30, %v5514_v30 }
 0x3a5   : > { %v3562_v11 = vmul.f32 %v3522_v43, %v5781_v17 }
 0x3a6   : > { %v3621_v23 = vadd.f32 %v3620_v14, %v3582_v44  ;;  %v3592_v44 = vmul.f32 %v3551_v35, %v3551_v35 }
 0x3a8   : > { %v3622_v48 = vadd.f32 %v3621_v23, %v3583_v52  ;;  %v3593_v52 = vmul.f32 %v3552_v1, %v3552_v1 }
 0x3aa   : > { %v3623_v20 = vadd.f32 %v3622_v48, %v3584_v55  ;;  %v3594_v55 = vmul.f32 %v3553_v15, %v3553_v15 }
 0x3ac   : > { %v3624_v10 = vadd.f32 %v3623_v20, %v3585_v56  ;;  %v5772_v20 = vld [vmem:[#allocation7_spill] sm:$0xff] }
 0x3ad   : > { %v3557_v2 = vmul.f32 %v3517_v59, %v5772_v20 }
 0x3ae   : > { %v3625_v63 = vadd.f32 %v3624_v10, %v3586_v0  ;;  %v5773_v0 = vld [vmem:[#allocation33_spill] sm:$0xff] }
 0x3af   : > { %v3558_v10 = vmul.f32 %v3518_v49, %v5773_v0 }
 0x3b0   : > { %v3626_v57 = vadd.f32 %v3625_v63, %v3587_v21  ;;  %v3559_v21 = vmul.f32 %v3519_v16, %v5775_v33  ;;  %v3598_v63 = vmul.f32 %v3557_v2, %v3557_v2  ;;  %v3610_v16 = vmul.f32 %v5516_v36, %v5516_v36 }
 0x3b1   : > { %v3599_v46 = vmul.f32 %v3558_v10, %v3558_v10 }
 0x3b2   : > { %v3627_v19 = vadd.f32 %v3626_v57, %v3588_v24  ;;  %v5777_v24 = vld [vmem:[#allocation8_spill] sm:$0xff]  ;;  %v3600_v42 = vmul.f32 %v3559_v21, %v3559_v21 }
 0x3b3   : > { %v3560_v57 = vmul.f32 %v3520_v4, %v5777_v24 }
 0x3b4   : > { %v3628_v40 = vadd.f32 %v3627_v19, %v3589_v45  ;;  %v3523_v45 = vsub.f32 %v5778_v25, %v5497_v34  ;;  %v5779_v19 = vld [vmem:[#allocation9_spill] sm:$0xff] }
 0x3b5   : > { %v3561_v38 = vmul.f32 %v3521_v27, %v5779_v19  ;;  %v3601_v12 = vmul.f32 %v3560_v57, %v3560_v57 }
 0x3b6   : > { %v3629_v5 = vadd.f32 %v3628_v40, %v3590_v8  ;;  %v5780_v8 = vld [vmem:[#allocation10_spill] sm:$0xff] }
 0x3b7   : > { %v3524_v40 = vsub.f32 %v5780_v8, %v5497_v34  ;;  %v3602_v22 = vmul.f32 %v3561_v38, %v3561_v38 }
 0x3b8   : > { %v3630_v14 = vadd.f32 %v3629_v5, %v3591_v26  ;;  %v5782_v26 = vld [vmem:[#allocation38_spill] sm:$0xff] }
 0x3b9   : > { %v3563_v5 = vmul.f32 %v3523_v45, %v5782_v26  ;;  %v3564_v15 = vmul.f32 %v3524_v40, %v5783_v61 }
 0x3ba   : > { %v3631_v23 = vadd.f32 %v3630_v14, %v3592_v44  ;;  %v3603_v44 = vmul.f32 %v3562_v11, %v3562_v11 }
 0x3bb   : > { %v3604_v6 = vmul.f32 %v3563_v5, %v3563_v5  ;;  %v3605_v53 = vmul.f32 %v3564_v15, %v3564_v15 }
 0x3bc   : > { %v3632_v48 = vadd.f32 %v3631_v23, %v3593_v52  ;;  %v5785_v23 = vld [vmem:[#allocation11_spill] sm:$0xff] }
 0x3bd   : > { %v3566_v59 = vmul.f32 %v3526_v60, %v5785_v23 }
 0x3be   : > { %v3633_v56 = vadd.f32 %v3632_v48, %v3594_v55  ;;  %v3606_v55 = vmul.f32 %v3565_v18, %v3565_v18 }
 0x3bf   : > { %v3607_v49 = vmul.f32 %v3566_v59, %v3566_v59 }
 0x3c0   : > { %v3634_v9 = vadd.f32 %v3633_v56, %v3595_v7  ;;  %v3608_v7 = vmul.f32 %v5512_v39, %v5512_v39 }
 0x3c2   : > { %v3635_v62 = vadd.f32 %v3634_v9, %v3596_v51 }
 0x3c4   : > { %v3636_v37 = vadd.f32 %v3635_v62, %v3597_v29 }
 0x3c6   : > { %v3637_v58 = vadd.f32 %v3636_v37, %v3598_v63 }
 0x3c8   : > { %v3638_v35 = vadd.f32 %v3637_v58, %v3599_v46 }
 0x3ca   : > { %v3639_v1 = vadd.f32 %v3638_v35, %v3600_v42 }
 0x3cc   : > { %v3640_v54 = vadd.f32 %v3639_v1, %v3601_v12 }
 0x3ce   : > { %v3641_v14 = vadd.f32 %v3640_v54, %v3602_v22 }
 0x3d0   : > { %v3642_v52 = vadd.f32 %v3641_v14, %v3603_v44 }
 0x3d2   : > { %v3643_v47 = vadd.f32 %v3642_v52, %v3604_v6 }
 0x3d4   : > { %v3644_v48 = vadd.f32 %v3643_v47, %v3605_v53 }
 0x3d6   : > { %v3645_v3 = vadd.f32 %v3644_v48, %v3606_v55 }
 0x3d8   : > { %v3646_v56 = vadd.f32 %v3645_v3, %v3607_v49 }
 0x3da   : > { %v3647_v31 = vadd.f32 %v3646_v56, %v3608_v7 }
 0x3dc   : > { %v3648_v32 = vadd.f32 %v3647_v31, %v3609_v50 }
 0x3de   : > { %v3649_v34 = vadd.f32 %v3648_v32, %v3610_v16 }
 0x3e0   : > { %v3650_v60 = vrot.slane %v3649_v34, 4 }
 0x3e2   : > { %v3651_v20 = vadd.f32 %v3650_v60, %v3649_v34 }
 0x3e4   : > { %v3652_v2 = vrot.slane %v3651_v20, 2 }
 0x3e6   : > { %v3653_v51 = vadd.f32 %v3652_v2, %v3651_v20 }
 0x3e8   : > { %v3654_v9 = vrot.slane %v3653_v51, 1 }
 0x3ea   : > { %v3655_v39 = vadd.f32 %v3654_v9, %v3653_v51 }
 0x3ec   : > { %3656 = vst [vmem:[%s415_s27] sm:$0x1] %v3655_v39 }
 0x3ed PF: > { %s17_s23 = sadd.s32 1, %s4338_s23   ;;  %s5786_s21 = smov %s4334_s22 }
 0x3ee   : > { %p14_p5 = scmp.ge.s32.totalorder %s17_s23, 4   ;;  %s5787_s22 = smov %s5789_s24 }
 0x3f0   :  { %16 = sbr.rel (!%p14_p5) target bundleno = 2 (0x2), region = 104 }

// kernel: separated_block_apply.3
= control target key start
LH: loop header
LB: loop body
LE: loop exit
PB: predicated region body
PF: predicated region fallthrough
CT: control target
= control target key end

     0   :  { %s4377_s21 = smov 0   ;;  %s4379_s22 = smov 0   ;;  %s5646_s0 = inlined_call_operand.vmem [shape: bf16[2,360,8], index: 0, kind: input, shape index: {}, may-alias: {0,1}]   ;;  %s5647_s1 = inlined_call_operand.vmem [shape: bf16[2,360,8], index: 1, kind: input, shape index: {}, may-alias: {0,1}]   ;;  %s5648_s2 = inlined_call_operand.vmem [shape: bf16[9,8,128], index: 2, kind: input, shape index: {}]   ;;  %s5649_s3 = inlined_call_operand.vmem [shape: f32[320,1], index: 3, kind: input, shape index: {}]   ;;  %s5650_s4 = inlined_call_operand.vmem [shape: bf16[2,320,128], index: 4, kind: output, shape index: {0}]   ;;  %s5651_s5 = inlined_call_operand.vmem [shape: f32[2,1,1,128], index: 5, kind: output, shape index: {1}]   ;;  %s5652_s6 = inlined_call_operand.vmem [shape: f32[2,1,1,128], index: 6, kind: output, shape index: {2}]  }
   0x1   :  { %s4381_s23 = smov 0  }
   0x2 LB: > { %s29_s24 = sadd.s32 1, %s4334_s22  ;;  %p3852_p0 = scmp.ge.s32.totalorder %s4338_s23, 1  ;;  %s4338_s23 = sphi %s4381_s23, %s17_s23   ;;  %s4334_s22 = sphi %s4379_s22, %s5787_s22   ;;  %s4330_s21 = sphi %s4377_s21, %s5786_s21  }
   0x3   : > { %p31_p1 = scmp.ge.s32.totalorder %s29_s24, 2  ;;  %p286_p2 = scmp.lt.s32.totalorder %s4338_s23, 3 }
   0x5   : > { %s5789_s24 = smov (%p31_p1, %s29_s24), 0  ;;  %p287_p3 = pnand %p3852_p0, %p286_p2 }
   0x7   : > { %290 = sbr.rel (%p287_p3) target bundleno = 1005 (0x3ed), region = 36 }
   0xc   : > { %v3856_v0 = vld [vmem:[%s5648_s2 + $0x4] sm:$0xf]  ;;  %vm736_vm0 = vcmask 1043456   ;;  %p361_p4 = scmp.lt.s32.totalorder %s4330_s21, 1  ;;  %v3897_v2 = vld [vmem:[%s5648_s2 + $0x8] sm:$0xf] }
   0xd   : > { %v738_v1 = vsel %vm736_vm0, %v3856_v0, 0  ;;  %v3918_v3 = vld [vmem:[%s5648_s2 + $0xc] sm:$0xf]  ;;  %v1144_v4 = vsel %vm736_vm0, %v3897_v2, 0  ;;  %v613_v6 = vld [vmem:[%s5648_s2] sm:$0xf] }
   0xe   : > { %4275 = vmatpush.bf16.msra.mxu1 %v738_v1  ;;  %4276 = vmatpush.bf16.msra.mxu2 %v738_v1  ;;  %s5791_s21 = smov (!%p361_p4, %s4330_s21), 1  ;;  %v1418_v5 = vsel %vm736_vm0, %v3918_v3, 0  ;;  %v910_v7 = vsel %vm736_vm0, %v613_v6, 0  ;;  %v3939_v8 = vld [vmem:[%s5648_s2 + $0x10] sm:$0xf]  ;;  %vm497_vm1 = vcmask 64512  }
   0xf   : > { %4277 = vmatpush.bf16.msra.mxu3 %v738_v1  ;;  %747 = vmatpush.bf16.msra.mxu0 %v738_v1  ;;  %s4278_s11 = smul.u32 180, %s5791_s21  ;;  %v1692_v9 = vsel %vm736_vm0, %v3939_v8, 0  ;;  %vm3099_vm2 = vcmask 7168   ;;  %s409_s20 = scalar_lea.vmem %s5651_s5, %s5791_s21 }
  0x10   : > { %s415_s27 = scalar_lea.vmem %s5652_s6, %s5791_s21 }
  0x11   : > { %s4423_s14 = scalar_lea.vmem %s5646_s0, %s4278_s11  ;;  %s4047_s15 = sadd.s32 160, %s4278_s11 }
  0x12   : > { %1153 = vmatpush.bf16.msrb.mxu2 %v1144_v4  ;;  %919 = vmatpush.bf16.msrb.mxu1 %v910_v7  ;;  %v4240_v10 = vld [vmem:[%s4423_s14 + $0x28] sm:$0xff]   ;;  %v4241_v11 = vld [vmem:[%s4423_s14 + $0x30] sm:$0xff]   ;;  %v4246_v16 = vld [vmem:[%s4423_s14 + $0x58] sm:$0xff]   ;;  %s4493_s18 = scalar_lea.vmem %s5647_s1, %s4047_s15  ;;  %s4280_s11 = smul.u32 160, %s5791_s21 }
  0x13   : > { %1427 = vmatpush.bf16.msrb.mxu3 %v1418_v5  ;;  %1701 = vmatpush.bf16.msrb.mxu0 %v1692_v9  ;;  %v4245_v12 = vld [vmem:[%s4423_s14 + $0x50] sm:$0xff]   ;;  %v4070_v13 = vunpack.c.l.bf16 %v4240_v10  ;;  %v4071_v14 = vunpack.c.h.bf16 %v4240_v10  ;;  %v4074_v15 = vunpack.c.l.bf16 %v4241_v11  ;;  %v4250_v18 = vld [vmem:[%s4423_s14 + $0x78] sm:$0xff]   ;;  %v4094_v20 = vunpack.c.l.bf16 %v4246_v16  ;;  %v4251_v21 = vld [vmem:[%s4423_s14 + $0x80] sm:$0xff]   ;;  %s4341_s15 = smov 1.0  }
  0x14   : > { %v4090_v17 = vunpack.c.l.bf16 %v4245_v12  ;;  %v4091_v19 = vunpack.c.h.bf16 %v4245_v12  ;;  %v4110_v22 = vunpack.c.l.bf16 %v4250_v18  ;;  %v4049_v23 = vld [vmem:[%s4423_s14] sm:$0xff]   ;;  %v4111_v24 = vunpack.c.h.bf16 %v4250_v18  ;;  %v4236_v26 = vld [vmem:[%s4423_s14 + $0x8] sm:$0xff]   ;;  %v4242_v29 = vld [vmem:[%s4423_s14 + $0x38] sm:$0xff]  }
  0x15   : > { %508 = vst.msk [vmem:[#allocation2 + $0x50] sm:$0xff] %vm497_vm1, %v4070_v13  ;;  %v4114_v25 = vunpack.c.l.bf16 %v4251_v21  ;;  %v4050_v27 = vunpack.c.l.bf16 %v4049_v23  ;;  %v4051_v28 = vunpack.c.h.bf16 %v4049_v23  ;;  %v4054_v30 = vunpack.c.l.bf16 %v4236_v26  ;;  %v4247_v33 = vld [vmem:[%s4423_s14 + $0x60] sm:$0xff]   ;;  %v4252_v38 = vld [vmem:[%s4423_s14 + $0x88] sm:$0xff]   ;;  %v4237_v43 = vld [vmem:[%s4423_s14 + $0x10] sm:$0xff]  }
  0x16   : > { %509 = vst.msk [vmem:[#allocation2 + $0x58] sm:$0xff] %vm497_vm1, %v4071_v14  ;;  %v4075_v32 = vunpack.c.h.bf16 %v4241_v11  ;;  %v4078_v35 = vunpack.c.l.bf16 %v4242_v29  ;;  %v4095_v37 = vunpack.c.h.bf16 %v4246_v16  ;;  %v4098_v40 = vunpack.c.l.bf16 %v4247_v33  ;;  %v4243_v48 = vld [vmem:[%s4423_s14 + $0x40] sm:$0xff]   ;;  %v4248_v53 = vld [vmem:[%s4423_s14 + $0x68] sm:$0xff]   ;;  %v4253_v58 = vld [vmem:[%s4423_s14 + $0x90] sm:$0xff]  }
  0x17   : > { %510 = vst.msk [vmem:[#allocation2 + $0x60] sm:$0xff] %vm497_vm1, %v4074_v15  ;;  %v4115_v42 = vunpack.c.h.bf16 %v4251_v21  ;;  %v4118_v45 = vunpack.c.l.bf16 %v4252_v38  ;;  %v4055_v47 = vunpack.c.h.bf16 %v4236_v26  ;;  %v4058_v50 = vunpack.c.l.bf16 %v4237_v43  ;;  %v4238_v62 = vld [vmem:[%s4423_s14 + $0x18] sm:$0xff]   ;;  %v4244_v3 = vld [vmem:[%s4423_s14 + $0x48] sm:$0xff]   ;;  %v4249_v9 = vld [vmem:[%s4423_s14 + $0x70] sm:$0xff]  }
  0x18   : > { %518 = vst.msk [vmem:[#allocation2 + $0xa0] sm:$0xff] %vm497_vm1, %v4090_v17  ;;  %v4079_v52 = vunpack.c.h.bf16 %v4242_v29  ;;  %v4082_v55 = vunpack.c.l.bf16 %v4243_v48  ;;  %v4099_v57 = vunpack.c.h.bf16 %v4247_v33  ;;  %v4102_v60 = vunpack.c.l.bf16 %v4248_v53  ;;  %v4254_v12 = vld [vmem:[%s4423_s14 + $0x98] sm:$0xff]   ;;  %v4239_v18 = vld [vmem:[%s4423_s14 + $0x20] sm:$0xff]   ;;  %s5123_s14 = scalar_lea.vmem %s5650_s4, %s4280_s11 }
  0x19   : > { %519 = vst.msk [vmem:[#allocation2 + $0xa8] sm:$0xff] %vm497_vm1, %v4091_v19  ;;  %v4119_v61 = vunpack.c.h.bf16 %v4252_v38  ;;  %v4122_v1 = vunpack.c.l.bf16 %v4253_v58  ;;  %v4059_v2 = vunpack.c.h.bf16 %v4237_v43  ;;  %v4062_v4 = vunpack.c.l.bf16 %v4238_v62  ;;  %v4129_v29 = vld [vmem:[%s4493_s18] sm:$0xff]  }
  0x1a   : > { %520 = vst.msk [vmem:[#allocation2 + $0xb0] sm:$0xff] %vm497_vm1, %v4094_v20  ;;  %v4083_v8 = vunpack.c.h.bf16 %v4243_v48  ;;  %v4086_v10 = vunpack.c.l.bf16 %v4244_v3  ;;  %v4103_v11 = vunpack.c.h.bf16 %v4248_v53  ;;  %v4106_v16 = vunpack.c.l.bf16 %v4249_v9 }
  0x1b   : > { %528 = vst.msk [vmem:[#allocation2 + $0xf0] sm:$0xff] %vm497_vm1, %v4110_v22  ;;  %v4123_v17 = vunpack.c.h.bf16 %v4253_v58  ;;  %v4126_v19 = vunpack.c.l.bf16 %v4254_v12  ;;  %v4063_v23 = vunpack.c.h.bf16 %v4238_v62  ;;  %v4131_v43 = vunpack.c.h.bf16 %v4129_v29  ;;  %v3960_v62 = vld [vmem:[%s5648_s2 + $0x14] sm:$0xf] }
  0x1c   : > { %529 = vst.msk [vmem:[#allocation2 + $0xf8] sm:$0xff] %vm497_vm1, %v4111_v24  ;;  %v4066_v24 = vunpack.c.l.bf16 %v4239_v18 }
  0x1d   : > { %v624_v31 = vld [vmem:[#allocation2 + $0x51] sm:$0xff]  ;;  %530 = vst.msk [vmem:[#allocation2 + $0x100] sm:$0xff] %vm497_vm1, %v4114_v25 }
  0x1e   : > { %v625_v34 = vld [vmem:[#allocation2 + $0x59] sm:$0xff]  ;;  %498 = vst.msk [vmem:[#allocation2] sm:$0xff] %vm497_vm1, %v4050_v27 }
  0x1f   : > { %v659_v36 = vpack.c.bf16 %v625_v34, %v624_v31  ;;  %499 = vst.msk [vmem:[#allocation2 + $0x8] sm:$0xff] %vm497_vm1, %v4051_v28  ;;  %v4087_v28 = vunpack.c.h.bf16 %v4244_v3  ;;  %v4127_v31 = vunpack.c.h.bf16 %v4254_v12 }
  0x20   : > { %v634_v39 = vld [vmem:[#allocation2 + $0xa1] sm:$0xff]  ;;  %500 = vst.msk [vmem:[#allocation2 + $0x10] sm:$0xff] %vm497_vm1, %v4054_v30  ;;  %v4107_v30 = vunpack.c.h.bf16 %v4249_v9 }
  0x21   : > { %3862 = vmatmul.msk.bf16.vlgmr.msra.gmra.mxu1 %vm497_vm1, %v659_v36  ;;  %v635_v41 = vld [vmem:[#allocation2 + $0xa9] sm:$0xff]  ;;  %511 = vst.msk [vmem:[#allocation2 + $0x68] sm:$0xff] %vm497_vm1, %v4075_v32  ;;  %v4130_v32 = vunpack.c.l.bf16 %v4129_v29  ;;  %v4067_v36 = vunpack.c.h.bf16 %v4239_v18 }
  0x22   : > { %v664_v44 = vpack.c.bf16 %v635_v41, %v634_v39  ;;  %512 = vst.msk [vmem:[#allocation2 + $0x70] sm:$0xff] %vm497_vm1, %v4078_v35 }
  0x23   : > { %v644_v46 = vld [vmem:[#allocation2 + $0xf1] sm:$0xff]  ;;  %521 = vst.msk [vmem:[#allocation2 + $0xb8] sm:$0xff] %vm497_vm1, %v4095_v37 }
  0x24   : > { %3867 = vmatmul.msk.bf16.vlgmr.msra.gmra.mxu2 %vm497_vm1, %v664_v44  ;;  %v645_v49 = vld [vmem:[#allocation2 + $0xf9] sm:$0xff]  ;;  %522 = vst.msk [vmem:[#allocation2 + $0xc0] sm:$0xff] %vm497_vm1, %v4098_v40 }
  0x25   : > { %v669_v51 = vpack.c.bf16 %v645_v49, %v644_v46  ;;  %531 = vst.msk [vmem:[#allocation2 + $0x108] sm:$0xff] %vm497_vm1, %v4115_v42 }
  0x26   : > { %v614_v54 = vld [vmem:[#allocation2 + $0x1] sm:$0xff]  ;;  %532 = vst.msk [vmem:[#allocation2 + $0x110] sm:$0xff] %vm497_vm1, %v4118_v45 }
  0x27   : > { %3872 = vmatmul.msk.bf16.vlgmr.msra.gmra.mxu3 %vm497_vm1, %v669_v51  ;;  %v615_v56 = vld [vmem:[#allocation2 + $0x9] sm:$0xff]  ;;  %501 = vst.msk [vmem:[#allocation2 + $0x18] sm:$0xff] %vm497_vm1, %v4055_v47 }
  0x28   : > { %v654_v59 = vpack.c.bf16 %v615_v56, %v614_v54  ;;  %502 = vst.msk [vmem:[#allocation2 + $0x20] sm:$0xff] %vm497_vm1, %v4058_v50  ;;  %v626_v63 = vld [vmem:[#allocation2 + $0x61] sm:$0xff] }
  0x29   : > { %513 = vst.msk [vmem:[#allocation2 + $0x78] sm:$0xff] %vm497_vm1, %v4079_v52  ;;  %v627_v0 = vld [vmem:[#allocation2 + $0x69] sm:$0xff] }
  0x2a   : > { %3857 = vmatmul.msk.bf16.vlgmr.msra.gmra.mxu0 %vm497_vm1, %v654_v59  ;;  %514 = vst.msk [vmem:[#allocation2 + $0x80] sm:$0xff] %vm497_vm1, %v4082_v55  ;;  %v660_v5 = vpack.c.bf16 %v627_v0, %v626_v63  ;;  %v636_v6 = vld [vmem:[#allocation2 + $0xb1] sm:$0xff]  ;;  %v4023_v63 = vld [vmem:[%s5648_s2 + $0x20] sm:$0xf] }
  0x2b   : > { %523 = vst.msk [vmem:[#allocation2 + $0xc8] sm:$0xff] %vm497_vm1, %v4099_v57  ;;  %v637_v7 = vld [vmem:[#allocation2 + $0xb9] sm:$0xff] }
  0x2c   : > { %524 = vst.msk [vmem:[#allocation2 + $0xd0] sm:$0xff] %vm497_vm1, %v4102_v60  ;;  %v665_v13 = vpack.c.bf16 %v637_v7, %v636_v6  ;;  %v646_v14 = vld [vmem:[#allocation2 + $0x101] sm:$0xff]  ;;  %v3981_v57 = vld [vmem:[%s5648_s2 + $0x18] sm:$0xf] }
  0x2d   : > { %533 = vst.msk [vmem:[#allocation2 + $0x118] sm:$0xff] %vm497_vm1, %v4119_v61  ;;  %v647_v15 = vld [vmem:[#allocation2 + $0x109] sm:$0xff]  ;;  %v2240_v58 = vsel %vm736_vm0, %v3981_v57, 0  ;;  %v4002_v61 = vld [vmem:[%s5648_s2 + $0x1c] sm:$0xf] }
  0x2e   : > { %534 = vst.msk [vmem:[#allocation2 + $0x120] sm:$0xff] %vm497_vm1, %v4122_v1  ;;  %v670_v20 = vpack.c.bf16 %v647_v15, %v646_v14  ;;  %v616_v21 = vld [vmem:[#allocation2 + $0x11] sm:$0xff]  ;;  %2249 = vmatpush.bf16.msra.mxu2 %v2240_v58  ;;  %v2514_v0 = vsel %vm736_vm0, %v4002_v61, 0  ;;  %v1966_v1 = vsel %vm736_vm0, %v3960_v62, 0  ;;  %v554_v14 = vld [vmem:[#allocation2 + $0x8] sm:$0xff] }
  0x2f   : > { %503 = vst.msk [vmem:[#allocation2 + $0x28] sm:$0xff] %vm497_vm1, %v4059_v2  ;;  %v617_v22 = vld [vmem:[#allocation2 + $0x19] sm:$0xff]  ;;  %v2788_v2 = vsel %vm736_vm0, %v4023_v63, 0  ;;  %2523 = vmatpush.bf16.msra.mxu3 %v2514_v0  ;;  %1975 = vmatpush.bf16.msra.mxu1 %v1966_v1 }
  0x30   : > { %504 = vst.msk [vmem:[#allocation2 + $0x30] sm:$0xff] %vm497_vm1, %v4062_v4  ;;  %v655_v25 = vpack.c.bf16 %v617_v22, %v616_v21  ;;  %v628_v26 = vld [vmem:[#allocation2 + $0x71] sm:$0xff]  ;;  %2797 = vmatpush.bf16.msra.mxu0 %v2788_v2  ;;  %v1304_v0 = vld [vmem:[#allocation2 + $0x5a] sm:$0xff] }
  0x31   : > { %3863 = vmatmul.msk.bf16.gmra.mxu1 %vm497_vm1, %v660_v5  ;;  %515 = vst.msk [vmem:[#allocation2 + $0x88] sm:$0xff] %vm497_vm1, %v4083_v8  ;;  %v629_v27 = vld [vmem:[#allocation2 + $0x79] sm:$0xff] }
  0x32   : > { %516 = vst.msk [vmem:[#allocation2 + $0x90] sm:$0xff] %vm497_vm1, %v4086_v10  ;;  %v661_v33 = vpack.c.bf16 %v629_v27, %v628_v26  ;;  %v638_v34 = vld [vmem:[#allocation2 + $0xc1] sm:$0xff]  ;;  %v1569_v22 = vld [vmem:[#allocation2 + $0x13] sm:$0xff] }
  0x33   : > { %525 = vst.msk [vmem:[#allocation2 + $0xd8] sm:$0xff] %vm497_vm1, %v4103_v11  ;;  %v639_v35 = vld [vmem:[#allocation2 + $0xc9] sm:$0xff]  ;;  %v556_v26 = vld [vmem:[#allocation2 + $0x18] sm:$0xff] }
  0x34   : > { %3868 = vmatmul.msk.bf16.gmra.mxu2 %vm497_vm1, %v665_v13  ;;  %526 = vst.msk [vmem:[#allocation2 + $0xe0] sm:$0xff] %vm497_vm1, %v4106_v16  ;;  %v666_v37 = vpack.c.bf16 %v639_v35, %v638_v34  ;;  %v648_v38 = vld [vmem:[#allocation2 + $0x111] sm:$0xff]  ;;  %v553_v13 = vld [vmem:[#allocation2] sm:$0xff] }
  0x35   : > { %535 = vst.msk [vmem:[#allocation2 + $0x128] sm:$0xff] %vm497_vm1, %v4123_v17  ;;  %v649_v39 = vld [vmem:[#allocation2 + $0x119] sm:$0xff]  ;;  %v593_v15 = vpack.c.bf16 %v554_v14, %v553_v13  ;;  %v1021_v16 = vld [vmem:[#allocation2 + $0x2] sm:$0xff]  ;;  %v1022_v17 = vld [vmem:[#allocation2 + $0xa] sm:$0xff] }
  0x36   : > { %536 = vst.msk [vmem:[#allocation2 + $0x130] sm:$0xff] %vm497_vm1, %v4126_v19  ;;  %v671_v40 = vpack.c.bf16 %v649_v39, %v648_v38  ;;  %v618_v41 = vld [vmem:[#allocation2 + $0x21] sm:$0xff]  ;;  %v1061_v18 = vpack.c.bf16 %v1022_v17, %v1021_v16  ;;  %v1295_v19 = vld [vmem:[#allocation2 + $0x12] sm:$0xff]  ;;  %v1306_v17 = vld [vmem:[#allocation2 + $0x6a] sm:$0xff] }
  0x37   : > { %3873 = vmatmul.msk.bf16.gmra.mxu3 %vm497_vm1, %v670_v20  ;;  %505 = vst.msk [vmem:[#allocation2 + $0x38] sm:$0xff] %vm497_vm1, %v4063_v23  ;;  %v619_v42 = vld [vmem:[#allocation2 + $0x29] sm:$0xff]  ;;  %v1296_v20 = vld [vmem:[#allocation2 + $0x1a] sm:$0xff]  ;;  %v1303_v63 = vld [vmem:[#allocation2 + $0x52] sm:$0xff] }
  0x38   : > { %506 = vst.msk [vmem:[#allocation2 + $0x40] sm:$0xff] %vm497_vm1, %v4066_v24  ;;  %v656_v44 = vpack.c.bf16 %v619_v42, %v618_v41  ;;  %v630_v45 = vld [vmem:[#allocation2 + $0x81] sm:$0xff]  ;;  %v1335_v21 = vpack.c.bf16 %v1296_v20, %v1295_v19  ;;  %v1298_v29 = vld [vmem:[#allocation2 + $0x2a] sm:$0xff]  ;;  %v1339_v2 = vpack.c.bf16 %v1304_v0, %v1303_v63 }
  0x39   : > { %517 = vst.msk [vmem:[#allocation2 + $0x98] sm:$0xff] %vm497_vm1, %v4087_v28  ;;  %v631_v46 = vld [vmem:[#allocation2 + $0x89] sm:$0xff]  ;;  %v1570_v23 = vld [vmem:[#allocation2 + $0x1b] sm:$0xff] }
  0x3a   : > { %3858 = vmatmul.msk.bf16.gmra.mxu0 %vm497_vm1, %v655_v25  ;;  %527 = vst.msk [vmem:[#allocation2 + $0xe8] sm:$0xff] %vm497_vm1, %v4107_v30  ;;  %v662_v47 = vpack.c.bf16 %v631_v46, %v630_v45  ;;  %v640_v48 = vld [vmem:[#allocation2 + $0xd1] sm:$0xff]  ;;  %v1609_v24 = vpack.c.bf16 %v1570_v23, %v1569_v22  ;;  %v1297_v28 = vld [vmem:[#allocation2 + $0x22] sm:$0xff] }
  0x3b   : > { %537 = vst.msk [vmem:[#allocation2 + $0x138] sm:$0xff] %vm497_vm1, %v4127_v31  ;;  %v641_v49 = vld [vmem:[#allocation2 + $0xd9] sm:$0xff]  ;;  %v555_v25 = vld [vmem:[#allocation2 + $0x10] sm:$0xff]  ;;  %v1336_v30 = vpack.c.bf16 %v1298_v29, %v1297_v28  ;;  %v1571_v31 = vld [vmem:[#allocation2 + $0x23] sm:$0xff] }
  0x3c   : > { %548 = vst.msk [vmem:[#allocation2 + $0x140] sm:$0xff] %vm497_vm1, %v4130_v32  ;;  %v667_v50 = vpack.c.bf16 %v641_v49, %v640_v48  ;;  %v650_v51 = vld [vmem:[#allocation2 + $0x121] sm:$0xff]  ;;  %v594_v27 = vpack.c.bf16 %v556_v26, %v555_v25  ;;  %v1572_v32 = vld [vmem:[#allocation2 + $0x2b] sm:$0xff] }
  0x3d   : > { %507 = vst.msk [vmem:[#allocation2 + $0x48] sm:$0xff] %vm497_vm1, %v4067_v36  ;;  %v651_v52 = vld [vmem:[#allocation2 + $0x129] sm:$0xff]  ;;  %v557_v34 = vld [vmem:[#allocation2 + $0x20] sm:$0xff] }
  0x3e   : > { %549 = vst.msk [vmem:[#allocation2 + $0x148] sm:$0xff] %vm497_vm1, %v4131_v43  ;;  %v672_v53 = vpack.c.bf16 %v651_v52, %v650_v51  ;;  %v620_v54 = vld [vmem:[#allocation2 + $0x31] sm:$0xff]  ;;  %v558_v35 = vld [vmem:[#allocation2 + $0x28] sm:$0xff] }
  0x3f   : > { %v621_v55 = vld [vmem:[#allocation2 + $0x39] sm:$0xff]  ;;  %v595_v36 = vpack.c.bf16 %v558_v35, %v557_v34  ;;  %v559_v43 = vld [vmem:[#allocation2 + $0x30] sm:$0xff]  ;;  %v1305_v16 = vld [vmem:[#allocation2 + $0x62] sm:$0xff] }
  0x40   : > { %v657_v56 = vpack.c.bf16 %v621_v55, %v620_v54  ;;  %v632_v59 = vld [vmem:[#allocation2 + $0x91] sm:$0xff]  ;;  %v633_v60 = vld [vmem:[#allocation2 + $0x99] sm:$0xff]  ;;  %v1340_v19 = vpack.c.bf16 %v1306_v17, %v1305_v16  ;;  %v1579_v20 = vld [vmem:[#allocation2 + $0x63] sm:$0xff] }
  0x41   : > { %3864 = vmatmul.msk.bf16.gmra.mxu1 %vm497_vm1, %v661_v33  ;;  %v663_v3 = vpack.c.bf16 %v633_v60, %v632_v59  ;;  %v642_v4 = vld [vmem:[#allocation2 + $0xe1] sm:$0xff]  ;;  %v643_v5 = vld [vmem:[#allocation2 + $0xe9] sm:$0xff]  ;;  %v1610_v33 = vpack.c.bf16 %v1572_v32, %v1571_v31 }
  0x42   : > { %v668_v6 = vpack.c.bf16 %v643_v5, %v642_v4  ;;  %v652_v7 = vld [vmem:[#allocation2 + $0x131] sm:$0xff]  ;;  %v1300_v38 = vld [vmem:[#allocation2 + $0x3a] sm:$0xff]  ;;  %v566_v28 = vld [vmem:[#allocation2 + $0x68] sm:$0xff] }
  0x43   : > { %v653_v8 = vld [vmem:[#allocation2 + $0x139] sm:$0xff]  ;;  %v1584_v63 = vld [vmem:[#allocation2 + $0x8b] sm:$0xff] }
  0x44   : > { %3869 = vmatmul.msk.bf16.gmra.mxu2 %vm497_vm1, %v666_v37  ;;  %v673_v9 = vpack.c.bf16 %v653_v8, %v652_v7  ;;  %v622_v10 = vld [vmem:[#allocation2 + $0x41] sm:$0xff]  ;;  %v623_v11 = vld [vmem:[#allocation2 + $0x49] sm:$0xff]  ;;  %v1299_v37 = vld [vmem:[#allocation2 + $0x32] sm:$0xff] }
  0x45   : > { %v658_v12 = vpack.c.bf16 %v623_v11, %v622_v10  ;;  %v1337_v39 = vpack.c.bf16 %v1300_v38, %v1299_v37  ;;  %v1574_v41 = vld [vmem:[#allocation2 + $0x3b] sm:$0xff]  ;;  %v1302_v48 = vld [vmem:[#allocation2 + $0x4a] sm:$0xff]  ;;  %v1581_v37 = vld [vmem:[#allocation2 + $0x73] sm:$0xff] }
  0x46   : > { %v1576_v51 = vld [vmem:[#allocation2 + $0x4b] sm:$0xff]  ;;  %v561_v57 = vld [vmem:[#allocation2 + $0x40] sm:$0xff]  ;;  %v564_v11 = vld [vmem:[#allocation2 + $0x58] sm:$0xff] }
  0x47   : > { %3874 = vmatmul.msk.bf16.gmra.mxu3 %vm497_vm1, %v671_v40  ;;  %v1573_v40 = vld [vmem:[#allocation2 + $0x33] sm:$0xff]  ;;  %v562_v58 = vld [vmem:[#allocation2 + $0x48] sm:$0xff]  ;;  %v1578_v4 = vld [vmem:[#allocation2 + $0x5b] sm:$0xff] }
  0x48   : > { %v1611_v42 = vpack.c.bf16 %v1574_v41, %v1573_v40  ;;  %v597_v59 = vpack.c.bf16 %v562_v58, %v561_v57  ;;  %v563_v10 = vld [vmem:[#allocation2 + $0x50] sm:$0xff]  ;;  %v1308_v34 = vld [vmem:[#allocation2 + $0x7a] sm:$0xff] }
  0x49   : > { %v1582_v38 = vld [vmem:[#allocation2 + $0x7b] sm:$0xff] }
  0x4a   : > { %3859 = vmatmul.msk.bf16.gmra.mxu0 %vm497_vm1, %v656_v44  ;;  %v560_v44 = vld [vmem:[#allocation2 + $0x38] sm:$0xff] }
  0x4b   : > { %v596_v45 = vpack.c.bf16 %v560_v44, %v559_v43  ;;  %v567_v44 = vld [vmem:[#allocation2 + $0x70] sm:$0xff] }
  0x51   : > { %3865 = vmatmul.msk.bf16.gmra.mxu1 %vm497_vm1, %v662_v47  ;;  %v1301_v47 = vld [vmem:[#allocation2 + $0x42] sm:$0xff] }
  0x52   : > { %v1338_v49 = vpack.c.bf16 %v1302_v48, %v1301_v47 }
  0x54   : > { %3870 = vmatmul.msk.bf16.gmra.mxu2 %vm497_vm1, %v667_v50  ;;  %v1575_v50 = vld [vmem:[#allocation2 + $0x43] sm:$0xff] }
  0x55   : > { %v1612_v52 = vpack.c.bf16 %v1576_v51, %v1575_v50  ;;  %v1309_v51 = vld [vmem:[#allocation2 + $0x82] sm:$0xff] }
  0x57   : > { %3875 = vmatmul.msk.bf16.gmra.mxu3 %vm497_vm1, %v672_v53 }
  0x5a   : > { %3860 = vmatmul.msk.bf16.gmra.mxu0 %vm497_vm1, %v657_v56 }
  0x61   : > { %3866 = vmatmul.msk.bf16.gmra.mxu1 %vm497_vm1, %v663_v3  ;;  %v1577_v3 = vld [vmem:[#allocation2 + $0x53] sm:$0xff] }
  0x62   : > { %v1613_v5 = vpack.c.bf16 %v1578_v4, %v1577_v3 }
  0x64   : > { %3871 = vmatmul.msk.bf16.gmra.mxu2 %vm497_vm1, %v668_v6 }
  0x67   : > { %3876 = vmatmul.msk.bf16.gmra.mxu3 %vm497_vm1, %v673_v9 }
  0x6a   : > { %3861 = vmatmul.msk.bf16.gmra.mxu0 %vm497_vm1, %v658_v12  ;;  %v598_v12 = vpack.c.bf16 %v564_v11, %v563_v10  ;;  %v569_v10 = vld [vmem:[#allocation2 + $0x80] sm:$0xff]  ;;  %v570_v11 = vld [vmem:[#allocation2 + $0x88] sm:$0xff] }
  0x71   : > { %3877 = vmatmul.msk.bf16.vlgmr.msrb.gmra.mxu1 %vm497_vm1, %v593_v15 }
  0x74   : > { %3898 = vmatmul.msk.bf16.vlgmr.msrb.gmra.mxu2 %vm497_vm1, %v1061_v18 }
  0x77   : > { %3919 = vmatmul.msk.bf16.vlgmr.msrb.gmra.mxu3 %vm497_vm1, %v1335_v21 }
  0x7a   : > { %3940 = vmatmul.msk.bf16.vlgmr.msrb.gmra.mxu0 %vm497_vm1, %v1609_v24 }
  0x81   : > { %3878 = vmatmul.msk.bf16.gmra.mxu1 %vm497_vm1, %v594_v27  ;;  %v565_v27 = vld [vmem:[#allocation2 + $0x60] sm:$0xff] }
  0x82   : > { %v599_v29 = vpack.c.bf16 %v566_v28, %v565_v27 }
  0x84   : > { %3899 = vmatmul.msk.bf16.gmra.mxu2 %vm497_vm1, %v1335_v21  ;;  %v1580_v21 = vld [vmem:[#allocation2 + $0x6b] sm:$0xff] }
  0x85   : > { %v1614_v22 = vpack.c.bf16 %v1580_v21, %v1579_v20  ;;  %v1311_v21 = vld [vmem:[#allocation2 + $0x92] sm:$0xff] }
  0x87   : > { %3920 = vmatmul.msk.bf16.gmra.mxu3 %vm497_vm1, %v1336_v30 }
  0x8a   : > { %3941 = vmatmul.msk.bf16.gmra.mxu0 %vm497_vm1, %v1610_v33  ;;  %v1307_v33 = vld [vmem:[#allocation2 + $0x72] sm:$0xff] }
  0x91   : > { %3879 = vmatmul.msk.bf16.gmra.mxu1 %vm497_vm1, %v595_v36  ;;  %v1341_v36 = vpack.c.bf16 %v1308_v34, %v1307_v33  ;;  %v1586_v33 = vld [vmem:[#allocation2 + $0x9b] sm:$0xff] }
  0x94   : > { %3900 = vmatmul.msk.bf16.gmra.mxu2 %vm497_vm1, %v1336_v30 }
  0x97   : > { %3921 = vmatmul.msk.bf16.gmra.mxu3 %vm497_vm1, %v1337_v39 }
  0x9a   : > { %3942 = vmatmul.msk.bf16.gmra.mxu0 %vm497_vm1, %v1611_v42 }
  0x9e   : > { %v4543_v46 = vpop.f32.mrf.mxu1 }
  0xa1   : > { %3880 = vmatmul.msk.bf16.gmra.mxu1 %vm497_vm1, %v596_v45  ;;  %v568_v45 = vld [vmem:[#allocation2 + $0x78] sm:$0xff] }
  0xa2   : > { %v600_v47 = vpack.c.bf16 %v568_v45, %v567_v44  ;;  %v571_v45 = vld [vmem:[#allocation2 + $0x90] sm:$0xff] }
  0xa4   : > { %3901 = vmatmul.msk.bf16.gmra.mxu2 %vm497_vm1, %v1337_v39  ;;  %v1615_v39 = vpack.c.bf16 %v1582_v38, %v1581_v37 }
  0xa6   : > { %v4547_v53 = vpop.f32.mrf.mxu1 }
  0xa7   : > { %v4549_v54 = vpop.f32.mrf.mxu0  ;;  %3922 = vmatmul.msk.bf16.gmra.mxu3 %vm497_vm1, %v1338_v49  ;;  %v4552_v55 = vpop.f32.mrf.mxu2 }
  0xaa   : > { %3943 = vmatmul.msk.bf16.gmra.mxu0 %vm497_vm1, %v1612_v52  ;;  %v4555_v56 = vpop.f32.mrf.mxu3  ;;  %v1310_v52 = vld [vmem:[#allocation2 + $0x8a] sm:$0xff] }
  0xab   : > { %v1342_v58 = vpack.c.bf16 %v1310_v52, %v1309_v51 }
  0xae   : > { %v4557_v60 = vpop.f32.mrf.mxu1 }
  0xaf   : > { %v4559_v61 = vpop.f32.mrf.mxu0  ;;  %v4561_v62 = vpop.f32.mrf.mxu2 }
  0xb1   : > { %3881 = vmatmul.msk.bf16.gmra.mxu1 %vm497_vm1, %v597_v59  ;;  %v1583_v59 = vld [vmem:[#allocation2 + $0x83] sm:$0xff] }
  0xb2   : > { %v4564_v1 = vpop.f32.mrf.mxu3  ;;  %v1616_v0 = vpack.c.bf16 %v1584_v63, %v1583_v59 }
  0xb4   : > { %3902 = vmatmul.msk.bf16.gmra.mxu2 %vm497_vm1, %v1338_v49 }
  0xb6   : > { %v4567_v6 = vpop.f32.mrf.mxu1 }
  0xb7   : > { %v4569_v7 = vpop.f32.mrf.mxu0  ;;  %3923 = vmatmul.msk.bf16.gmra.mxu3 %vm497_vm1, %v1339_v2  ;;  %v4572_v8 = vpop.f32.mrf.mxu2 }
  0xba   : > { %3944 = vmatmul.msk.bf16.gmra.mxu0 %vm497_vm1, %v1613_v5  ;;  %v4575_v9 = vpop.f32.mrf.mxu3 }
  0xbe   : > { %v4577_v13 = vpop.f32.mrf.mxu1 }
  0xbf   : > { %v4579_v14 = vpop.f32.mrf.mxu0  ;;  %v4581_v15 = vpop.f32.mrf.mxu2 }
  0xc1   : > { %3882 = vmatmul.msk.bf16.gmra.mxu1 %vm497_vm1, %v598_v12  ;;  %v601_v12 = vpack.c.bf16 %v570_v11, %v569_v10 }
  0xc2   : > { %v4584_v18 = vpop.f32.mrf.mxu3 }
  0xc4   : > { %3903 = vmatmul.msk.bf16.gmra.mxu2 %vm497_vm1, %v1339_v2 }
  0xc6   : > { %v4587_v23 = vpop.f32.mrf.mxu1 }
  0xc7   : > { %v4589_v24 = vpop.f32.mrf.mxu0  ;;  %3924 = vmatmul.msk.bf16.gmra.mxu3 %vm497_vm1, %v1340_v19  ;;  %v4592_v25 = vpop.f32.mrf.mxu2 }
  0xca   : > { %3945 = vmatmul.msk.bf16.gmra.mxu0 %vm497_vm1, %v1614_v22  ;;  %v4595_v26 = vpop.f32.mrf.mxu3  ;;  %v1312_v22 = vld [vmem:[#allocation2 + $0x9a] sm:$0xff] }
  0xcb   : > { %v1343_v28 = vpack.c.bf16 %v1312_v22, %v1311_v21  ;;  %v1587_v22 = vld [vmem:[#allocation2 + $0xa3] sm:$0xff] }
  0xce   : > { %v4597_v30 = vpop.f32.mrf.mxu1 }
  0xcf   : > { %v4599_v31 = vpop.f32.mrf.mxu0  ;;  %v4601_v32 = vpop.f32.mrf.mxu2 }
  0xd1   : > { %3883 = vmatmul.msk.bf16.gmra.mxu1 %vm497_vm1, %v599_v29  ;;  %v1585_v29 = vld [vmem:[#allocation2 + $0x93] sm:$0xff] }
  0xd2   : > { %v4604_v35 = vpop.f32.mrf.mxu3  ;;  %v1617_v34 = vpack.c.bf16 %v1586_v33, %v1585_v29  ;;  %v1588_v29 = vld [vmem:[#allocation2 + $0xab] sm:$0xff] }
  0xd4   : > { %3904 = vmatmul.msk.bf16.gmra.mxu2 %vm497_vm1, %v1340_v19 }
  0xd6   : > { %v4607_v40 = vpop.f32.mrf.mxu1 }
  0xd7   : > { %v4609_v41 = vpop.f32.mrf.mxu0  ;;  %3925 = vmatmul.msk.bf16.gmra.mxu3 %vm497_vm1, %v1341_v36  ;;  %v4612_v42 = vpop.f32.mrf.mxu2 }
  0xda   : > { %3946 = vmatmul.msk.bf16.gmra.mxu0 %vm497_vm1, %v1615_v39  ;;  %v4615_v43 = vpop.f32.mrf.mxu3 }
  0xde   : > { %v4617_v48 = vpop.f32.mrf.mxu1 }
  0xdf   : > { %v4619_v49 = vpop.f32.mrf.mxu0  ;;  %v4621_v50 = vpop.f32.mrf.mxu2 }
  0xe1   : > { %3884 = vmatmul.msk.bf16.gmra.mxu1 %vm497_vm1, %v600_v47  ;;  %v572_v47 = vld [vmem:[#allocation2 + $0x98] sm:$0xff] }
  0xe2   : > { %v4624_v57 = vpop.f32.mrf.mxu3  ;;  %v602_v52 = vpack.c.bf16 %v572_v47, %v571_v45  ;;  %v574_v45 = vld [vmem:[#allocation2 + $0xa8] sm:$0xff] }
  0xe4   : > { %3905 = vmatmul.msk.bf16.gmra.mxu2 %vm497_vm1, %v1341_v36 }
  0xe6   : > { %v4627_v2 = vpop.f32.mrf.mxu1 }
  0xe7   : > { %v4629_v3 = vpop.f32.mrf.mxu0  ;;  %3926 = vmatmul.msk.bf16.gmra.mxu3 %vm497_vm1, %v1342_v58  ;;  %v4632_v4 = vpop.f32.mrf.mxu2 }
  0xea   : > { %3947 = vmatmul.msk.bf16.gmra.mxu0 %vm497_vm1, %v1616_v0  ;;  %v4635_v5 = vpop.f32.mrf.mxu3 }
  0xee   : > { %v921_v16 = vpop.f32.mrf.mxu1 }
  0xef   : > { %v4637_v17 = vpop.f32.mrf.mxu0  ;;  %v4639_v19 = vpop.f32.mrf.mxu2  ;;  %v922_v20 = vadd.f32 %v921_v16, %v4549_v54  ;;  %v1314_v16 = vld [vmem:[#allocation2 + $0xaa] sm:$0xff] }
  0xf1   : > { %3885 = vmatmul.msk.bf16.gmra.mxu1 %vm497_vm1, %v601_v12  ;;  %v1313_v12 = vld [vmem:[#allocation2 + $0xa2] sm:$0xff] }
  0xf2   : > { %v4643_v27 = vpop.f32.mrf.mxu3  ;;  %v1344_v21 = vpack.c.bf16 %v1314_v16, %v1313_v12  ;;  %v1315_v12 = vld [vmem:[#allocation2 + $0xb2] sm:$0xff]  ;;  %v1316_v16 = vld [vmem:[#allocation2 + $0xba] sm:$0xff] }
  0xf4   : > { %3906 = vmatmul.msk.bf16.gmra.mxu2 %vm497_vm1, %v1342_v58 }
  0xf6   : > { %v923_v36 = vpop.f32.mrf.mxu1 }
  0xf7   : > { %v1703_v37 = vpop.f32.mrf.mxu0  ;;  %3927 = vmatmul.msk.bf16.gmra.mxu3 %vm497_vm1, %v1343_v28  ;;  %v1155_v38 = vpop.f32.mrf.mxu2  ;;  %v924_v39 = vadd.f32 %v923_v36, %v4559_v61 }
  0xf8   : > { %v1255_v54 = vadd.f32 %v1155_v38, %v922_v20 }
  0xfa   : > { %3948 = vmatmul.msk.bf16.gmra.mxu0 %vm497_vm1, %v1617_v34  ;;  %v1429_v44 = vpop.f32.mrf.mxu3  ;;  %v1618_v34 = vpack.c.bf16 %v1588_v29, %v1587_v22  ;;  %v1590_v22 = vld [vmem:[#allocation2 + $0xbb] sm:$0xff] }
  0xfb   : > { %v1529_v51 = vadd.f32 %v1429_v44, %v1255_v54  ;;  %v573_v44 = vld [vmem:[#allocation2 + $0xa0] sm:$0xff] }
  0xfd   : > { %v4649_v59 = vadd.f32 %v1703_v37, %v1529_v51  ;;  %v603_v51 = vpack.c.bf16 %v574_v45, %v573_v44  ;;  %v576_v44 = vld [vmem:[#allocation2 + $0xb8] sm:$0xff] }
  0xfe   : > { %v926_v63 = vpop.f32.mrf.mxu1 }
  0xff   : > { %v1705_v58 = vpop.f32.mrf.mxu0  ;;  %v1157_v0 = vpop.f32.mrf.mxu2  ;;  %v927_v10 = vadd.f32 %v926_v63, %v4569_v7 }
 0x100   : > { %v1256_v11 = vadd.f32 %v1157_v0, %v924_v39 }
 0x101   : > { %3886 = vmatmul.msk.bf16.gmra.mxu1 %vm497_vm1, %v602_v52 }
 0x102   : > { %v1431_v61 = vpop.f32.mrf.mxu3 }
 0x103   : > { %v1530_v20 = vadd.f32 %v1431_v61, %v1256_v11  ;;  %v1345_v61 = vpack.c.bf16 %v1316_v16, %v1315_v12  ;;  %v1317_v12 = vld [vmem:[#allocation2 + $0xc2] sm:$0xff]  ;;  %v1318_v16 = vld [vmem:[#allocation2 + $0xca] sm:$0xff] }
 0x104   : > { %3907 = vmatmul.msk.bf16.gmra.mxu2 %vm497_vm1, %v1343_v28 }
 0x105   : > { %v4654_v33 = vadd.f32 %v1705_v58, %v1530_v20  ;;  %v1589_v20 = vld [vmem:[#allocation2 + $0xb3] sm:$0xff] }
 0x106   : > { %v928_v36 = vpop.f32.mrf.mxu1 }
 0x107   : > { %v1708_v37 = vpop.f32.mrf.mxu0  ;;  %3928 = vmatmul.msk.bf16.gmra.mxu3 %vm497_vm1, %v1344_v21  ;;  %v1160_v7 = vpop.f32.mrf.mxu2  ;;  %v929_v38 = vadd.f32 %v928_v36, %v4579_v14 }
 0x108   : > { %v1257_v39 = vadd.f32 %v1160_v7, %v927_v10 }
 0x10a   : > { %3949 = vmatmul.msk.bf16.gmra.mxu0 %vm497_vm1, %v1618_v34  ;;  %v1434_v54 = vpop.f32.mrf.mxu3  ;;  %v1619_v34 = vpack.c.bf16 %v1590_v22, %v1589_v20  ;;  %v1592_v20 = vld [vmem:[#allocation2 + $0xcb] sm:$0xff] }
 0x10b   : > { %v1531_v47 = vadd.f32 %v1434_v54, %v1257_v39  ;;  %v575_v54 = vld [vmem:[#allocation2 + $0xb0] sm:$0xff] }
 0x10d   : > { %v4659_v52 = vadd.f32 %v1708_v37, %v1531_v47  ;;  %v604_v47 = vpack.c.bf16 %v576_v44, %v575_v54  ;;  %v578_v54 = vld [vmem:[#allocation2 + $0xc8] sm:$0xff] }
 0x10e   : > { %v931_v28 = vpop.f32.mrf.mxu1 }
 0x10f   : > { %v1710_v63 = vpop.f32.mrf.mxu0  ;;  %v1162_v58 = vpop.f32.mrf.mxu2  ;;  %v932_v0 = vadd.f32 %v931_v28, %v4589_v24 }
 0x110   : > { %v1258_v11 = vadd.f32 %v1162_v58, %v929_v38 }
 0x111   : > { %3887 = vmatmul.msk.bf16.gmra.mxu1 %vm497_vm1, %v603_v51 }
 0x112   : > { %v1436_v14 = vpop.f32.mrf.mxu3 }
 0x113   : > { %v1532_v10 = vadd.f32 %v1436_v14, %v1258_v11  ;;  %v1346_v14 = vpack.c.bf16 %v1318_v16, %v1317_v12  ;;  %v1319_v12 = vld [vmem:[#allocation2 + $0xd2] sm:$0xff]  ;;  %v1320_v16 = vld [vmem:[#allocation2 + $0xda] sm:$0xff] }
 0x114   : > { %3908 = vmatmul.msk.bf16.gmra.mxu2 %vm497_vm1, %v1344_v21 }
 0x115   : > { %v4664_v29 = vadd.f32 %v1710_v63, %v1532_v10  ;;  %v1591_v10 = vld [vmem:[#allocation2 + $0xc3] sm:$0xff] }
 0x116   : > { %v933_v36 = vpop.f32.mrf.mxu1 }
 0x117   : > { %v1713_v37 = vpop.f32.mrf.mxu0  ;;  %3929 = vmatmul.msk.bf16.gmra.mxu3 %vm497_vm1, %v1345_v61  ;;  %v1165_v24 = vpop.f32.mrf.mxu2  ;;  %v934_v7 = vadd.f32 %v933_v36, %v4599_v31 }
 0x118   : > { %v1259_v38 = vadd.f32 %v1165_v24, %v932_v0 }
 0x11a   : > { %3950 = vmatmul.msk.bf16.gmra.mxu0 %vm497_vm1, %v1619_v34  ;;  %v1439_v39 = vpop.f32.mrf.mxu3  ;;  %v1620_v34 = vpack.c.bf16 %v1592_v20, %v1591_v10  ;;  %v1594_v10 = vld [vmem:[#allocation2 + $0xdb] sm:$0xff] }
 0x11b   : > { %v1533_v45 = vadd.f32 %v1439_v39, %v1259_v38  ;;  %v577_v39 = vld [vmem:[#allocation2 + $0xc0] sm:$0xff] }
 0x11d   : > { %v4669_v51 = vadd.f32 %v1713_v37, %v1533_v45  ;;  %v605_v45 = vpack.c.bf16 %v578_v54, %v577_v39  ;;  %v580_v39 = vld [vmem:[#allocation2 + $0xd8] sm:$0xff] }
 0x11e   : > { %v936_v21 = vpop.f32.mrf.mxu1 }
 0x11f   : > { %v1715_v28 = vpop.f32.mrf.mxu0  ;;  %v1167_v63 = vpop.f32.mrf.mxu2  ;;  %v937_v58 = vadd.f32 %v936_v21, %v4609_v41 }
 0x120   : > { %v1260_v11 = vadd.f32 %v1167_v63, %v934_v7 }
 0x121   : > { %3888 = vmatmul.msk.bf16.gmra.mxu1 %vm497_vm1, %v604_v47 }
 0x122   : > { %v1441_v31 = vpop.f32.mrf.mxu3 }
 0x123   : > { %v1534_v0 = vadd.f32 %v1441_v31, %v1260_v11  ;;  %v1347_v31 = vpack.c.bf16 %v1320_v16, %v1319_v12  ;;  %v1322_v12 = vld [vmem:[#allocation2 + $0xea] sm:$0xff] }
 0x124   : > { %3909 = vmatmul.msk.bf16.gmra.mxu2 %vm497_vm1, %v1345_v61 }
 0x125   : > { %v4674_v22 = vadd.f32 %v1715_v28, %v1534_v0  ;;  %v1593_v0 = vld [vmem:[#allocation2 + $0xd3] sm:$0xff] }
 0x126   : > { %v938_v36 = vpop.f32.mrf.mxu1 }
 0x127   : > { %v1718_v37 = vpop.f32.mrf.mxu0  ;;  %3930 = vmatmul.msk.bf16.gmra.mxu3 %vm497_vm1, %v1346_v14  ;;  %v1170_v41 = vpop.f32.mrf.mxu2  ;;  %v939_v24 = vadd.f32 %v938_v36, %v4619_v49 }
 0x128   : > { %v1261_v7 = vadd.f32 %v1170_v41, %v937_v58 }
 0x12a   : > { %3951 = vmatmul.msk.bf16.gmra.mxu0 %vm497_vm1, %v1620_v34  ;;  %v1444_v38 = vpop.f32.mrf.mxu3  ;;  %v1621_v34 = vpack.c.bf16 %v1594_v10, %v1593_v0 }
 0x12b   : > { %v1535_v44 = vadd.f32 %v1444_v38, %v1261_v7  ;;  %v579_v38 = vld [vmem:[#allocation2 + $0xd0] sm:$0xff] }
 0x12d   : > { %v4679_v47 = vadd.f32 %v1718_v37, %v1535_v44  ;;  %v606_v44 = vpack.c.bf16 %v580_v39, %v579_v38  ;;  %v582_v38 = vld [vmem:[#allocation2 + $0xe8] sm:$0xff] }
 0x12e   : > { %v941_v61 = vpop.f32.mrf.mxu1 }
 0x12f   : > { %v1720_v21 = vpop.f32.mrf.mxu0  ;;  %v1172_v28 = vpop.f32.mrf.mxu2  ;;  %v942_v63 = vadd.f32 %v941_v61, %v4629_v3 }
 0x130   : > { %v1262_v11 = vadd.f32 %v1172_v28, %v939_v24 }
 0x131   : > { %3889 = vmatmul.msk.bf16.gmra.mxu1 %vm497_vm1, %v605_v45 }
 0x132   : > { %v1446_v49 = vpop.f32.mrf.mxu3 }
 0x133   : > { %v1536_v58 = vadd.f32 %v1446_v49, %v1262_v11  ;;  %v1321_v11 = vld [vmem:[#allocation2 + $0xe2] sm:$0xff] }
 0x134   : > { %3910 = vmatmul.msk.bf16.gmra.mxu2 %vm497_vm1, %v1346_v14  ;;  %v1595_v49 = vld [vmem:[#allocation2 + $0xe3] sm:$0xff] }
 0x135   : > { %v4684_v20 = vadd.f32 %v1720_v21, %v1536_v58  ;;  %v1596_v58 = vld [vmem:[#allocation2 + $0xeb] sm:$0xff] }
 0x136   : > { %v943_v36 = vpop.f32.mrf.mxu1 }
 0x137   : > { %v1723_v37 = vpop.f32.mrf.mxu0  ;;  %3931 = vmatmul.msk.bf16.gmra.mxu3 %vm497_vm1, %v1347_v31  ;;  %v1175_v3 = vpop.f32.mrf.mxu2  ;;  %v944_v41 = vadd.f32 %v943_v36, %v4637_v17 }
 0x138   : > { %v1263_v24 = vadd.f32 %v1175_v3, %v942_v63  ;;  %v1348_v63 = vpack.c.bf16 %v1322_v12, %v1321_v11  ;;  %v1324_v11 = vld [vmem:[#allocation2 + $0xfa] sm:$0xff] }
 0x13a   : > { %3952 = vmatmul.msk.bf16.gmra.mxu0 %vm497_vm1, %v1621_v34  ;;  %v1449_v7 = vpop.f32.mrf.mxu3  ;;  %v1622_v34 = vpack.c.bf16 %v1596_v58, %v1595_v49  ;;  %v1597_v49 = vld [vmem:[#allocation2 + $0xf3] sm:$0xff]  ;;  %v1598_v58 = vld [vmem:[#allocation2 + $0xfb] sm:$0xff] }
 0x13b   : > { %v1537_v54 = vadd.f32 %v1449_v7, %v1263_v24  ;;  %v581_v7 = vld [vmem:[#allocation2 + $0xe0] sm:$0xff] }
 0x13d   : > { %v4689_v45 = vadd.f32 %v1723_v37, %v1537_v54  ;;  %v607_v54 = vpack.c.bf16 %v582_v38, %v581_v7  ;;  %v583_v7 = vld [vmem:[#allocation2 + $0xf0] sm:$0xff]  ;;  %v584_v38 = vld [vmem:[#allocation2 + $0xf8] sm:$0xff] }
 0x13e   : > { %v946_v14 = vpop.f32.mrf.mxu1 }
 0x13f   : > { %v1725_v61 = vpop.f32.mrf.mxu0  ;;  %v1177_v21 = vpop.f32.mrf.mxu2  ;;  %v947_v10 = vadd.f32 %v946_v14, %v4543_v46 }
 0x140   : > { %v1264_v28 = vadd.f32 %v1177_v21, %v944_v41 }
 0x141   : > { %3890 = vmatmul.msk.bf16.gmra.mxu1 %vm497_vm1, %v606_v44 }
 0x142   : > { %v1451_v16 = vpop.f32.mrf.mxu3 }
 0x143   : > { %v1538_v17 = vadd.f32 %v1451_v16, %v1264_v28  ;;  %v1323_v28 = vld [vmem:[#allocation2 + $0xf2] sm:$0xff] }
 0x144   : > { %3911 = vmatmul.msk.bf16.gmra.mxu2 %vm497_vm1, %v1347_v31 }
 0x145   : > { %v4693_v0 = vadd.f32 %v1725_v61, %v1538_v17  ;;  %v1349_v17 = vpack.c.bf16 %v1324_v11, %v1323_v28  ;;  %v1326_v28 = vld [vmem:[#allocation2 + $0x10a] sm:$0xff] }
 0x146   : > { %v948_v36 = vpop.f32.mrf.mxu1 }
 0x147   : > { %v1728_v37 = vpop.f32.mrf.mxu0  ;;  %3932 = vmatmul.msk.bf16.gmra.mxu3 %vm497_vm1, %v1348_v63  ;;  %v1180_v3 = vpop.f32.mrf.mxu2  ;;  %v949_v31 = vadd.f32 %v948_v36, %v4547_v53  ;;  %v1623_v53 = vpack.c.bf16 %v1598_v58, %v1597_v49  ;;  %v1599_v49 = vld [vmem:[#allocation2 + $0x103] sm:$0xff]  ;;  %v1600_v58 = vld [vmem:[#allocation2 + $0x10b] sm:$0xff] }
 0x148   : > { %v1265_v41 = vadd.f32 %v1180_v3, %v947_v10 }
 0x14a   : > { %3953 = vmatmul.msk.bf16.gmra.mxu0 %vm497_vm1, %v1622_v34  ;;  %v1454_v24 = vpop.f32.mrf.mxu3 }
 0x14b   : > { %v1539_v39 = vadd.f32 %v1454_v24, %v1265_v41 }
 0x14d   : > { %v4698_v44 = vadd.f32 %v1728_v37, %v1539_v39 }
 0x14e   : > { %v951_v61 = vpop.f32.mrf.mxu1 }
 0x14f   : > { %v1730_v46 = vpop.f32.mrf.mxu0  ;;  %v1182_v14 = vpop.f32.mrf.mxu2  ;;  %v952_v34 = vadd.f32 %v951_v61, %v4557_v60 }
 0x150   : > { %v1266_v21 = vadd.f32 %v1182_v14, %v949_v31 }
 0x151   : > { %3891 = vmatmul.msk.bf16.gmra.mxu1 %vm497_vm1, %v607_v54  ;;  %v608_v54 = vpack.c.bf16 %v584_v38, %v583_v7  ;;  %v585_v7 = vld [vmem:[#allocation2 + $0x100] sm:$0xff]  ;;  %v586_v38 = vld [vmem:[#allocation2 + $0x108] sm:$0xff] }
 0x152   : > { %v1456_v12 = vpop.f32.mrf.mxu3 }
 0x153   : > { %v1540_v16 = vadd.f32 %v1456_v12, %v1266_v21  ;;  %v1325_v21 = vld [vmem:[#allocation2 + $0x102] sm:$0xff] }
 0x154   : > { %3912 = vmatmul.msk.bf16.gmra.mxu2 %vm497_vm1, %v1348_v63 }
 0x155   : > { %v4703_v10 = vadd.f32 %v1730_v46, %v1540_v16  ;;  %v1350_v16 = vpack.c.bf16 %v1326_v28, %v1325_v21  ;;  %v1328_v21 = vld [vmem:[#allocation2 + $0x11a] sm:$0xff] }
 0x156   : > { %v953_v36 = vpop.f32.mrf.mxu1 }
 0x157   : > { %v1733_v37 = vpop.f32.mrf.mxu0  ;;  %3933 = vmatmul.msk.bf16.gmra.mxu3 %vm497_vm1, %v1349_v17  ;;  %v1185_v3 = vpop.f32.mrf.mxu2  ;;  %v954_v63 = vadd.f32 %v953_v36, %v4567_v6  ;;  %v1624_v6 = vpack.c.bf16 %v1600_v58, %v1599_v49  ;;  %v1601_v49 = vld [vmem:[#allocation2 + $0x113] sm:$0xff]  ;;  %v1602_v58 = vld [vmem:[#allocation2 + $0x11b] sm:$0xff] }
 0x158   : > { %v1267_v41 = vadd.f32 %v1185_v3, %v952_v34 }
 0x15a   : > { %3954 = vmatmul.msk.bf16.gmra.mxu0 %vm497_vm1, %v1623_v53  ;;  %v1459_v24 = vpop.f32.mrf.mxu3 }
 0x15b   : > { %v1541_v39 = vadd.f32 %v1459_v24, %v1267_v41 }
 0x15d   : > { %v4708_v31 = vadd.f32 %v1733_v37, %v1541_v39 }
 0x15e   : > { %v956_v46 = vpop.f32.mrf.mxu1 }
 0x15f   : > { %v1735_v60 = vpop.f32.mrf.mxu0  ;;  %v1187_v61 = vpop.f32.mrf.mxu2  ;;  %v957_v53 = vadd.f32 %v956_v46, %v4577_v13 }
 0x160   : > { %v1268_v14 = vadd.f32 %v1187_v61, %v954_v63 }
 0x161   : > { %3892 = vmatmul.msk.bf16.gmra.mxu1 %vm497_vm1, %v608_v54  ;;  %v609_v54 = vpack.c.bf16 %v586_v38, %v585_v7  ;;  %v587_v7 = vld [vmem:[#allocation2 + $0x110] sm:$0xff]  ;;  %v588_v38 = vld [vmem:[#allocation2 + $0x118] sm:$0xff] }
 0x162   : > { %v1461_v11 = vpop.f32.mrf.mxu3 }
 0x163   : > { %v1542_v12 = vadd.f32 %v1461_v11, %v1268_v14  ;;  %v1327_v14 = vld [vmem:[#allocation2 + $0x112] sm:$0xff] }
 0x164   : > { %3913 = vmatmul.msk.bf16.gmra.mxu2 %vm497_vm1, %v1349_v17 }
 0x165   : > { %v4713_v34 = vadd.f32 %v1735_v60, %v1542_v12  ;;  %v1351_v12 = vpack.c.bf16 %v1328_v21, %v1327_v14  ;;  %v1329_v21 = vld [vmem:[#allocation2 + $0x122] sm:$0xff] }
 0x166   : > { %v958_v36 = vpop.f32.mrf.mxu1 }
 0x167   : > { %v1738_v37 = vpop.f32.mrf.mxu0  ;;  %3934 = vmatmul.msk.bf16.gmra.mxu3 %vm497_vm1, %v1350_v16  ;;  %v1190_v3 = vpop.f32.mrf.mxu2  ;;  %v959_v17 = vadd.f32 %v958_v36, %v4587_v23 }
 0x168   : > { %v1269_v41 = vadd.f32 %v1190_v3, %v957_v53 }
 0x16a   : > { %3955 = vmatmul.msk.bf16.gmra.mxu0 %vm497_vm1, %v1624_v6  ;;  %v1464_v24 = vpop.f32.mrf.mxu3  ;;  %v1625_v6 = vpack.c.bf16 %v1602_v58, %v1601_v49 }
 0x16b   : > { %v1543_v39 = vadd.f32 %v1464_v24, %v1269_v41 }
 0x16d   : > { %v4718_v63 = vadd.f32 %v1738_v37, %v1543_v39 }
 0x16e   : > { %v961_v60 = vpop.f32.mrf.mxu1 }
 0x16f   : > { %v1740_v13 = vpop.f32.mrf.mxu0  ;;  %v1192_v46 = vpop.f32.mrf.mxu2  ;;  %v962_v23 = vadd.f32 %v961_v60, %v4597_v30 }
 0x170   : > { %v1270_v61 = vadd.f32 %v1192_v46, %v959_v17 }
 0x171   : > { %3893 = vmatmul.msk.bf16.gmra.mxu1 %vm497_vm1, %v609_v54  ;;  %v4255_v54 = vld [vmem:[%s4493_s18 + $0x8] sm:$0xff]  }
 0x172   : > { %v1466_v28 = vpop.f32.mrf.mxu3  ;;  %v4134_v17 = vunpack.c.l.bf16 %v4255_v54  ;;  %v590_v54 = vld [vmem:[#allocation2 + $0x128] sm:$0xff] }
 0x173   : > { %v1544_v11 = vadd.f32 %v1466_v28, %v1270_v61  ;;  %v1330_v28 = vld [vmem:[#allocation2 + $0x12a] sm:$0xff] }
 0x174   : > { %3914 = vmatmul.msk.bf16.gmra.mxu2 %vm497_vm1, %v1350_v16  ;;  %v610_v16 = vpack.c.bf16 %v588_v38, %v587_v7  ;;  %550 = vst.msk [vmem:[#allocation2 + $0x150] sm:$0xff] %vm497_vm1, %v4134_v17  ;;  %v1352_v58 = vpack.c.bf16 %v1330_v28, %v1329_v21  ;;  %v1332_v21 = vld [vmem:[#allocation2 + $0x13a] sm:$0xff] }
 0x175   : > { %v4723_v53 = vadd.f32 %v1740_v13, %v1544_v11 }
 0x176   : > { %v963_v36 = vpop.f32.mrf.mxu1 }
 0x177   : > { %v1743_v37 = vpop.f32.mrf.mxu0  ;;  %3935 = vmatmul.msk.bf16.gmra.mxu3 %vm497_vm1, %v1351_v12  ;;  %v1195_v3 = vpop.f32.mrf.mxu2  ;;  %v964_v30 = vadd.f32 %v963_v36, %v4607_v40 }
 0x178   : > { %v1271_v41 = vadd.f32 %v1195_v3, %v962_v23  ;;  %v1603_v23 = vld [vmem:[#allocation2 + $0x123] sm:$0xff] }
 0x17a   : > { %3956 = vmatmul.msk.bf16.gmra.mxu0 %vm497_vm1, %v1625_v6  ;;  %v1469_v24 = vpop.f32.mrf.mxu3  ;;  %v1604_v6 = vld [vmem:[#allocation2 + $0x12b] sm:$0xff] }
 0x17b   : > { %v1545_v39 = vadd.f32 %v1469_v24, %v1271_v41  ;;  %v1626_v36 = vpack.c.bf16 %v1604_v6, %v1603_v23  ;;  %v1605_v23 = vld [vmem:[#allocation2 + $0x133] sm:$0xff]  ;;  %v1606_v6 = vld [vmem:[#allocation2 + $0x13b] sm:$0xff] }
 0x17d   : > { %v4729_v13 = vadd.f32 %v1743_v37, %v1545_v39  ;;  %v589_v39 = vld [vmem:[#allocation2 + $0x120] sm:$0xff] }
 0x17e   : > { %v966_v60 = vpop.f32.mrf.mxu1 }
 0x17f   : > { %v1745_v46 = vpop.f32.mrf.mxu0  ;;  %v1197_v61 = vpop.f32.mrf.mxu2  ;;  %v967_v40 = vadd.f32 %v966_v60, %v4617_v48 }
 0x180   : > { %v1272_v14 = vadd.f32 %v1197_v61, %v964_v30 }
 0x181   : > { %3894 = vmatmul.msk.bf16.gmra.mxu1 %vm497_vm1, %v610_v16  ;;  %v611_v16 = vpack.c.bf16 %v590_v54, %v589_v39  ;;  %v591_v39 = vld [vmem:[#allocation2 + $0x130] sm:$0xff]  ;;  %v592_v54 = vld [vmem:[#allocation2 + $0x138] sm:$0xff] }
 0x182   : > { %v1471_v11 = vpop.f32.mrf.mxu3 }
 0x183   : > { %v1546_v49 = vadd.f32 %v1471_v11, %v1272_v14  ;;  %v1331_v14 = vld [vmem:[#allocation2 + $0x132] sm:$0xff] }
 0x184   : > { %3915 = vmatmul.msk.bf16.gmra.mxu2 %vm497_vm1, %v1351_v12 }
 0x185   : > { %v4735_v37 = vadd.f32 %v1745_v46, %v1546_v49  ;;  %v1353_v49 = vpack.c.bf16 %v1332_v21, %v1331_v14  ;;  %v1334_v14 = vld [vmem:[#allocation2 + $0x14a] sm:$0xff] }
 0x186   : > { %v968_v3 = vpop.f32.mrf.mxu1 }
 0x187   : > { %v1748_v41 = vpop.f32.mrf.mxu0  ;;  %3936 = vmatmul.msk.bf16.gmra.mxu3 %vm497_vm1, %v1352_v58  ;;  %v1200_v24 = vpop.f32.mrf.mxu2  ;;  %v969_v12 = vadd.f32 %v968_v3, %v4627_v2  ;;  %v1627_v2 = vpack.c.bf16 %v1606_v6, %v1605_v23  ;;  %v1607_v23 = vld [vmem:[#allocation2 + $0x143] sm:$0xff]  ;;  %v1608_v6 = vld [vmem:[#allocation2 + $0x14b] sm:$0xff] }
 0x188   : > { %v1273_v7 = vadd.f32 %v1200_v24, %v967_v40 }
 0x18a   : > { %3957 = vmatmul.msk.bf16.gmra.mxu0 %vm497_vm1, %v1626_v36  ;;  %v1474_v38 = vpop.f32.mrf.mxu3 }
 0x18b   : > { %v1547_v17 = vadd.f32 %v1474_v38, %v1273_v7 }
 0x18d   : > { %v4740_v30 = vadd.f32 %v1748_v41, %v1547_v17 }
 0x18e   : > { %v971_v46 = vpop.f32.mrf.mxu1 }
 0x18f   : > { %v1750_v48 = vpop.f32.mrf.mxu0  ;;  %v1202_v60 = vpop.f32.mrf.mxu2  ;;  %v972_v36 = vadd.f32 %v971_v46, %v4552_v55 }
 0x190   : > { %v1274_v61 = vadd.f32 %v1202_v60, %v969_v12 }
 0x191   : > { %3895 = vmatmul.msk.bf16.gmra.mxu1 %vm497_vm1, %v611_v16  ;;  %v612_v16 = vpack.c.bf16 %v592_v54, %v591_v39  ;;  %v1843_v39 = vld [vmem:[#allocation2 + $0x14] sm:$0xff]  ;;  %v1844_v54 = vld [vmem:[#allocation2 + $0x1c] sm:$0xff] }
 0x192   : > { %v1476_v28 = vpop.f32.mrf.mxu3 }
 0x193   : > { %v1548_v11 = vadd.f32 %v1476_v28, %v1274_v61  ;;  %v1333_v61 = vld [vmem:[#allocation2 + $0x142] sm:$0xff] }
 0x194   : > { %3916 = vmatmul.msk.bf16.gmra.mxu2 %vm497_vm1, %v1352_v58 }
 0x195   : > { %v4745_v40 = vadd.f32 %v1750_v48, %v1548_v11  ;;  %v1354_v11 = vpack.c.bf16 %v1334_v14, %v1333_v61  ;;  %v4766_v61 = vld [vmem:[%s5649_s3] sm:$0xff] }
 0x196   : > { %v973_v3 = vpop.f32.mrf.mxu1 }
 0x197   : > { %v1753_v41 = vpop.f32.mrf.mxu0  ;;  %3937 = vmatmul.msk.bf16.gmra.mxu3 %vm497_vm1, %v1353_v49  ;;  %v1205_v24 = vpop.f32.mrf.mxu2  ;;  %v974_v58 = vadd.f32 %v973_v3, %v4561_v62  ;;  %v1628_v62 = vpack.c.bf16 %v1608_v6, %v1607_v23  ;;  %v4340_v23 = vmov 0  }
 0x198   : > { %v1275_v7 = vadd.f32 %v1205_v24, %v972_v36  ;;  %4310 = vset.pattern.permute.xlu0 %v4340_v23  ;;  %4311 = vset.pattern.permute.xlu1 %v4340_v23 }
 0x199   : > { %3191 = vperm.xlu0 %4310, %v4766_v61   ;;  %4312 = vset.pattern.permute.xlu2 %v4340_v23 }
 0x19a   : > { %3958 = vmatmul.msk.bf16.gmra.mxu0 %vm497_vm1, %v1627_v2  ;;  %v1479_v38 = vpop.f32.mrf.mxu3 }
 0x19b   : > { %v1549_v17 = vadd.f32 %v1479_v38, %v1275_v7 }
 0x19d   : > { %v4750_v12 = vadd.f32 %v1753_v41, %v1549_v17 }
 0x19e   : > { %v976_v48 = vpop.f32.mrf.mxu1 }
 0x19f   : > { %v1755_v55 = vpop.f32.mrf.mxu0  ;;  %v1207_v46 = vpop.f32.mrf.mxu2  ;;  %v977_v2 = vadd.f32 %v976_v48, %v4572_v8 }
 0x1a0   : > { %v1276_v60 = vadd.f32 %v1207_v46, %v974_v58  ;;  %v2117_v58 = vld [vmem:[#allocation2 + $0x24] sm:$0xff] }
 0x1a1   : > { %3896 = vmatmul.msk.bf16.gmra.mxu1 %vm497_vm1, %v612_v16  ;;  %v1883_v16 = vpack.c.bf16 %v1844_v54, %v1843_v39 }
 0x1a2   : > { %v1481_v21 = vpop.f32.mrf.mxu3 }
 0x1a3   : > { %v1550_v28 = vadd.f32 %v1481_v21, %v1276_v60 }
 0x1a4   : > { %3917 = vmatmul.msk.bf16.gmra.mxu2 %vm497_vm1, %v1353_v49  ;;  %v2118_v49 = vld [vmem:[#allocation2 + $0x2c] sm:$0xff] }
 0x1a5   : > { %v4755_v36 = vadd.f32 %v1755_v55, %v1550_v28  ;;  %v2157_v21 = vpack.c.bf16 %v2118_v49, %v2117_v58  ;;  %v2391_v28 = vld [vmem:[#allocation2 + $0x25] sm:$0xff] }
 0x1a6   : > { %v978_v3 = vpop.f32.mrf.mxu1 }
 0x1a7   : > { %v1758_v41 = vpop.f32.mrf.mxu0  ;;  %3938 = vmatmul.msk.bf16.gmra.mxu3 %vm497_vm1, %v1354_v11  ;;  %v1210_v24 = vpop.f32.mrf.mxu2  ;;  %v979_v8 = vadd.f32 %v978_v3, %v4581_v15  ;;  %v2392_v11 = vld [vmem:[#allocation2 + $0x2d] sm:$0xff] }
 0x1a8   : > { %v1277_v7 = vadd.f32 %v1210_v24, %v977_v2  ;;  %v2431_v2 = vpack.c.bf16 %v2392_v11, %v2391_v28  ;;  %v2666_v3 = vld [vmem:[#allocation2 + $0x2e] sm:$0xff] }
 0x1a9   : > { %v3061_v11 = vld [vmem:[%s5649_s3 + $0x10] sm:$0xff] }
 0x1aa   : > { %3959 = vmatmul.msk.bf16.gmra.mxu0 %vm497_vm1, %v1628_v62  ;;  %v1484_v38 = vpop.f32.mrf.mxu3  ;;  %v2665_v62 = vld [vmem:[#allocation2 + $0x26] sm:$0xff] }
 0x1ab   : > { %v1551_v17 = vadd.f32 %v1484_v38, %v1277_v7  ;;  %v2705_v7 = vpack.c.bf16 %v2666_v3, %v2665_v62 }
 0x1ad   : > { %v4760_v55 = vadd.f32 %v1758_v41, %v1551_v17  ;;  %v3060_v17 = vld [vmem:[%s5649_s3 + $0x8] sm:$0xff] }
 0x1ae   : > { %v981_v48 = vpop.f32.mrf.mxu1  ;;  %3196 = vperm.xlu1 %4311, %v3060_v17  }
 0x1af   : > { %v1760_v46 = vpop.f32.mrf.mxu0  ;;  %v1212_v60 = vpop.f32.mrf.mxu2  ;;  %v982_v24 = vadd.f32 %v981_v48, %v4592_v25 }
 0x1b0   : > { %v1278_v14 = vadd.f32 %v1212_v60, %v979_v8  ;;  %v2119_v8 = vld [vmem:[#allocation2 + $0x34] sm:$0xff] }
 0x1b1   : > { %3961 = vmatmul.msk.bf16.vlgmr.msra.gmra.mxu1 %vm497_vm1, %v1883_v16 }
 0x1b2   : > { %v1486_v15 = vpop.f32.mrf.mxu3 }
 0x1b3   : > { %v1552_v6 = vadd.f32 %v1486_v15, %v1278_v14 }
 0x1b4   : > { %3982 = vmatmul.msk.bf16.vlgmr.msra.gmra.mxu2 %vm497_vm1, %v2157_v21 }
 0x1b5   : > { %v4771_v41 = vadd.f32 %v1760_v46, %v1552_v6  ;;  %v2120_v46 = vld [vmem:[#allocation2 + $0x3c] sm:$0xff] }
 0x1b6   : > { %v983_v38 = vpop.f32.mrf.mxu1  ;;  %v2158_v15 = vpack.c.bf16 %v2120_v46, %v2119_v8  ;;  %v2393_v6 = vld [vmem:[#allocation2 + $0x35] sm:$0xff]  ;;  %3201 = vperm.xlu1 %4311, %v3061_v11  }
 0x1b7   : > { %v1763_v39 = vpop.f32.mrf.mxu0  ;;  %4003 = vmatmul.msk.bf16.vlgmr.msra.gmra.mxu3 %vm497_vm1, %v2431_v2  ;;  %v1215_v54 = vpop.f32.mrf.mxu2  ;;  %v984_v25 = vadd.f32 %v983_v38, %v4601_v32  ;;  %v2394_v2 = vld [vmem:[#allocation2 + $0x3d] sm:$0xff] }
 0x1b8   : > { %v1279_v16 = vadd.f32 %v1215_v54, %v982_v24  ;;  %v2432_v24 = vpack.c.bf16 %v2394_v2, %v2393_v6 }
 0x1ba   : > { %4024 = vmatmul.msk.bf16.vlgmr.msra.gmra.mxu0 %vm497_vm1, %v2705_v7  ;;  %v1489_v58 = vpop.f32.mrf.mxu3  ;;  %v2667_v7 = vld [vmem:[#allocation2 + $0x36] sm:$0xff] }
 0x1bb   : > { %v1553_v49 = vadd.f32 %v1489_v58, %v1279_v16 }
 0x1bd   : > { %v4779_v60 = vadd.f32 %v1763_v39, %v1553_v49  ;;  %v2668_v39 = vld [vmem:[#allocation2 + $0x3e] sm:$0xff] }
 0x1be   : > { %v986_v48 = vpop.f32.mrf.mxu1  ;;  %v2706_v54 = vpack.c.bf16 %v2668_v39, %v2667_v7  ;;  %v2396_v7 = vld [vmem:[#allocation2 + $0x4d] sm:$0xff] }
 0x1bf   : > { %v1765_v14 = vpop.f32.mrf.mxu0  ;;  %v1217_v28 = vpop.f32.mrf.mxu2  ;;  %v987_v38 = vadd.f32 %v986_v48, %v4612_v42 }
 0x1c0   : > { %v1280_v23 = vadd.f32 %v1217_v28, %v984_v25  ;;  %v2121_v25 = vld [vmem:[#allocation2 + $0x44] sm:$0xff]  ;;  %v2122_v28 = vld [vmem:[#allocation2 + $0x4c] sm:$0xff] }
 0x1c1   : > { %3962 = vmatmul.msk.bf16.gmra.mxu1 %vm497_vm1, %v2157_v21 }
 0x1c2   : > { %v1491_v62 = vpop.f32.mrf.mxu3 }
 0x1c3   : > { %v1554_v3 = vadd.f32 %v1491_v62, %v1280_v23  ;;  %v2159_v62 = vpack.c.bf16 %v2122_v28, %v2121_v25 }
 0x1c4   : > { %3983 = vmatmul.msk.bf16.gmra.mxu2 %vm497_vm1, %v2158_v15 }
 0x1c5   : > { %v4787_v32 = vadd.f32 %v1765_v14, %v1554_v3  ;;  %v2395_v3 = vld [vmem:[#allocation2 + $0x45] sm:$0xff] }
 0x1c6   : > { %v988_v16 = vpop.f32.mrf.mxu1 }
 0x1c7   : > { %v1768_v58 = vpop.f32.mrf.mxu0  ;;  %4004 = vmatmul.msk.bf16.gmra.mxu3 %vm497_vm1, %v2432_v24  ;;  %v1220_v49 = vpop.f32.mrf.mxu2  ;;  %v989_v14 = vadd.f32 %v988_v16, %v4621_v50  ;;  %v3101_v50 = vsel %vm3099_vm2, %v3060_v17, 0.0 }
 0x1c8   : > { %v1281_v8 = vadd.f32 %v1220_v49, %v987_v38  ;;  %v2433_v38 = vpack.c.bf16 %v2396_v7, %v2395_v3  ;;  %v2670_v49 = vld [vmem:[#allocation2 + $0x4e] sm:$0xff]  ;;  %v2124_v3 = vld [vmem:[#allocation2 + $0x5c] sm:$0xff] }
 0x1c9   : > { %v3062_v7 = vld [vmem:[%s5649_s3 + $0x18] sm:$0xff] }
 0x1ca   : > { %4025 = vmatmul.msk.bf16.gmra.mxu0 %vm497_vm1, %v2706_v54  ;;  %v1494_v21 = vpop.f32.mrf.mxu3  ;;  %v2669_v54 = vld [vmem:[#allocation2 + $0x46] sm:$0xff]  ;;  %3206 = vperm.xlu2 %4312, %v3062_v7  }
 0x1cb   : > { %v1555_v46 = vadd.f32 %v1494_v21, %v1281_v8  ;;  %v2707_v21 = vpack.c.bf16 %v2670_v49, %v2669_v54 }
 0x1cd   : > { %v4792_v23 = vadd.f32 %v1768_v58, %v1555_v46  ;;  %v3100_v58 = vsel %vm3099_vm2, %v4766_v61, 0.0 }
 0x1ce   : > { %v991_v6 = vpop.f32.mrf.mxu1 }
 0x1cf   : > { %v1770_v2 = vpop.f32.mrf.mxu0  ;;  %v1222_v42 = vpop.f32.mrf.mxu2  ;;  %v992_v8 = vadd.f32 %v991_v6, %v4632_v4  ;;  %v4812_v6 = vld [vmem:[%s5649_s3 + $0x68] sm:$0xff] }
 0x1d0   : > { %v1282_v48 = vadd.f32 %v1222_v42, %v989_v14  ;;  %v3064_v14 = vld [vmem:[%s5649_s3 + $0x28] sm:$0xff]  ;;  %v3103_v42 = vsel %vm3099_vm2, %v3061_v11, 0.0  ;;  %3256 = vperm.xlu0 %4310, %v4812_v6  }
 0x1d1   : > { %3963 = vmatmul.msk.bf16.gmra.mxu1 %vm497_vm1, %v2158_v15  ;;  %v3102_v15 = vadd.f32 %v3101_v50, %v3100_v58  ;;  %3216 = vperm.xlu1 %4311, %v3064_v14   ;;  %v3063_v50 = vld [vmem:[%s5649_s3 + $0x20] sm:$0xff] }
 0x1d2   : > { %v1496_v24 = vpop.f32.mrf.mxu3  ;;  %3211 = vperm.xlu2 %4312, %v3063_v50  }
 0x1d3   : > { %v1556_v39 = vadd.f32 %v1496_v24, %v1282_v48  ;;  %v3104_v4 = vadd.f32 %v3103_v42, %v3102_v15  ;;  %v2123_v48 = vld [vmem:[#allocation2 + $0x54] sm:$0xff] }
 0x1d4   : > { %3984 = vmatmul.msk.bf16.gmra.mxu2 %vm497_vm1, %v2159_v62  ;;  %v2397_v15 = vld [vmem:[#allocation2 + $0x55] sm:$0xff] }
 0x1d5   : > { %v4800_v16 = vadd.f32 %v1770_v2, %v1556_v39  ;;  %v2671_v42 = vld [vmem:[#allocation2 + $0x56] sm:$0xff] }
 0x1d6   : > { %v993_v46 = vpop.f32.mrf.mxu1 }
 0x1d7   : > { %v1773_v25 = vpop.f32.mrf.mxu0  ;;  %4005 = vmatmul.msk.bf16.gmra.mxu3 %vm497_vm1, %v2433_v38  ;;  %v1225_v28 = vpop.f32.mrf.mxu2  ;;  %v994_v24 = vadd.f32 %v993_v46, %v4639_v19  ;;  %v3105_v38 = vsel %vm3099_vm2, %v3062_v7, 0.0  ;;  %v3107_v19 = vsel %vm3099_vm2, %v3063_v50, 0.0  ;;  %v4833_v7 = vld [vmem:[%s5649_s3 + $0x80] sm:$0xff]  ;;  %v3068_v50 = vld [vmem:[%s5649_s3 + $0x48] sm:$0xff] }
 0x1d8   : > { %v1283_v61 = vadd.f32 %v1225_v28, %v992_v8  ;;  %v3106_v58 = vadd.f32 %v3105_v38, %v3104_v4  ;;  %v2398_v28 = vld [vmem:[#allocation2 + $0x5d] sm:$0xff]  ;;  %3271 = vperm.xlu0 %4310, %v4833_v7  }
 0x1d9   : > { %v2672_v4 = vld [vmem:[#allocation2 + $0x5e] sm:$0xff] }
 0x1da   : > { %4026 = vmatmul.msk.bf16.gmra.mxu0 %vm497_vm1, %v2707_v21  ;;  %v1499_v17 = vpop.f32.mrf.mxu3  ;;  %v4825_v21 = vpack.c.bf16 %v2124_v3, %v2123_v48  ;;  %v3108_v46 = vadd.f32 %v3107_v19, %v3106_v58  ;;  %v3065_v48 = vld [vmem:[%s5649_s3 + $0x30] sm:$0xff] }
 0x1db   : > { %v1557_v2 = vadd.f32 %v1499_v17, %v1283_v61  ;;  %3221 = vperm.xlu2 %4312, %v3065_v48  }
 0x1dd   : > { %v4818_v11 = vadd.f32 %v1773_v25, %v1557_v2  ;;  %v3109_v25 = vsel %vm3099_vm2, %v3064_v14, 0.0  ;;  %v2434_v2 = vpack.c.bf16 %v2398_v28, %v2397_v15 }
 0x1de   : > { %v996_v39 = vpop.f32.mrf.mxu1  ;;  %v3110_v14 = vadd.f32 %v3109_v25, %v3108_v46 }
 0x1df   : > { %5690 = vst [vmem:[#allocation3_spill] sm:$0xff] %v4818_v11  ;;  %v1775_v54 = vpop.f32.mrf.mxu0  ;;  %v1227_v49 = vpop.f32.mrf.mxu2  ;;  %v997_v38 = vadd.f32 %v996_v39, %v4555_v56 }
 0x1e0   : > { %v1284_v8 = vadd.f32 %v1227_v49, %v994_v24  ;;  %v2708_v49 = vpack.c.bf16 %v2672_v4, %v2671_v42  ;;  %v4867_v4 = vld [vmem:[%s5649_s3 + $0x50] sm:$0xff] }
 0x1e1   : > { %3964 = vmatmul.msk.bf16.gmra.mxu1 %vm497_vm1, %v2159_v62  ;;  %v3111_v62 = vsel %vm3099_vm2, %v3065_v48, 0.0 }
 0x1e2   : > { %v1501_v61 = vpop.f32.mrf.mxu3  ;;  %v3112_v3 = vadd.f32 %v3111_v62, %v3110_v14  ;;  %v3119_v14 = vsel %vm3099_vm2, %v4867_v4, 0.0 }
 0x1e3   : > { %v1558_v17 = vadd.f32 %v1501_v61, %v1284_v8  ;;  %v3066_v8 = vld [vmem:[%s5649_s3 + $0x38] sm:$0xff]  ;;  %v3117_v61 = vsel %vm3099_vm2, %v3068_v50, 0.0 }
 0x1e4   : > { %3985 = vmatmul.msk.bf16.gmra.mxu2 %vm497_vm1, %v4825_v21  ;;  %v3113_v25 = vsel %vm3099_vm2, %v3066_v8, 0.0  ;;  %3226 = vperm.xlu1 %4311, %v3066_v8  }
 0x1e5   : > { %v4842_v24 = vadd.f32 %v1775_v54, %v1558_v17  ;;  %v3067_v54 = vld [vmem:[%s5649_s3 + $0x40] sm:$0xff]  ;;  %v3114_v39 = vadd.f32 %v3113_v25, %v3112_v3 }
 0x1e6   : > { %v998_v58 = vpop.f32.mrf.mxu1  ;;  %v3115_v56 = vsel %vm3099_vm2, %v3067_v54, 0.0  ;;  %v2125_v3 = vld [vmem:[#allocation2 + $0x64] sm:$0xff]  ;;  %3231 = vperm.xlu2 %4312, %v3067_v54  }
 0x1e7   : > { %5691 = vst [vmem:[#allocation4_spill] sm:$0xff] %v4842_v24  ;;  %v1778_v15 = vpop.f32.mrf.mxu0  ;;  %4006 = vmatmul.msk.bf16.gmra.mxu3 %vm497_vm1, %v2434_v2  ;;  %v1230_v28 = vpop.f32.mrf.mxu2  ;;  %v3116_v42 = vadd.f32 %v3115_v56, %v3114_v39  ;;  %v4862_v2 = vld [vmem:[%s5649_s3 + $0x98] sm:$0xff]  ;;  %v3076_v54 = vld [vmem:[%s5649_s3 + $0x88] sm:$0xff] }
 0x1e8   : > { %v1285_v19 = vadd.f32 %v1230_v28, %v997_v38  ;;  %3286 = vperm.xlu0 %4310, %v4862_v2   ;;  %v2126_v38 = vld [vmem:[#allocation2 + $0x6c] sm:$0xff]  ;;  %v999_v28 = vadd.f32 %v998_v58, %v4564_v1  ;;  %v3125_v58 = vsel %vm3099_vm2, %v4812_v6, 0.0 }
 0x1e9   : > { %v3118_v62 = vadd.f32 %v3117_v61, %v3116_v42  ;;  %v4882_v61 = vld [vmem:[%s5649_s3 + $0x60] sm:$0xff]  ;;  %v4884_v24 = vpack.c.bf16 %v2126_v38, %v2125_v3  ;;  %v3081_v3 = vld [vmem:[%s5649_s3 + $0xb0] sm:$0xff] }
 0x1ea   : > { %4027 = vmatmul.msk.bf16.gmra.mxu0 %vm497_vm1, %v2708_v49  ;;  %v1504_v46 = vpop.f32.mrf.mxu3  ;;  %v3070_v49 = vld [vmem:[%s5649_s3 + $0x58] sm:$0xff]  ;;  %v3123_v1 = vsel %vm3099_vm2, %v4882_v61, 0.0  ;;  %v3073_v38 = vld [vmem:[%s5649_s3 + $0x70] sm:$0xff] }
 0x1eb   : > { %v1559_v17 = vadd.f32 %v1504_v46, %v1285_v19  ;;  %v3121_v19 = vsel %vm3099_vm2, %v3070_v49, 0.0  ;;  %v3120_v56 = vadd.f32 %v3119_v14, %v3118_v62  ;;  %v2673_v14 = vld [vmem:[#allocation2 + $0x66] sm:$0xff]  ;;  %v3127_v6 = vsel %vm3099_vm2, %v3073_v38, 0.0 }
 0x1ec   : > { %3236 = vperm.xlu1 %4311, %v3068_v50  }
 0x1ed   : > { %v4875_v8 = vadd.f32 %v1778_v15, %v1559_v17  ;;  %v2399_v15 = vld [vmem:[#allocation2 + $0x65] sm:$0xff]  ;;  %v2400_v17 = vld [vmem:[#allocation2 + $0x6d] sm:$0xff]  ;;  %v3122_v48 = vadd.f32 %v3121_v19, %v3120_v56 }
 0x1ee   : > { %v1001_v25 = vpop.f32.mrf.mxu1  ;;  %v2435_v11 = vpack.c.bf16 %v2400_v17, %v2399_v15  ;;  %v4907_v15 = vld [vmem:[%s5649_s3 + $0x78] sm:$0xff]  ;;  %3241 = vperm.xlu2 %4312, %v4867_v4  }
 0x1ef   : > { %5692 = vst [vmem:[#allocation5_spill] sm:$0xff] %v4875_v8  ;;  %v1780_v39 = vpop.f32.mrf.mxu0  ;;  %v1232_v46 = vpop.f32.mrf.mxu2  ;;  %v3124_v62 = vadd.f32 %v3123_v1, %v3122_v48  ;;  %v1002_v56 = vadd.f32 %v1001_v25, %v4575_v9  ;;  %v3129_v9 = vsel %vm3099_vm2, %v4907_v15, 0.0 }
 0x1f0   : > { %v1286_v42 = vadd.f32 %v1232_v46, %v999_v28  ;;  %v2674_v28 = vld [vmem:[#allocation2 + $0x6e] sm:$0xff]  ;;  %3301 = vperm.xlu0 %4310, %v3081_v3  }
 0x1f1   : > { %3965 = vmatmul.msk.bf16.gmra.mxu1 %vm497_vm1, %v4825_v21  ;;  %v3126_v21 = vadd.f32 %v3125_v58, %v3124_v62  ;;  %v2709_v46 = vpack.c.bf16 %v2674_v28, %v2673_v14  ;;  %v3131_v58 = vsel %vm3099_vm2, %v4833_v7, 0.0  ;;  %v3084_v7 = vld [vmem:[%s5649_s3 + $0xc8] sm:$0xff] }
 0x1f2   : > { %v1506_v50 = vpop.f32.mrf.mxu3 }
 0x1f3   : > { %v1560_v8 = vadd.f32 %v1506_v50, %v1286_v42  ;;  %v3128_v17 = vadd.f32 %v3127_v6, %v3126_v21  ;;  %v3133_v50 = vsel %vm3099_vm2, %v3076_v54, 0.0  ;;  %v2127_v6 = vld [vmem:[#allocation2 + $0x74] sm:$0xff]  ;;  %v2128_v21 = vld [vmem:[#allocation2 + $0x7c] sm:$0xff] }
 0x1f4   : > { %3986 = vmatmul.msk.bf16.gmra.mxu2 %vm497_vm1, %v4884_v24  ;;  %3246 = vperm.xlu1 %4311, %v3070_v49   ;;  %v4925_v49 = vld [vmem:[%s5649_s3 + $0x90] sm:$0xff] }
 0x1f5   : > { %v4901_v19 = vadd.f32 %v1780_v39, %v1560_v8  ;;  %v3130_v25 = vadd.f32 %v3129_v9, %v3128_v17  ;;  %v3135_v62 = vsel %vm3099_vm2, %v4925_v49, 0.0 }
 0x1f6   : > { %v1003_v42 = vpop.f32.mrf.mxu1  ;;  %3251 = vperm.xlu2 %4312, %v4882_v61   ;;  %v3149_v61 = vsel %vm3099_vm2, %v3084_v7, 0.0 }
 0x1f7   : > { %5693 = vst [vmem:[#allocation6_spill] sm:$0xff] %v4901_v19  ;;  %v1783_v1 = vpop.f32.mrf.mxu0  ;;  %4007 = vmatmul.msk.bf16.gmra.mxu3 %vm497_vm1, %v2435_v11  ;;  %v1235_v48 = vpop.f32.mrf.mxu2  ;;  %v3132_v11 = vadd.f32 %v3131_v58, %v3130_v25  ;;  %v1004_v17 = vadd.f32 %v1003_v42, %v4584_v18  ;;  %v3079_v25 = vld [vmem:[%s5649_s3 + $0xa0] sm:$0xff]  ;;  %v4944_v18 = vld [vmem:[%s5649_s3 + $0xa8] sm:$0xff] }
 0x1f8   : > { %v1287_v8 = vadd.f32 %v1235_v48, %v1002_v56  ;;  %3316 = vperm.xlu0 %4310, %v3084_v7   ;;  %v3137_v56 = vsel %vm3099_vm2, %v4862_v2, 0.0  ;;  %v2402_v19 = vld [vmem:[#allocation2 + $0x7d] sm:$0xff]  ;;  %v3139_v2 = vsel %vm3099_vm2, %v3079_v25, 0.0 }
 0x1f9   : > { %v3134_v28 = vadd.f32 %v3133_v50, %v3132_v11  ;;  %v2162_v50 = vpack.c.bf16 %v2128_v21, %v2127_v6  ;;  %v2401_v11 = vld [vmem:[#allocation2 + $0x75] sm:$0xff]  ;;  %v2676_v6 = vld [vmem:[#allocation2 + $0x7e] sm:$0xff]  ;;  %v3143_v21 = vsel %vm3099_vm2, %v3081_v3, 0.0 }
 0x1fa   : > { %4028 = vmatmul.msk.bf16.gmra.mxu0 %vm497_vm1, %v2709_v46  ;;  %v1509_v39 = vpop.f32.mrf.mxu3  ;;  %v4981_v7 = vld [vmem:[%s5649_s3 + $0xd8] sm:$0xff] }
 0x1fb   : > { %v1561_v14 = vadd.f32 %v1509_v39, %v1287_v8  ;;  %v3136_v58 = vadd.f32 %v3135_v62, %v3134_v28  ;;  %v2436_v62 = vpack.c.bf16 %v2402_v19, %v2401_v11  ;;  %v2675_v28 = vld [vmem:[#allocation2 + $0x76] sm:$0xff] }
 0x1fc   : > { %3261 = vperm.xlu1 %4311, %v3073_v38   ;;  %v3141_v38 = vsel %vm3099_vm2, %v4944_v18, 0.0 }
 0x1fd   : > { %v4931_v46 = vadd.f32 %v1783_v1, %v1561_v14  ;;  %v3138_v1 = vadd.f32 %v3137_v56, %v3136_v58  ;;  %v2710_v58 = vpack.c.bf16 %v2676_v6, %v2675_v28  ;;  %v2130_v28 = vld [vmem:[#allocation2 + $0x8c] sm:$0xff] }
 0x1fe   : > { %v1006_v48 = vpop.f32.mrf.mxu1  ;;  %3266 = vperm.xlu2 %4312, %v4907_v15   ;;  %v5000_v15 = vld [vmem:[%s5649_s3 + $0xe8] sm:$0xff] }
 0x1ff   : > { %5694 = vst [vmem:[#allocation7_spill] sm:$0xff] %v4931_v46  ;;  %v1785_v9 = vpop.f32.mrf.mxu0  ;;  %v1237_v8 = vpop.f32.mrf.mxu2  ;;  %v3140_v42 = vadd.f32 %v3139_v2, %v3138_v1  ;;  %v4956_v46 = vld [vmem:[%s5649_s3 + $0xb8] sm:$0xff] }
 0x200   : > { %v1288_v39 = vadd.f32 %v1237_v8, %v1004_v17  ;;  %v1007_v17 = vadd.f32 %v1006_v48, %v4595_v26  ;;  %v3145_v26 = vsel %vm3099_vm2, %v4956_v46, 0.0 }
 0x201   : > { %3966 = vmatmul.msk.bf16.gmra.mxu1 %vm497_vm1, %v4884_v24  ;;  %v3142_v56 = vadd.f32 %v3141_v38, %v3140_v42  ;;  %v4974_v42 = vld [vmem:[%s5649_s3 + $0xd0] sm:$0xff] }
 0x202   : > { %v1511_v4 = vpop.f32.mrf.mxu3 }
 0x203   : > { %v1562_v14 = vadd.f32 %v1511_v4, %v1288_v39  ;;  %v3144_v19 = vadd.f32 %v3143_v21, %v3142_v56 }
 0x204   : > { %3987 = vmatmul.msk.bf16.gmra.mxu2 %vm497_vm1, %v2162_v50  ;;  %3276 = vperm.xlu1 %4311, %v3076_v54   ;;  %v3151_v54 = vsel %vm3099_vm2, %v4974_v42, 0.0 }
 0x205   : > { %v4950_v24 = vadd.f32 %v1785_v9, %v1562_v14  ;;  %v4963_v9 = vld [vmem:[%s5649_s3 + $0xc0] sm:$0xff]  ;;  %v3146_v2 = vadd.f32 %v3145_v26, %v3144_v19 }
 0x206   : > { %v1008_v8 = vpop.f32.mrf.mxu1  ;;  %v3147_v11 = vsel %vm3099_vm2, %v4963_v9, 0.0  ;;  %v4992_v26 = vld [vmem:[%s5649_s3 + $0xe0] sm:$0xff]  ;;  %3281 = vperm.xlu2 %4312, %v4925_v49   ;;  %v5035_v49 = vld [vmem:[%s5649_s3 + $0x108] sm:$0xff] }
 0x207   : > { %v1788_v39 = vpop.f32.mrf.mxu0  ;;  %4008 = vmatmul.msk.bf16.gmra.mxu3 %vm497_vm1, %v2436_v62  ;;  %v1240_v3 = vpop.f32.mrf.mxu2  ;;  %v3148_v4 = vadd.f32 %v3147_v11, %v3146_v2  ;;  %v2129_v62 = vld [vmem:[#allocation2 + $0x84] sm:$0xff]  ;;  %v1009_v21 = vadd.f32 %v1008_v8, %v4604_v35  ;;  %v2404_v2 = vld [vmem:[#allocation2 + $0x8d] sm:$0xff]  ;;  %v3155_v8 = vsel %vm3099_vm2, %v4992_v26, 0.0 }
 0x208   : > { %v1289_v48 = vadd.f32 %v1240_v3, %v1007_v17  ;;  %v2403_v11 = vld [vmem:[#allocation2 + $0x85] sm:$0xff] }
 0x209   : > { %v3150_v14 = vadd.f32 %v3149_v61, %v3148_v4 }
 0x20a   : > { %4029 = vmatmul.msk.bf16.gmra.mxu0 %vm497_vm1, %v2710_v58  ;;  %v1514_v1 = vpop.f32.mrf.mxu3  ;;  %v3153_v58 = vsel %vm3099_vm2, %v4981_v7, 0.0 }
 0x20b   : > { %v1563_v38 = vadd.f32 %v1514_v1, %v1289_v48  ;;  %v3152_v17 = vadd.f32 %v3151_v54, %v3150_v14  ;;  %v2677_v14 = vld [vmem:[#allocation2 + $0x86] sm:$0xff]  ;;  %v2678_v54 = vld [vmem:[#allocation2 + $0x8e] sm:$0xff] }
 0x20c   : > { %3291 = vperm.xlu1 %4311, %v3079_v25   ;;  %v3157_v25 = vsel %vm3099_vm2, %v5000_v15, 0.0 }
 0x20d   : > { %v4983_v6 = vadd.f32 %v1788_v39, %v1563_v38  ;;  %v2163_v39 = vpack.c.bf16 %v2130_v28, %v2129_v62  ;;  %v3154_v35 = vadd.f32 %v3153_v58, %v3152_v17  ;;  %v2437_v38 = vpack.c.bf16 %v2404_v2, %v2403_v11  ;;  %v5007_v62 = vld [vmem:[%s5649_s3 + $0xf0] sm:$0xff] }
 0x20e   : > { %v1011_v56 = vpop.f32.mrf.mxu1  ;;  %v3159_v28 = vsel %vm3099_vm2, %v5007_v62, 0.0  ;;  %v2711_v58 = vpack.c.bf16 %v2678_v54, %v2677_v14  ;;  %3296 = vperm.xlu2 %4312, %v4944_v18   ;;  %v5070_v18 = vld [vmem:[%s5649_s3 + $0x128] sm:$0xff] }
 0x20f   : > { %5695 = vst [vmem:[#allocation8_spill] sm:$0xff] %v4983_v6  ;;  %v1790_v19 = vpop.f32.mrf.mxu0  ;;  %v1242_v3 = vpop.f32.mrf.mxu2  ;;  %v3156_v1 = vadd.f32 %v3155_v8, %v3154_v35  ;;  %v1012_v17 = vadd.f32 %v1011_v56, %v4615_v43 }
 0x210   : > { %v1290_v48 = vadd.f32 %v1242_v3, %v1009_v21 }
 0x211   : > { %3967 = vmatmul.msk.bf16.gmra.mxu1 %vm497_vm1, %v2162_v50  ;;  %v3158_v50 = vadd.f32 %v3157_v25, %v3156_v1 }
 0x212   : > { %v1516_v61 = vpop.f32.mrf.mxu3 }
 0x213   : > { %v1564_v4 = vadd.f32 %v1516_v61, %v1290_v48  ;;  %v5018_v48 = vld [vmem:[%s5649_s3 + $0xf8] sm:$0xff]  ;;  %v3160_v11 = vadd.f32 %v3159_v28, %v3158_v50 }
 0x214   : > { %3988 = vmatmul.msk.bf16.gmra.mxu2 %vm497_vm1, %v2163_v39  ;;  %v3161_v43 = vsel %vm3099_vm2, %v5018_v48, 0.0  ;;  %3306 = vperm.xlu1 %4311, %v4956_v46   ;;  %v5043_v46 = vld [vmem:[%s5649_s3 + $0x110] sm:$0xff]  ;;  %v2132_v28 = vld [vmem:[#allocation2 + $0x9c] sm:$0xff] }
 0x215   : > { %v5012_v21 = vadd.f32 %v1790_v19, %v1564_v4  ;;  %v5025_v19 = vld [vmem:[%s5649_s3 + $0x100] sm:$0xff]  ;;  %v3162_v8 = vadd.f32 %v3161_v43, %v3160_v11  ;;  %v3165_v4 = vsel %vm3099_vm2, %v5035_v49, 0.0  ;;  %v3167_v54 = vsel %vm3099_vm2, %v5043_v46, 0.0  ;;  %v2131_v50 = vld [vmem:[#allocation2 + $0x94] sm:$0xff] }
 0x216   : > { %v1013_v3 = vpop.f32.mrf.mxu1  ;;  %v3163_v61 = vsel %vm3099_vm2, %v5025_v19, 0.0  ;;  %3311 = vperm.xlu2 %4312, %v4963_v9  }
 0x217   : > { %5696 = vst [vmem:[#allocation9_spill] sm:$0xff] %v5012_v21  ;;  %v1793_v2 = vpop.f32.mrf.mxu0  ;;  %4009 = vmatmul.msk.bf16.gmra.mxu3 %vm497_vm1, %v2437_v38  ;;  %v1245_v35 = vpop.f32.mrf.mxu2  ;;  %v3164_v25 = vadd.f32 %v3163_v61, %v3162_v8  ;;  %v1014_v11 = vadd.f32 %v1013_v3, %v4624_v57  ;;  %v2406_v57 = vld [vmem:[#allocation2 + $0x9d] sm:$0xff] }
 0x218   : > { %v1291_v56 = vadd.f32 %v1245_v35, %v1012_v17  ;;  %v5050_v17 = vld [vmem:[%s5649_s3 + $0x118] sm:$0xff] }
 0x219   : > { %v3166_v14 = vadd.f32 %v3165_v4, %v3164_v25  ;;  %v2164_v25 = vpack.c.bf16 %v2132_v28, %v2131_v50  ;;  %v2405_v4 = vld [vmem:[#allocation2 + $0x95] sm:$0xff] }
 0x21a   : > { %4030 = vmatmul.msk.bf16.gmra.mxu0 %vm497_vm1, %v2711_v58  ;;  %v1519_v1 = vpop.f32.mrf.mxu3  ;;  %v2438_v50 = vpack.c.bf16 %v2406_v57, %v2405_v4  ;;  %v2679_v28 = vld [vmem:[#allocation2 + $0x96] sm:$0xff] }
 0x21b   : > { %v1565_v38 = vadd.f32 %v1519_v1, %v1291_v56  ;;  %v3168_v43 = vadd.f32 %v3167_v54, %v3166_v14  ;;  %v3169_v56 = vsel %vm3099_vm2, %v5050_v17, 0.0  ;;  %v5061_v1 = vld [vmem:[%s5649_s3 + $0x120] sm:$0xff] }
 0x21c   : > { %3321 = vperm.xlu1 %4311, %v4974_v42   ;;  %v3173_v42 = vsel %vm3099_vm2, %v5070_v18, 0.0 }
 0x21d   : > { %v5052_v58 = vadd.f32 %v1793_v2, %v1565_v38  ;;  %v3170_v3 = vadd.f32 %v3169_v56, %v3168_v43  ;;  %v3171_v38 = vsel %vm3099_vm2, %v5061_v1, 0.0  ;;  %v3097_v43 = vld [vmem:[%s5649_s3 + $0x130] sm:$0xff] }
 0x21e   : > { %v1016_v35 = vpop.f32.mrf.mxu1  ;;  %v3175_v56 = vsel %vm3099_vm2, %v3097_v43, 0.0  ;;  %3326 = vperm.xlu2 %4312, %v4981_v7  }
 0x21f   : > { %5697 = vst [vmem:[#allocation10_spill] sm:$0xff] %v5052_v58  ;;  %v1795_v8 = vpop.f32.mrf.mxu0  ;;  %v1247_v61 = vpop.f32.mrf.mxu2  ;;  %v3172_v54 = vadd.f32 %v3171_v38, %v3170_v3  ;;  %v1017_v3 = vadd.f32 %v1016_v35, %v4635_v5 }
 0x220   : > { %v1292_v2 = vadd.f32 %v1247_v61, %v1014_v11  ;;  %v2680_v61 = vld [vmem:[#allocation2 + $0x9e] sm:$0xff] }
 0x221   : > { %3968 = vmatmul.msk.bf16.gmra.mxu1 %vm497_vm1, %v2163_v39  ;;  %v3174_v39 = vadd.f32 %v3173_v42, %v3172_v54  ;;  %v2712_v38 = vpack.c.bf16 %v2680_v61, %v2679_v28  ;;  %v2134_v28 = vld [vmem:[#allocation2 + $0xac] sm:$0xff] }
 0x222   : > { %v1521_v14 = vpop.f32.mrf.mxu3 }
 0x223   : > { %v1566_v11 = vadd.f32 %v1521_v14, %v1292_v2  ;;  %v5085_v2 = vld [vmem:[%s5649_s3 + $0x138] sm:$0xff]  ;;  %v3176_v4 = vadd.f32 %v3175_v56, %v3174_v39 }
 0x224   : > { %3989 = vmatmul.msk.bf16.gmra.mxu2 %vm497_vm1, %v2164_v25  ;;  %3336 = vperm.xlu1 %4311, %v5000_v15  }
 0x225   : > { %v5079_v58 = vadd.f32 %v1795_v8, %v1566_v11  ;;  %v3177_v8 = vsel %vm3099_vm2, %v5085_v2, 0.0  ;;  %v2133_v11 = vld [vmem:[#allocation2 + $0xa4] sm:$0xff] }
 0x226   : > { %v1018_v21 = vpop.f32.mrf.mxu1  ;;  %v3178_v35 = vadd.f32 %v3177_v8, %v3176_v4  ;;  %v2407_v4 = vld [vmem:[#allocation2 + $0xa5] sm:$0xff]  ;;  %3341 = vperm.xlu2 %4312, %v5007_v62  }
 0x227   : > { %5698 = vst [vmem:[#allocation11_spill] sm:$0xff] %v5079_v58  ;;  %v1798_v57 = vpop.f32.mrf.mxu0  ;;  %4010 = vmatmul.msk.bf16.gmra.mxu3 %vm497_vm1, %v2438_v50  ;;  %v1250_v14 = vpop.f32.mrf.mxu2  ;;  %v1019_v9 = vadd.f32 %v1018_v21, %v4643_v27 }
 0x228   : > { %v1293_v5 = vadd.f32 %v1250_v14, %v1017_v3  ;;  %3179 = vadd.xlane.f32.xlu0 %v3178_v35  ;;  %v2165_v3 = vpack.c.bf16 %v2134_v28, %v2133_v11  ;;  %v2682_v35 = vld [vmem:[#allocation2 + $0xae] sm:$0xff] }
 0x229   : > { %v2135_v28 = vld [vmem:[#allocation2 + $0xb4] sm:$0xff] }
 0x22a   : > { %4031 = vmatmul.msk.bf16.gmra.mxu0 %vm497_vm1, %v2712_v38  ;;  %v1524_v54 = vpop.f32.mrf.mxu3  ;;  %v2408_v38 = vld [vmem:[#allocation2 + $0xad] sm:$0xff] }
 0x22b   : > { %v1567_v42 = vadd.f32 %v1524_v54, %v1293_v5  ;;  %v2439_v5 = vpack.c.bf16 %v2408_v38, %v2407_v4  ;;  %v2410_v38 = vld [vmem:[#allocation2 + $0xbd] sm:$0xff] }
 0x22c   : > { %3351 = vperm.xlu1 %4311, %v5025_v19  }
 0x22d   : > { %v5093_v61 = vadd.f32 %v1798_v57, %v1567_v42  ;;  %v2681_v57 = vld [vmem:[#allocation2 + $0xa6] sm:$0xff] }
 0x22e   : > { %v1977_v50 = vpop.f32.mrf.mxu1  ;;  %v2713_v7 = vpack.c.bf16 %v2682_v35, %v2681_v57  ;;  %3356 = vperm.xlu2 %4312, %v5035_v49   ;;  %v2683_v57 = vld [vmem:[#allocation2 + $0xb6] sm:$0xff]  ;;  %v2684_v35 = vld [vmem:[#allocation2 + $0xbe] sm:$0xff] }
 0x22f   : > { %5699 = vst [vmem:[#allocation12_spill] sm:$0xff] %v5093_v61  ;;  %v1800_v39 = vpop.f32.mrf.mxu0  ;;  %v1252_v56 = vpop.f32.mrf.mxu2  ;;  %v2714_v49 = vpack.c.bf16 %v2684_v35, %v2683_v57 }
 0x230   : > { %v1294_v15 = vadd.f32 %v1252_v56, %v1019_v9  ;;  %v2136_v9 = vld [vmem:[#allocation2 + $0xbc] sm:$0xff] }
 0x231   : > { %3969 = vmatmul.msk.bf16.gmra.mxu1 %vm497_vm1, %v2164_v25  ;;  %v2077_v25 = vadd.f32 %v1977_v50, %v4649_v59  ;;  %v2166_v59 = vpack.c.bf16 %v2136_v9, %v2135_v28  ;;  %v2409_v50 = vld [vmem:[#allocation2 + $0xb5] sm:$0xff] }
 0x232   : > { %v1526_v14 = vpop.f32.mrf.mxu3 }
 0x233   : > { %v1568_v8 = vadd.f32 %v1526_v14, %v1294_v15 }
 0x234   : > { %3990 = vmatmul.msk.bf16.gmra.mxu2 %vm497_vm1, %v2165_v3  ;;  %3366 = vperm.xlu1 %4311, %v5050_v17  }
 0x235   : > { %v5100_v27 = vadd.f32 %v1800_v39, %v1568_v8 }
 0x236   : > { %v1979_v21 = vpop.f32.mrf.mxu1  ;;  %3371 = vperm.xlu2 %4312, %v5061_v1  }
 0x237   : > { %5700 = vst [vmem:[#allocation13_spill] sm:$0xff] %v5100_v27  ;;  %v2799_v19 = vpop.f32.mrf.mxu0  ;;  %4011 = vmatmul.msk.bf16.gmra.mxu3 %vm497_vm1, %v2439_v5  ;;  %v2251_v54 = vpop.f32.mrf.mxu2  ;;  %v2078_v39 = vadd.f32 %v1979_v21, %v4654_v33  ;;  %v2440_v33 = vpack.c.bf16 %v2410_v38, %v2409_v50 }
 0x238   : > { %v2351_v11 = vadd.f32 %v2251_v54, %v2077_v25 }
 0x23a   : > { %4032 = vmatmul.msk.bf16.gmra.mxu0 %vm497_vm1, %v2713_v7  ;;  %v2525_v42 = vpop.f32.mrf.mxu3 }
 0x23b   : > { %v2625_v62 = vadd.f32 %v2525_v42, %v2351_v11  ;;  %v2137_v42 = vld [vmem:[#allocation2 + $0xc4] sm:$0xff]  ;;  %v2138_v11 = vld [vmem:[#allocation2 + $0xcc] sm:$0xff] }
 0x23c   : > { %3331 = vperm.xlu0 %4310, %v4992_v26   ;;  %3381 = vperm.xlu1 %4311, %v3097_v43  }
 0x23d   : > { %v2899_v8 = vadd.f32 %v2799_v19, %v2625_v62 }
 0x23e   : > { %v1982_v56 = vpop.f32.mrf.mxu1  ;;  %3386 = vperm.xlu2 %4312, %v5085_v2  }
 0x23f   : > { %v2801_v15 = vpop.f32.mrf.mxu0  ;;  %v2253_v4 = vpop.f32.mrf.mxu2  ;;  %v5115_v43 = vmax.f32 %v2899_v8, 0.0 }
 0x240   : > { %v2352_v17 = vadd.f32 %v2253_v4, %v2078_v39 }
 0x241   : > { %3970 = vmatmul.msk.bf16.gmra.mxu1 %vm497_vm1, %v2165_v3  ;;  %5701 = vst [vmem:[#allocation14_spill] sm:$0xff] %v5115_v43 }
 0x242   : > { %v2527_v14 = vpop.f32.mrf.mxu3 }
 0x243   : > { %v2626_v5 = vadd.f32 %v2527_v14, %v2352_v17  ;;  %v2167_v17 = vpack.c.bf16 %v2138_v11, %v2137_v42 }
 0x244   : > { %3991 = vmatmul.msk.bf16.gmra.mxu2 %vm497_vm1, %v2166_v59  ;;  %3346 = vperm.xlu0 %4310, %v5018_v48   ;;  %v2079_v48 = vadd.f32 %v1982_v56, %v4659_v52  ;;  %v2411_v52 = vld [vmem:[#allocation2 + $0xc5] sm:$0xff]  ;;  %v2412_v56 = vld [vmem:[#allocation2 + $0xcd] sm:$0xff] }
 0x245   : > { %v2900_v26 = vadd.f32 %v2801_v15, %v2626_v5  ;;  %v2441_v8 = vpack.c.bf16 %v2412_v56, %v2411_v52  ;;  %v2685_v5 = vld [vmem:[#allocation2 + $0xc6] sm:$0xff]  ;;  %v2687_v56 = vld [vmem:[#allocation2 + $0xd6] sm:$0xff] }
 0x246   : > { %v1984_v7 = vpop.f32.mrf.mxu1 }
 0x247   : > { %v5117_v21 = vmax.f32 %v2900_v26, 0.0  ;;  %v2804_v3 = vpop.f32.mrf.mxu0  ;;  %4012 = vmatmul.msk.bf16.gmra.mxu3 %vm497_vm1, %v2440_v33  ;;  %v2256_v19 = vpop.f32.mrf.mxu2  ;;  %v2080_v28 = vadd.f32 %v1984_v7, %v4664_v29  ;;  %v2686_v29 = vld [vmem:[#allocation2 + $0xce] sm:$0xff] }
 0x248   : > { %v2353_v25 = vadd.f32 %v2256_v19, %v2079_v48  ;;  %v2715_v2 = vpack.c.bf16 %v2686_v29, %v2685_v5 }
 0x249   : > { %5702 = vst [vmem:[#allocation15_spill] sm:$0xff] %v5117_v21  ;;  %v4139_v54 = vpack.c.bf16 %v5117_v21, %v5115_v43 }
 0x24a   : > { %4033 = vmatmul.msk.bf16.gmra.mxu0 %vm497_vm1, %v2714_v49  ;;  %v2530_v1 = vpop.f32.mrf.mxu3 }
 0x24b   : > { %4140 = vst [vmem:[%s5123_s14] sm:$0xff] %v4139_v54   ;;  %v2627_v39 = vadd.f32 %v2530_v1, %v2353_v25  ;;  %v2139_v54 = vld [vmem:[#allocation2 + $0xd4] sm:$0xff] }
 0x24c   : > { %3361 = vperm.xlu0 %4310, %v5043_v46  }
 0x24d   : > { %v2901_v38 = vadd.f32 %v2804_v3, %v2627_v39 }
 0x24e   : > { %v1987_v9 = vpop.f32.mrf.mxu1 }
 0x24f   : > { %v2806_v62 = vpop.f32.mrf.mxu0  ;;  %v2258_v15 = vpop.f32.mrf.mxu2  ;;  %v5136_v57 = vmax.f32 %v2901_v38, 0.0  ;;  %v2081_v7 = vadd.f32 %v1987_v9, %v4669_v51 }
 0x250   : > { %v2354_v4 = vadd.f32 %v2258_v15, %v2080_v28  ;;  %v2414_v15 = vld [vmem:[#allocation2 + $0xdd] sm:$0xff] }
 0x251   : > { %3971 = vmatmul.msk.bf16.gmra.mxu1 %vm497_vm1, %v2166_v59 }
 0x252   : > { %v2532_v50 = vpop.f32.mrf.mxu3 }
 0x253   : > { %v2628_v14 = vadd.f32 %v2532_v50, %v2354_v4  ;;  %v2688_v50 = vld [vmem:[#allocation2 + $0xde] sm:$0xff] }
 0x254   : > { %3992 = vmatmul.msk.bf16.gmra.mxu2 %vm497_vm1, %v2167_v17  ;;  %3376 = vperm.xlu0 %4310, %v5070_v18   ;;  %v2140_v18 = vld [vmem:[#allocation2 + $0xdc] sm:$0xff]  ;;  %v2716_v38 = vpack.c.bf16 %v2688_v50, %v2687_v56 }
 0x255   : > { %v2902_v46 = vadd.f32 %v2806_v62, %v2628_v14  ;;  %v2168_v39 = vpack.c.bf16 %v2140_v18, %v2139_v54  ;;  %v2413_v62 = vld [vmem:[#allocation2 + $0xd5] sm:$0xff] }
 0x256   : > { %v1989_v33 = vpop.f32.mrf.mxu1  ;;  %v2442_v52 = vpack.c.bf16 %v2414_v15, %v2413_v62  ;;  %v2689_v15 = vld [vmem:[#allocation2 + $0xe6] sm:$0xff] }
 0x257   : > { %v5138_v35 = vmax.f32 %v2902_v46, 0.0  ;;  %v2809_v26 = vpop.f32.mrf.mxu0  ;;  %4013 = vmatmul.msk.bf16.gmra.mxu3 %vm497_vm1, %v2441_v8  ;;  %v2261_v59 = vpop.f32.mrf.mxu2  ;;  %v2082_v48 = vadd.f32 %v1989_v33, %v4674_v22 }
 0x258   : > { %v2355_v19 = vadd.f32 %v2261_v59, %v2081_v7  ;;  %v2141_v59 = vld [vmem:[#allocation2 + $0xe4] sm:$0xff] }
 0x259   : > { %v4144_v49 = vpack.c.bf16 %v5138_v35, %v5136_v57 }
 0x25a   : > { %4034 = vmatmul.msk.bf16.gmra.mxu0 %vm497_vm1, %v2715_v2  ;;  %v2535_v3 = vpop.f32.mrf.mxu3 }
 0x25b   : > { %4256 = vst [vmem:[%s5123_s14 + $0x8] sm:$0xff] %v4144_v49   ;;  %v2629_v25 = vadd.f32 %v2535_v3, %v2355_v19  ;;  %v2142_v49 = vld [vmem:[#allocation2 + $0xec] sm:$0xff] }
 0x25d   : > { %v2903_v9 = vadd.f32 %v2809_v26, %v2629_v25  ;;  %v2169_v25 = vpack.c.bf16 %v2142_v49, %v2141_v59 }
 0x25e   : > { %v1992_v1 = vpop.f32.mrf.mxu1 }
 0x25f   : > { %v2811_v42 = vpop.f32.mrf.mxu0  ;;  %v2263_v11 = vpop.f32.mrf.mxu2  ;;  %v5149_v8 = vmax.f32 %v2903_v9, 0.0  ;;  %v2083_v2 = vadd.f32 %v1992_v1, %v4679_v47 }
 0x260   : > { %v2356_v28 = vadd.f32 %v2263_v11, %v2082_v48  ;;  %v2416_v11 = vld [vmem:[#allocation2 + $0xed] sm:$0xff] }
 0x261   : > { %3972 = vmatmul.msk.bf16.gmra.mxu1 %vm497_vm1, %v2167_v17 }
 0x262   : > { %v2537_v51 = vpop.f32.mrf.mxu3 }
 0x263   : > { %v2630_v4 = vadd.f32 %v2537_v51, %v2356_v28  ;;  %v2690_v51 = vld [vmem:[#allocation2 + $0xee] sm:$0xff] }
 0x264   : > { %3993 = vmatmul.msk.bf16.gmra.mxu2 %vm497_vm1, %v2168_v39  ;;  %v2717_v9 = vpack.c.bf16 %v2690_v51, %v2689_v15 }
 0x265   : > { %v2904_v22 = vadd.f32 %v2811_v42, %v2630_v4  ;;  %v2415_v42 = vld [vmem:[#allocation2 + $0xe5] sm:$0xff] }
 0x266   : > { %v1994_v14 = vpop.f32.mrf.mxu1  ;;  %v2443_v62 = vpack.c.bf16 %v2416_v11, %v2415_v42  ;;  %v2691_v11 = vld [vmem:[#allocation2 + $0xf6] sm:$0xff] }
 0x267   : > { %v5151_v5 = vmax.f32 %v2904_v22, 0.0  ;;  %v2814_v29 = vpop.f32.mrf.mxu0  ;;  %4014 = vmatmul.msk.bf16.gmra.mxu3 %vm497_vm1, %v2442_v52  ;;  %v2266_v17 = vpop.f32.mrf.mxu2  ;;  %v2084_v7 = vadd.f32 %v1994_v14, %v4684_v20 }
 0x268   : > { %v2357_v26 = vadd.f32 %v2266_v17, %v2083_v2  ;;  %v2143_v17 = vld [vmem:[#allocation2 + $0xf4] sm:$0xff] }
 0x269   : > { %v4149_v46 = vpack.c.bf16 %v5151_v5, %v5149_v8 }
 0x26a   : > { %4035 = vmatmul.msk.bf16.gmra.mxu0 %vm497_vm1, %v2716_v38  ;;  %v2540_v33 = vpop.f32.mrf.mxu3 }
 0x26b   : > { %4257 = vst [vmem:[%s5123_s14 + $0x10] sm:$0xff] %v4149_v46   ;;  %v2631_v19 = vadd.f32 %v2540_v33, %v2357_v26  ;;  %v2144_v46 = vld [vmem:[#allocation2 + $0xfc] sm:$0xff] }
 0x26d   : > { %v2905_v1 = vadd.f32 %v2814_v29, %v2631_v19  ;;  %v2170_v19 = vpack.c.bf16 %v2144_v46, %v2143_v17 }
 0x26e   : > { %v1997_v3 = vpop.f32.mrf.mxu1 }
 0x26f   : > { %v2816_v54 = vpop.f32.mrf.mxu0  ;;  %v2268_v18 = vpop.f32.mrf.mxu2  ;;  %v5162_v52 = vmax.f32 %v2905_v1, 0.0  ;;  %v2085_v38 = vadd.f32 %v1997_v3, %v4689_v45 }
 0x270   : > { %v2358_v48 = vadd.f32 %v2268_v18, %v2084_v7  ;;  %v2418_v18 = vld [vmem:[#allocation2 + $0xfd] sm:$0xff] }
 0x271   : > { %3973 = vmatmul.msk.bf16.gmra.mxu1 %vm497_vm1, %v2168_v39 }
 0x272   : > { %v2542_v47 = vpop.f32.mrf.mxu3 }
 0x273   : > { %v2632_v28 = vadd.f32 %v2542_v47, %v2358_v48  ;;  %v2692_v47 = vld [vmem:[#allocation2 + $0xfe] sm:$0xff] }
 0x274   : > { %3994 = vmatmul.msk.bf16.gmra.mxu2 %vm497_vm1, %v2169_v25  ;;  %v2718_v1 = vpack.c.bf16 %v2692_v47, %v2691_v11 }
 0x275   : > { %v2906_v20 = vadd.f32 %v2816_v54, %v2632_v28  ;;  %v2417_v54 = vld [vmem:[#allocation2 + $0xf5] sm:$0xff] }
 0x276   : > { %v1999_v4 = vpop.f32.mrf.mxu1  ;;  %v2444_v42 = vpack.c.bf16 %v2418_v18, %v2417_v54  ;;  %v2693_v18 = vld [vmem:[#allocation2 + $0x106] sm:$0xff] }
 0x277   : > { %v5164_v56 = vmax.f32 %v2906_v20, 0.0  ;;  %v2819_v50 = vpop.f32.mrf.mxu0  ;;  %4015 = vmatmul.msk.bf16.gmra.mxu3 %vm497_vm1, %v2443_v62  ;;  %v2271_v39 = vpop.f32.mrf.mxu2  ;;  %v2086_v2 = vadd.f32 %v1999_v4, %v4693_v0 }
 0x278   : > { %v2359_v29 = vadd.f32 %v2271_v39, %v2085_v38  ;;  %v2145_v39 = vld [vmem:[#allocation2 + $0x104] sm:$0xff] }
 0x279   : > { %v4154_v22 = vpack.c.bf16 %v5164_v56, %v5162_v52 }
 0x27a   : > { %4036 = vmatmul.msk.bf16.gmra.mxu0 %vm497_vm1, %v2717_v9  ;;  %v2545_v14 = vpop.f32.mrf.mxu3 }
 0x27b   : > { %4258 = vst [vmem:[%s5123_s14 + $0x18] sm:$0xff] %v4154_v22   ;;  %v2633_v26 = vadd.f32 %v2545_v14, %v2359_v29  ;;  %v2146_v22 = vld [vmem:[#allocation2 + $0x10c] sm:$0xff] }
 0x27d   : > { %v2907_v3 = vadd.f32 %v2819_v50, %v2633_v26  ;;  %v2171_v26 = vpack.c.bf16 %v2146_v22, %v2145_v39 }
 0x27e   : > { %v2002_v33 = vpop.f32.mrf.mxu1 }
 0x27f   : > { %v2821_v59 = vpop.f32.mrf.mxu0  ;;  %v2273_v49 = vpop.f32.mrf.mxu2  ;;  %v5175_v62 = vmax.f32 %v2907_v3, 0.0  ;;  %v2087_v9 = vadd.f32 %v2002_v33, %v4698_v44 }
 0x280   : > { %v2360_v7 = vadd.f32 %v2273_v49, %v2086_v2  ;;  %v2420_v49 = vld [vmem:[#allocation2 + $0x10d] sm:$0xff] }
 0x281   : > { %3974 = vmatmul.msk.bf16.gmra.mxu1 %vm497_vm1, %v2169_v25 }
 0x282   : > { %v2547_v45 = vpop.f32.mrf.mxu3 }
 0x283   : > { %v2634_v48 = vadd.f32 %v2547_v45, %v2360_v7  ;;  %v2694_v45 = vld [vmem:[#allocation2 + $0x10e] sm:$0xff] }
 0x284   : > { %3995 = vmatmul.msk.bf16.gmra.mxu2 %vm497_vm1, %v2170_v19  ;;  %v2719_v3 = vpack.c.bf16 %v2694_v45, %v2693_v18 }
 0x285   : > { %v2908_v0 = vadd.f32 %v2821_v59, %v2634_v48  ;;  %v2419_v59 = vld [vmem:[#allocation2 + $0x105] sm:$0xff] }
 0x286   : > { %v2004_v28 = vpop.f32.mrf.mxu1  ;;  %v2445_v54 = vpack.c.bf16 %v2420_v49, %v2419_v59  ;;  %v2695_v49 = vld [vmem:[#allocation2 + $0x116] sm:$0xff] }
 0x287   : > { %v5177_v15 = vmax.f32 %v2908_v0, 0.0  ;;  %v2824_v51 = vpop.f32.mrf.mxu0  ;;  %4016 = vmatmul.msk.bf16.gmra.mxu3 %vm497_vm1, %v2444_v42  ;;  %v2276_v25 = vpop.f32.mrf.mxu2  ;;  %v2088_v38 = vadd.f32 %v2004_v28, %v4703_v10 }
 0x288   : > { %v2361_v50 = vadd.f32 %v2276_v25, %v2087_v9  ;;  %v2147_v25 = vld [vmem:[#allocation2 + $0x114] sm:$0xff] }
 0x289   : > { %5703 = vst [vmem:[#allocation16_spill] sm:$0xff] %v5177_v15  ;;  %v4159_v20 = vpack.c.bf16 %v5177_v15, %v5175_v62 }
 0x28a   : > { %4037 = vmatmul.msk.bf16.gmra.mxu0 %vm497_vm1, %v2718_v1  ;;  %v2550_v4 = vpop.f32.mrf.mxu3 }
 0x28b   : > { %4259 = vst [vmem:[%s5123_s14 + $0x20] sm:$0xff] %v4159_v20   ;;  %v2635_v29 = vadd.f32 %v2550_v4, %v2361_v50  ;;  %v2148_v20 = vld [vmem:[#allocation2 + $0x11c] sm:$0xff] }
 0x28d   : > { %v2909_v33 = vadd.f32 %v2824_v51, %v2635_v29  ;;  %v2172_v29 = vpack.c.bf16 %v2148_v20, %v2147_v25 }
 0x28e   : > { %v2007_v14 = vpop.f32.mrf.mxu1 }
 0x28f   : > { %v2826_v17 = vpop.f32.mrf.mxu0  ;;  %v2278_v46 = vpop.f32.mrf.mxu2  ;;  %v5188_v42 = vmax.f32 %v2909_v33, 0.0  ;;  %v2089_v1 = vadd.f32 %v2007_v14, %v4708_v31 }
 0x290   : > { %v2362_v2 = vadd.f32 %v2278_v46, %v2088_v38  ;;  %v2422_v46 = vld [vmem:[#allocation2 + $0x11d] sm:$0xff] }
 0x291   : > { %3975 = vmatmul.msk.bf16.gmra.mxu1 %vm497_vm1, %v2170_v19 }
 0x292   : > { %v2552_v44 = vpop.f32.mrf.mxu3 }
 0x293   : > { %v2636_v7 = vadd.f32 %v2552_v44, %v2362_v2  ;;  %v2696_v44 = vld [vmem:[#allocation2 + $0x11e] sm:$0xff] }
 0x294   : > { %3996 = vmatmul.msk.bf16.gmra.mxu2 %vm497_vm1, %v2171_v26  ;;  %v2720_v33 = vpack.c.bf16 %v2696_v44, %v2695_v49 }
 0x295   : > { %v2910_v10 = vadd.f32 %v2826_v17, %v2636_v7  ;;  %v2421_v17 = vld [vmem:[#allocation2 + $0x115] sm:$0xff] }
 0x296   : > { %v2009_v48 = vpop.f32.mrf.mxu1  ;;  %v2446_v59 = vpack.c.bf16 %v2422_v46, %v2421_v17  ;;  %v2697_v46 = vld [vmem:[#allocation2 + $0x126] sm:$0xff] }
 0x297   : > { %v5190_v11 = vmax.f32 %v2910_v10, 0.0  ;;  %v2829_v47 = vpop.f32.mrf.mxu0  ;;  %4017 = vmatmul.msk.bf16.gmra.mxu3 %vm497_vm1, %v2445_v54  ;;  %v2281_v19 = vpop.f32.mrf.mxu2  ;;  %v2090_v9 = vadd.f32 %v2009_v48, %v4713_v34 }
 0x298   : > { %v2363_v51 = vadd.f32 %v2281_v19, %v2089_v1  ;;  %v2149_v19 = vld [vmem:[#allocation2 + $0x124] sm:$0xff] }
 0x299   : > { %v4164_v0 = vpack.c.bf16 %v5190_v11, %v5188_v42 }
 0x29a   : > { %4038 = vmatmul.msk.bf16.gmra.mxu0 %vm497_vm1, %v2719_v3  ;;  %v2555_v28 = vpop.f32.mrf.mxu3 }
 0x29b   : > { %4260 = vst [vmem:[%s5123_s14 + $0x28] sm:$0xff] %v4164_v0   ;;  %v2637_v50 = vadd.f32 %v2555_v28, %v2363_v51  ;;  %v2150_v0 = vld [vmem:[#allocation2 + $0x12c] sm:$0xff] }
 0x29d   : > { %v2911_v14 = vadd.f32 %v2829_v47, %v2637_v50  ;;  %v2173_v50 = vpack.c.bf16 %v2150_v0, %v2149_v19  ;;  %v2152_v19 = vld [vmem:[#allocation2 + $0x13c] sm:$0xff] }
 0x29e   : > { %v2012_v4 = vpop.f32.mrf.mxu1 }
 0x29f   : > { %v2831_v39 = vpop.f32.mrf.mxu0  ;;  %v2283_v22 = vpop.f32.mrf.mxu2  ;;  %v5201_v54 = vmax.f32 %v2911_v14, 0.0  ;;  %v2091_v3 = vadd.f32 %v2012_v4, %v4718_v63 }
 0x2a0   : > { %v2364_v38 = vadd.f32 %v2283_v22, %v2090_v9  ;;  %v2424_v22 = vld [vmem:[#allocation2 + $0x12d] sm:$0xff] }
 0x2a1   : > { %3976 = vmatmul.msk.bf16.gmra.mxu1 %vm497_vm1, %v2171_v26 }
 0x2a2   : > { %v2557_v31 = vpop.f32.mrf.mxu3 }
 0x2a3   : > { %v2638_v2 = vadd.f32 %v2557_v31, %v2364_v38  ;;  %v2698_v31 = vld [vmem:[#allocation2 + $0x12e] sm:$0xff] }
 0x2a4   : > { %3997 = vmatmul.msk.bf16.gmra.mxu2 %vm497_vm1, %v2172_v29  ;;  %v2721_v14 = vpack.c.bf16 %v2698_v31, %v2697_v46  ;;  %v5231_v31 = vpop.permute.xlu0 %3191 }
 0x2a5   : > { %v2912_v34 = vadd.f32 %v2831_v39, %v2638_v2  ;;  %v2423_v39 = vld [vmem:[#allocation2 + $0x125] sm:$0xff]  ;;  %5704 = vst [vmem:[#allocation17_spill] sm:$0xff] %v5231_v31 }
 0x2a6   : > { %v2014_v7 = vpop.f32.mrf.mxu1  ;;  %v2447_v17 = vpack.c.bf16 %v2424_v22, %v2423_v39  ;;  %v2426_v39 = vld [vmem:[#allocation2 + $0x13d] sm:$0xff] }
 0x2a7   : > { %v5203_v18 = vmax.f32 %v2912_v34, 0.0  ;;  %v2834_v45 = vpop.f32.mrf.mxu0  ;;  %4018 = vmatmul.msk.bf16.gmra.mxu3 %vm497_vm1, %v2446_v59  ;;  %v2286_v26 = vpop.f32.mrf.mxu2  ;;  %v2092_v1 = vadd.f32 %v2014_v7, %v4723_v53 }
 0x2a8   : > { %v2365_v47 = vadd.f32 %v2286_v26, %v2091_v3  ;;  %v542_v26 = vld [vmem:[%s4493_s18 + $0x10] sm:$0xf] }
 0x2a9   : > { %v4169_v10 = vpack.c.bf16 %v5203_v18, %v5201_v54 }
 0x2aa   : > { %4039 = vmatmul.msk.bf16.gmra.mxu0 %vm497_vm1, %v2720_v33  ;;  %v2560_v48 = vpop.f32.mrf.mxu3 }
 0x2ab   : > { %4261 = vst [vmem:[%s5123_s14 + $0x30] sm:$0xff] %v4169_v10   ;;  %v2639_v51 = vadd.f32 %v2560_v48, %v2365_v47  ;;  %v4315_v10 = vld [vmem:[%s4493_s18 + $0x8] sm:$0xff]   ;;  %v547_v48 = vunpack.c.l.bf16 %v542_v26  ;;  %v2151_v47 = vld [vmem:[#allocation2 + $0x134] sm:$0xff] }
 0x2ac   : > { %v4135_v3 = vunpack.c.h.bf16 %v4315_v10  ;;  %v2153_v26 = vld [vmem:[#allocation2 + $0x144] sm:$0xff]  ;;  %v2154_v10 = vld [vmem:[#allocation2 + $0x14c] sm:$0xff] }
 0x2ad   : > { %v2913_v4 = vadd.f32 %v2834_v45, %v2639_v51  ;;  %552 = vst.msk [vmem:[#allocation2 + $0x160] sm:$0xff] %vm497_vm1, %v547_v48 }
 0x2ae   : > { %v2017_v28 = vpop.f32.mrf.mxu1  ;;  %551 = vst.msk [vmem:[#allocation2 + $0x158] sm:$0xff] %vm497_vm1, %v4135_v3  ;;  %v5243_v3 = vpop.permute.xlu0 %3256 }
 0x2af   : > { %v2836_v25 = vpop.f32.mrf.mxu0  ;;  %v2288_v20 = vpop.f32.mrf.mxu2  ;;  %v5214_v59 = vmax.f32 %v2913_v4, 0.0  ;;  %v2093_v33 = vadd.f32 %v2017_v28, %v4729_v13  ;;  %v2174_v28 = vpack.c.bf16 %v2152_v19, %v2151_v47 }
 0x2b0   : > { %v2366_v9 = vadd.f32 %v2288_v20, %v2092_v1 }
 0x2b1   : > { %3977 = vmatmul.msk.bf16.gmra.mxu1 %vm497_vm1, %v2172_v29 }
 0x2b2   : > { %v2562_v63 = vpop.f32.mrf.mxu3 }
 0x2b3   : > { %v2640_v38 = vadd.f32 %v2562_v63, %v2366_v9  ;;  %v2425_v9 = vld [vmem:[#allocation2 + $0x135] sm:$0xff] }
 0x2b4   : > { %3998 = vmatmul.msk.bf16.gmra.mxu2 %vm497_vm1, %v2173_v50 }
 0x2b5   : > { %v2914_v53 = vadd.f32 %v2836_v25, %v2640_v38  ;;  %v2448_v38 = vpack.c.bf16 %v2426_v39, %v2425_v9  ;;  %v2428_v9 = vld [vmem:[#allocation2 + $0x14d] sm:$0xff] }
 0x2b6   : > { %v2019_v2 = vpop.f32.mrf.mxu1 }
 0x2b7   : > { %v5216_v49 = vmax.f32 %v2914_v53, 0.0  ;;  %v2839_v44 = vpop.f32.mrf.mxu0  ;;  %4019 = vmatmul.msk.bf16.gmra.mxu3 %vm497_vm1, %v2447_v17  ;;  %v2291_v29 = vpop.f32.mrf.mxu2  ;;  %v2094_v0 = vadd.f32 %v2019_v2, %v4735_v37  ;;  %v2699_v17 = vld [vmem:[#allocation2 + $0x136] sm:$0xff]  ;;  %v2700_v37 = vld [vmem:[#allocation2 + $0x13e] sm:$0xff] }
 0x2b8   : > { %v2367_v45 = vadd.f32 %v2291_v29, %v2093_v33  ;;  %v2722_v53 = vpack.c.bf16 %v2700_v37, %v2699_v17 }
 0x2b9   : > { %v4174_v34 = vpack.c.bf16 %v5216_v49, %v5214_v59 }
 0x2ba   : > { %4040 = vmatmul.msk.bf16.gmra.mxu0 %vm497_vm1, %v2721_v14  ;;  %v2565_v7 = vpop.f32.mrf.mxu3 }
 0x2bb   : > { %4262 = vst [vmem:[%s5123_s14 + $0x38] sm:$0xff] %v4174_v34   ;;  %v2641_v51 = vadd.f32 %v2565_v7, %v2367_v45 }
 0x2bd   : > { %v2915_v63 = vadd.f32 %v2839_v44, %v2641_v51 }
 0x2be   : > { %v2022_v1 = vpop.f32.mrf.mxu1 }
 0x2bf   : > { %v2841_v25 = vpop.f32.mrf.mxu0  ;;  %v2293_v20 = vpop.f32.mrf.mxu2  ;;  %v5233_v2 = vmax.f32 %v2915_v63, 0.0  ;;  %v2095_v33 = vadd.f32 %v2022_v1, %v4740_v30  ;;  %v2701_v63 = vld [vmem:[#allocation2 + $0x146] sm:$0xff] }
 0x2c0   : > { %v2368_v13 = vadd.f32 %v2293_v20, %v2094_v0  ;;  %v2175_v20 = vpack.c.bf16 %v2154_v10, %v2153_v26 }
 0x2c1   : > { %3978 = vmatmul.msk.bf16.gmra.mxu1 %vm497_vm1, %v2173_v50 }
 0x2c2   : > { %v2567_v22 = vpop.f32.mrf.mxu3 }
 0x2c3   : > { %v2642_v4 = vadd.f32 %v2567_v22, %v2368_v13  ;;  %v2427_v13 = vld [vmem:[#allocation2 + $0x145] sm:$0xff] }
 0x2c4   : > { %3999 = vmatmul.msk.bf16.gmra.mxu2 %vm497_vm1, %v2174_v28  ;;  %v2449_v22 = vpack.c.bf16 %v2428_v9, %v2427_v13  ;;  %v2429_v13 = vld [vmem:[#allocation2 + $0x155] sm:$0xff]  ;;  %v2430_v9 = vld [vmem:[#allocation2 + $0x15d] sm:$0xff] }
 0x2c5   : > { %v2916_v46 = vadd.f32 %v2841_v25, %v2642_v4  ;;  %v2702_v4 = vld [vmem:[#allocation2 + $0x14e] sm:$0xff] }
 0x2c6   : > { %v2024_v14 = vpop.f32.mrf.mxu1 }
 0x2c7   : > { %v5235_v29 = vmax.f32 %v2916_v46, 0.0  ;;  %v2844_v34 = vpop.f32.mrf.mxu0  ;;  %4020 = vmatmul.msk.bf16.gmra.mxu3 %vm497_vm1, %v2448_v38  ;;  %v2296_v50 = vpop.f32.mrf.mxu2  ;;  %v2096_v48 = vadd.f32 %v2024_v14, %v4745_v40  ;;  %v2723_v38 = vpack.c.bf16 %v2702_v4, %v2701_v63  ;;  %v2704_v63 = vld [vmem:[#allocation2 + $0x15e] sm:$0xff] }
 0x2c8   : > { %v2369_v45 = vadd.f32 %v2296_v50, %v2095_v33  ;;  %v5253_v14 = vpop.permute.xlu0 %3271 }
 0x2c9   : > { %v4179_v44 = vpack.c.bf16 %v5235_v29, %v5233_v2  ;;  %5705 = vst [vmem:[#allocation18_spill] sm:$0xff] %v5253_v14 }
 0x2ca   : > { %4041 = vmatmul.msk.bf16.gmra.mxu0 %vm497_vm1, %v2722_v53  ;;  %v2570_v7 = vpop.f32.mrf.mxu3 }
 0x2cb   : > { %4263 = vst [vmem:[%s5123_s14 + $0x40] sm:$0xff] %v4179_v44   ;;  %v2643_v19 = vadd.f32 %v2570_v7, %v2369_v45  ;;  %v2155_v7 = vld [vmem:[#allocation2 + $0x154] sm:$0xff]  ;;  %v2156_v45 = vld [vmem:[#allocation2 + $0x15c] sm:$0xff] }
 0x2cd   : > { %v2917_v1 = vadd.f32 %v2844_v34, %v2643_v19 }
 0x2ce   : > { %v2027_v47 = vpop.f32.mrf.mxu1 }
 0x2cf   : > { %v2846_v0 = vpop.f32.mrf.mxu0  ;;  %v2298_v51 = vpop.f32.mrf.mxu2  ;;  %v5248_v37 = vmax.f32 %v2917_v1, 0.0  ;;  %v2097_v50 = vadd.f32 %v2027_v47, %v4750_v12 }
 0x2d0   : > { %v2370_v25 = vadd.f32 %v2298_v51, %v2096_v48  ;;  %v5262_v12 = vpop.permute.xlu0 %3286 }
 0x2d1   : > { %3979 = vmatmul.msk.bf16.gmra.mxu1 %vm497_vm1, %v2174_v28 }
 0x2d2   : > { %v2572_v30 = vpop.f32.mrf.mxu3 }
 0x2d3   : > { %v2644_v39 = vadd.f32 %v2572_v30, %v2370_v25  ;;  %v2176_v25 = vpack.c.bf16 %v2156_v45, %v2155_v7 }
 0x2d4   : > { %4000 = vmatmul.msk.bf16.gmra.mxu2 %vm497_vm1, %v2175_v20 }
 0x2d5   : > { %v2918_v40 = vadd.f32 %v2846_v0, %v2644_v39  ;;  %v2450_v39 = vpack.c.bf16 %v2430_v9, %v2429_v13 }
 0x2d6   : > { %v2029_v17 = vpop.f32.mrf.mxu1 }
 0x2d7   : > { %v5250_v46 = vmax.f32 %v2918_v40, 0.0  ;;  %v2849_v53 = vpop.f32.mrf.mxu0  ;;  %4021 = vmatmul.msk.bf16.gmra.mxu3 %vm497_vm1, %v2449_v22  ;;  %v2301_v28 = vpop.f32.mrf.mxu2  ;;  %v2098_v26 = vadd.f32 %v2029_v17, %v4755_v36  ;;  %v2703_v22 = vld [vmem:[#allocation2 + $0x156] sm:$0xff] }
 0x2d8   : > { %v2371_v33 = vadd.f32 %v2301_v28, %v2097_v50  ;;  %v2724_v4 = vpack.c.bf16 %v2704_v63, %v2703_v22  ;;  %v5279_v45 = vpop.permute.xlu0 %3301 }
 0x2d9   : > { %v4184_v34 = vpack.c.bf16 %v5250_v46, %v5248_v37  ;;  %5707 = vst [vmem:[#allocation20_spill] sm:$0xff] %v5279_v45 }
 0x2da   : > { %4042 = vmatmul.msk.bf16.gmra.mxu0 %vm497_vm1, %v2723_v38  ;;  %v2575_v44 = vpop.f32.mrf.mxu3 }
 0x2db   : > { %4264 = vst [vmem:[%s5123_s14 + $0x48] sm:$0xff] %v4184_v34   ;;  %v2645_v48 = vadd.f32 %v2575_v44, %v2371_v33  ;;  %v5270_v34 = vpop.permute.xlu1 %3196  ;;  %v5275_v44 = vpop.permute.xlu2 %3206 }
 0x2dc   : > { %5706 = vst [vmem:[#allocation19_spill] sm:$0xff] %v5270_v34 }
 0x2dd   : > { %v2919_v30 = vadd.f32 %v2849_v53, %v2645_v48 }
 0x2de   : > { %v2032_v10 = vpop.f32.mrf.mxu1 }
 0x2df   : > { %v2851_v19 = vpop.f32.mrf.mxu0  ;;  %v2303_v0 = vpop.f32.mrf.mxu2  ;;  %v5265_v38 = vmax.f32 %v2919_v30, 0.0  ;;  %v2099_v50 = vadd.f32 %v2032_v10, %v4760_v55 }
 0x2e0   : > { %v2372_v51 = vadd.f32 %v2303_v0, %v2098_v26 }
 0x2e1   : > { %3980 = vmatmul.msk.bf16.gmra.mxu1 %vm497_vm1, %v2175_v20 }
 0x2e2   : > { %v2577_v47 = vpop.f32.mrf.mxu3 }
 0x2e3   : > { %v2646_v1 = vadd.f32 %v2577_v47, %v2372_v51  ;;  %v5282_v13 = vpop.permute.xlu1 %3201  ;;  %v5284_v47 = vpop.permute.xlu2 %3211 }
 0x2e4   : > { %4001 = vmatmul.msk.bf16.gmra.mxu2 %vm497_vm1, %v2176_v25  ;;  %5708 = vst [vmem:[#allocation21_spill] sm:$0xff] %v5282_v13 }
 0x2e5   : > { %v2920_v36 = vadd.f32 %v2851_v19, %v2646_v1  ;;  %v5286_v1 = vpop.permute.xlu0 %3316 }
 0x2e6   : > { %v2034_v40 = vpop.f32.mrf.mxu1  ;;  %5709 = vst [vmem:[#allocation22_spill] sm:$0xff] %v5286_v1 }
 0x2e7   : > { %v5267_v17 = vmax.f32 %v2920_v36, 0.0  ;;  %v2854_v28 = vpop.f32.mrf.mxu0  ;;  %4022 = vmatmul.msk.bf16.gmra.mxu3 %vm497_vm1, %v2450_v39  ;;  %v2306_v20 = vpop.f32.mrf.mxu2  ;;  %v2100_v26 = vadd.f32 %v2034_v40, %v4771_v41 }
 0x2e8   : > { %v2373_v7 = vadd.f32 %v2306_v20, %v2099_v50 }
 0x2e9   : > { %v4189_v53 = vpack.c.bf16 %v5267_v17, %v5265_v38 }
 0x2ea   : > { %4043 = vmatmul.msk.bf16.gmra.mxu0 %vm497_vm1, %v2724_v4  ;;  %v2580_v33 = vpop.f32.mrf.mxu3 }
 0x2eb   : > { %4265 = vst [vmem:[%s5123_s14 + $0x50] sm:$0xff] %v4189_v53   ;;  %v2647_v19 = vadd.f32 %v2580_v33, %v2373_v7  ;;  %v5295_v20 = vpop.permute.xlu1 %3216  ;;  %v5298_v50 = vpop.permute.xlu2 %3221 }
 0x2ec   : > { %5710 = vst [vmem:[#allocation23_spill] sm:$0xff] %v5298_v50 }
 0x2ed   : > { %v2921_v10 = vadd.f32 %v2854_v28, %v2647_v19 }
 0x2ee   : > { %v2037_v48 = vpop.f32.mrf.mxu1 }
 0x2ef   : > { %v2856_v0 = vpop.f32.mrf.mxu0  ;;  %v2308_v51 = vpop.f32.mrf.mxu2  ;;  %v5288_v22 = vmax.f32 %v2921_v10, 0.0  ;;  %v2101_v40 = vadd.f32 %v2037_v48, %v4779_v60 }
 0x2f0   : > { %v2374_v25 = vadd.f32 %v2308_v51, %v2100_v26 }
 0x2f2   : > { %v2582_v55 = vpop.f32.mrf.mxu3 }
 0x2f3   : > { %v2648_v9 = vadd.f32 %v2582_v55, %v2374_v25  ;;  %v3180_v25 = vpop.xlane.xlu0 %3179  ;;  %v5301_v55 = vpop.permute.xlu1 %3226 }
 0x2f4   : > { %5711 = vst [vmem:[#allocation24_spill] sm:$0xff] %v5301_v55  ;;  %v3181_v10 = vrot.slane %v3180_v25, 4 }
 0x2f5   : > { %v2922_v30 = vadd.f32 %v2856_v0, %v2648_v9 }
 0x2f6   : > { %v2039_v39 = vpop.f32.mrf.mxu1 }
 0x2f7   : > { %v5290_v41 = vmax.f32 %v2922_v30, 0.0  ;;  %v2859_v63 = vpop.f32.mrf.mxu0  ;;  %v2311_v36 = vpop.f32.mrf.mxu2  ;;  %v2102_v33 = vadd.f32 %v2039_v39, %v4787_v32 }
 0x2f8   : > { %v2375_v53 = vadd.f32 %v2311_v36, %v2101_v40  ;;  %v5303_v30 = vpop.permute.xlu2 %3231 }
 0x2f9   : > { %v4194_v4 = vpack.c.bf16 %v5290_v41, %v5288_v22  ;;  %5712 = vst [vmem:[#allocation25_spill] sm:$0xff] %v5303_v30 }
 0x2fa   : > { %v2585_v28 = vpop.f32.mrf.mxu3 }
 0x2fb   : > { %4266 = vst [vmem:[%s5123_s14 + $0x58] sm:$0xff] %v4194_v4   ;;  %v2649_v26 = vadd.f32 %v2585_v28, %v2375_v53  ;;  %v3182_v4 = vadd.f32 %v3181_v10, %v3180_v25 }
 0x2fd   : > { %v2923_v60 = vadd.f32 %v2859_v63, %v2649_v26  ;;  %v3183_v63 = vrot.slane %v3182_v4, 2 }
 0x2fe   : > { %v2042_v7 = vpop.f32.mrf.mxu1 }
 0x2ff   : > { %v2861_v19 = vpop.f32.mrf.mxu0  ;;  %v2313_v0 = vpop.f32.mrf.mxu2  ;;  %v5305_v27 = vmax.f32 %v2923_v60, 0.0 }
 0x300   : > { %v2376_v51 = vadd.f32 %v2313_v0, %v2102_v33  ;;  %v2103_v33 = vadd.f32 %v2042_v7, %v4792_v23  ;;  %v5312_v0 = vpop.permute.xlu1 %3236 }
 0x301   : > { %5713 = vst [vmem:[#allocation26_spill] sm:$0xff] %v5305_v27 }
 0x302   : > { %v2587_v9 = vpop.f32.mrf.mxu3  ;;  %5715 = vst [vmem:[#allocation28_spill] sm:$0xff] %v5312_v0 }
 0x303   : > { %v2650_v48 = vadd.f32 %v2587_v9, %v2376_v51  ;;  %v3184_v9 = vadd.f32 %v3183_v63, %v3182_v4 }
 0x305   : > { %v2924_v36 = vadd.f32 %v2861_v19, %v2650_v48  ;;  %v5315_v19 = vpop.permute.xlu2 %3241  ;;  %v3185_v58 = vrot.slane %v3184_v9, 1 }
 0x306   : > { %v2044_v40 = vpop.f32.mrf.mxu1  ;;  %5716 = vst [vmem:[#allocation29_spill] sm:$0xff] %v5315_v19 }
 0x307   : > { %v5307_v32 = vmax.f32 %v2924_v36, 0.0  ;;  %v2864_v39 = vpop.f32.mrf.mxu0  ;;  %v2316_v28 = vpop.f32.mrf.mxu2  ;;  %v2104_v25 = vadd.f32 %v2044_v40, %v4800_v16  ;;  %v3186_v7 = vadd.f32 %v3185_v58, %v3184_v9 }
 0x308   : > { %v2377_v51 = vadd.f32 %v2316_v28, %v2103_v33  ;;  %v5318_v6 = vpop.permute.xlu1 %3246 }
 0x309   : > { %5714 = vst [vmem:[#allocation27_spill] sm:$0xff] %v5307_v32  ;;  %v4199_v53 = vpack.c.bf16 %v5307_v32, %v5305_v27 }
 0x30a   : > { %v2590_v26 = vpop.f32.mrf.mxu3  ;;  %4281 = vpush %v3186_v7 }
 0x30b   : > { %4267 = vst [vmem:[%s5123_s14 + $0x60] sm:$0xff] %v4199_v53   ;;  %v2651_v60 = vadd.f32 %v2590_v26, %v2377_v51  ;;  %v3390_v26 = vmul.f32 %v5270_v34, %v5117_v21 }
 0x30d   : > { %v2925_v1 = vadd.f32 %v2864_v39, %v2651_v60  ;;  %v5320_v53 = vpop.permute.xlu2 %3251  ;;  %v5717_v39 = vld [vmem:[#allocation3_spill] sm:$0xff] }
 0x30e   : > { %v2047_v10 = vpop.f32.mrf.mxu1 }
 0x30f   : > { %v2866_v48 = vpop.f32.mrf.mxu0  ;;  %v2318_v36 = vpop.f32.mrf.mxu2  ;;  %v5322_v16 = vmax.f32 %v2925_v1, 0.0  ;;  %v3391_v1 = vmul.f32 %v5282_v13, %v5136_v57 }
 0x310   : > { %v2378_v61 = vadd.f32 %v2318_v36, %v2104_v25  ;;  %v5331_v51 = vpop.permute.xlu1 %3261  ;;  %v3392_v36 = vmul.f32 %v5275_v44, %v5138_v35 }
 0x312   : > { %v2592_v23 = vpop.f32.mrf.mxu3 }
 0x313   : > { %v2652_v32 = vadd.f32 %v2592_v23, %v2378_v61  ;;  %v2105_v61 = vadd.f32 %v2047_v10, %v5717_v39  ;;  %v5719_v23 = vld [vmem:[#allocation4_spill] sm:$0xff]  ;;  %v3393_v39 = vmul.f32 %v5284_v47, %v5149_v8 }
 0x315   : > { %v2926_v28 = vadd.f32 %v2866_v48, %v2652_v32  ;;  %v3389_v32 = vmul.f32 %v5231_v31, %v5115_v43  ;;  %v5338_v60 = vpop.permute.xlu2 %3266 }
 0x316   : > { %v2049_v33 = vpop.f32.mrf.mxu1  ;;  %5718 = vst [vmem:[#allocation3_spill] sm:$0xff] %v5338_v60 }
 0x317   : > { %v5324_v4 = vmax.f32 %v2926_v28, 0.0  ;;  %v2869_v40 = vpop.f32.mrf.mxu0  ;;  %v2321_v63 = vpop.f32.mrf.mxu2  ;;  %v3429_v48 = vadd.f32 %v3390_v26, %v3389_v32  ;;  %v2106_v7 = vadd.f32 %v2049_v33, %v5719_v23  ;;  %v3395_v33 = vmul.f32 %v5298_v50, %v5162_v52 }
 0x318   : > { %v2379_v9 = vadd.f32 %v2321_v63, %v2105_v61  ;;  %v3394_v63 = vmul.f32 %v5295_v20, %v5151_v5 }
 0x319   : > { %v4204_v58 = vpack.c.bf16 %v5324_v4, %v5322_v16  ;;  %v3430_v28 = vadd.f32 %v3429_v48, %v3391_v1 }
 0x31a   : > { %v2595_v25 = vpop.f32.mrf.mxu3 }
 0x31b   : > { %4268 = vst [vmem:[%s5123_s14 + $0x68] sm:$0xff] %v4204_v58   ;;  %v2653_v34 = vadd.f32 %v2595_v25, %v2379_v9  ;;  %v3431_v13 = vadd.f32 %v3430_v28, %v3392_v36  ;;  %v5347_v58 = vpop.permute.xlu1 %3276  ;;  %v3396_v25 = vmul.f32 %v5301_v55, %v5164_v56 }
 0x31c   : > { %5720 = vst [vmem:[#allocation4_spill] sm:$0xff] %v5347_v58 }
 0x31d   : > { %v3432_v61 = vadd.f32 %v3431_v13, %v3393_v39  ;;  %v2927_v32 = vadd.f32 %v2869_v40, %v2653_v34  ;;  %v5351_v48 = vpop.permute.xlu2 %3281  ;;  %v3398_v40 = vmul.f32 %v5312_v0, %v5177_v15  ;;  %v5724_v0 = vld [vmem:[#allocation6_spill] sm:$0xff] }
 0x31e   : > { %v2052_v10 = vpop.f32.mrf.mxu1  ;;  %5721 = vst [vmem:[#allocation30_spill] sm:$0xff] %v5351_v48 }
 0x31f   : > { %v2871_v31 = vpop.f32.mrf.mxu0  ;;  %v2323_v21 = vpop.f32.mrf.mxu2  ;;  %v3433_v23 = vadd.f32 %v3432_v61, %v3394_v63  ;;  %v5357_v28 = vmax.f32 %v2927_v32, 0.0  ;;  %v3399_v32 = vmul.f32 %v5315_v19, %v5188_v42 }
 0x320   : > { %v2380_v43 = vadd.f32 %v2323_v21, %v2106_v7  ;;  %v3397_v7 = vmul.f32 %v5303_v30, %v5175_v62 }
 0x321   : > { %v3434_v36 = vadd.f32 %v3433_v23, %v3395_v33 }
 0x322   : > { %v2597_v26 = vpop.f32.mrf.mxu3 }
 0x323   : > { %v2654_v1 = vadd.f32 %v2597_v26, %v2380_v43  ;;  %v3435_v43 = vadd.f32 %v3434_v36, %v3396_v25  ;;  %v5366_v61 = vpop.permute.xlu1 %3291  ;;  %v3400_v25 = vmul.f32 %v5318_v6, %v5190_v11 }
 0x325   : > { %v2928_v21 = vadd.f32 %v2871_v31, %v2654_v1  ;;  %v5722_v31 = vld [vmem:[#allocation5_spill] sm:$0xff]  ;;  %v3436_v1 = vadd.f32 %v3435_v43, %v3397_v7  ;;  %v5373_v36 = vpop.permute.xlu2 %3296 }
 0x326   : > { %v2054_v9 = vpop.f32.mrf.mxu1  ;;  %v2107_v26 = vadd.f32 %v2052_v10, %v5722_v31  ;;  %5723 = vst [vmem:[#allocation5_spill] sm:$0xff] %v5373_v36  ;;  %v3401_v10 = vmul.f32 %v5320_v53, %v5201_v54 }
 0x327   : > { %v5359_v13 = vmax.f32 %v2928_v21, 0.0  ;;  %v2874_v39 = vpop.f32.mrf.mxu0  ;;  %v2326_v34 = vpop.f32.mrf.mxu2  ;;  %v3437_v21 = vadd.f32 %v3436_v1, %v3398_v40  ;;  %v2108_v30 = vadd.f32 %v2054_v9, %v5724_v0 }
 0x328   : > { %v2381_v23 = vadd.f32 %v2326_v34, %v2107_v26  ;;  %v3402_v34 = vmul.f32 %v5243_v3, %v5203_v18  ;;  %v3403_v26 = vmul.f32 %v5331_v51, %v5214_v59 }
 0x329   : > { %v4209_v63 = vpack.c.bf16 %v5359_v13, %v5357_v28  ;;  %v3438_v15 = vadd.f32 %v3437_v21, %v3399_v32  ;;  %v3405_v21 = vmul.f32 %v5253_v14, %v5233_v2 }
 0x32a   : > { %v2600_v33 = vpop.f32.mrf.mxu3 }
 0x32b   : > { %4269 = vst [vmem:[%s5123_s14 + $0x70] sm:$0xff] %v4209_v63   ;;  %v2655_v31 = vadd.f32 %v2600_v33, %v2381_v23  ;;  %v3439_v19 = vadd.f32 %v3438_v15, %v3400_v25  ;;  %v5382_v9 = vpop.permute.xlu1 %3306  ;;  %v3404_v33 = vmul.f32 %v5338_v60, %v5216_v49 }
 0x32c   : > { %5725 = vst [vmem:[#allocation6_spill] sm:$0xff] %v5382_v9 }
 0x32d   : > { %v3440_v63 = vadd.f32 %v3439_v19, %v3401_v10  ;;  %v2929_v1 = vadd.f32 %v2874_v39, %v2655_v31 }
 0x32e   : > { %v2057_v55 = vpop.f32.mrf.mxu1 }
 0x32f   : > { %v2876_v7 = vpop.f32.mrf.mxu0  ;;  %v2328_v43 = vpop.f32.mrf.mxu2  ;;  %v3441_v32 = vadd.f32 %v3440_v63, %v3402_v34  ;;  %v5388_v25 = vmax.f32 %v2929_v1, 0.0  ;;  %v5728_v34 = vld [vmem:[#allocation7_spill] sm:$0xff]  ;;  %v3407_v1 = vmul.f32 %v5351_v48, %v5248_v37 }
 0x330   : > { %v2382_v50 = vadd.f32 %v2328_v43, %v2108_v30  ;;  %v3406_v43 = vmul.f32 %v5347_v58, %v5235_v29 }
 0x331   : > { %v3442_v15 = vadd.f32 %v3441_v32, %v3403_v26 }
 0x332   : > { %v2602_v40 = vpop.f32.mrf.mxu3 }
 0x333   : > { %v2656_v0 = vadd.f32 %v2602_v40, %v2382_v50  ;;  %v5392_v50 = vpop.permute.xlu2 %3311  ;;  %v3443_v31 = vadd.f32 %v3442_v15, %v3404_v33  ;;  %v2109_v40 = vadd.f32 %v2057_v55, %v5728_v34  ;;  %v5404_v33 = vpop.permute.xlu1 %3321  ;;  %v3409_v55 = vmul.f32 %v5366_v61, %v5265_v38 }
 0x334   : > { %5727 = vst [vmem:[#allocation32_spill] sm:$0xff] %v5392_v50 }
 0x335   : > { %v2930_v23 = vadd.f32 %v2876_v7, %v2656_v0  ;;  %v3444_v26 = vadd.f32 %v3443_v31, %v3405_v21 }
 0x336   : > { %v2059_v30 = vpop.f32.mrf.mxu1 }
 0x337   : > { %v5390_v19 = vmax.f32 %v2930_v23, 0.0  ;;  %v2879_v10 = vpop.f32.mrf.mxu0  ;;  %v2331_v39 = vpop.f32.mrf.mxu2  ;;  %v3445_v32 = vadd.f32 %v3444_v26, %v3406_v43  ;;  %v3408_v23 = vmul.f32 %v5262_v12, %v5250_v46  ;;  %v2110_v15 = vadd.f32 %v2059_v30, %v4950_v24 }
 0x338   : > { %v2383_v0 = vadd.f32 %v2331_v39, %v2109_v40  ;;  %v3410_v39 = vmul.f32 %v5373_v36, %v5267_v17  ;;  %v3411_v24 = vmul.f32 %v5279_v45, %v5288_v22 }
 0x339   : > { %5726 = vst [vmem:[#allocation31_spill] sm:$0xff] %v5390_v19  ;;  %v4214_v7 = vpack.c.bf16 %v5390_v19, %v5388_v25  ;;  %v3446_v14 = vadd.f32 %v3445_v32, %v3407_v1  ;;  %v5417_v32 = vpop.permute.xlu0 %3331 }
 0x33a   : > { %v2605_v63 = vpop.f32.mrf.mxu3  ;;  %5730 = vst [vmem:[#allocation33_spill] sm:$0xff] %v5417_v32 }
 0x33b   : > { %4270 = vst [vmem:[%s5123_s14 + $0x78] sm:$0xff] %v4214_v7   ;;  %v2657_v34 = vadd.f32 %v2605_v63, %v2383_v0  ;;  %v3447_v48 = vadd.f32 %v3446_v14, %v3408_v23  ;;  %v5411_v43 = vpop.permute.xlu2 %3326  ;;  %v3412_v63 = vmul.f32 %v5382_v9, %v5290_v41  ;;  %s4282_s18 = spop %4281 }
 0x33c   : > { %5729 = vst [vmem:[#allocation7_spill] sm:$0xff] %v5411_v43  ;;  %s3188_s16 = smax.f32 %s4341_s15, %s4282_s18 }
 0x33d   : > { %v3448_v40 = vadd.f32 %v3447_v48, %v3409_v55  ;;  %v2931_v30 = vadd.f32 %v2879_v10, %v2657_v34 }
 0x33e   : > { %v2062_v58 = vpop.f32.mrf.mxu1 }
 0x33f   : > { %v2881_v21 = vpop.f32.mrf.mxu0  ;;  %v2333_v31 = vpop.f32.mrf.mxu2  ;;  %v3449_v1 = vadd.f32 %v3448_v40, %v3410_v39  ;;  %v5734_v39 = vld [vmem:[#allocation27_spill] sm:$0xff] }
 0x340   : > { %v2384_v60 = vadd.f32 %v2333_v31, %v2110_v15  ;;  %v3413_v15 = vmul.f32 %v5392_v50, %v5305_v27  ;;  %v5421_v31 = vmax.f32 %v2931_v30, 0.0  ;;  %v3415_v30 = vmul.f32 %v5404_v33, %v5322_v16 }
 0x341   : > { %v3450_v23 = vadd.f32 %v3449_v1, %v3411_v24  ;;  %v5442_v36 = vpop.permute.xlu0 %3346 }
 0x342   : > { %v2607_v7 = vpop.f32.mrf.mxu3  ;;  %5731 = vst [vmem:[#allocation34_spill] sm:$0xff] %v5421_v31 }
 0x343   : > { %v2658_v26 = vadd.f32 %v2607_v7, %v2384_v60  ;;  %v5425_v60 = vpop.permute.xlu1 %3336  ;;  %v3451_v34 = vadd.f32 %v3450_v23, %v3412_v63  ;;  %v5735_v7 = vld [vmem:[#allocation22_spill] sm:$0xff]  ;;  %v5435_v50 = vpop.permute.xlu2 %3341  ;;  %v3416_v63 = vmul.f32 %v5411_v43, %v5324_v4  ;;  %v5738_v23 = vld [vmem:[#allocation9_spill] sm:$0xff] }
 0x344   : > { %5733 = vst [vmem:[#allocation36_spill] sm:$0xff] %v5425_v60 }
 0x345   : > { %v2932_v0 = vadd.f32 %v2881_v21, %v2658_v26  ;;  %v3414_v21 = vmul.f32 %v5735_v7, %v5734_v39  ;;  %v5736_v26 = vld [vmem:[#allocation8_spill] sm:$0xff]  ;;  %v3452_v9 = vadd.f32 %v3451_v34, %v3413_v15  ;;  %5739 = vst [vmem:[#allocation9_spill] sm:$0xff] %v5442_v36 }
 0x346   : > { %v2064_v14 = vpop.f32.mrf.mxu1  ;;  %v2111_v24 = vadd.f32 %v2062_v58, %v5736_v26  ;;  %5737 = vst [vmem:[#allocation8_spill] sm:$0xff] %v5435_v50  ;;  %v3417_v58 = vmul.f32 %v5417_v32, %v5357_v28 }
 0x347   : > { %v5423_v48 = vmax.f32 %v2932_v0, 0.0  ;;  %v2884_v55 = vpop.f32.mrf.mxu0  ;;  %v2336_v10 = vpop.f32.mrf.mxu2  ;;  %v3453_v45 = vadd.f32 %v3452_v9, %v3414_v21  ;;  %v2112_v7 = vadd.f32 %v2064_v14, %v5738_v23  ;;  %v3418_v9 = vmul.f32 %v5425_v60, %v5359_v13 }
 0x348   : > { %v2385_v0 = vadd.f32 %v2336_v10, %v2111_v24 }
 0x349   : > { %5732 = vst [vmem:[#allocation35_spill] sm:$0xff] %v5423_v48  ;;  %v4219_v40 = vpack.c.bf16 %v5423_v48, %v5421_v31  ;;  %v3454_v27 = vadd.f32 %v3453_v45, %v3415_v30  ;;  %v3419_v45 = vmul.f32 %v5435_v50, %v5388_v25 }
 0x34a   : > { %v2610_v1 = vpop.f32.mrf.mxu3 }
 0x34b   : > { %4271 = vst [vmem:[%s5123_s14 + $0x80] sm:$0xff] %v4219_v40   ;;  %v2659_v26 = vadd.f32 %v2610_v1, %v2385_v0  ;;  %v3455_v10 = vadd.f32 %v3454_v27, %v3416_v63  ;;  %v5446_v21 = vpop.permute.xlu1 %3351  ;;  %v3420_v1 = vmul.f32 %v5442_v36, %v5390_v19  ;;  %v5452_v32 = vpop.permute.xlu2 %3356  ;;  %v5742_v27 = vld [vmem:[#allocation10_spill] sm:$0xff] }
 0x34c   : > { %5740 = vst [vmem:[#allocation37_spill] sm:$0xff] %v5446_v21 }
 0x34d   : > { %v3456_v43 = vadd.f32 %v3455_v10, %v3417_v58  ;;  %v2933_v14 = vadd.f32 %v2884_v55, %v2659_v26  ;;  %5741 = vst [vmem:[#allocation38_spill] sm:$0xff] %v5452_v32  ;;  %v3421_v58 = vmul.f32 %v5446_v21, %v5421_v31 }
 0x34e   : > { %v2067_v39 = vpop.f32.mrf.mxu1 }
 0x34f   : > { %v2886_v15 = vpop.f32.mrf.mxu0  ;;  %v2338_v34 = vpop.f32.mrf.mxu2  ;;  %v3457_v23 = vadd.f32 %v3456_v43, %v3418_v9  ;;  %v5457_v10 = vmax.f32 %v2933_v14, 0.0 }
 0x350   : > { %v2386_v40 = vadd.f32 %v2338_v34, %v2112_v7  ;;  %v2113_v7 = vadd.f32 %v2067_v39, %v5742_v27  ;;  %v5465_v9 = vpop.permute.xlu0 %3361 }
 0x351   : > { %v3458_v34 = vadd.f32 %v3457_v23, %v3419_v45  ;;  %5743 = vst [vmem:[#allocation10_spill] sm:$0xff] %v5457_v10  ;;  %v3423_v14 = vmul.f32 %v5465_v9, %v5457_v10 }
 0x352   : > { %v2612_v24 = vpop.f32.mrf.mxu3  ;;  %5744 = vst [vmem:[#allocation39_spill] sm:$0xff] %v5465_v9 }
 0x353   : > { %v2660_v30 = vadd.f32 %v2612_v24, %v2386_v40  ;;  %v3459_v40 = vadd.f32 %v3458_v34, %v3420_v1  ;;  %v5470_v23 = vpop.permute.xlu1 %3366  ;;  %v5477_v36 = vpop.permute.xlu2 %3371 }
 0x354   : > { %5745 = vst [vmem:[#allocation40_spill] sm:$0xff] %v5470_v23 }
 0x355   : > { %v2934_v0 = vadd.f32 %v2886_v15, %v2660_v30  ;;  %v3422_v15 = vmul.f32 %v5452_v32, %v5423_v48  ;;  %v3460_v45 = vadd.f32 %v3459_v40, %v3421_v58 }
 0x356   : > { %v2069_v63 = vpop.f32.mrf.mxu1 }
 0x357   : > { %v5459_v50 = vmax.f32 %v2934_v0, 0.0  ;;  %v2889_v55 = vpop.f32.mrf.mxu0  ;;  %v2341_v43 = vpop.f32.mrf.mxu2  ;;  %v3461_v0 = vadd.f32 %v3460_v45, %v3422_v15 }
 0x358   : > { %v2387_v26 = vadd.f32 %v2341_v43, %v2113_v7  ;;  %v5746_v7 = vld [vmem:[#allocation11_spill] sm:$0xff] }
 0x359   : > { %v4224_v39 = vpack.c.bf16 %v5459_v50, %v5457_v10  ;;  %v3424_v1 = vmul.f32 %v5470_v23, %v5459_v50  ;;  %v2114_v34 = vadd.f32 %v2069_v63, %v5746_v7  ;;  %v3462_v43 = vadd.f32 %v3461_v0, %v3423_v14  ;;  %5747 = vst [vmem:[#allocation11_spill] sm:$0xff] %v5477_v36 }
 0x35a   : > { %v2615_v24 = vpop.f32.mrf.mxu3 }
 0x35b   : > { %4272 = vst [vmem:[%s5123_s14 + $0x88] sm:$0xff] %v4224_v39   ;;  %v2661_v30 = vadd.f32 %v2615_v24, %v2387_v26  ;;  %v3463_v9 = vadd.f32 %v3462_v43, %v3424_v1 }
 0x35d   : > { %v2935_v27 = vadd.f32 %v2889_v55, %v2661_v30  ;;  %v5748_v30 = vld [vmem:[#allocation12_spill] sm:$0xff] }
 0x35e   : > { %v2072_v15 = vpop.f32.mrf.mxu1 }
 0x35f   : > { %v5475_v32 = vmax.f32 %v2935_v27, 0.0  ;;  %v2343_v21 = vpop.f32.mrf.mxu2  ;;  %v2891_v58 = vpop.f32.mrf.mxu0  ;;  %v2115_v63 = vadd.f32 %v2072_v15, %v5748_v30  ;;  %v5749_v15 = vld [vmem:[#allocation13_spill] sm:$0xff] }
 0x360   : > { %v2388_v40 = vadd.f32 %v2343_v21, %v2114_v34  ;;  %v5484_v27 = vpop.permute.xlu0 %3376 }
 0x361   : > { %v3425_v26 = vmul.f32 %v5477_v36, %v5475_v32 }
 0x362   : > { %v2617_v39 = vpop.f32.mrf.mxu3 }
 0x363   : > { %v3464_v24 = vadd.f32 %v3463_v9, %v3425_v26  ;;  %v2662_v45 = vadd.f32 %v2617_v39, %v2388_v40 }
 0x365   : > { %v2936_v55 = vadd.f32 %v2891_v58, %v2662_v45  ;;  %v3474_v45 = vstv %s3188_s16 }
 0x366   : > { %v2074_v40 = vpop.f32.mrf.mxu1  ;;  %4313 = vrcp.f32 %v3474_v45  ;;  %vm3480_vm3 = vweird.f32 %v3474_v45 }
 0x367   : > { %v5482_v14 = vmax.f32 %v2936_v55, 0.0  ;;  %v2346_v0 = vpop.f32.mrf.mxu2  ;;  %v2894_v34 = vpop.f32.mrf.mxu0  ;;  %v2116_v39 = vadd.f32 %v2074_v40, %v5749_v15 }
 0x368   : > { %v2389_v7 = vadd.f32 %v2346_v0, %v2115_v63  ;;  %v3382_v63 = vpop.permute.xlu1 %3381 }
 0x369   : > { %v4229_v21 = vpack.c.bf16 %v5482_v14, %v5475_v32  ;;  %v3426_v1 = vmul.f32 %v5484_v27, %v5482_v14 }
 0x36a   : > { %v2620_v43 = vpop.f32.mrf.mxu3 }
 0x36b   : > { %4273 = vst [vmem:[%s5123_s14 + $0x90] sm:$0xff] %v4229_v21   ;;  %v3465_v9 = vadd.f32 %v3464_v24, %v3426_v1  ;;  %v2663_v58 = vadd.f32 %v2620_v43, %v2389_v7  ;;  %v3387_v43 = vpop.permute.xlu2 %3386 }
 0x36c   : > { %v4314_v1 = vpop.eup %4313 }
 0x36d   : > { %v2937_v26 = vadd.f32 %v2894_v34, %v2663_v58  ;;  %v3476_v40 = vmul.f32 %v4314_v1, %v3474_v45  ;;  %vm3481_vm4 = vweird.f32 %v4314_v1 }
 0x36e   : > { %vm3482_vm5 = vmor %vm3480_vm3, %vm3481_vm4 }
 0x36f   : > { %v2977_v55 = vmax.f32 %v2937_v26, 0.0  ;;  %v2348_v30 = vpop.f32.mrf.mxu2  ;;  %v2896_v21 = vpop.f32.mrf.mxu0  ;;  %v3477_v31 = vsub.f32 1.0, %v3476_v40  ;;  %v5750_v40 = vld [vmem:[#allocation14_spill] sm:$0xff] }
 0x370   : > { %v2390_v0 = vadd.f32 %v2348_v30, %v2116_v39 }
 0x371   : > { %v3427_v36 = vmul.f32 %v3382_v63, %v2977_v55  ;;  %v3478_v30 = vmul.f32 %v4314_v1, %v3477_v31 }
 0x372   : > { %v2622_v23 = vpop.f32.mrf.mxu3 }
 0x373   : > { %v3466_v10 = vadd.f32 %v3465_v9, %v3427_v36  ;;  %v2664_v48 = vadd.f32 %v2622_v23, %v2390_v0  ;;  %v3486_v23 = vand.u32 2147483648, %v3474_v45  ;;  %v3484_v9 = vand.u32 2147483647, %v3474_v45 }
 0x375   : > { %v2938_v24 = vadd.f32 %v2896_v21, %v2664_v48  ;;  %v3479_v48 = vadd.f32 %v4314_v1, %v3478_v30  ;;  %vm3485_vm6 = vcmp.eq.f32.partialorder %v3484_v9, 8.507059e+37 }
 0x377   : > { %v2978_v7 = vmax.f32 %v2938_v24, 0.0  ;;  %v3483_v21 = vsel %vm3482_vm5, %v4314_v1, %v3479_v48  ;;  %v5753_v48 = vld [vmem:[#allocation19_spill] sm:$0xff] }
 0x379   : > { %v4234_v34 = vpack.c.bf16 %v2978_v7, %v2977_v55  ;;  %v3428_v58 = vmul.f32 %v3387_v43, %v2978_v7 }
 0x37b   : > { %4274 = vst [vmem:[%s5123_s14 + $0x98] sm:$0xff] %v4234_v34   ;;  %v3467_v26 = vadd.f32 %v3466_v10, %v3428_v58  ;;  %v3487_v10 = vor.u32 1.1754944e-38, %v3486_v23  ;;  %v5752_v23 = vld [vmem:[#allocation17_spill] sm:$0xff] }
 0x37d   : > { %v3468_v15 = vrot.slane %v3467_v26, 4  ;;  %v3488_v24 = vsel %vm3485_vm6, %v3487_v10, %v3483_v21  ;;  %v5754_v10 = vld [vmem:[#allocation21_spill] sm:$0xff] }
 0x37f   : > { %v3469_v60 = vadd.f32 %v3468_v15, %v3467_v26  ;;  %v5751_v26 = vld [vmem:[#allocation15_spill] sm:$0xff] }
 0x381   : > { %v3470_v39 = vrot.slane %v3469_v60, 2 }
 0x383   : > { %v3471_v19 = vadd.f32 %v3470_v39, %v3469_v60 }
 0x385   : > { %v3472_v36 = vrot.slane %v3471_v19, 1 }
 0x387   : > { %v3473_v0 = vadd.f32 %v3472_v36, %v3471_v19 }
 0x389   : > { %3570 = vst [vmem:[%s409_s20] sm:$0x1] %v3473_v0  ;;  %v5497_v34 = vmul.f32 %v3488_v24, %v3473_v0 }
 0x38b   : > { %v3525_v31 = vsub.f32 %v5459_v50, %v5497_v34  ;;  %v3526_v60 = vsub.f32 %v5475_v32, %v5497_v34  ;;  %v3527_v58 = vsub.f32 %v5482_v14, %v5497_v34  ;;  %v3528_v45 = vsub.f32 %v2977_v55, %v5497_v34 }
 0x38c   : > { %v3529_v19 = vsub.f32 %v2978_v7, %v5497_v34  ;;  %v3490_v1 = vsub.f32 %v5750_v40, %v5497_v34  ;;  %v3491_v15 = vsub.f32 %v5751_v26, %v5497_v34  ;;  %v3492_v14 = vsub.f32 %v5136_v57, %v5497_v34 }
 0x38d   : > { %v5512_v39 = vmul.f32 %v3527_v58, %v5484_v27  ;;  %v5514_v30 = vmul.f32 %v3528_v45, %v3382_v63  ;;  %v3493_v9 = vsub.f32 %v5138_v35, %v5497_v34  ;;  %v3494_v0 = vsub.f32 %v5149_v8, %v5497_v34 }
 0x38e   : > { %v5516_v36 = vmul.f32 %v3529_v19, %v3387_v43  ;;  %v3530_v55 = vmul.f32 %v3490_v1, %v5752_v23  ;;  %v3531_v7 = vmul.f32 %v3491_v15, %v5753_v48  ;;  %v3532_v27 = vmul.f32 %v3492_v14, %v5754_v10 }
 0x38f   : > { %v3495_v43 = vsub.f32 %v5151_v5, %v5497_v34  ;;  %v3533_v24 = vmul.f32 %v3493_v9, %v5275_v44  ;;  %v3496_v57 = vsub.f32 %v5162_v52, %v5497_v34  ;;  %v3534_v58 = vmul.f32 %v3494_v0, %v5284_v47  ;;  %v5755_v5 = vld [vmem:[#allocation23_spill] sm:$0xff]  ;;  %v5756_v52 = vld [vmem:[#allocation16_spill] sm:$0xff] }
 0x390   : > { %v3571_v21 = vmul.f32 %v3530_v55, %v3530_v55  ;;  %v3572_v63 = vmul.f32 %v3531_v7, %v3531_v7  ;;  %v3573_v45 = vmul.f32 %v3532_v27, %v3532_v27  ;;  %v3497_v35 = vsub.f32 %v5164_v56, %v5497_v34  ;;  %v5757_v47 = vld [vmem:[#allocation24_spill] sm:$0xff] }
 0x391   : > { %v3535_v8 = vmul.f32 %v3495_v43, %v5295_v20  ;;  %v3574_v40 = vmul.f32 %v3533_v24, %v3533_v24  ;;  %v3498_v26 = vsub.f32 %v5175_v62, %v5497_v34  ;;  %v3536_v15 = vmul.f32 %v3496_v57, %v5755_v5  ;;  %v5758_v20 = vld [vmem:[#allocation25_spill] sm:$0xff]  ;;  %v5759_v27 = vld [vmem:[#allocation28_spill] sm:$0xff] }
 0x392   : > { %v3611_v19 = vadd.f32 %v3572_v63, %v3571_v21  ;;  %v3575_v44 = vmul.f32 %v3534_v58, %v3534_v58  ;;  %v3499_v23 = vsub.f32 %v5756_v52, %v5497_v34  ;;  %v3537_v55 = vmul.f32 %v3497_v35, %v5757_v47  ;;  %v5760_v57 = vld [vmem:[#allocation29_spill] sm:$0xff] }
 0x393   : > { %v3576_v48 = vmul.f32 %v3535_v8, %v3535_v8  ;;  %v3500_v56 = vsub.f32 %v5188_v42, %v5497_v34  ;;  %v3538_v9 = vmul.f32 %v3498_v26, %v5758_v20  ;;  %v3577_v0 = vmul.f32 %v3536_v15, %v3536_v15 }
 0x394   : > { %v3612_v1 = vadd.f32 %v3611_v19, %v3573_v45  ;;  %v3501_v62 = vsub.f32 %v5190_v11, %v5497_v34  ;;  %v3539_v21 = vmul.f32 %v3499_v23, %v5759_v27  ;;  %v3578_v63 = vmul.f32 %v3537_v55, %v3537_v55 }
 0x395   : > { %v3502_v24 = vsub.f32 %v5201_v54, %v5497_v34  ;;  %v3540_v58 = vmul.f32 %v3500_v56, %v5760_v57  ;;  %v3579_v45 = vmul.f32 %v3538_v9, %v3538_v9  ;;  %v3503_v42 = vsub.f32 %v5203_v18, %v5497_v34 }
 0x396   : > { %v3613_v14 = vadd.f32 %v3612_v1, %v3574_v40  ;;  %v3541_v35 = vmul.f32 %v3501_v62, %v5318_v6  ;;  %v3580_v8 = vmul.f32 %v3539_v21, %v3539_v21  ;;  %v3504_v11 = vsub.f32 %v5214_v59, %v5497_v34  ;;  %v5764_v62 = vld [vmem:[#allocation30_spill] sm:$0xff] }
 0x397   : > { %v3542_v1 = vmul.f32 %v3502_v24, %v5320_v53  ;;  %v3581_v26 = vmul.f32 %v3540_v58, %v3540_v58  ;;  %v3505_v54 = vsub.f32 %v5216_v49, %v5497_v34  ;;  %v3543_v15 = vmul.f32 %v3503_v42, %v5243_v3  ;;  %v5761_v53 = vld [vmem:[#allocation3_spill] sm:$0xff]  ;;  %v5762_v3 = vld [vmem:[#allocation18_spill] sm:$0xff]  ;;  %v5765_v42 = vld [vmem:[#allocation5_spill] sm:$0xff] }
 0x398   : > { %v3614_v7 = vadd.f32 %v3613_v14, %v3575_v44  ;;  %v3582_v44 = vmul.f32 %v3541_v35, %v3541_v35  ;;  %v3506_v18 = vsub.f32 %v5233_v2, %v5497_v34  ;;  %v3544_v6 = vmul.f32 %v3504_v11, %v5331_v51  ;;  %v5763_v51 = vld [vmem:[#allocation4_spill] sm:$0xff] }
 0x399   : > { %v3583_v52 = vmul.f32 %v3542_v1, %v3542_v1  ;;  %v3507_v59 = vsub.f32 %v5235_v29, %v5497_v34  ;;  %v3545_v47 = vmul.f32 %v3505_v54, %v5761_v53  ;;  %v3584_v55 = vmul.f32 %v3543_v15, %v3543_v15  ;;  %v5771_v53 = vld [vmem:[#allocation22_spill] sm:$0xff] }
 0x39a   : > { %v3615_v10 = vadd.f32 %v3614_v7, %v3576_v48  ;;  %v3508_v49 = vsub.f32 %v5248_v37, %v5497_v34  ;;  %v3546_v7 = vmul.f32 %v3506_v18, %v5762_v3  ;;  %v3585_v56 = vmul.f32 %v3544_v6, %v3544_v6  ;;  %v5770_v18 = vld [vmem:[#allocation32_spill] sm:$0xff] }
 0x39b   : > { %v3509_v2 = vsub.f32 %v5250_v46, %v5497_v34  ;;  %v3547_v9 = vmul.f32 %v3507_v59, %v5763_v51  ;;  %v3510_v29 = vsub.f32 %v5265_v38, %v5497_v34  ;;  %v3511_v37 = vsub.f32 %v5267_v17, %v5497_v34  ;;  %v5766_v17 = vld [vmem:[#allocation26_spill] sm:$0xff] }
 0x39c   : > { %v3616_v43 = vadd.f32 %v3615_v10, %v3577_v0  ;;  %v3586_v0 = vmul.f32 %v3545_v47, %v3545_v47  ;;  %v3548_v27 = vmul.f32 %v3508_v49, %v5764_v62  ;;  %v3587_v21 = vmul.f32 %v3546_v7, %v3546_v7 }
 0x39d   : > { %v3588_v24 = vmul.f32 %v3547_v9, %v3547_v9  ;;  %v3512_v46 = vsub.f32 %v5288_v22, %v5497_v34  ;;  %v3550_v58 = vmul.f32 %v3510_v29, %v5366_v61  ;;  %v3513_v38 = vsub.f32 %v5290_v41, %v5497_v34  ;;  %v5768_v22 = vld [vmem:[#allocation27_spill] sm:$0xff]  ;;  %v5769_v61 = vld [vmem:[#allocation6_spill] sm:$0xff] }
 0x39e   : > { %v3617_v19 = vadd.f32 %v3616_v43, %v3578_v63  ;;  %v3549_v43 = vmul.f32 %v3509_v2, %v5262_v12  ;;  %v3551_v35 = vmul.f32 %v3511_v37, %v5765_v42  ;;  %v3514_v11 = vsub.f32 %v5766_v17, %v5497_v34  ;;  %v5767_v12 = vld [vmem:[#allocation20_spill] sm:$0xff]  ;;  %v5781_v17 = vld [vmem:[#allocation37_spill] sm:$0xff] }
 0x39f   : > { %v3552_v1 = vmul.f32 %v3512_v46, %v5767_v12  ;;  %v3515_v54 = vsub.f32 %v5768_v22, %v5497_v34  ;;  %v3553_v15 = vmul.f32 %v3513_v38, %v5769_v61  ;;  %v3516_v41 = vsub.f32 %v5322_v16, %v5497_v34  ;;  %v5783_v61 = vld [vmem:[#allocation39_spill] sm:$0xff] }
 0x3a0   : > { %v3618_v40 = vadd.f32 %v3617_v19, %v3579_v45  ;;  %v3589_v45 = vmul.f32 %v3548_v27, %v3548_v27  ;;  %v3554_v6 = vmul.f32 %v3514_v11, %v5770_v18  ;;  %v3517_v59 = vsub.f32 %v5324_v4, %v5497_v34 }
 0x3a1   : > { %v3555_v47 = vmul.f32 %v3515_v54, %v5771_v53  ;;  %v3518_v49 = vsub.f32 %v5357_v28, %v5497_v34  ;;  %v3556_v3 = vmul.f32 %v3516_v41, %v5404_v33  ;;  %v3519_v16 = vsub.f32 %v5359_v13, %v5497_v34  ;;  %v5774_v28 = vld [vmem:[#allocation31_spill] sm:$0xff]  ;;  %v5775_v33 = vld [vmem:[#allocation36_spill] sm:$0xff]  ;;  %v5776_v13 = vld [vmem:[#allocation34_spill] sm:$0xff] }
 0x3a2   : > { %v3619_v5 = vadd.f32 %v3618_v40, %v3580_v8  ;;  %v3590_v8 = vmul.f32 %v3549_v43, %v3549_v43  ;;  %v3595_v7 = vmul.f32 %v3554_v6, %v3554_v6  ;;  %v3520_v4 = vsub.f32 %v5388_v25, %v5497_v34  ;;  %v5778_v25 = vld [vmem:[#allocation35_spill] sm:$0xff]  ;;  %v5784_v41 = vld [vmem:[#allocation40_spill] sm:$0xff] }
 0x3a3   : > { %v3596_v51 = vmul.f32 %v3555_v47, %v3555_v47  ;;  %v3597_v29 = vmul.f32 %v3556_v3, %v3556_v3  ;;  %v3521_v27 = vsub.f32 %v5774_v28, %v5497_v34  ;;  %v3522_v43 = vsub.f32 %v5776_v13, %v5497_v34 }
 0x3a4   : > { %v3620_v14 = vadd.f32 %v3619_v5, %v3581_v26  ;;  %v3591_v26 = vmul.f32 %v3550_v58, %v3550_v58  ;;  %v3565_v18 = vmul.f32 %v3525_v31, %v5784_v41  ;;  %v3609_v50 = vmul.f32 %v5514_v30, %v5514_v30 }
 0x3a5   : > { %v3562_v11 = vmul.f32 %v3522_v43, %v5781_v17 }
 0x3a6   : > { %v3621_v23 = vadd.f32 %v3620_v14, %v3582_v44  ;;  %v3592_v44 = vmul.f32 %v3551_v35, %v3551_v35 }
 0x3a8   : > { %v3622_v48 = vadd.f32 %v3621_v23, %v3583_v52  ;;  %v3593_v52 = vmul.f32 %v3552_v1, %v3552_v1 }
 0x3aa   : > { %v3623_v20 = vadd.f32 %v3622_v48, %v3584_v55  ;;  %v3594_v55 = vmul.f32 %v3553_v15, %v3553_v15 }
 0x3ac   : > { %v3624_v10 = vadd.f32 %v3623_v20, %v3585_v56  ;;  %v5772_v20 = vld [vmem:[#allocation7_spill] sm:$0xff] }
 0x3ad   : > { %v3557_v2 = vmul.f32 %v3517_v59, %v5772_v20 }
 0x3ae   : > { %v3625_v63 = vadd.f32 %v3624_v10, %v3586_v0  ;;  %v5773_v0 = vld [vmem:[#allocation33_spill] sm:$0xff] }
 0x3af   : > { %v3558_v10 = vmul.f32 %v3518_v49, %v5773_v0 }
 0x3b0   : > { %v3626_v57 = vadd.f32 %v3625_v63, %v3587_v21  ;;  %v3559_v21 = vmul.f32 %v3519_v16, %v5775_v33  ;;  %v3598_v63 = vmul.f32 %v3557_v2, %v3557_v2  ;;  %v3610_v16 = vmul.f32 %v5516_v36, %v5516_v36 }
 0x3b1   : > { %v3599_v46 = vmul.f32 %v3558_v10, %v3558_v10 }
 0x3b2   : > { %v3627_v19 = vadd.f32 %v3626_v57, %v3588_v24  ;;  %v5777_v24 = vld [vmem:[#allocation8_spill] sm:$0xff]  ;;  %v3600_v42 = vmul.f32 %v3559_v21, %v3559_v21 }
 0x3b3   : > { %v3560_v57 = vmul.f32 %v3520_v4, %v5777_v24 }
 0x3b4   : > { %v3628_v40 = vadd.f32 %v3627_v19, %v3589_v45  ;;  %v3523_v45 = vsub.f32 %v5778_v25, %v5497_v34  ;;  %v5779_v19 = vld [vmem:[#allocation9_spill] sm:$0xff] }
 0x3b5   : > { %v3561_v38 = vmul.f32 %v3521_v27, %v5779_v19  ;;  %v3601_v12 = vmul.f32 %v3560_v57, %v3560_v57 }
 0x3b6   : > { %v3629_v5 = vadd.f32 %v3628_v40, %v3590_v8  ;;  %v5780_v8 = vld [vmem:[#allocation10_spill] sm:$0xff] }
 0x3b7   : > { %v3524_v40 = vsub.f32 %v5780_v8, %v5497_v34  ;;  %v3602_v22 = vmul.f32 %v3561_v38, %v3561_v38 }
 0x3b8   : > { %v3630_v14 = vadd.f32 %v3629_v5, %v3591_v26  ;;  %v5782_v26 = vld [vmem:[#allocation38_spill] sm:$0xff] }
 0x3b9   : > { %v3563_v5 = vmul.f32 %v3523_v45, %v5782_v26  ;;  %v3564_v15 = vmul.f32 %v3524_v40, %v5783_v61 }
 0x3ba   : > { %v3631_v23 = vadd.f32 %v3630_v14, %v3592_v44  ;;  %v3603_v44 = vmul.f32 %v3562_v11, %v3562_v11 }
 0x3bb   : > { %v3604_v6 = vmul.f32 %v3563_v5, %v3563_v5  ;;  %v3605_v53 = vmul.f32 %v3564_v15, %v3564_v15 }
 0x3bc   : > { %v3632_v48 = vadd.f32 %v3631_v23, %v3593_v52  ;;  %v5785_v23 = vld [vmem:[#allocation11_spill] sm:$0xff] }
 0x3bd   : > { %v3566_v59 = vmul.f32 %v3526_v60, %v5785_v23 }
 0x3be   : > { %v3633_v56 = vadd.f32 %v3632_v48, %v3594_v55  ;;  %v3606_v55 = vmul.f32 %v3565_v18, %v3565_v18 }
 0x3bf   : > { %v3607_v49 = vmul.f32 %v3566_v59, %v3566_v59 }
 0x3c0   : > { %v3634_v9 = vadd.f32 %v3633_v56, %v3595_v7  ;;  %v3608_v7 = vmul.f32 %v5512_v39, %v5512_v39 }
 0x3c2   : > { %v3635_v62 = vadd.f32 %v3634_v9, %v3596_v51 }
 0x3c4   : > { %v3636_v37 = vadd.f32 %v3635_v62, %v3597_v29 }
 0x3c6   : > { %v3637_v58 = vadd.f32 %v3636_v37, %v3598_v63 }
 0x3c8   : > { %v3638_v35 = vadd.f32 %v3637_v58, %v3599_v46 }
 0x3ca   : > { %v3639_v1 = vadd.f32 %v3638_v35, %v3600_v42 }
 0x3cc   : > { %v3640_v54 = vadd.f32 %v3639_v1, %v3601_v12 }
 0x3ce   : > { %v3641_v14 = vadd.f32 %v3640_v54, %v3602_v22 }
 0x3d0   : > { %v3642_v52 = vadd.f32 %v3641_v14, %v3603_v44 }
 0x3d2   : > { %v3643_v47 = vadd.f32 %v3642_v52, %v3604_v6 }
 0x3d4   : > { %v3644_v48 = vadd.f32 %v3643_v47, %v3605_v53 }
 0x3d6   : > { %v3645_v3 = vadd.f32 %v3644_v48, %v3606_v55 }
 0x3d8   : > { %v3646_v56 = vadd.f32 %v3645_v3, %v3607_v49 }
 0x3da   : > { %v3647_v31 = vadd.f32 %v3646_v56, %v3608_v7 }
 0x3dc   : > { %v3648_v32 = vadd.f32 %v3647_v31, %v3609_v50 }
 0x3de   : > { %v3649_v34 = vadd.f32 %v3648_v32, %v3610_v16 }
 0x3e0   : > { %v3650_v60 = vrot.slane %v3649_v34, 4 }
 0x3e2   : > { %v3651_v20 = vadd.f32 %v3650_v60, %v3649_v34 }
 0x3e4   : > { %v3652_v2 = vrot.slane %v3651_v20, 2 }
 0x3e6   : > { %v3653_v51 = vadd.f32 %v3652_v2, %v3651_v20 }
 0x3e8   : > { %v3654_v9 = vrot.slane %v3653_v51, 1 }
 0x3ea   : > { %v3655_v39 = vadd.f32 %v3654_v9, %v3653_v51 }
 0x3ec   : > { %3656 = vst [vmem:[%s415_s27] sm:$0x1] %v3655_v39 }
 0x3ed PF: > { %s17_s23 = sadd.s32 1, %s4338_s23   ;;  %s5786_s21 = smov %s4334_s22 }
 0x3ee   : > { %p14_p5 = scmp.ge.s32.totalorder %s17_s23, 4   ;;  %s5787_s22 = smov %s5789_s24 }
 0x3f0   :  { %16 = sbr.rel (!%p14_p5) target bundleno = 2 (0x2), region = 104 }

</bundles_post_ra>
